<compile_context>
chip_gen: v7x
topology: tpu7x:2x2x1
jax: 0.10.0
libtpu: 0.0.40
codegen_flags: <defaults>
</compile_context>

<pallas_src>
import numpy as np
import jax
import jax.numpy as jnp
from jax.experimental import pallas as pl
from jax.experimental.pallas import tpu as pltpu

C1_IN, C1_OUT = 2, 32
C2_OUT = 64
H, W = 10, 9                  # input spatial
H1, W1 = H - 2, W - 2         # after conv1: 8, 7
H2, W2 = H1 - 2, W1 - 2       # after conv2: 6, 5
IN_FLAT = C1_IN * H * W       # 180
MID_FLAT = C1_OUT * H1 * W1   # 1792
FLAT = C2_OUT * H2 * W2       # 1920
HID = 128
NACT = 4


def _round_up(a, b):
    return (a + b - 1) // b * b


# ---------------------------------------------------------------------------
# Parameter preparation: fold convs into dense matrices, fuse the two heads.
# ---------------------------------------------------------------------------
def _fold_conv(w, hi, wi):
    """Fold a (Cout, Cin, 3, 3) VALID conv into M of shape
    (Cin*hi*wi, Cout*ho*wo) so that  flatten_NCHW(x) @ M == flatten_NCHW(conv(x))."""
    cout, cin, kh, kw = w.shape
    ho, wo = hi - kh + 1, wi - kw + 1
    m = np.zeros((cin, hi, wi, cout, ho, wo), np.float32)
    for dy in range(kh):
        for dx in range(kw):
            for y in range(ho):
                for x in range(wo):
                    m[:, y + dy, x + dx, :, y, x] = w[:, :, dy, dx].T
    return m.reshape(cin * hi * wi, cout * ho * wo)


def prepare_params(raw):
    """PyTorch-layout params -> kernel-layout (folded, fused, bf16) params."""
    r = {k: np.asarray(v, np.float32) for k, v in raw.items()}

    m1 = _fold_conv(r["w_conv1"], H, W)                       # (180, 1792)
    m2 = _fold_conv(r["w_conv2"], H1, W1)                     # (1792, 1920)
    b1 = np.repeat(r["b_conv1"], H1 * W1)[None, :]            # (1, 1792)
    b2 = np.repeat(r["b_conv2"], H2 * W2)[None, :]            # (1, 1920)

    # Fused first FC layer: columns [0:128]=adv hidden, [128:256]=val hidden.
    wh1 = np.concatenate([r["w1a"].T, r["w1v"].T], axis=1)    # (1920, 256)
    bh1 = np.concatenate([r["b1a"], r["b1v"]])[None, :]       # (1, 256)

    # Fused second FC layer: block-diagonal (256, 5); cols 0..3 adv, col 4 val.
    wh2 = np.zeros((2 * HID, NACT + 1), np.float32)
    wh2[:HID, :NACT] = r["w2a"].T
    wh2[HID:, NACT:] = r["w2v"].T
    bh2 = np.concatenate([r["b2a"], r["b2v"]])[None, :]       # (1, 5)

    # Dueling combine as a constant matmul: q = relu_out @ cmb
    #   q_j = adv_j - mean(adv) + val
    cmb = np.zeros((NACT + 1, NACT), np.float32)
    cmb[:NACT, :NACT] = np.eye(NACT, dtype=np.float32) - 1.0 / NACT
    cmb[NACT, :] = 1.0

    return {
        "m1": jnp.asarray(m1, jnp.bfloat16),
        "b1": jnp.asarray(b1, jnp.float32),
        "m2": jnp.asarray(m2, jnp.bfloat16),
        "b2": jnp.asarray(b2, jnp.float32),
        "wh1": jnp.asarray(wh1, jnp.bfloat16),
        "bh1": jnp.asarray(bh1, jnp.float32),
        "wh2": jnp.asarray(wh2, jnp.bfloat16),
        "bh2": jnp.asarray(bh2, jnp.float32),
        "cmb": jnp.asarray(cmb, jnp.float32),
    }


def init_raw_params(key):
    """PyTorch-default (uniform +-1/sqrt(fan_in)) init in PyTorch layouts."""
    ks = jax.random.split(key, 12)

    def u(k, shape, fan_in):
        b = 1.0 / np.sqrt(fan_in)
        return jax.random.uniform(k, shape, jnp.float32, -b, b)

    return {
        "w_conv1": u(ks[0], (C1_OUT, C1_IN, 3, 3), C1_IN * 9),
        "b_conv1": u(ks[1], (C1_OUT,), C1_IN * 9),
        "w_conv2": u(ks[2], (C2_OUT, C1_OUT, 3, 3), C1_OUT * 9),
        "b_conv2": u(ks[3], (C2_OUT,), C1_OUT * 9),
        "w1a": u(ks[4], (HID, FLAT), FLAT),
        "b1a": u(ks[5], (HID,), FLAT),
        "w2a": u(ks[6], (NACT, HID), HID),
        "b2a": u(ks[7], (NACT,), HID),
        "w1v": u(ks[8], (HID, FLAT), FLAT),
        "b1v": u(ks[9], (HID,), FLAT),
        "w2v": u(ks[10], (1, HID), HID),
        "b2v": u(ks[11], (1,), HID),
    }


# ---------------------------------------------------------------------------
# Fused kernel: folded conv1+conv2 + fused dueling FC heads for one batch tile.
# ---------------------------------------------------------------------------
def dueling_qnet_kernel(x_ref, m1_ref, b1_ref, m2_ref, b2_ref,
                        wh1_ref, bh1_ref, wh2_ref, bh2_ref, cmb_ref, o_ref):
    # conv1 (folded dense matmul) + bias + ReLU              -> (TB, 1792)
    h = jnp.dot(x_ref[...], m1_ref[...], preferred_element_type=jnp.float32)
    h = jnp.maximum(h + b1_ref[...], 0.0).astype(jnp.bfloat16)
    # conv2 (folded) + bias + ReLU; layout == torch.flatten  -> (TB, 1920)
    h = jnp.dot(h, m2_ref[...], preferred_element_type=jnp.float32)
    h = jnp.maximum(h + b2_ref[...], 0.0).astype(jnp.bfloat16)
    # fused fc1_adv | fc1_val + ReLU                         -> (TB, 256)
    h = jnp.dot(h, wh1_ref[...], preferred_element_type=jnp.float32)
    h = jnp.maximum(h + bh1_ref[...], 0.0).astype(jnp.bfloat16)
    # fused block-diagonal fc2_adv | fc2_val + ReLU          -> (TB, 5)
    # (the reference module applies ReLU to the final adv/val layers too)
    h = jnp.dot(h, wh2_ref[...], preferred_element_type=jnp.float32)
    h = jnp.maximum(h + bh2_ref[...], 0.0)
    # dueling combine folded into a constant (5, 4) matmul   -> (TB, 4)
    o_ref[...] = jnp.dot(h, cmb_ref[...], preferred_element_type=jnp.float32)


def dueling_qnet_forward(x, params, *, batch_tile=256):
    n = x.shape[0]
    x = x.astype(jnp.float32)                      # mirrors x.type(torch.float32)
    xf = x.reshape(n, IN_FLAT)                     # NCHW flatten (channel-major)

    tb = min(batch_tile, max(8, _round_up(n, 8)))  # batch tile on the M axis
    n_pad = _round_up(n, tb)
    if n_pad != n:
        xf = jnp.pad(xf, ((0, n_pad - n), (0, 0)))
    xf = xf.astype(jnp.bfloat16)                   # bf16 MXU operands, fp32 accum

    const = lambda i: (0, 0)                       # resident weights (no re-DMA)
    out = pl.pallas_call(
        dueling_qnet_kernel,
        out_shape=jax.ShapeDtypeStruct((n_pad, NACT), jnp.float32),
        grid_spec=pltpu.PrefetchScalarGridSpec(
            num_scalar_prefetch=0,
            grid=(n_pad // tb,),
            in_specs=[
                pl.BlockSpec((tb, IN_FLAT), lambda i: (i, 0)),
                pl.BlockSpec((IN_FLAT, MID_FLAT), const),
                pl.BlockSpec((1, MID_FLAT), const),
                pl.BlockSpec((MID_FLAT, FLAT), const),
                pl.BlockSpec((1, FLAT), const),
                pl.BlockSpec((FLAT, 2 * HID), const),
                pl.BlockSpec((1, 2 * HID), const),
                pl.BlockSpec((2 * HID, NACT + 1), const),
                pl.BlockSpec((1, NACT + 1), const),
                pl.BlockSpec((NACT + 1, NACT), const),
            ],
            out_specs=pl.BlockSpec((tb, NACT), lambda i: (i, 0)),
        ),
        compiler_params=pltpu.CompilerParams(
            dimension_semantics=("parallel",)),
    )(xf, params["m1"], params["b1"], params["m2"], params["b2"],
      params["wh1"], params["bh1"], params["wh2"], params["bh2"], params["cmb"])
    return out[:n]


# ---------------------------------------------------------------------------
# Pure-JAX reference (fp32), used to sanity-check the fold/fusion layout.
# ---------------------------------------------------------------------------
def reference_forward(x, raw):
    x = x.astype(jnp.float32)
    h = jax.lax.conv_general_dilated(
        x, raw["w_conv1"], (1, 1), "VALID",
        dimension_numbers=("NCHW", "OIHW", "NCHW"))
    h = jax.nn.relu(h + raw["b_conv1"][None, :, None, None])
    h = jax.lax.conv_general_dilated(
        h, raw["w_conv2"], (1, 1), "VALID",
        dimension_numbers=("NCHW", "OIHW", "NCHW"))
    h = jax.nn.relu(h + raw["b_conv2"][None, :, None, None])
    f = h.reshape(h.shape[0], -1)
    adv = jax.nn.relu(f @ raw["w1a"].T + raw["b1a"])
    adv = jax.nn.relu(adv @ raw["w2a"].T + raw["b2a"])
    val = jax.nn.relu(f @ raw["w1v"].T + raw["b1v"])
    val = jax.nn.relu(val @ raw["w2v"].T + raw["b2v"])
    return val + adv - jnp.mean(adv, axis=1, keepdims=True)


if __name__ == "__main__":
    key = jax.random.PRNGKey(0)
    pkey, xkey = jax.random.split(key)
    raw = init_raw_params(pkey)
    params = prepare_params(raw)

    x = jax.random.uniform(xkey, (2, C1_IN, H, W), jnp.float32)  # NCHW, like PyTorch
    out = jax.block_until_ready(dueling_qnet_forward(x, params))
    assert out.shape == (2, NACT) and out.dtype == jnp.float32

    ref = jax.block_until_ready(reference_forward(x, raw))
    np.testing.assert_allclose(np.asarray(out), np.asarray(ref), rtol=5e-2, atol=5e-2)
    print("KERNEL_OK")
</pallas_src>

<mosaic_0001>
module attributes {stable_mosaic.version = 11 : i64} {
  func.func @dueling_qnet_kernel(%arg0: i32, %arg1: memref<8x180xbf16, #tpu.memory_space<vmem>>, %arg2: memref<180x1792xbf16, #tpu.memory_space<vmem>>, %arg3: memref<1x1792xf32, #tpu.memory_space<vmem>>, %arg4: memref<1792x1920xbf16, #tpu.memory_space<vmem>>, %arg5: memref<1x1920xf32, #tpu.memory_space<vmem>>, %arg6: memref<1920x256xbf16, #tpu.memory_space<vmem>>, %arg7: memref<1x256xf32, #tpu.memory_space<vmem>>, %arg8: memref<256x5xbf16, #tpu.memory_space<vmem>>, %arg9: memref<1x5xf32, #tpu.memory_space<vmem>>, %arg10: memref<5x4xf32, #tpu.memory_space<vmem>>, %arg11: memref<8x4xf32, #tpu.memory_space<vmem>>) attributes {dimension_semantics = [#tpu.dimension_semantics<parallel>], iteration_bounds = array<i64: 1>, scalar_prefetch = 0 : i64, scratch_operands = 0 : i64, tpu.core_type = #tpu.core_type<tc>, window_params = [{transform_indices = @transform_0, window_bounds = array<i64: 8, 180>}, {pipeline_mode = #tpu.pipeline_mode<synchronous>, transform_indices = @transform_1, window_bounds = array<i64: 180, 1792>}, {pipeline_mode = #tpu.pipeline_mode<synchronous>, transform_indices = @transform_2, window_bounds = array<i64: 1, 1792>}, {pipeline_mode = #tpu.pipeline_mode<synchronous>, transform_indices = @transform_3, window_bounds = array<i64: 1792, 1920>}, {pipeline_mode = #tpu.pipeline_mode<synchronous>, transform_indices = @transform_4, window_bounds = array<i64: 1, 1920>}, {pipeline_mode = #tpu.pipeline_mode<synchronous>, transform_indices = @transform_5, window_bounds = array<i64: 1920, 256>}, {pipeline_mode = #tpu.pipeline_mode<synchronous>, transform_indices = @transform_6, window_bounds = array<i64: 1, 256>}, {pipeline_mode = #tpu.pipeline_mode<synchronous>, transform_indices = @transform_7, window_bounds = array<i64: 256, 5>}, {pipeline_mode = #tpu.pipeline_mode<synchronous>, transform_indices = @transform_8, window_bounds = array<i64: 1, 5>}, {pipeline_mode = #tpu.pipeline_mode<synchronous>, transform_indices = @transform_9, window_bounds = array<i64: 5, 4>}, {transform_indices = @transform_10, window_bounds = array<i64: 8, 4>}]} {
    %c0 = arith.constant 0 : index
    %c0_0 = arith.constant 0 : index
    %0 = vector.load %arg1[%c0, %c0_0] : memref<8x180xbf16, #tpu.memory_space<vmem>>, vector<8x180xbf16>
    %c0_1 = arith.constant 0 : index
    %c0_2 = arith.constant 0 : index
    %1 = vector.load %arg2[%c0_1, %c0_2] : memref<180x1792xbf16, #tpu.memory_space<vmem>>, vector<180x1792xbf16>
    %cst = arith.constant dense<0.000000e+00> : vector<8x1792xf32>
    %2 = tpu.matmul %0, %1, %cst {dimension_numbers = #tpu.dot_dimension_numbers<[1], [0], [0], [1], [0, 0, 1, 1], [], []>} : vector<8x180xbf16>, vector<180x1792xbf16>, vector<8x1792xf32> -> vector<8x1792xf32>
    %c0_3 = arith.constant 0 : index
    %c0_4 = arith.constant 0 : index
    %3 = vector.load %arg3[%c0_3, %c0_4] : memref<1x1792xf32, #tpu.memory_space<vmem>>, vector<1x1792xf32>
    %4 = vector.broadcast %3 : vector<1x1792xf32> to vector<8x1792xf32>
    %5 = arith.addf %2, %4 : vector<8x1792xf32>
    %cst_5 = arith.constant 0.000000e+00 : f32
    %6 = vector.broadcast %cst_5 : f32 to vector<8x1792xf32>
    %7 = arith.maximumf %5, %6 : vector<8x1792xf32>
    %8 = arith.truncf %7 : vector<8x1792xf32> to vector<8x1792xbf16>
    %c0_6 = arith.constant 0 : index
    %c0_7 = arith.constant 0 : index
    %9 = vector.load %arg4[%c0_6, %c0_7] : memref<1792x1920xbf16, #tpu.memory_space<vmem>>, vector<1792x1920xbf16>
    %cst_8 = arith.constant dense<0.000000e+00> : vector<8x1920xf32>
    %10 = tpu.matmul %8, %9, %cst_8 {dimension_numbers = #tpu.dot_dimension_numbers<[1], [0], [0], [1], [0, 0, 1, 1], [], []>} : vector<8x1792xbf16>, vector<1792x1920xbf16>, vector<8x1920xf32> -> vector<8x1920xf32>
    %c0_9 = arith.constant 0 : index
    %c0_10 = arith.constant 0 : index
    %11 = vector.load %arg5[%c0_9, %c0_10] : memref<1x1920xf32, #tpu.memory_space<vmem>>, vector<1x1920xf32>
    %12 = vector.broadcast %11 : vector<1x1920xf32> to vector<8x1920xf32>
    %13 = arith.addf %10, %12 : vector<8x1920xf32>
    %cst_11 = arith.constant 0.000000e+00 : f32
    %14 = vector.broadcast %cst_11 : f32 to vector<8x1920xf32>
    %15 = arith.maximumf %13, %14 : vector<8x1920xf32>
    %16 = arith.truncf %15 : vector<8x1920xf32> to vector<8x1920xbf16>
    %c0_12 = arith.constant 0 : index
    %c0_13 = arith.constant 0 : index
    %17 = vector.load %arg6[%c0_12, %c0_13] : memref<1920x256xbf16, #tpu.memory_space<vmem>>, vector<1920x256xbf16>
    %cst_14 = arith.constant dense<0.000000e+00> : vector<8x256xf32>
    %18 = tpu.matmul %16, %17, %cst_14 {dimension_numbers = #tpu.dot_dimension_numbers<[1], [0], [0], [1], [0, 0, 1, 1], [], []>} : vector<8x1920xbf16>, vector<1920x256xbf16>, vector<8x256xf32> -> vector<8x256xf32>
    %c0_15 = arith.constant 0 : index
    %c0_16 = arith.constant 0 : index
    %19 = vector.load %arg7[%c0_15, %c0_16] : memref<1x256xf32, #tpu.memory_space<vmem>>, vector<1x256xf32>
    %20 = vector.broadcast %19 : vector<1x256xf32> to vector<8x256xf32>
    %21 = arith.addf %18, %20 : vector<8x256xf32>
    %cst_17 = arith.constant 0.000000e+00 : f32
    %22 = vector.broadcast %cst_17 : f32 to vector<8x256xf32>
    %23 = arith.maximumf %21, %22 : vector<8x256xf32>
    %24 = arith.truncf %23 : vector<8x256xf32> to vector<8x256xbf16>
    %c0_18 = arith.constant 0 : index
    %c0_19 = arith.constant 0 : index
    %25 = vector.load %arg8[%c0_18, %c0_19] : memref<256x5xbf16, #tpu.memory_space<vmem>>, vector<256x5xbf16>
    %cst_20 = arith.constant dense<0.000000e+00> : vector<8x5xf32>
    %26 = tpu.matmul %24, %25, %cst_20 {dimension_numbers = #tpu.dot_dimension_numbers<[1], [0], [0], [1], [0, 0, 1, 1], [], []>} : vector<8x256xbf16>, vector<256x5xbf16>, vector<8x5xf32> -> vector<8x5xf32>
    %c0_21 = arith.constant 0 : index
    %c0_22 = arith.constant 0 : index
    %27 = vector.load %arg9[%c0_21, %c0_22] : memref<1x5xf32, #tpu.memory_space<vmem>>, vector<1x5xf32>
    %28 = vector.broadcast %27 : vector<1x5xf32> to vector<8x5xf32>
    %29 = arith.addf %26, %28 : vector<8x5xf32>
    %cst_23 = arith.constant 0.000000e+00 : f32
    %30 = vector.broadcast %cst_23 : f32 to vector<8x5xf32>
    %31 = arith.maximumf %29, %30 : vector<8x5xf32>
    %c0_24 = arith.constant 0 : index
    %c0_25 = arith.constant 0 : index
    %32 = vector.load %arg10[%c0_24, %c0_25] : memref<5x4xf32, #tpu.memory_space<vmem>>, vector<5x4xf32>
    %cst_26 = arith.constant dense<0.000000e+00> : vector<8x4xf32>
    %33 = tpu.matmul %31, %32, %cst_26 {dimension_numbers = #tpu.dot_dimension_numbers<[1], [0], [0], [1], [0, 0, 1, 1], [], []>} : vector<8x5xf32>, vector<5x4xf32>, vector<8x4xf32> -> vector<8x4xf32>
    %c0_27 = arith.constant 0 : index
    %c0_28 = arith.constant 0 : index
    %34 = vector.load %arg11[%c0_27, %c0_28] : memref<8x4xf32, #tpu.memory_space<vmem>>, vector<8x4xf32>
    tpu.vector_store %arg11[%c0_27, %c0_28], %33 {strides = array<i32>} : memref<8x4xf32, #tpu.memory_space<vmem>>, vector<8x4xf32>,
    return
  }
  func.func @transform_0(%arg0: i32) -> (i32, i32) {
    %c0_i32 = arith.constant 0 : i32
    %c0_i32_0 = arith.constant 0 : i32
    return %arg0, %c0_i32 : i32, i32
  }
  func.func @transform_1(%arg0: i32) -> (i32, i32) {
    %c0_i32 = arith.constant 0 : i32
    %c0_i32_0 = arith.constant 0 : i32
    %c0_i32_1 = arith.constant 0 : i32
    return %c0_i32, %c0_i32_0 : i32, i32
  }
  func.func @transform_2(%arg0: i32) -> (i32, i32) {
    %c0_i32 = arith.constant 0 : i32
    %c0_i32_0 = arith.constant 0 : i32
    %c0_i32_1 = arith.constant 0 : i32
    return %c0_i32, %c0_i32_0 : i32, i32
  }
  func.func @transform_3(%arg0: i32) -> (i32, i32) {
    %c0_i32 = arith.constant 0 : i32
    %c0_i32_0 = arith.constant 0 : i32
    %c0_i32_1 = arith.constant 0 : i32
    return %c0_i32, %c0_i32_0 : i32, i32
  }
  func.func @transform_4(%arg0: i32) -> (i32, i32) {
    %c0_i32 = arith.constant 0 : i32
    %c0_i32_0 = arith.constant 0 : i32
    %c0_i32_1 = arith.constant 0 : i32
    return %c0_i32, %c0_i32_0 : i32, i32
  }
  func.func @transform_5(%arg0: i32) -> (i32, i32) {
    %c0_i32 = arith.constant 0 : i32
    %c0_i32_0 = arith.constant 0 : i32
    %c0_i32_1 = arith.constant 0 : i32
    return %c0_i32, %c0_i32_0 : i32, i32
  }
  func.func @transform_6(%arg0: i32) -> (i32, i32) {
    %c0_i32 = arith.constant 0 : i32
    %c0_i32_0 = arith.constant 0 : i32
    %c0_i32_1 = arith.constant 0 : i32
    return %c0_i32, %c0_i32_0 : i32, i32
  }
  func.func @transform_7(%arg0: i32) -> (i32, i32) {
    %c0_i32 = arith.constant 0 : i32
    %c0_i32_0 = arith.constant 0 : i32
    %c0_i32_1 = arith.constant 0 : i32
    return %c0_i32, %c0_i32_0 : i32, i32
  }
  func.func @transform_8(%arg0: i32) -> (i32, i32) {
    %c0_i32 = arith.constant 0 : i32
    %c0_i32_0 = arith.constant 0 : i32
    %c0_i32_1 = arith.constant 0 : i32
    return %c0_i32, %c0_i32_0 : i32, i32
  }
  func.func @transform_9(%arg0: i32) -> (i32, i32) {
    %c0_i32 = arith.constant 0 : i32
    %c0_i32_0 = arith.constant 0 : i32
    %c0_i32_1 = arith.constant 0 : i32
    return %c0_i32, %c0_i32_0 : i32, i32
  }
  func.func @transform_10(%arg0: i32) -> (i32, i32) {
    %c0_i32 = arith.constant 0 : i32
    %c0_i32_0 = arith.constant 0 : i32
    return %arg0, %c0_i32 : i32, i32
  }
}

</mosaic_0001>

<bundles_post_ra>
// kernel: tpu_custom_call.1
= control target key start
LH: loop header
LB: loop body
LE: loop exit
PB: predicated region body
PF: predicated region fallthrough
CT: control target
= control target key end

     0   :  { %15 = vsyncpa [#allocation3], 0  ;;  %s22692_s0 = inlined_call_operand.hbm [shape: bf16[8,180], index: 0, kind: input, shape index: {}]   ;;  %s22693_s1 = inlined_call_operand.hbm [shape: bf16[180,1792], index: 1, kind: input, shape index: {}]   ;;  %s22694_s2 = inlined_call_operand.hbm [shape: f32[1,1792], index: 2, kind: input, shape index: {}]   ;;  %s22695_s3 = inlined_call_operand.hbm [shape: bf16[1792,1920], index: 3, kind: input, shape index: {}]   ;;  %s22696_s4 = inlined_call_operand.hbm [shape: f32[1,1920], index: 4, kind: input, shape index: {}]   ;;  %s22697_s5 = inlined_call_operand.hbm [shape: bf16[1920,256], index: 5, kind: input, shape index: {}]   ;;  %s22698_s6 = inlined_call_operand.hbm [shape: f32[1,256], index: 6, kind: input, shape index: {}]   ;;  %s22699_s7 = inlined_call_operand.vmem [shape: bf16[256,5], index: 7, kind: input, shape index: {}]   ;;  %s22700_s8 = inlined_call_operand.hbm [shape: f32[1,5], index: 8, kind: input, shape index: {}]   ;;  %s22701_s9 = inlined_call_operand.vmem [shape: f32[5,4], index: 9, kind: input, shape index: {}]   ;;  %s22702_s10 = inlined_call_operand.vmem [shape: f32[8,4], index: 10, kind: output, shape index: {}]  }
   0x1   :  { %16 = vsyncpa [#allocation5], 0 }
   0x2   :  { %17 = vsyncpa [#allocation8], 0 }
   0x3   :  { %18 = vsyncpa [#allocation11], 0 }
   0x4   :  { %19 = vsyncpa [#allocation14], 0  ;;  %s22106_s13 = smov [#allocation4]   ;;  %s21920_s17 = scalar_lea.hbm %s22693_s1, 20608 }
   0x5   :  { %s35_s14 = sshll.u32 %s22106_s13, 4  ;;  %p21921_p0 = scmp.ne.s32.totalorder %s22693_s1, %s21920_s17  ;;  %s36_s14 = int_to_ptr.vmem [resolvable:$true] %s35_s14 }
   0x6   :  { %p21924_p1 = scmp.lt.u32.totalorder %s21920_s17, %s22693_s1 }
   0x8   :  { %p21926_p2 = pnand %p21924_p1, %p21921_p0 }
   0xa   :  { %21929 = shalt.err (!%p21926_p2)
}
   0xb   :  { %s21930_s22 = scalar_lea.vmem %s36_s14, 20608  ;;  %p21935_p4 = scmp.lt.s32.totalorder %s36_s14, %s36_s14 }
   0xc   :  { %p21931_p3 = scmp.ne.s32.totalorder %s36_s14, %s21930_s22  ;;  %p21936_p5 = scmp.lt.s32.totalorder %s21930_s22, %s21930_s22 }
   0xe   :  { %p21937_p6 = por %p21936_p5, %p21935_p4 }
  0x10   :  { %p21938_p7 = pnand %p21937_p6, %p21931_p3 }
  0x12   :  { %21941 = shalt.err (!%p21938_p7)
}
  0x13   :  { %s22107_s23 = smov 896   ;;  %s22108_s24 = smov 56  }
  0x14   :  { %41 = dma.hbm_to_vmem [thread:$0]  %s22693_s1, 20608, %s36_s14, [#allocation5], %s22107_s23, %s22107_s23, %s22108_s24  }
  0x15   :  { %s22109_s27 = smov [#allocation7]   ;;  %s21942_s11 = scalar_lea.hbm %s22695_s3, 215040 }
  0x16   :  { %s57_s28 = sshll.u32 %s22109_s27, 4  ;;  %p21943_p8 = scmp.ne.s32.totalorder %s22695_s3, %s21942_s11  ;;  %s58_s28 = int_to_ptr.vmem [resolvable:$true] %s57_s28 }
  0x17   :  { %p21946_p9 = scmp.lt.u32.totalorder %s21942_s11, %s22695_s3 }
  0x19   :  { %p21948_p10 = pnand %p21946_p9, %p21943_p8 }
  0x1b   :  { %21951 = shalt.err (!%p21948_p10)
}
  0x1c   :  { %s21952_s17 = scalar_lea.vmem %s58_s28, 215040  ;;  %p21957_p12 = scmp.lt.s32.totalorder %s58_s28, %s58_s28 }
  0x1d   :  { %p21953_p11 = scmp.ne.s32.totalorder %s58_s28, %s21952_s17  ;;  %p21958_p13 = scmp.lt.s32.totalorder %s21952_s17, %s21952_s17 }
  0x1f   :  { %p21959_p0 = por %p21958_p13, %p21957_p12 }
  0x21   :  { %p21960_p1 = pnand %p21959_p0, %p21953_p11 }
  0x23   :  { %21963 = shalt.err (!%p21960_p1)
}
  0x24   :  { %s22110_s1 = smov 960   ;;  %s22111_s14 = smov 60  }
  0x25   :  { %63 = dma.hbm_to_vmem [thread:$0]  %s22695_s3, 215040, %s58_s28, [#allocation8], %s22110_s1, %s22110_s1, %s22111_s14  }
  0x26   :  { %s22112_s20 = smov [#allocation10]   ;;  %s21964_s24 = scalar_lea.hbm %s22697_s5, 30720 }
  0x27   :  { %s79_s21 = sshll.u32 %s22112_s20, 4  ;;  %p21965_p2 = scmp.ne.s32.totalorder %s22697_s5, %s21964_s24  ;;  %s80_s21 = int_to_ptr.vmem [resolvable:$true] %s79_s21 }
  0x28   :  { %p21968_p3 = scmp.lt.u32.totalorder %s21964_s24, %s22697_s5 }
  0x2a   :  { %p21970_p4 = pnand %p21968_p3, %p21965_p2 }
  0x2c   :  { %21973 = shalt.err (!%p21970_p4)
}
  0x2d   :  { %s21974_s30 = scalar_lea.vmem %s80_s21, 30720  ;;  %p21979_p6 = scmp.lt.s32.totalorder %s80_s21, %s80_s21 }
  0x2e   :  { %p21975_p5 = scmp.ne.s32.totalorder %s80_s21, %s21974_s30  ;;  %p21980_p7 = scmp.lt.s32.totalorder %s21974_s30, %s21974_s30 }
  0x30   :  { %p21981_p8 = por %p21980_p7, %p21979_p6 }
  0x32   :  { %p21982_p9 = pnand %p21981_p8, %p21975_p5 }
  0x34   :  { %21985 = shalt.err (!%p21982_p9)
}
  0x35   :  { %s22113_s3 = smov 128   ;;  %s22114_s28 = smov 8  }
  0x36   :  { %85 = dma.hbm_to_vmem [thread:$0]  %s22697_s5, 30720, %s80_s21, [#allocation11], %s22113_s3, %s22113_s3, %s22114_s28  }
  0x37   :  { %s22115_s13 = smov [#allocation2]   ;;  %s22116_s16 = smov [#allocation6]  }
  0x38   :  { %s26_s15 = sshll.u32 %s22115_s13, 4  ;;  %s48_s17 = sshll.u32 %s22116_s16, 4  ;;  %s27_s15 = int_to_ptr.vmem [resolvable:$true] %s26_s15  ;;  %s49_s17 = int_to_ptr.vmem [resolvable:$true] %s48_s17 }
  0x39   :  { %s21986_s18 = scalar_lea.hbm %s22692_s0, 128 }
  0x3a   :  { %p21987_p10 = scmp.ne.s32.totalorder %s22692_s0, %s21986_s18  ;;  %p21990_p11 = scmp.lt.u32.totalorder %s21986_s18, %s22692_s0 }
  0x3c   :  { %p21992_p12 = pnand %p21990_p11, %p21987_p10 }
  0x3e   :  { %21995 = shalt.err (!%p21992_p12)
}
  0x3f   :  { %s21996_s5 = scalar_lea.vmem %s27_s15, 128  ;;  %p22001_p0 = scmp.lt.s32.totalorder %s27_s15, %s27_s15 }
  0x40   :  { %p21997_p13 = scmp.ne.s32.totalorder %s27_s15, %s21996_s5  ;;  %p22002_p1 = scmp.lt.s32.totalorder %s21996_s5, %s21996_s5 }
  0x42   :  { %p22003_p2 = por %p22002_p1, %p22001_p0 }
  0x44   :  { %p22004_p3 = pnand %p22003_p2, %p21997_p13 }
  0x46   :  { %22007 = shalt.err (!%p22004_p3)
}
  0x47   :  { %29 = dma.hbm_to_vmem [thread:$0]  %s22692_s0, 128, %s27_s15, [#allocation3]  }
  0x48   :  { %s22008_s27 = scalar_lea.hbm %s22694_s2, 224 }
  0x49   :  { %p22009_p4 = scmp.ne.s32.totalorder %s22694_s2, %s22008_s27  ;;  %p22012_p5 = scmp.lt.u32.totalorder %s22008_s27, %s22694_s2 }
  0x4b   :  { %p22014_p6 = pnand %p22012_p5, %p22009_p4 }
  0x4d   :  { %22017 = shalt.err (!%p22014_p6)
}
  0x4e   :  { %s22018_s11 = scalar_lea.vmem %s49_s17, 224  ;;  %p22023_p8 = scmp.lt.s32.totalorder %s49_s17, %s49_s17 }
  0x4f   :  { %p22019_p7 = scmp.ne.s32.totalorder %s49_s17, %s22018_s11  ;;  %p22024_p9 = scmp.lt.s32.totalorder %s22018_s11, %s22018_s11 }
  0x51   :  { %p22025_p10 = por %p22024_p9, %p22023_p8 }
  0x53   :  { %p22026_p11 = pnand %p22025_p10, %p22019_p7 }
  0x55   :  { %22029 = shalt.err (!%p22026_p11)
}
  0x56   :  { %51 = dma.hbm_to_vmem [thread:$0]  %s22694_s2, 224, %s49_s17, [#allocation5]  }
  0x57   :  { %s22117_s13 = smov [#allocation9]   ;;  %s22118_s16 = smov [#allocation12]  }
  0x58   :  { %s70_s15 = sshll.u32 %s22117_s13, 4  ;;  %s92_s1 = sshll.u32 %s22118_s16, 4  ;;  %s71_s15 = int_to_ptr.vmem [resolvable:$true] %s70_s15  ;;  %s93_s1 = int_to_ptr.vmem [resolvable:$true] %s92_s1 }
  0x59   :  { %s22030_s19 = scalar_lea.hbm %s22696_s4, 240 }
  0x5a   :  { %p22031_p12 = scmp.ne.s32.totalorder %s22696_s4, %s22030_s19  ;;  %p22034_p13 = scmp.lt.u32.totalorder %s22030_s19, %s22696_s4 }
  0x5c   :  { %p22036_p0 = pnand %p22034_p13, %p22031_p12 }
  0x5e   :  { %22039 = shalt.err (!%p22036_p0)
}
  0x5f   :  { %s22040_s2 = scalar_lea.vmem %s71_s15, 240  ;;  %s22044_s17 = scalar_lea.vmem %s71_s15, 256 }
  0x60   :  { %p22041_p1 = scmp.ne.s32.totalorder %s71_s15, %s22040_s2  ;;  %p22045_p2 = scmp.lt.s32.totalorder %s71_s15, %s71_s15 }
  0x61   :  { %p22046_p3 = scmp.lt.s32.totalorder %s22044_s17, %s22040_s2 }
  0x63   :  { %p22047_p4 = por %p22046_p3, %p22045_p2 }
  0x65   :  { %p22048_p5 = pnand %p22047_p4, %p22041_p1 }
  0x67   :  { %22051 = shalt.err (!%p22048_p5)
}
  0x68   :  { %73 = dma.hbm_to_vmem [thread:$0]  %s22696_s4, 240, %s71_s15, [#allocation8]  }
  0x69   :  { %s22052_s27 = scalar_lea.hbm %s22698_s6, 32 }
  0x6a   :  { %p22053_p6 = scmp.ne.s32.totalorder %s22698_s6, %s22052_s27  ;;  %p22056_p7 = scmp.lt.u32.totalorder %s22052_s27, %s22698_s6 }
  0x6c   :  { %p22058_p8 = pnand %p22056_p7, %p22053_p6 }
  0x6e   :  { %22061 = shalt.err (!%p22058_p8)
}
  0x6f   :  { %s22062_s11 = scalar_lea.vmem %s93_s1, 32  ;;  %p22067_p10 = scmp.lt.s32.totalorder %s93_s1, %s93_s1 }
  0x70   :  { %p22063_p9 = scmp.ne.s32.totalorder %s93_s1, %s22062_s11  ;;  %p22068_p11 = scmp.lt.s32.totalorder %s22062_s11, %s22062_s11 }
  0x72   :  { %p22069_p12 = por %p22068_p11, %p22067_p10 }
  0x74   :  { %p22070_p13 = pnand %p22069_p12, %p22063_p9 }
  0x76   :  { %22073 = shalt.err (!%p22070_p13)
}
  0x77   :  { %95 = dma.hbm_to_vmem [thread:$0]  %s22698_s6, 32, %s93_s1, [#allocation11]  }
  0x78   :  { %s22119_s12 = smov [#allocation13]   ;;  %s22074_s14 = scalar_lea.hbm %s22700_s8, 16 }
  0x79   :  { %s104_s13 = sshll.u32 %s22119_s12, 4  ;;  %p22075_p0 = scmp.ne.s32.totalorder %s22700_s8, %s22074_s14  ;;  %s105_s13 = int_to_ptr.vmem [resolvable:$true] %s104_s13 }
  0x7a   :  { %p22078_p1 = scmp.lt.u32.totalorder %s22074_s14, %s22700_s8 }
  0x7c   :  { %p22080_p2 = pnand %p22078_p1, %p22075_p0 }
  0x7e   :  { %22083 = shalt.err (!%p22080_p2)
}
  0x7f   :  { %s22084_s23 = scalar_lea.vmem %s105_s13, 16  ;;  %s22088_s6 = scalar_lea.vmem %s105_s13, 32 }
  0x80   :  { %p22085_p3 = scmp.ne.s32.totalorder %s105_s13, %s22084_s23  ;;  %p22089_p4 = scmp.lt.s32.totalorder %s105_s13, %s105_s13 }
  0x81   :  { %p22090_p5 = scmp.lt.s32.totalorder %s22088_s6, %s22084_s23 }
  0x83   :  { %p22091_p6 = por %p22090_p5, %p22089_p4 }
  0x85   :  { %p22092_p7 = pnand %p22091_p6, %p22085_p3 }
  0x87   :  { %22095 = shalt.err (!%p22092_p7)
}
  0x88   :  { %107 = dma.hbm_to_vmem [thread:$0]  %s22700_s8, 16, %s105_s13, [#allocation14]  }
  0x89   :  { %22096 = dma.done.wait [#allocation3], 128  }
  0x8a   :  { %22097 = vsyncadd [#allocation3], 4294967168 }
  0x8b   :  { %22098 = dma.done.wait [#allocation5], 20832  }
  0x8c   :  { %22099 = vsyncadd [#allocation5], 4294946464 }
  0x8d   :  { %22100 = dma.done.wait [#allocation8], 215280  }
  0x8e   :  { %22101 = vsyncadd [#allocation8], 4294752016 }
  0x8f   :  { %22102 = dma.done.wait [#allocation11], 30752  }
  0x90   :  { %22103 = vsyncadd [#allocation11], 4294936544 }
  0x91   :  { %22104 = dma.done.wait [#allocation14], 16  }
  0x92   :  { %22105 = vsyncadd [#allocation14], 4294967280  ;;  %v18829_v0 = vld [vmem:[#allocation4 + $0x4] ss:$56 sps:$4 sm:$0xff]   ;;  %v18831_v1 = vld [vmem:[#allocation4] ss:$56 sps:$4 sm:$0xff]  }
  0x93   :  { %1229 = vmatprep.subr.bf16.mxu0 %v18829_v0  ;;  %v18832_v2 = vld [vmem:[#allocation4 + $0x74] ss:$56 sps:$4 sm:$0xff]   ;;  %v18834_v3 = vld [vmem:[#allocation4 + $0x70] ss:$56 sps:$4 sm:$0xff]   ;;  %v18835_v4 = vld [vmem:[#allocation4 + $0xe4] ss:$56 sps:$4 sm:$0xff]  }
  0x94   :  { %1230 = vmatpush1.bf16.msra.mxu0 %v18831_v1  ;;  %v18837_v5 = vld [vmem:[#allocation4 + $0xe0] ss:$56 sps:$4 sm:$0xff]   ;;  %v18838_v6 = vld [vmem:[#allocation4 + $0x154] ss:$56 sps:$4 sm:$0xff]   ;;  %v18840_v7 = vld [vmem:[#allocation4 + $0x150] ss:$56 sps:$4 sm:$0xff]  }
  0x95   :  { %1231 = vmatprep.subr.bf16.mxu0 %v18832_v2  ;;  %v18841_v8 = vld [vmem:[#allocation4 + $0x1c4] ss:$56 sps:$4 sm:$0xff]   ;;  %v18843_v9 = vld [vmem:[#allocation4 + $0x1c0] ss:$56 sps:$4 sm:$0xff]   ;;  %vm1182_vm0 = vcmask 424960   ;;  %vm1186_vm1 = vcmask 1041408  }
  0x96   :  { %v22274_v10 = vld [vmem:[#allocation2] sm:$0xff]  ;;  %v18844_v11 = vld [vmem:[#allocation4 + $0x234] ss:$56 sps:$4 sm:$0xff]   ;;  %v18846_v13 = vld [vmem:[#allocation4 + $0x230] ss:$56 sps:$4 sm:$0xff]   ;;  %vm16211_vm2 = vcmask 1044480  }
  0x97   :  { %v22278_v12 = vcombine.high %v22274_v10, %v22274_v10  ;;  %v18847_v14 = vld [vmem:[#allocation4 + $0x2a4] ss:$56 sps:$4 sm:$0xff]   ;;  %v18877_v16 = vld [vmem:[#allocation4 + $0x8] ss:$56 sps:$4 sm:$0xff]   ;;  %v18883_v19 = vld [vmem:[#allocation4 + $0x78] ss:$56 sps:$4 sm:$0xff]   ;;  %v22288_v44 = vcombine.low %v22274_v10, %v22274_v10 }
  0x98   :  { %1232 = vmatpush1.bf16.msra.mxu0 %v18834_v3  ;;  %v18875_v15 = vld [vmem:[#allocation4 + $0xc] ss:$56 sps:$4 sm:$0xff]   ;;  %v18849_v17 = vld [vmem:[#allocation4 + $0x2a0] ss:$56 sps:$4 sm:$0xff]   ;;  %v18881_v18 = vld [vmem:[#allocation4 + $0x7c] ss:$56 sps:$4 sm:$0xff]  }
  0x99   :  { %1233 = vmatprep.subr.bf16.mxu0 %v18835_v4  ;;  %16467 = vmatprep.mubr.msk.bf16.mxu0 %vm1182_vm0, %v22278_v12  ;;  %v18850_v20 = vld [vmem:[#allocation4 + $0x314] ss:$56 sps:$4 sm:$0xff]   ;;  %v18852_v22 = vld [vmem:[#allocation4 + $0x310] ss:$56 sps:$4 sm:$0xff]   ;;  %v18853_v24 = vld [vmem:[#allocation4 + $0x384] ss:$56 sps:$4 sm:$0xff]  }
  0x9a   :  { %16469 = vmatprep.mubr.msk.bf16.mxu1 %vm1182_vm0, %v22278_v12  ;;  %1270 = vmatprep.subr.bf16.mxu1 %v18875_v15  ;;  %v18887_v21 = vld [vmem:[#allocation4 + $0xec] ss:$56 sps:$4 sm:$0xff]   ;;  %v18889_v23 = vld [vmem:[#allocation4 + $0xe8] ss:$56 sps:$4 sm:$0xff]   ;;  %v18893_v25 = vld [vmem:[#allocation4 + $0x15c] ss:$56 sps:$4 sm:$0xff]  }
  0x9b   :  { %1271 = vmatpush1.bf16.msra.mxu1 %v18877_v16  ;;  %v18855_v26 = vld [vmem:[#allocation4 + $0x380] ss:$56 sps:$4 sm:$0xff]   ;;  %v18856_v28 = vld [vmem:[#allocation4 + $0x3f4] ss:$56 sps:$4 sm:$0xff]   ;;  %v18858_v30 = vld [vmem:[#allocation4 + $0x3f0] ss:$56 sps:$4 sm:$0xff]  }
  0x9c   :  { %1234 = vmatpush1.bf16.msra.mxu0 %v18837_v5  ;;  %1272 = vmatprep.subr.bf16.mxu1 %v18881_v18  ;;  %v18895_v27 = vld [vmem:[#allocation4 + $0x158] ss:$56 sps:$4 sm:$0xff]   ;;  %v18899_v29 = vld [vmem:[#allocation4 + $0x1cc] ss:$56 sps:$4 sm:$0xff]   ;;  %v18901_v31 = vld [vmem:[#allocation4 + $0x1c8] ss:$56 sps:$4 sm:$0xff]  }
  0x9d   :  { %1235 = vmatprep.subr.bf16.mxu0 %v18838_v6  ;;  %v18859_v32 = vld [vmem:[#allocation4 + $0x464] ss:$56 sps:$4 sm:$0xff]   ;;  %v290_v34 = vld [vmem:[#allocation4 + $0x4d0] sm:$0x33]  ;;  %v18861_v35 = vld [vmem:[#allocation4 + $0x460] ss:$56 sps:$4 sm:$0xff]  }
  0x9e   :  { %v18905_v33 = vld [vmem:[#allocation4 + $0x23c] ss:$56 sps:$4 sm:$0xff]   ;;  %v18907_v36 = vld [vmem:[#allocation4 + $0x238] ss:$56 sps:$4 sm:$0xff]   ;;  %v16453_v37 = vcombine.high %v290_v34, %v290_v34  ;;  %v16452_v38 = vcombine.low %v290_v34, %v290_v34  ;;  %v18911_v39 = vld [vmem:[#allocation4 + $0x2ac] ss:$56 sps:$4 sm:$0xff]  }
  0x9f   :  { %1273 = vmatpush1.bf16.msra.mxu1 %v18883_v19  ;;  %v18913_v40 = vld [vmem:[#allocation4 + $0x2a8] ss:$56 sps:$4 sm:$0xff]   ;;  %v18868_v42 = vld [vmem:[#allocation4 + $0x14] ss:$56 sps:$4 sm:$0xff]   ;;  %v18871_v46 = vld [vmem:[#allocation4 + $0x84] ss:$56 sps:$4 sm:$0xff]  }
  0xa0   :  { %1236 = vmatpush1.bf16.msra.mxu0 %v18840_v7  ;;  %1274 = vmatprep.subr.bf16.mxu1 %v18887_v21  ;;  %v1188_v41 = vsel %vm1186_vm1, %v16452_v38, 0  ;;  %v18917_v43 = vld [vmem:[#allocation4 + $0x31c] ss:$56 sps:$4 sm:$0xff]   ;;  %v18866_v45 = vld [vmem:[#allocation4 + $0x10] ss:$56 sps:$4 sm:$0xff]   ;;  %vm22122_vm3 = vmmov 0  }
  0xa1   :  { %1237 = vmatprep.subr.bf16.mxu0 %v18841_v8  ;;  %v18919_v47 = vld [vmem:[#allocation4 + $0x318] ss:$56 sps:$4 sm:$0xff]   ;;  %v18923_v48 = vld [vmem:[#allocation4 + $0x38c] ss:$56 sps:$4 sm:$0xff]   ;;  %v18925_v51 = vld [vmem:[#allocation4 + $0x388] ss:$56 sps:$4 sm:$0xff]  }
  0xa2   :  { %v18869_v49 = vld [vmem:[#allocation4 + $0x80] ss:$56 sps:$4 sm:$0xff]   ;;  %v18874_v50 = vld [vmem:[#allocation4 + $0xf4] ss:$56 sps:$4 sm:$0xff]   ;;  %v18872_v53 = vld [vmem:[#allocation4 + $0xf0] ss:$56 sps:$4 sm:$0xff]  }
  0xa3   :  { %1275 = vmatpush1.bf16.msra.mxu1 %v18889_v23  ;;  %v18927_v52 = vld [vmem:[#allocation4 + $0x3fc] ss:$56 sps:$4 sm:$0xff]   ;;  %v18930_v55 = vld [vmem:[#allocation4 + $0x3f8] ss:$56 sps:$4 sm:$0xff]   ;;  %v18931_v56 = vld [vmem:[#allocation4 + $0x46c] ss:$56 sps:$4 sm:$0xff]  }
  0xa4   :  { %1238 = vmatpush1.bf16.msra.mxu0 %v18843_v9  ;;  %1276 = vmatprep.subr.bf16.mxu1 %v18893_v25  ;;  %v18880_v54 = vld [vmem:[#allocation4 + $0x164] ss:$56 sps:$4 sm:$0xff]   ;;  %v18878_v58 = vld [vmem:[#allocation4 + $0x160] ss:$56 sps:$4 sm:$0xff]   ;;  %v18886_v60 = vld [vmem:[#allocation4 + $0x1d4] ss:$56 sps:$4 sm:$0xff]  }
  0xa5   :  { %1239 = vmatprep.subr.bf16.mxu0 %v18844_v11  ;;  %v291_v57 = vld [vmem:[#allocation4 + $0x4d8] sm:$0x33]  ;;  %v18933_v59 = vld [vmem:[#allocation4 + $0x468] ss:$56 sps:$4 sm:$0xff]   ;;  %v18898_v4 = vld [vmem:[#allocation4 + $0x2b4] ss:$56 sps:$4 sm:$0xff]  }
  0xa6   :  { %v16455_v61 = vcombine.high %v291_v57, %v291_v57  ;;  %v16454_v62 = vcombine.low %v291_v57, %v291_v57  ;;  %v18884_v63 = vld [vmem:[#allocation4 + $0x1d0] ss:$56 sps:$4 sm:$0xff]   ;;  %v18892_v0 = vld [vmem:[#allocation4 + $0x244] ss:$56 sps:$4 sm:$0xff]   ;;  %v18890_v3 = vld [vmem:[#allocation4 + $0x240] ss:$56 sps:$4 sm:$0xff]  }
  0xa7   :  { %1277 = vmatpush1.bf16.msra.mxu1 %v18895_v27  ;;  %v18938_v2 = vld [vmem:[#allocation4 + $0x1c] ss:$56 sps:$4 sm:$0xff]   ;;  %v18936_v5 = vld [vmem:[#allocation4 + $0x18] ss:$56 sps:$4 sm:$0xff]   ;;  %v18941_v6 = vld [vmem:[#allocation4 + $0x8c] ss:$56 sps:$4 sm:$0xff]  }
  0xa8   :  { %1240 = vmatpush1.bf16.msra.mxu0 %v18846_v13  ;;  %1278 = vmatprep.subr.bf16.mxu1 %v18899_v29  ;;  %v1194_v1 = vsel %vm1186_vm1, %v16454_v62, 0  ;;  %v18896_v7 = vld [vmem:[#allocation4 + $0x2b0] ss:$56 sps:$4 sm:$0xff]   ;;  %v18904_v8 = vld [vmem:[#allocation4 + $0x324] ss:$56 sps:$4 sm:$0xff]   ;;  %vm16207_vm4 = vcmask 39936  }
  0xa9   :  { %1241 = vmatprep.subr.bf16.mxu0 %v18847_v14  ;;  %v18939_v9 = vld [vmem:[#allocation4 + $0x88] ss:$56 sps:$4 sm:$0xff]   ;;  %v18944_v10 = vld [vmem:[#allocation4 + $0xfc] ss:$56 sps:$4 sm:$0xff]   ;;  %v18942_v14 = vld [vmem:[#allocation4 + $0xf8] ss:$56 sps:$4 sm:$0xff]  }
  0xaa   :  { %v18902_v11 = vld [vmem:[#allocation4 + $0x320] ss:$56 sps:$4 sm:$0xff]   ;;  %v18910_v13 = vld [vmem:[#allocation4 + $0x394] ss:$56 sps:$4 sm:$0xff]   ;;  %v18908_v16 = vld [vmem:[#allocation4 + $0x390] ss:$56 sps:$4 sm:$0xff]  }
  0xab   :  { %1279 = vmatpush1.bf16.msra.mxu1 %v18901_v31  ;;  %v18947_v15 = vld [vmem:[#allocation4 + $0x16c] ss:$56 sps:$4 sm:$0xff]   ;;  %v18945_v18 = vld [vmem:[#allocation4 + $0x168] ss:$56 sps:$4 sm:$0xff]   ;;  %v18950_v19 = vld [vmem:[#allocation4 + $0x1dc] ss:$56 sps:$4 sm:$0xff]  }
  0xac   :  { %1242 = vmatpush1.bf16.msra.mxu0 %v18849_v17  ;;  %1280 = vmatprep.subr.bf16.mxu1 %v18905_v33  ;;  %v18916_v17 = vld [vmem:[#allocation4 + $0x404] ss:$56 sps:$4 sm:$0xff]   ;;  %v18922_v21 = vld [vmem:[#allocation4 + $0x474] ss:$56 sps:$4 sm:$0xff]   ;;  %v18920_v25 = vld [vmem:[#allocation4 + $0x470] ss:$56 sps:$4 sm:$0xff]  }
  0xad   :  { %1243 = vmatprep.subr.bf16.mxu0 %v18850_v20  ;;  %v18914_v20 = vld [vmem:[#allocation4 + $0x400] ss:$56 sps:$4 sm:$0xff]   ;;  %v18953_v23 = vld [vmem:[#allocation4 + $0x24c] ss:$56 sps:$4 sm:$0xff]   ;;  %v18956_v29 = vld [vmem:[#allocation4 + $0x2bc] ss:$56 sps:$4 sm:$0xff]  }
  0xae   :  { %v18976_v33 = vld [vmem:[#allocation4 + $0x24] ss:$56 sps:$4 sm:$0xff]   ;;  %v18957_v34 = vld [vmem:[#allocation4 + $0x328] ss:$56 sps:$4 sm:$0xff]   ;;  %v18960_v38 = vld [vmem:[#allocation4 + $0x398] ss:$56 sps:$4 sm:$0xff]  }
  0xaf   :  { %1281 = vmatpush1.bf16.msra.mxu1 %v18907_v36  ;;  %v18962_v36 = vld [vmem:[#allocation4 + $0x39c] ss:$56 sps:$4 sm:$0xff]   ;;  %v18971_v57 = vld [vmem:[#allocation4 + $0x28] ss:$56 sps:$4 sm:$0xff]   ;;  %v18985_v62 = vld [vmem:[#allocation4 + $0x10c] ss:$56 sps:$4 sm:$0xff]  }
  0xb0   :  { %1244 = vmatpush1.bf16.msra.mxu0 %v18852_v22  ;;  %1282 = vmatprep.subr.bf16.mxu1 %v18911_v39  ;;  %v18948_v22 = vld [vmem:[#allocation4 + $0x1d8] ss:$56 sps:$4 sm:$0xff]   ;;  %vm16285_vm5 = vcmask 31744  }
  0xb1   :  { %1245 = vmatprep.subr.bf16.mxu0 %v18853_v24  ;;  %v292_v24 = vld [vmem:[#allocation4 + $0x4e0] sm:$0x33]  ;;  %v18980_v39 = vld [vmem:[#allocation4 + $0x90] ss:$56 sps:$4 sm:$0xff]  }
  0xb2   :  { %v16457_v27 = vcombine.high %v292_v24, %v292_v24 }
  0xb3   :  { %1283 = vmatpush1.bf16.msra.mxu1 %v18913_v40  ;;  %v18965_v40 = vld [vmem:[#allocation4 + $0x40c] ss:$56 sps:$4 sm:$0xff]  }
  0xb4   :  { %1246 = vmatpush1.bf16.msra.mxu0 %v18855_v26  ;;  %1284 = vmatprep.subr.bf16.mxu1 %v18917_v43  ;;  %v18951_v26 = vld [vmem:[#allocation4 + $0x248] ss:$56 sps:$4 sm:$0xff]  }
  0xb5   :  { %1247 = vmatprep.subr.bf16.mxu0 %v18856_v28  ;;  %v16456_v28 = vcombine.low %v292_v24, %v292_v24  ;;  %v18986_v43 = vld [vmem:[#allocation4 + $0x100] ss:$56 sps:$4 sm:$0xff]  }
  0xb6   :  { %v19013_v24 = vld [vmem:[#allocation4 + $0x338] ss:$56 sps:$4 sm:$0xff]  }
  0xb7   :  { %1285 = vmatpush1.bf16.msra.mxu1 %v18919_v47  ;;  %v1200_v31 = vsel %vm1186_vm1, %v16456_v28, 0  ;;  %v293_v47 = vld [vmem:[#allocation4 + $0x4e8] sm:$0x33] }
  0xb8   :  { %1248 = vmatpush1.bf16.msra.mxu0 %v18858_v30  ;;  %1286 = vmatprep.subr.bf16.mxu1 %v18923_v48  ;;  %v18954_v30 = vld [vmem:[#allocation4 + $0x2b8] ss:$56 sps:$4 sm:$0xff]   ;;  %v19019_v28 = vld [vmem:[#allocation4 + $0x3a8] ss:$56 sps:$4 sm:$0xff]  }
  0xb9   :  { %1249 = vmatprep.subr.bf16.mxu0 %v18859_v32  ;;  %v18959_v32 = vld [vmem:[#allocation4 + $0x32c] ss:$56 sps:$4 sm:$0xff]   ;;  %v18966_v48 = vld [vmem:[#allocation4 + $0x478] ss:$56 sps:$4 sm:$0xff]  }
  0xbb   :  { %1287 = vmatpush1.bf16.msra.mxu1 %v18925_v51  ;;  %v16458_v51 = vcombine.low %v293_v47, %v293_v47 }
  0xbc   :  { %1250 = vmatpush1.bf16.msra.mxu0 %v18861_v35  ;;  %1288 = vmatprep.subr.bf16.mxu1 %v18927_v52  ;;  %v18974_v35 = vld [vmem:[#allocation4 + $0x20] ss:$56 sps:$4 sm:$0xff]   ;;  %v19000_v52 = vld [vmem:[#allocation4 + $0x1e4] ss:$56 sps:$4 sm:$0xff]  }
  0xbd   :  { %16466 = vmatprep.subr.msk.bf16.mxu0 %vm1186_vm1, %v16453_v37  ;;  %v18982_v37 = vld [vmem:[#allocation4 + $0x94] ss:$56 sps:$4 sm:$0xff]  }
  0xbf   :  { %1289 = vmatpush1.bf16.msra.mxu1 %v18930_v55  ;;  %v18973_v55 = vld [vmem:[#allocation4 + $0x2c] ss:$56 sps:$4 sm:$0xff]  }
  0xc0   :  { %1252 = vmatpush1.bf16.msra.mxu0 %v1188_v41  ;;  %1290 = vmatprep.subr.bf16.mxu1 %v18931_v56  ;;  %v18988_v41 = vld [vmem:[#allocation4 + $0x104] ss:$56 sps:$4 sm:$0xff]   ;;  %v19006_v56 = vld [vmem:[#allocation4 + $0x254] ss:$56 sps:$4 sm:$0xff]  }
  0xc1   :  { %1311 = vmatprep.subr.bf16.mxu0 %v18868_v42  ;;  %v18963_v42 = vld [vmem:[#allocation4 + $0x408] ss:$56 sps:$4 sm:$0xff]  }
  0xc3   :  { %1262 = vmatmul.mubr.bf16.vlgmr.msra.gmra.mrb[0].mxu0 %v22288_v44  ;;  %1291 = vmatpush1.bf16.msra.mxu1 %v18933_v59  ;;  %v18979_v59 = vld [vmem:[#allocation4 + $0x9c] ss:$56 sps:$4 sm:$0xff]  }
  0xc4   :  { %1312 = vmatpush1.bf16.msra.mxu0 %v18866_v45  ;;  %16471 = vmatprep.mubr.msk.bf16.mxu0 %vm1182_vm0, %v22278_v12  ;;  %v18968_v45 = vld [vmem:[#allocation4 + $0x47c] ss:$56 sps:$4 sm:$0xff]  }
  0xc5   :  { %1313 = vmatprep.subr.bf16.mxu0 %v18871_v46  ;;  %16468 = vmatprep.subr.msk.bf16.mxu1 %vm1186_vm1, %v16455_v61  ;;  %v18994_v46 = vld [vmem:[#allocation4 + $0x174] ss:$56 sps:$4 sm:$0xff]   ;;  %v18977_v61 = vld [vmem:[#allocation4 + $0x98] ss:$56 sps:$4 sm:$0xff]  }
  0xc7   :  { %1293 = vmatpush1.bf16.msra.mxu1 %v1194_v1  ;;  %v18983_v1 = vld [vmem:[#allocation4 + $0x108] ss:$56 sps:$4 sm:$0xff]  }
  0xc8   :  { %1314 = vmatpush1.bf16.msra.mxu0 %v18869_v49  ;;  %1352 = vmatprep.subr.bf16.mxu1 %v18938_v2  ;;  %v18992_v49 = vld [vmem:[#allocation4 + $0x170] ss:$56 sps:$4 sm:$0xff]   ;;  %v18991_v2 = vld [vmem:[#allocation4 + $0x17c] ss:$56 sps:$4 sm:$0xff]  }
  0xc9   :  { %1315 = vmatprep.subr.bf16.mxu0 %v18874_v50  ;;  %v16459_v50 = vcombine.high %v293_v47, %v293_v47  ;;  %v19071_v47 = vld [vmem:[#allocation4 + $0x260] ss:$56 sps:$4 sm:$0xff]  }
  0xca   :  { %1303 = vmatmul.mubr.bf16.vlgmr.msra.gmra.mrb[0].mxu1 %v22288_v44 }
  0xcb   :  { %1353 = vmatpush1.bf16.msra.mxu1 %v18936_v5  ;;  %16473 = vmatprep.mubr.msk.bf16.mxu1 %vm1182_vm0, %v22278_v12  ;;  %v18989_v5 = vld [vmem:[#allocation4 + $0x178] ss:$56 sps:$4 sm:$0xff]  }
  0xcc   :  { %1316 = vmatpush1.bf16.msra.mxu0 %v18872_v53  ;;  %1354 = vmatprep.subr.bf16.mxu1 %v18941_v6  ;;  %v18998_v53 = vld [vmem:[#allocation4 + $0x1e0] ss:$56 sps:$4 sm:$0xff]   ;;  %v18997_v6 = vld [vmem:[#allocation4 + $0x1ec] ss:$56 sps:$4 sm:$0xff]  }
  0xcd   :  { %1317 = vmatprep.subr.bf16.mxu0 %v18880_v54  ;;  %v1206_v54 = vsel %vm1186_vm1, %v16458_v51, 0  ;;  %v19077_v51 = vld [vmem:[#allocation4 + $0x2d0] ss:$56 sps:$4 sm:$0xff]  }
  0xcf   :  { %1355 = vmatpush1.bf16.msra.mxu1 %v18939_v9  ;;  %v18995_v9 = vld [vmem:[#allocation4 + $0x1e8] ss:$56 sps:$4 sm:$0xff]  }
  0xd0   :  { %1318 = vmatpush1.bf16.msra.mxu0 %v18878_v58  ;;  %1356 = vmatprep.subr.bf16.mxu1 %v18944_v10  ;;  %v19004_v58 = vld [vmem:[#allocation4 + $0x250] ss:$56 sps:$4 sm:$0xff]   ;;  %v19003_v10 = vld [vmem:[#allocation4 + $0x25c] ss:$56 sps:$4 sm:$0xff]  }
  0xd1   :  { %1319 = vmatprep.subr.bf16.mxu0 %v18886_v60  ;;  %v19012_v60 = vld [vmem:[#allocation4 + $0x2c4] ss:$56 sps:$4 sm:$0xff]  }
  0xd3   :  { %1357 = vmatpush1.bf16.msra.mxu1 %v18942_v14  ;;  %v294_v14 = vld [vmem:[#allocation4 + $0x4f0] sm:$0x33] }
  0xd4   :  { %1320 = vmatpush1.bf16.msra.mxu0 %v18884_v63  ;;  %1358 = vmatprep.subr.bf16.mxu1 %v18947_v15  ;;  %v19010_v63 = vld [vmem:[#allocation4 + $0x2c0] ss:$56 sps:$4 sm:$0xff]  }
  0xd5   :  { %1321 = vmatprep.subr.bf16.mxu0 %v18892_v0  ;;  %v19018_v0 = vld [vmem:[#allocation4 + $0x334] ss:$56 sps:$4 sm:$0xff]   ;;  %v19001_v15 = vld [vmem:[#allocation4 + $0x258] ss:$56 sps:$4 sm:$0xff]  }
  0xd7   :  { %1359 = vmatpush1.bf16.msra.mxu1 %v18945_v18  ;;  %v16461_v18 = vcombine.high %v294_v14, %v294_v14 }
  0xd8   :  { %1322 = vmatpush1.bf16.msra.mxu0 %v18890_v3  ;;  %1360 = vmatprep.subr.bf16.mxu1 %v18950_v19  ;;  %v19016_v3 = vld [vmem:[#allocation4 + $0x330] ss:$56 sps:$4 sm:$0xff]   ;;  %v16460_v19 = vcombine.low %v294_v14, %v294_v14  ;;  %v19115_v14 = vld [vmem:[#allocation7 + $0xf08] ss:$60 sps:$4 sm:$0xff]  }
  0xd9   :  { %1323 = vmatprep.subr.bf16.mxu0 %v18898_v4  ;;  %v19024_v4 = vld [vmem:[#allocation4 + $0x3a4] ss:$56 sps:$4 sm:$0xff]  }
  0xdb   :  { %1361 = vmatpush1.bf16.msra.mxu1 %v18948_v22  ;;  %v1212_v22 = vsel %vm1186_vm1, %v16460_v19, 0  ;;  %v19100_v19 = vld [vmem:[#allocation7 + $0x43c] ss:$60 sps:$4 sm:$0xff]  }
  0xdc   :  { %1324 = vmatpush1.bf16.msra.mxu0 %v18896_v7  ;;  %1362 = vmatprep.subr.bf16.mxu1 %v18953_v23  ;;  %v19022_v7 = vld [vmem:[#allocation4 + $0x3a0] ss:$56 sps:$4 sm:$0xff]   ;;  %v19043_v23 = vld [vmem:[#allocation4 + $0x34] ss:$56 sps:$4 sm:$0xff]  }
  0xdd   :  { %1325 = vmatprep.subr.bf16.mxu0 %v18904_v8  ;;  %v19030_v8 = vld [vmem:[#allocation4 + $0x414] ss:$56 sps:$4 sm:$0xff]  }
  0xdf   :  { %1363 = vmatpush1.bf16.msra.mxu1 %v18951_v26  ;;  %v19021_v26 = vld [vmem:[#allocation4 + $0x3ac] ss:$56 sps:$4 sm:$0xff]  }
  0xe0   :  { %1326 = vmatpush1.bf16.msra.mxu0 %v18902_v11  ;;  %1364 = vmatprep.subr.bf16.mxu1 %v18956_v29  ;;  %v19028_v11 = vld [vmem:[#allocation4 + $0x410] ss:$56 sps:$4 sm:$0xff]   ;;  %v19047_v29 = vld [vmem:[#allocation4 + $0xa0] ss:$56 sps:$4 sm:$0xff]  }
  0xe1   :  { %1327 = vmatprep.subr.bf16.mxu0 %v18910_v13  ;;  %v19036_v13 = vld [vmem:[#allocation4 + $0x484] ss:$56 sps:$4 sm:$0xff]  }
  0xe3   :  { %1365 = vmatpush1.bf16.msra.mxu1 %v18954_v30  ;;  %v19027_v30 = vld [vmem:[#allocation4 + $0x41c] ss:$56 sps:$4 sm:$0xff]  }
  0xe4   :  { %1328 = vmatpush1.bf16.msra.mxu0 %v18908_v16  ;;  %1366 = vmatprep.subr.bf16.mxu1 %v18959_v32  ;;  %v19034_v16 = vld [vmem:[#allocation4 + $0x480] ss:$56 sps:$4 sm:$0xff]  }
  0xe5   :  { %1329 = vmatprep.subr.bf16.mxu0 %v18916_v17  ;;  %v19009_v17 = vld [vmem:[#allocation4 + $0x2cc] ss:$56 sps:$4 sm:$0xff]   ;;  %v19025_v32 = vld [vmem:[#allocation4 + $0x418] ss:$56 sps:$4 sm:$0xff]  }
  0xe7   :  { %1367 = vmatpush1.bf16.msra.mxu1 %v18957_v34  ;;  %v19053_v34 = vld [vmem:[#allocation4 + $0x110] ss:$56 sps:$4 sm:$0xff]  }
  0xe8   :  { %1330 = vmatpush1.bf16.msra.mxu0 %v18914_v20  ;;  %1368 = vmatprep.subr.bf16.mxu1 %v18962_v36  ;;  %v19007_v20 = vld [vmem:[#allocation4 + $0x2c8] ss:$56 sps:$4 sm:$0xff]   ;;  %v19061_v36 = vld [vmem:[#allocation4 + $0x184] ss:$56 sps:$4 sm:$0xff]  }
  0xe9   :  { %1331 = vmatprep.subr.bf16.mxu0 %v18922_v21  ;;  %v19015_v21 = vld [vmem:[#allocation4 + $0x33c] ss:$56 sps:$4 sm:$0xff]  }
  0xeb   :  { %1369 = vmatpush1.bf16.msra.mxu1 %v18960_v38  ;;  %v19059_v38 = vld [vmem:[#allocation4 + $0x180] ss:$56 sps:$4 sm:$0xff]  }
  0xec   :  { %1332 = vmatpush1.bf16.msra.mxu0 %v18920_v25  ;;  %1370 = vmatprep.subr.bf16.mxu1 %v18965_v40  ;;  %v19041_v25 = vld [vmem:[#allocation4 + $0x30] ss:$56 sps:$4 sm:$0xff]  }
  0xed   :  { %16470 = vmatprep.subr.msk.bf16.mxu0 %vm1186_vm1, %v16457_v27  ;;  %v19049_v27 = vld [vmem:[#allocation4 + $0xa4] ss:$56 sps:$4 sm:$0xff]  }
  0xef   :  { %1371 = vmatpush1.bf16.msra.mxu1 %v18963_v42 }
  0xf0   :  { %1334 = vmatpush1.bf16.msra.mxu0 %v1200_v31  ;;  %1372 = vmatprep.subr.bf16.mxu1 %v18968_v45  ;;  %v19055_v31 = vld [vmem:[#allocation4 + $0x114] ss:$56 sps:$4 sm:$0xff]   ;;  %v19073_v45 = vld [vmem:[#allocation4 + $0x264] ss:$56 sps:$4 sm:$0xff]  }
  0xf1   :  { %1393 = vmatprep.subr.bf16.mxu0 %v18976_v33  ;;  %v19033_v33 = vld [vmem:[#allocation4 + $0x48c] ss:$56 sps:$4 sm:$0xff]  }
  0xf3   :  { %1344 = vmatmul.mubr.bf16.vlgmr.msra.gmra.mrb[4].mxu0 %v22288_v44  ;;  %1373 = vmatpush1.bf16.msra.mxu1 %v18966_v48  ;;  %v19052_v48 = vld [vmem:[#allocation7 + $0x7c] ss:$60 sps:$4 sm:$0xff]  }
  0xf4   :  { %1394 = vmatpush1.bf16.msra.mxu0 %v18974_v35  ;;  %16475 = vmatprep.mubr.msk.bf16.mxu0 %vm1182_vm0, %v22278_v12  ;;  %v295_v35 = vld [vmem:[#allocation4 + $0x4f8] sm:$0x33] }
  0xf5   :  { %1395 = vmatprep.subr.bf16.mxu0 %v18982_v37  ;;  %16472 = vmatprep.subr.msk.bf16.mxu1 %vm1186_vm1, %v16459_v50  ;;  %v19031_v37 = vld [vmem:[#allocation4 + $0x488] ss:$56 sps:$4 sm:$0xff]   ;;  %v16462_v40 = vcombine.low %v295_v35, %v295_v35 }
  0xf6   :  { %v19050_v50 = vld [vmem:[#allocation7 + $0x78] ss:$60 sps:$4 sm:$0xff]  }
  0xf7   :  { %1375 = vmatpush1.bf16.msra.mxu1 %v1206_v54  ;;  %v1218_v42 = vsel %vm1186_vm1, %v16462_v40, 0  ;;  %v19056_v54 = vld [vmem:[#allocation7 + $0xf0] ss:$60 sps:$4 sm:$0xff]  }
  0xf8   :  { %1396 = vmatpush1.bf16.msra.mxu0 %v18980_v39  ;;  %1434 = vmatprep.subr.bf16.mxu1 %v18973_v55  ;;  %v16463_v39 = vcombine.high %v295_v35, %v295_v35  ;;  %v19083_v55 = vld [vmem:[#allocation4 + $0x340] ss:$56 sps:$4 sm:$0xff]   ;;  %v19153_v35 = vld [vmem:[#allocation7 + $0x11dc] ss:$60 sps:$4 sm:$0xff]  }
  0xf9   :  { %1397 = vmatprep.subr.bf16.mxu0 %v18988_v41  ;;  %v19067_v41 = vld [vmem:[#allocation4 + $0x1f4] ss:$56 sps:$4 sm:$0xff]   ;;  %v19124_v40 = vld [vmem:[#allocation7 + $0x690] ss:$60 sps:$4 sm:$0xff]  }
  0xfa   :  { %1385 = vmatmul.mubr.bf16.vlgmr.msra.gmra.mrb[4].mxu1 %v22288_v44 }
  0xfb   :  { %1435 = vmatpush1.bf16.msra.mxu1 %v18971_v57  ;;  %16477 = vmatprep.mubr.msk.bf16.mxu1 %vm1182_vm0, %v22278_v12  ;;  %v19091_v57 = vld [vmem:[#allocation4 + $0x3b4] ss:$56 sps:$4 sm:$0xff]  }
  0xfc   :  { %1398 = vmatpush1.bf16.msra.mxu0 %v18986_v43  ;;  %1436 = vmatprep.subr.bf16.mxu1 %v18979_v59  ;;  %v19046_v43 = vld [vmem:[#allocation7 + $0x4] ss:$60 sps:$4 sm:$0xff]   ;;  %v19089_v59 = vld [vmem:[#allocation4 + $0x3b0] ss:$56 sps:$4 sm:$0xff]  }
  0xfd   :  { %1399 = vmatprep.subr.bf16.mxu0 %v18994_v46  ;;  %v19044_v46 = vld [vmem:[#allocation7] ss:$60 sps:$4 sm:$0xff]  }
  0xff   :  { %1437 = vmatpush1.bf16.msra.mxu1 %v18977_v61  ;;  %v19097_v61 = vld [vmem:[#allocation4 + $0x424] ss:$56 sps:$4 sm:$0xff]  }
 0x100   :  { %1400 = vmatpush1.bf16.msra.mxu0 %v18992_v49  ;;  %1438 = vmatprep.subr.bf16.mxu1 %v18985_v62  ;;  %v19079_v49 = vld [vmem:[#allocation4 + $0x2d4] ss:$56 sps:$4 sm:$0xff]  }
 0x101   :  { %1401 = vmatprep.subr.bf16.mxu0 %v19000_v52  ;;  %v19058_v52 = vld [vmem:[#allocation7 + $0xf4] ss:$60 sps:$4 sm:$0xff]   ;;  %v19068_v62 = vld [vmem:[#allocation7 + $0x1e0] ss:$60 sps:$4 sm:$0xff]  }
 0x103   :  { %1439 = vmatpush1.bf16.msra.mxu1 %v18983_v1  ;;  %v19103_v1 = vld [vmem:[#allocation4 + $0x494] ss:$56 sps:$4 sm:$0xff]  }
 0x104   :  { %1402 = vmatpush1.bf16.msra.mxu0 %v18998_v53  ;;  %1440 = vmatprep.subr.bf16.mxu1 %v18991_v2  ;;  %v19085_v53 = vld [vmem:[#allocation4 + $0x344] ss:$56 sps:$4 sm:$0xff]   ;;  %v19074_v2 = vld [vmem:[#allocation7 + $0x258] ss:$60 sps:$4 sm:$0xff]  }
 0x105   :  { %1403 = vmatprep.subr.bf16.mxu0 %v19006_v56  ;;  %v19064_v56 = vld [vmem:[#allocation7 + $0x16c] ss:$60 sps:$4 sm:$0xff]  }
 0x107   :  { %1441 = vmatpush1.bf16.msra.mxu1 %v18989_v5  ;;  %v19082_v5 = vld [vmem:[#allocation7 + $0x2d4] ss:$60 sps:$4 sm:$0xff]  }
 0x108   :  { %1404 = vmatpush1.bf16.msra.mxu0 %v19004_v58  ;;  %1442 = vmatprep.subr.bf16.mxu1 %v18997_v6  ;;  %v19062_v58 = vld [vmem:[#allocation7 + $0x168] ss:$60 sps:$4 sm:$0xff]  }
 0x109   :  { %1405 = vmatprep.subr.bf16.mxu0 %v19012_v60  ;;  %v19070_v60 = vld [vmem:[#allocation7 + $0x1e4] ss:$60 sps:$4 sm:$0xff]  }
 0x10b   :  { %1443 = vmatpush1.bf16.msra.mxu1 %v18995_v9  ;;  %v19088_v9 = vld [vmem:[#allocation7 + $0x34c] ss:$60 sps:$4 sm:$0xff]  }
 0x10c   :  { %1406 = vmatpush1.bf16.msra.mxu0 %v19010_v63  ;;  %1444 = vmatprep.subr.bf16.mxu1 %v19003_v10  ;;  %v19095_v63 = vld [vmem:[#allocation4 + $0x420] ss:$56 sps:$4 sm:$0xff]  }
 0x10d   :  { %1407 = vmatprep.subr.bf16.mxu0 %v19018_v0  ;;  %v19076_v0 = vld [vmem:[#allocation7 + $0x25c] ss:$60 sps:$4 sm:$0xff]  }
 0x10f   :  { %1445 = vmatpush1.bf16.msra.mxu1 %v19001_v15  ;;  %v19094_v15 = vld [vmem:[#allocation7 + $0x3c4] ss:$60 sps:$4 sm:$0xff]  }
 0x110   :  { %1408 = vmatpush1.bf16.msra.mxu0 %v19016_v3  ;;  %1446 = vmatprep.subr.bf16.mxu1 %v19009_v17  ;;  %v19101_v3 = vld [vmem:[#allocation4 + $0x490] ss:$56 sps:$4 sm:$0xff]  }
 0x111   :  { %1409 = vmatprep.subr.bf16.mxu0 %v19024_v4  ;;  %v296_v4 = vld [vmem:[#allocation4 + $0x500] sm:$0x33]  ;;  %v19092_v17 = vld [vmem:[#allocation7 + $0x3c0] ss:$60 sps:$4 sm:$0xff]  }
 0x112   :  { %v16465_v6 = vcombine.high %v296_v4, %v296_v4 }
 0x113   :  { %1447 = vmatpush1.bf16.msra.mxu1 %v19007_v20  ;;  %v19129_v20 = vld [vmem:[#allocation7 + $0xffc] ss:$60 sps:$4 sm:$0xff]  }
 0x114   :  { %1410 = vmatpush1.bf16.msra.mxu0 %v19022_v7  ;;  %1448 = vmatprep.subr.bf16.mxu1 %v19015_v21  ;;  %v16464_v7 = vcombine.low %v296_v4, %v296_v4  ;;  %v19098_v21 = vld [vmem:[#allocation7 + $0x438] ss:$60 sps:$4 sm:$0xff]  }
 0x115   :  { %1411 = vmatprep.subr.bf16.mxu0 %v19030_v8  ;;  %v19080_v8 = vld [vmem:[#allocation7 + $0x2d0] ss:$60 sps:$4 sm:$0xff]  }
 0x116   :  { %v1224_v10 = vsel %vm1186_vm1, %v16464_v7, 0 }
 0x117   :  { %1449 = vmatpush1.bf16.msra.mxu1 %v19013_v24  ;;  %v19135_v24 = vld [vmem:[#allocation7 + $0x1074] ss:$60 sps:$4 sm:$0xff]  }
 0x118   :  { %1412 = vmatpush1.bf16.msra.mxu0 %v19028_v11  ;;  %1450 = vmatprep.subr.bf16.mxu1 %v19021_v26  ;;  %v19117_v11 = vld [vmem:[#allocation7 + $0xf0c] ss:$60 sps:$4 sm:$0xff]  }
 0x119   :  { %1413 = vmatprep.subr.bf16.mxu0 %v19036_v13  ;;  %v19086_v13 = vld [vmem:[#allocation7 + $0x348] ss:$60 sps:$4 sm:$0xff]   ;;  %v19133_v26 = vld [vmem:[#allocation7 + $0x1070] ss:$60 sps:$4 sm:$0xff]  }
 0x11b   :  { %1451 = vmatpush1.bf16.msra.mxu1 %v19019_v28  ;;  %v19108_v28 = vld [vmem:[#allocation7 + $0x528] ss:$60 sps:$4 sm:$0xff]  }
 0x11c   :  { %1414 = vmatpush1.bf16.msra.mxu0 %v19034_v16  ;;  %1452 = vmatprep.subr.bf16.mxu1 %v19027_v30  ;;  %v19123_v16 = vld [vmem:[#allocation7 + $0xf84] ss:$60 sps:$4 sm:$0xff]  }
 0x11d   :  { %16474 = vmatprep.subr.msk.bf16.mxu0 %vm1186_vm1, %v16461_v18  ;;  %v19121_v18 = vld [vmem:[#allocation7 + $0xf80] ss:$60 sps:$4 sm:$0xff]  }
 0x11e   :  { %v19114_v30 = vld [vmem:[#allocation7 + $0x5a4] ss:$60 sps:$4 sm:$0xff]  }
 0x11f   :  { %1453 = vmatpush1.bf16.msra.mxu1 %v19025_v32  ;;  %v19112_v32 = vld [vmem:[#allocation7 + $0x5a0] ss:$60 sps:$4 sm:$0xff]  }
 0x120   :  { %1416 = vmatpush1.bf16.msra.mxu0 %v1212_v22  ;;  %1454 = vmatprep.subr.bf16.mxu1 %v19033_v33  ;;  %v19127_v22 = vld [vmem:[#allocation7 + $0xff8] ss:$60 sps:$4 sm:$0xff]   ;;  %v19145_v33 = vld [vmem:[#allocation7 + $0x1160] ss:$60 sps:$4 sm:$0xff]  }
 0x121   :  { %1475 = vmatprep.subr.bf16.mxu0 %v19043_v23  ;;  %v19106_v23 = vld [vmem:[#allocation7 + $0x4b4] ss:$60 sps:$4 sm:$0xff]  }
 0x123   :  { %1426 = vmatmul.mubr.bf16.vlgmr.msra.gmra.mrb[8].mxu0 %v22288_v44  ;;  %1455 = vmatpush1.bf16.msra.mxu1 %v19031_v37  ;;  %v19151_v37 = vld [vmem:[#allocation7 + $0x11d8] ss:$60 sps:$4 sm:$0xff]  }
 0x124   :  { %1476 = vmatpush1.bf16.msra.mxu0 %v19041_v25  ;;  %16479 = vmatprep.mubr.msk.bf16.mxu0 %vm1182_vm0, %v22278_v12  ;;  %v19065_v12 = vld [vmem:[#allocation4 + $0x1f0] ss:$56 sps:$4 sm:$0xff]  }
 0x125   :  { %1477 = vmatprep.subr.bf16.mxu0 %v19049_v27  ;;  %16476 = vmatprep.subr.msk.bf16.mxu1 %vm1186_vm1, %v16463_v39  ;;  %v19104_v25 = vld [vmem:[#allocation7 + $0x4b0] ss:$60 sps:$4 sm:$0xff]  }
 0x126   :  { %v19141_v27 = vld [vmem:[#allocation7 + $0x10ec] ss:$60 sps:$4 sm:$0xff]   ;;  %v19159_v39 = vld [vmem:[#allocation7 + $0x1254] ss:$60 sps:$4 sm:$0xff]  }
 0x127   :  { %1457 = vmatpush1.bf16.msra.mxu1 %v1218_v42  ;;  %v19165_v42 = vld [vmem:[#allocation7 + $0x12cc] ss:$60 sps:$4 sm:$0xff]  }
 0x128   :  { %1478 = vmatpush1.bf16.msra.mxu0 %v19047_v29  ;;  %11927 = vmatprep.subr.bf16.mxu1 %v19046_v43  ;;  %v19139_v29 = vld [vmem:[#allocation7 + $0x10e8] ss:$60 sps:$4 sm:$0xff]  }
 0x129   :  { %1479 = vmatprep.subr.bf16.mxu0 %v19055_v31  ;;  %v19147_v31 = vld [vmem:[#allocation7 + $0x1164] ss:$60 sps:$4 sm:$0xff]  }
 0x12a   :  { %1467 = vmatmul.mubr.bf16.vlgmr.msra.gmra.mrb[8].mxu1 %v22288_v44  ;;  %v19130_v43 = vld [vmem:[#allocation7 + $0x708] ss:$60 sps:$4 sm:$0xff]  }
 0x12b   :  { %11928 = vmatpush1.bf16.msra.mxu1 %v19044_v46  ;;  %v19138_v46 = vld [vmem:[#allocation7 + $0x784] ss:$60 sps:$4 sm:$0xff]  }
 0x12c   :  { %1480 = vmatpush1.bf16.msra.mxu0 %v19053_v34  ;;  %11929 = vmatprep.subr.bf16.mxu1 %v19052_v48  ;;  %v19120_v34 = vld [vmem:[#allocation7 + $0x61c] ss:$60 sps:$4 sm:$0xff]  }
 0x12d   :  { %1481 = vmatprep.subr.bf16.mxu0 %v19061_v36  ;;  %v19118_v36 = vld [vmem:[#allocation7 + $0x618] ss:$60 sps:$4 sm:$0xff]   ;;  %v19169_v48 = vld [vmem:[#allocation7 + $0x1340] ss:$60 sps:$4 sm:$0xff]  }
 0x12f   :  { %11930 = vmatpush1.bf16.msra.mxu1 %v19050_v50  ;;  %v19175_v50 = vld [vmem:[#allocation7 + $0x13b8] ss:$60 sps:$4 sm:$0xff]  }
 0x130   :  { %1482 = vmatpush1.bf16.msra.mxu0 %v19059_v38  ;;  %11931 = vmatprep.subr.bf16.mxu1 %v19058_v52  ;;  %v19126_v38 = vld [vmem:[#allocation7 + $0x694] ss:$60 sps:$4 sm:$0xff]  }
 0x131   :  { %1483 = vmatprep.subr.bf16.mxu0 %v19067_v41  ;;  %v19157_v41 = vld [vmem:[#allocation7 + $0x1250] ss:$60 sps:$4 sm:$0xff]  }
 0x132   :  { %v19181_v52 = vld [vmem:[#allocation7 + $0x1430] ss:$60 sps:$4 sm:$0xff]  }
 0x133   :  { %11932 = vmatpush1.bf16.msra.mxu1 %v19056_v54  ;;  %v19187_v54 = vld [vmem:[#allocation7 + $0x14a8] ss:$60 sps:$4 sm:$0xff]  }
 0x134   :  { %1484 = vmatpush1.bf16.msra.mxu0 %v19065_v12  ;;  %11933 = vmatprep.subr.bf16.mxu1 %v19064_v56  ;;  %v19132_v12 = vld [vmem:[#allocation7 + $0x70c] ss:$60 sps:$4 sm:$0xff]   ;;  %v19193_v56 = vld [vmem:[#allocation7 + $0x1520] ss:$60 sps:$4 sm:$0xff]  }
 0x135   :  { %1485 = vmatprep.subr.bf16.mxu0 %v19073_v45  ;;  %v19163_v45 = vld [vmem:[#allocation7 + $0x12c8] ss:$60 sps:$4 sm:$0xff]  }
 0x137   :  { %11934 = vmatpush1.bf16.msra.mxu1 %v19062_v58  ;;  %v301_v58 = vlaneseq }
 0x138   :  { %1486 = vmatpush1.bf16.msra.mxu0 %v19071_v47  ;;  %11935 = vmatprep.subr.bf16.mxu1 %v19070_v60  ;;  %v19171_v47 = vld [vmem:[#allocation7 + $0x1344] ss:$60 sps:$4 sm:$0xff]   ;;  %v19207_v60 = vld [vmem:[#allocation7 + $0x1614] ss:$60 sps:$4 sm:$0xff]  }
 0x139   :  { %1487 = vmatprep.subr.bf16.mxu0 %v19079_v49  ;;  %v19177_v49 = vld [vmem:[#allocation7 + $0x13bc] ss:$60 sps:$4 sm:$0xff]  }
 0x13b   :  { %11936 = vmatpush1.bf16.msra.mxu1 %v19068_v62  ;;  %v19205_v62 = vld [vmem:[#allocation7 + $0x1610] ss:$60 sps:$4 sm:$0xff]  }
 0x13c   :  { %1488 = vmatpush1.bf16.msra.mxu0 %v19077_v51  ;;  %11937 = vmatprep.subr.bf16.mxu1 %v19076_v0  ;;  %v19183_v51 = vld [vmem:[#allocation7 + $0x1434] ss:$60 sps:$4 sm:$0xff]  }
 0x13d   :  { %1489 = vmatprep.subr.bf16.mxu0 %v19085_v53  ;;  %v19189_v53 = vld [vmem:[#allocation7 + $0x14ac] ss:$60 sps:$4 sm:$0xff]  }
 0x13f   :  { %11938 = vmatpush1.bf16.msra.mxu1 %v19074_v2 }
 0x140   :  { %1490 = vmatpush1.bf16.msra.mxu0 %v19083_v55  ;;  %11939 = vmatprep.subr.bf16.mxu1 %v19082_v5  ;;  %v19195_v55 = vld [vmem:[#allocation7 + $0x1524] ss:$60 sps:$4 sm:$0xff]  }
 0x141   :  { %1491 = vmatprep.subr.bf16.mxu0 %v19091_v57  ;;  %v19201_v57 = vld [vmem:[#allocation7 + $0x159c] ss:$60 sps:$4 sm:$0xff]  }
 0x143   :  { %11940 = vmatpush1.bf16.msra.mxu1 %v19080_v8 }
 0x144   :  { %1492 = vmatpush1.bf16.msra.mxu0 %v19089_v59  ;;  %11941 = vmatprep.subr.bf16.mxu1 %v19088_v9  ;;  %v19199_v59 = vld [vmem:[#allocation7 + $0x1598] ss:$60 sps:$4 sm:$0xff]  }
 0x145   :  { %1493 = vmatprep.subr.bf16.mxu0 %v19097_v61  ;;  %v22319_v61 = vshrl.u32 %v301_v58, 7 }
 0x147   :  { %11942 = vmatpush1.bf16.msra.mxu1 %v19086_v13  ;;  %v22322_v0 = vsub.s32 0, %v22319_v61  ;;  %v22327_v2 = vsub.s32 1, %v22319_v61 }
 0x148   :  { %1494 = vmatpush1.bf16.msra.mxu0 %v19095_v63  ;;  %11943 = vmatprep.subr.bf16.mxu1 %v19094_v15  ;;  %v19213_v63 = vld [vmem:[#allocation7 + $0x168c] ss:$60 sps:$4 sm:$0xff]  }
 0x149   :  { %1495 = vmatprep.subr.bf16.mxu0 %v19103_v1  ;;  %v22324_v1 = vld [vmem:[#allocation6] sm:$0xff] }
 0x14a   :  { %v308_v4 = vrot.slane %v22324_v1, %v22327_v2 }
 0x14b   :  { %11944 = vmatpush1.bf16.msra.mxu1 %v19092_v17  ;;  %v19144_v17 = vld [vmem:[#allocation7 + $0x7fc] ss:$60 sps:$4 sm:$0xff]  }
 0x14c   :  { %1496 = vmatpush1.bf16.msra.mxu0 %v19101_v3  ;;  %11945 = vmatprep.subr.bf16.mxu1 %v19100_v19  ;;  %v304_v3 = vrot.slane %v22324_v1, %v22322_v0  ;;  %v19150_v19 = vld [vmem:[#allocation7 + $0x874] ss:$60 sps:$4 sm:$0xff]  }
 0x14d   :  { %16478 = vmatprep.subr.msk.bf16.mxu0 %vm1186_vm1, %v16465_v6 }
 0x14f   :  { %11946 = vmatpush1.bf16.msra.mxu1 %v19098_v21  ;;  %v22340_v21 = vsub.s32 3, %v22319_v61 }
 0x150   :  { %1498 = vmatpush1.bf16.msra.mxu0 %v1224_v10  ;;  %11947 = vmatprep.subr.bf16.mxu1 %v19106_v23  ;;  %v19154_v23 = vld [vmem:[#allocation7 + $0x8e8] ss:$60 sps:$4 sm:$0xff]  }
 0x151   :  { %12296 = vmatprep.subr.bf16.mxu0 %v19117_v11 }
 0x153   :  { %1508 = vmatmul.mubr.bf16.vlgmr.msra.gmra.mrb[12].mxu0 %v22288_v44  ;;  %v19110_v44 = vld [vmem:[#allocation7 + $0x52c] ss:$60 sps:$4 sm:$0xff]   ;;  %11948 = vmatpush1.bf16.msra.mxu1 %v19104_v25  ;;  %v19162_v25 = vld [vmem:[#allocation7 + $0x964] ss:$60 sps:$4 sm:$0xff]  }
 0x154   :  { %12297 = vmatpush1.bf16.msra.mxu0 %v19115_v14  ;;  %11949 = vmatprep.subr.bf16.mxu1 %v19110_v44  ;;  %v19136_v14 = vld [vmem:[#allocation7 + $0x780] ss:$60 sps:$4 sm:$0xff]  }
 0x155   :  { %12298 = vmatprep.subr.bf16.mxu0 %v19123_v16 }
 0x157   :  { %11950 = vmatpush1.bf16.msra.mxu1 %v19108_v28 }
 0x158   :  { %12299 = vmatpush1.bf16.msra.mxu0 %v19121_v18  ;;  %11951 = vmatprep.subr.bf16.mxu1 %v19114_v30  ;;  %v19142_v18 = vld [vmem:[#allocation7 + $0x7f8] ss:$60 sps:$4 sm:$0xff]  }
 0x159   :  { %12300 = vmatprep.subr.bf16.mxu0 %v19129_v20  ;;  %v19148_v20 = vld [vmem:[#allocation7 + $0x870] ss:$60 sps:$4 sm:$0xff]   ;;  %v19168_v30 = vld [vmem:[#allocation7 + $0x9dc] ss:$60 sps:$4 sm:$0xff]  }
 0x15b   :  { %11952 = vmatpush1.bf16.msra.mxu1 %v19112_v32 }
 0x15c   :  { %12301 = vmatpush1.bf16.msra.mxu0 %v19127_v22  ;;  %11953 = vmatprep.subr.bf16.mxu1 %v19120_v34  ;;  %v19156_v22 = vld [vmem:[#allocation7 + $0x8ec] ss:$60 sps:$4 sm:$0xff]  }
 0x15d   :  { %12302 = vmatprep.subr.bf16.mxu0 %v19135_v24  ;;  %v316_v24 = vrot.slane %v22324_v1, %v22340_v21 }
 0x15f   :  { %11954 = vmatpush1.bf16.msra.mxu1 %v19118_v36  ;;  %v19172_v36 = vld [vmem:[#allocation7 + $0xa50] ss:$60 sps:$4 sm:$0xff]  }
 0x160   :  { %12303 = vmatpush1.bf16.msra.mxu0 %v19133_v26  ;;  %11955 = vmatprep.subr.bf16.mxu1 %v19126_v38  ;;  %v19160_v26 = vld [vmem:[#allocation7 + $0x960] ss:$60 sps:$4 sm:$0xff]   ;;  %v19178_v38 = vld [vmem:[#allocation7 + $0xac8] ss:$60 sps:$4 sm:$0xff]  }
 0x161   :  { %12304 = vmatprep.subr.bf16.mxu0 %v19141_v27 }
 0x163   :  { %11956 = vmatpush1.bf16.msra.mxu1 %v19124_v40  ;;  %v19184_v40 = vld [vmem:[#allocation7 + $0xb40] ss:$60 sps:$4 sm:$0xff]  }
 0x164   :  { %12305 = vmatpush1.bf16.msra.mxu0 %v19139_v29  ;;  %11957 = vmatprep.subr.bf16.mxu1 %v19132_v12  ;;  %v19190_v12 = vld [vmem:[#allocation7 + $0xbb8] ss:$60 sps:$4 sm:$0xff]  }
 0x165   :  { %12306 = vmatprep.subr.bf16.mxu0 %v19147_v31 }
 0x167   :  { %11958 = vmatpush1.bf16.msra.mxu1 %v19130_v43  ;;  %v22353_v43 = vsub.s32 5, %v22319_v61 }
 0x168   :  { %12307 = vmatpush1.bf16.msra.mxu0 %v19145_v33  ;;  %11968 = vmatprep.subr.bf16.mxu1 %v19138_v46  ;;  %v19166_v33 = vld [vmem:[#allocation7 + $0x9d8] ss:$60 sps:$4 sm:$0xff]   ;;  %v19196_v46 = vld [vmem:[#allocation7 + $0xc30] ss:$60 sps:$4 sm:$0xff]  }
 0x169   :  { %12308 = vmatprep.subr.bf16.mxu0 %v19153_v35  ;;  %v19174_v35 = vld [vmem:[#allocation7 + $0xa54] ss:$60 sps:$4 sm:$0xff]  }
 0x16c   :  { %12309 = vmatpush1.bf16.msra.mxu0 %v19151_v37  ;;  %v19180_v37 = vld [vmem:[#allocation7 + $0xacc] ss:$60 sps:$4 sm:$0xff]  }
 0x16d   :  { %12310 = vmatprep.subr.bf16.mxu0 %v19159_v39  ;;  %v19186_v39 = vld [vmem:[#allocation7 + $0xb44] ss:$60 sps:$4 sm:$0xff]  }
 0x170   :  { %12311 = vmatpush1.bf16.msra.mxu0 %v19157_v41  ;;  %v19192_v41 = vld [vmem:[#allocation7 + $0xbbc] ss:$60 sps:$4 sm:$0xff]  }
 0x171   :  { %12312 = vmatprep.subr.bf16.mxu0 %v19165_v42  ;;  %v22350_v42 = vsub.s32 4, %v22319_v61 }
 0x174   :  { %12313 = vmatpush1.bf16.msra.mxu0 %v19163_v45  ;;  %v19198_v45 = vld [vmem:[#allocation7 + $0xc34] ss:$60 sps:$4 sm:$0xff]  }
 0x175   :  { %12314 = vmatprep.subr.bf16.mxu0 %v19171_v47  ;;  %v320_v47 = vrot.slane %v22324_v1, %v22350_v42 }
 0x178   :  { %12315 = vmatpush1.bf16.msra.mxu0 %v19169_v48  ;;  %v324_v48 = vrot.slane %v22324_v1, %v22353_v43 }
 0x179   :  { %12316 = vmatprep.subr.bf16.mxu0 %v19177_v49  ;;  %v19204_v49 = vld [vmem:[#allocation7 + $0xcac] ss:$60 sps:$4 sm:$0xff]  }
 0x17c   :  { %12317 = vmatpush1.bf16.msra.mxu0 %v19175_v50 }
 0x17d   :  { %12318 = vmatprep.subr.bf16.mxu0 %v19183_v51  ;;  %v19202_v51 = vld [vmem:[#allocation7 + $0xca8] ss:$60 sps:$4 sm:$0xff]  }
 0x180   :  { %12319 = vmatpush1.bf16.msra.mxu0 %v19181_v52 }
 0x181   :  { %12320 = vmatprep.subr.bf16.mxu0 %v19189_v53 }
 0x184   :  { %12321 = vmatpush1.bf16.msra.mxu0 %v19187_v54 }
 0x185   :  { %12322 = vmatprep.subr.bf16.mxu0 %v19195_v55 }
 0x188   :  { %12323 = vmatpush1.bf16.msra.mxu0 %v19193_v56 }
 0x189   :  { %12324 = vmatprep.subr.bf16.mxu0 %v19201_v57  ;;  %v19210_v57 = vld [vmem:[#allocation7 + $0xd24] ss:$60 sps:$4 sm:$0xff]  }
 0x18c   :  { %12325 = vmatpush1.bf16.msra.mxu0 %v19199_v59 }
 0x18d   :  { %12326 = vmatprep.subr.bf16.mxu0 %v19207_v60  ;;  %v19208_v60 = vld [vmem:[#allocation7 + $0xd20] ss:$60 sps:$4 sm:$0xff]  }
 0x190   :  { %12327 = vmatpush1.bf16.msra.mxu0 %v19205_v62  ;;  %v19211_v62 = vld [vmem:[#allocation7 + $0x1688] ss:$60 sps:$4 sm:$0xff]  }
 0x191   :  { %12337 = vmatprep.subr.bf16.mxu0 %v19213_v63 }
 0x196   :  { %v1263_v5 = vpop.f32.mrb[0].mxu0 }
 0x197   :  { %v1264_v6 = vadd.f32 %v1263_v5, %v304_v3  ;;  %v1265_v7 = vpop.f32.mrb[1].mxu0  ;;  %v19216_v5 = vld [vmem:[#allocation7 + $0xd9c] ss:$60 sps:$4 sm:$0xff]  }
 0x198   :  { %v1266_v8 = vadd.f32 %v1265_v7, %v308_v4  ;;  %v1267_v9 = vpop.f32.mrb[2].mxu0  ;;  %v22364_v4 = vsub.s32 2, %v22319_v61  ;;  %v19214_v7 = vld [vmem:[#allocation7 + $0xd98] ss:$60 sps:$4 sm:$0xff]  }
 0x199   :  { %v1516_v10 = vmax.f32 %v1264_v6, 0.0  ;;  %v1268_v11 = vpop.f32.mrb[3].mxu0  ;;  %v19219_v6 = vld [vmem:[#allocation7 + $0x1704] ss:$60 sps:$4 sm:$0xff]  }
 0x19a   :  { %v1517_v13 = vmax.f32 %v1266_v8, 0.0  ;;  %v19217_v8 = vld [vmem:[#allocation7 + $0x1700] ss:$60 sps:$4 sm:$0xff]   ;;  %v312_v9 = vrot.slane %v22324_v1, %v22364_v4 }
 0x19b   :  { %v22335_v16 = vpack.c.bf16 %v1516_v10, %v1516_v10  ;;  %v19222_v10 = vld [vmem:[#allocation7 + $0xe14] ss:$60 sps:$4 sm:$0xff]   ;;  %v19225_v11 = vld [vmem:[#allocation7 + $0x177c] ss:$60 sps:$4 sm:$0xff]  }
 0x19c   :  { %v22333_v15 = vpack.c.bf16 %v1517_v13, %v1517_v13  ;;  %v19220_v13 = vld [vmem:[#allocation7 + $0xe10] ss:$60 sps:$4 sm:$0xff]  }
 0x19d   :  { %v22344_v44 = vpop.f32.mrb[0].mxu1 }
 0x19e   :  { %11959 = vmatprep.mubr.bf16.mxu1 %v22333_v15  ;;  %v1306_v27 = vpop.f32.mrb[1].mxu1 }
 0x19f   :  { %11960 = vmatmul.mubr.bf16.vlgmr.msra.gmra.mrb[12].mxu1 %v22335_v16  ;;  %v1307_v28 = vadd.f32 %v1306_v27, %v316_v24  ;;  %v1308_v29 = vpop.f32.mrb[2].mxu1  ;;  %v19237_v27 = vld [vmem:[#allocation7 + $0x186c] ss:$60 sps:$4 sm:$0xff]  }
 0x1a0   :  { %11969 = vmatpush1.bf16.msra.mxu1 %v19136_v14  ;;  %v1309_v31 = vpop.f32.mrb[3].mxu1  ;;  %v19223_v14 = vld [vmem:[#allocation7 + $0x1778] ss:$60 sps:$4 sm:$0xff]   ;;  %v19235_v29 = vld [vmem:[#allocation7 + $0x1868] ss:$60 sps:$4 sm:$0xff]  }
 0x1a1   :  { %11970 = vmatprep.subr.bf16.mxu1 %v19144_v17  ;;  %v1519_v32 = vmax.f32 %v1307_v28, 0.0  ;;  %v331_v17 = vsub.s32 7, %v22319_v61  ;;  %v19232_v28 = vld [vmem:[#allocation7 + $0xf00] ss:$60 sps:$4 sm:$0xff]  }
 0x1a2   :  { %v19243_v31 = vld [vmem:[#allocation7 + $0x18e4] ss:$60 sps:$4 sm:$0xff]  }
 0x1a3   :  { %v22346_v34 = vpack.c.bf16 %v1519_v32, %v1519_v32  ;;  %v332_v24 = vrot.slane %v22324_v1, %v331_v17 }
 0x1a4   :  { %11971 = vmatpush1.bf16.msra.mxu1 %v19142_v18  ;;  %v1305_v18 = vadd.f32 %v22344_v44, %v312_v9  ;;  %v19274_v9 = vld [vmem:[#allocation7 + $0x1248] ss:$60 sps:$4 sm:$0xff]  }
 0x1a5   :  { %11972 = vmatprep.subr.bf16.mxu1 %v19150_v19  ;;  %12000 = vmatprep.mubr.bf16.mxu1 %v22346_v34  ;;  %v19228_v19 = vld [vmem:[#allocation7 + $0xe8c] ss:$60 sps:$4 sm:$0xff]  }
 0x1a8   :  { %11973 = vmatpush1.bf16.msra.mxu1 %v19148_v20  ;;  %v19231_v20 = vld [vmem:[#allocation7 + $0x17f4] ss:$60 sps:$4 sm:$0xff]  }
 0x1a9   :  { %11974 = vmatprep.subr.bf16.mxu1 %v19156_v22  ;;  %v19226_v22 = vld [vmem:[#allocation7 + $0xe88] ss:$60 sps:$4 sm:$0xff]  }
 0x1ac   :  { %11975 = vmatpush1.bf16.msra.mxu1 %v19154_v23  ;;  %v19229_v23 = vld [vmem:[#allocation7 + $0x17f0] ss:$60 sps:$4 sm:$0xff]  }
 0x1ad   :  { %11976 = vmatprep.subr.bf16.mxu1 %v19162_v25  ;;  %v1518_v25 = vmax.f32 %v1305_v18, 0.0  ;;  %v19282_v18 = vld [vmem:[#allocation7 + $0x12c4] ss:$60 sps:$4 sm:$0xff]  }
 0x1b0   :  { %11977 = vmatpush1.bf16.msra.mxu1 %v19160_v26  ;;  %v19234_v26 = vld [vmem:[#allocation7 + $0xf04] ss:$60 sps:$4 sm:$0xff]  }
 0x1b1   :  { %11978 = vmatprep.subr.bf16.mxu1 %v19168_v30  ;;  %v19240_v30 = vld [vmem:[#allocation7 + $0xf7c] ss:$60 sps:$4 sm:$0xff]  }
 0x1b4   :  { %11979 = vmatpush1.bf16.msra.mxu1 %v19166_v33 }
 0x1b5   :  { %11980 = vmatprep.subr.bf16.mxu1 %v19174_v35 }
 0x1b8   :  { %11981 = vmatpush1.bf16.msra.mxu1 %v19172_v36  ;;  %v22377_v36 = vpack.c.bf16 %v1518_v25, %v1518_v25  ;;  %v19288_v25 = vld [vmem:[#allocation7 + $0x133c] ss:$60 sps:$4 sm:$0xff]  }
 0x1b9   :  { %11982 = vmatprep.subr.bf16.mxu1 %v19180_v37 }
 0x1bc   :  { %11983 = vmatpush1.bf16.msra.mxu1 %v19178_v38 }
 0x1bd   :  { %11984 = vmatprep.subr.bf16.mxu1 %v19186_v39  ;;  %v19238_v39 = vld [vmem:[#allocation7 + $0xf78] ss:$60 sps:$4 sm:$0xff]  }
 0x1c0   :  { %11985 = vmatpush1.bf16.msra.mxu1 %v19184_v40  ;;  %v19241_v40 = vld [vmem:[#allocation7 + $0x18e0] ss:$60 sps:$4 sm:$0xff]  }
 0x1c1   :  { %11986 = vmatprep.subr.bf16.mxu1 %v19192_v41 }
 0x1c4   :  { %11987 = vmatpush1.bf16.msra.mxu1 %v19190_v12  ;;  %v19246_v12 = vld [vmem:[#allocation7 + $0xff4] ss:$60 sps:$4 sm:$0xff]  }
 0x1c5   :  { %11988 = vmatprep.subr.bf16.mxu1 %v19198_v45  ;;  %v19249_v45 = vld [vmem:[#allocation7 + $0x195c] ss:$60 sps:$4 sm:$0xff]  }
 0x1c6   :  { %v1345_v50 = vpop.f32.mrb[4].mxu0 }
 0x1c7   :  { %v1346_v52 = vadd.f32 %v1345_v50, %v320_v47  ;;  %v1347_v53 = vpop.f32.mrb[5].mxu0  ;;  %v19247_v47 = vld [vmem:[#allocation7 + $0x1958] ss:$60 sps:$4 sm:$0xff]   ;;  %v19250_v50 = vld [vmem:[#allocation7 + $0x1068] ss:$60 sps:$4 sm:$0xff]  }
 0x1c8   :  { %v1348_v54 = vadd.f32 %v1347_v53, %v324_v48  ;;  %11989 = vmatpush1.bf16.msra.mxu1 %v19196_v46  ;;  %v1349_v55 = vpop.f32.mrb[6].mxu0  ;;  %v19244_v46 = vld [vmem:[#allocation7 + $0xff0] ss:$60 sps:$4 sm:$0xff]  }
 0x1c9   :  { %v1520_v56 = vmax.f32 %v1346_v52, 0.0  ;;  %11990 = vmatprep.subr.bf16.mxu1 %v19204_v49  ;;  %v1350_v58 = vpop.f32.mrb[7].mxu0  ;;  %v19252_v48 = vld [vmem:[#allocation7 + $0x106c] ss:$60 sps:$4 sm:$0xff]   ;;  %v19255_v49 = vld [vmem:[#allocation7 + $0x19d4] ss:$60 sps:$4 sm:$0xff]  }
 0x1ca   :  { %v1521_v59 = vmax.f32 %v1348_v54, 0.0  ;;  %v19258_v52 = vld [vmem:[#allocation7 + $0x10e4] ss:$60 sps:$4 sm:$0xff]   ;;  %v19261_v53 = vld [vmem:[#allocation7 + $0x1a4c] ss:$60 sps:$4 sm:$0xff]  }
 0x1cb   :  { %v22359_v63 = vpack.c.bf16 %v1520_v56, %v1520_v56  ;;  %v19256_v54 = vld [vmem:[#allocation7 + $0x10e0] ss:$60 sps:$4 sm:$0xff]   ;;  %v19259_v55 = vld [vmem:[#allocation7 + $0x1a48] ss:$60 sps:$4 sm:$0xff]   ;;  %v19262_v58 = vld [vmem:[#allocation7 + $0x1158] ss:$60 sps:$4 sm:$0xff]  }
 0x1cc   :  { %v22361_v3 = vpack.c.bf16 %v1521_v59, %v1521_v59  ;;  %11991 = vmatpush1.bf16.msra.mxu1 %v19202_v51  ;;  %v19253_v51 = vld [vmem:[#allocation7 + $0x19d0] ss:$60 sps:$4 sm:$0xff]   ;;  %v19264_v56 = vld [vmem:[#allocation7 + $0x115c] ss:$60 sps:$4 sm:$0xff]  }
 0x1cd   :  { %11992 = vmatprep.subr.bf16.mxu1 %v19210_v57  ;;  %v22375_v44 = vpop.f32.mrb[4].mxu1  ;;  %v19267_v57 = vld [vmem:[#allocation7 + $0x1ac4] ss:$60 sps:$4 sm:$0xff]  }
 0x1ce   :  { %12328 = vmatprep.mubr.bf16.mxu0 %v22361_v3  ;;  %v1388_v32 = vpop.f32.mrb[5].mxu1  ;;  %v19265_v59 = vld [vmem:[#allocation7 + $0x1ac0] ss:$60 sps:$4 sm:$0xff]  }
 0x1cf   :  { %12329 = vmatmul.mubr.bf16.vlgmr.msra.gmra.mrb[16].mxu0 %v22359_v63  ;;  %v1389_v33 = vadd.f32 %v1388_v32, %v332_v24  ;;  %v1390_v35 = vpop.f32.mrb[6].mxu1  ;;  %v22387_v24 = vsub.s32 6, %v22319_v61  ;;  %v22391_v32 = vld [vmem:[#allocation6 + $0x8] sm:$0x3f] }
 0x1d0   :  { %11993 = vmatpush1.bf16.msra.mxu1 %v19208_v60  ;;  %12338 = vmatpush1.bf16.msra.mxu0 %v19211_v62  ;;  %v1391_v37 = vpop.f32.mrb[7].mxu1  ;;  %v19270_v60 = vld [vmem:[#allocation7 + $0x11d4] ss:$60 sps:$4 sm:$0xff]   ;;  %v19273_v62 = vld [vmem:[#allocation7 + $0x1b3c] ss:$60 sps:$4 sm:$0xff]  }
 0x1d1   :  { %11994 = vmatprep.subr.bf16.mxu1 %v19216_v5  ;;  %12339 = vmatprep.subr.bf16.mxu0 %v19219_v6  ;;  %v1523_v38 = vmax.f32 %v1389_v33, 0.0  ;;  %v19268_v5 = vld [vmem:[#allocation7 + $0x11d0] ss:$60 sps:$4 sm:$0xff]   ;;  %v19271_v6 = vld [vmem:[#allocation7 + $0x1b38] ss:$60 sps:$4 sm:$0xff]   ;;  %v340_v37 = vrot.slane %v22391_v32, %v22327_v2 }
 0x1d2   :  { %v19292_v33 = vld [vmem:[#allocation7 + $0x13b0] ss:$60 sps:$4 sm:$0xff]   ;;  %v19295_v35 = vld [vmem:[#allocation7 + $0x1d18] ss:$60 sps:$4 sm:$0xff]  }
 0x1d3   :  { %v22380_v41 = vpack.c.bf16 %v1523_v38, %v1523_v38 }
 0x1d4   :  { %11995 = vmatpush1.bf16.msra.mxu1 %v19214_v7  ;;  %12340 = vmatpush1.bf16.msra.mxu0 %v19217_v8  ;;  %v19276_v7 = vld [vmem:[#allocation7 + $0x124c] ss:$60 sps:$4 sm:$0xff]   ;;  %v19279_v8 = vld [vmem:[#allocation7 + $0x1bb4] ss:$60 sps:$4 sm:$0xff]  }
 0x1d5   :  { %11996 = vmatprep.subr.bf16.mxu1 %v19222_v10  ;;  %12341 = vmatprep.subr.bf16.mxu0 %v19225_v11  ;;  %v19277_v10 = vld [vmem:[#allocation7 + $0x1bb0] ss:$60 sps:$4 sm:$0xff]  }
 0x1d6   :  { %12369 = vmatprep.mubr.bf16.mxu0 %v22380_v41 }
 0x1d8   :  { %11997 = vmatpush1.bf16.msra.mxu1 %v19220_v13  ;;  %12342 = vmatpush1.bf16.msra.mxu0 %v19223_v14 }
 0x1d9   :  { %11998 = vmatprep.subr.bf16.mxu1 %v19228_v19  ;;  %12343 = vmatprep.subr.bf16.mxu0 %v19231_v20  ;;  %v19285_v19 = vld [vmem:[#allocation7 + $0x1c2c] ss:$60 sps:$4 sm:$0xff]  }
 0x1dc   :  { %11999 = vmatpush1.bf16.msra.mxu1 %v19226_v22  ;;  %12344 = vmatpush1.bf16.msra.mxu0 %v19229_v23  ;;  %v19280_v22 = vld [vmem:[#allocation7 + $0x12c0] ss:$60 sps:$4 sm:$0xff]   ;;  %v19283_v23 = vld [vmem:[#allocation7 + $0x1c28] ss:$60 sps:$4 sm:$0xff]  }
 0x1dd   :  { %12009 = vmatprep.subr.bf16.mxu1 %v19234_v26  ;;  %12345 = vmatprep.subr.bf16.mxu0 %v19237_v27  ;;  %v19291_v26 = vld [vmem:[#allocation7 + $0x1ca4] ss:$60 sps:$4 sm:$0xff]   ;;  %v19286_v27 = vld [vmem:[#allocation7 + $0x1338] ss:$60 sps:$4 sm:$0xff]  }
 0x1df   :  { %12001 = vmatmul.mubr.bf16.vlgmr.msra.gmra.mrb[12].mxu1 %v22377_v36 }
 0x1e0   :  { %12010 = vmatpush1.bf16.msra.mxu1 %v19232_v28  ;;  %12346 = vmatpush1.bf16.msra.mxu0 %v19235_v29  ;;  %v19289_v28 = vld [vmem:[#allocation7 + $0x1ca0] ss:$60 sps:$4 sm:$0xff]   ;;  %v328_v29 = vrot.slane %v22324_v1, %v22387_v24  ;;  %v19298_v1 = vld [vmem:[#allocation7 + $0x1428] ss:$60 sps:$4 sm:$0xff]  }
 0x1e1   :  { %12011 = vmatprep.subr.bf16.mxu1 %v19240_v30  ;;  %12347 = vmatprep.subr.bf16.mxu0 %v19243_v31  ;;  %v19294_v30 = vld [vmem:[#allocation7 + $0x13b4] ss:$60 sps:$4 sm:$0xff]   ;;  %v19297_v31 = vld [vmem:[#allocation7 + $0x1d1c] ss:$60 sps:$4 sm:$0xff]  }
 0x1e2   :  { %12041 = vmatprep.mubr.bf16.mxu1 %v22361_v3  ;;  %v1387_v38 = vadd.f32 %v22375_v44, %v328_v29  ;;  %v19345_v29 = vld [vmem:[#allocation7 + $0x20dc] ss:$60 sps:$4 sm:$0xff]  }
 0x1e4   :  { %12012 = vmatpush1.bf16.msra.mxu1 %v19238_v39  ;;  %12348 = vmatpush1.bf16.msra.mxu0 %v19241_v40  ;;  %v19300_v39 = vld [vmem:[#allocation7 + $0x142c] ss:$60 sps:$4 sm:$0xff]   ;;  %v19303_v40 = vld [vmem:[#allocation7 + $0x1d94] ss:$60 sps:$4 sm:$0xff]  }
 0x1e5   :  { %12013 = vmatprep.subr.bf16.mxu1 %v19246_v12  ;;  %12349 = vmatprep.subr.bf16.mxu0 %v19249_v45  ;;  %v19301_v12 = vld [vmem:[#allocation7 + $0x1d90] ss:$60 sps:$4 sm:$0xff]  }
 0x1e8   :  { %12014 = vmatpush1.bf16.msra.mxu1 %v19244_v46  ;;  %12350 = vmatpush1.bf16.msra.mxu0 %v19247_v47  ;;  %v1522_v46 = vmax.f32 %v1387_v38, 0.0  ;;  %v19306_v47 = vld [vmem:[#allocation7 + $0x14a4] ss:$60 sps:$4 sm:$0xff]  }
 0x1e9   :  { %12015 = vmatprep.subr.bf16.mxu1 %v19252_v48  ;;  %12351 = vmatprep.subr.bf16.mxu0 %v19255_v49  ;;  %v19309_v48 = vld [vmem:[#allocation7 + $0x1e0c] ss:$60 sps:$4 sm:$0xff]   ;;  %v19304_v49 = vld [vmem:[#allocation7 + $0x14a0] ss:$60 sps:$4 sm:$0xff]  }
 0x1ea   :  { %v19354_v38 = vld [vmem:[#allocation7 + $0x1864] ss:$60 sps:$4 sm:$0xff]  }
 0x1ec   :  { %12016 = vmatpush1.bf16.msra.mxu1 %v19250_v50  ;;  %12352 = vmatpush1.bf16.msra.mxu0 %v19253_v51  ;;  %v19307_v50 = vld [vmem:[#allocation7 + $0x1e08] ss:$60 sps:$4 sm:$0xff]  }
 0x1ed   :  { %12017 = vmatprep.subr.bf16.mxu1 %v19258_v52  ;;  %12353 = vmatprep.subr.bf16.mxu0 %v19261_v53 }
 0x1f0   :  { %12018 = vmatpush1.bf16.msra.mxu1 %v19256_v54  ;;  %12354 = vmatpush1.bf16.msra.mxu0 %v19259_v55  ;;  %v22400_v54 = vpack.c.bf16 %v1522_v46, %v1522_v46  ;;  %v19312_v55 = vld [vmem:[#allocation7 + $0x151c] ss:$60 sps:$4 sm:$0xff]   ;;  %v19363_v46 = vld [vmem:[#allocation7 + $0x2244] ss:$60 sps:$4 sm:$0xff]  }
 0x1f1   :  { %12019 = vmatprep.subr.bf16.mxu1 %v19264_v56  ;;  %12355 = vmatprep.subr.bf16.mxu0 %v19267_v57  ;;  %v19315_v56 = vld [vmem:[#allocation7 + $0x1e84] ss:$60 sps:$4 sm:$0xff]  }
 0x1f4   :  { %12020 = vmatpush1.bf16.msra.mxu1 %v19262_v58  ;;  %12356 = vmatpush1.bf16.msra.mxu0 %v19265_v59  ;;  %v19310_v58 = vld [vmem:[#allocation7 + $0x1518] ss:$60 sps:$4 sm:$0xff]  }
 0x1f5   :  { %12021 = vmatprep.subr.bf16.mxu1 %v19270_v60  ;;  %12357 = vmatprep.subr.bf16.mxu0 %v19273_v62  ;;  %v19313_v60 = vld [vmem:[#allocation7 + $0x1e80] ss:$60 sps:$4 sm:$0xff]   ;;  %v19318_v62 = vld [vmem:[#allocation7 + $0x1594] ss:$60 sps:$4 sm:$0xff]  }
 0x1f6   :  { %v22384_v11 = vpop.f32.mrb[8].mxu0 }
 0x1f7   :  { %v1429_v13 = vpop.f32.mrb[9].mxu0 }
 0x1f8   :  { %12022 = vmatpush1.bf16.msra.mxu1 %v19268_v5  ;;  %12358 = vmatpush1.bf16.msra.mxu0 %v19271_v6  ;;  %v1431_v14 = vpop.f32.mrb[10].mxu0  ;;  %v1430_v45 = vadd.f32 %v1429_v13, %v340_v37  ;;  %v19321_v5 = vld [vmem:[#allocation7 + $0x1efc] ss:$60 sps:$4 sm:$0xff]   ;;  %v19316_v6 = vld [vmem:[#allocation7 + $0x1590] ss:$60 sps:$4 sm:$0xff]  }
 0x1f9   :  { %12023 = vmatprep.subr.bf16.mxu1 %v19276_v7  ;;  %12359 = vmatprep.subr.bf16.mxu0 %v19279_v8  ;;  %v1432_v20 = vpop.f32.mrb[11].mxu0  ;;  %v19319_v7 = vld [vmem:[#allocation7 + $0x1ef8] ss:$60 sps:$4 sm:$0xff]   ;;  %v19324_v8 = vld [vmem:[#allocation7 + $0x160c] ss:$60 sps:$4 sm:$0xff]  }
 0x1fa   :  { %v1525_v52 = vmax.f32 %v1430_v45, 0.0  ;;  %v19325_v13 = vld [vmem:[#allocation7 + $0x1f70] ss:$60 sps:$4 sm:$0xff]   ;;  %v19330_v14 = vld [vmem:[#allocation7 + $0x1684] ss:$60 sps:$4 sm:$0xff]  }
 0x1fb   :  { %v19331_v20 = vld [vmem:[#allocation7 + $0x1fe8] ss:$60 sps:$4 sm:$0xff]   ;;  %v19349_v37 = vld [vmem:[#allocation7 + $0x2150] ss:$60 sps:$4 sm:$0xff]   ;;  %v19358_v45 = vld [vmem:[#allocation7 + $0x18d8] ss:$60 sps:$4 sm:$0xff]  }
 0x1fc   :  { %12024 = vmatpush1.bf16.msra.mxu1 %v19274_v9  ;;  %12360 = vmatpush1.bf16.msra.mxu0 %v19277_v10  ;;  %v22402_v59 = vpack.c.bf16 %v1525_v52, %v1525_v52  ;;  %v19327_v9 = vld [vmem:[#allocation7 + $0x1f74] ss:$60 sps:$4 sm:$0xff]   ;;  %v19322_v10 = vld [vmem:[#allocation7 + $0x1608] ss:$60 sps:$4 sm:$0xff]  }
 0x1fd   :  { %12025 = vmatprep.subr.bf16.mxu1 %v19282_v18  ;;  %12361 = vmatprep.subr.bf16.mxu0 %v19285_v19  ;;  %v22396_v51 = vpop.f32.mrb[8].mxu1  ;;  %v19333_v18 = vld [vmem:[#allocation7 + $0x1fec] ss:$60 sps:$4 sm:$0xff]   ;;  %v19328_v19 = vld [vmem:[#allocation7 + $0x1680] ss:$60 sps:$4 sm:$0xff]  }
 0x1fe   :  { %v22398_v44 = vpop.f32.mrb[9].mxu1  ;;  %v19367_v52 = vld [vmem:[#allocation7 + $0x22b8] ss:$60 sps:$4 sm:$0xff]  }
 0x1ff   :  { %v1472_v53 = vpop.f32.mrb[10].mxu1 }
 0x200   :  { %12026 = vmatpush1.bf16.msra.mxu1 %v19280_v22  ;;  %12362 = vmatpush1.bf16.msra.mxu0 %v19283_v23  ;;  %v1473_v57 = vpop.f32.mrb[11].mxu1  ;;  %v19336_v22 = vld [vmem:[#allocation7 + $0x16fc] ss:$60 sps:$4 sm:$0xff]   ;;  %v19339_v23 = vld [vmem:[#allocation7 + $0x2064] ss:$60 sps:$4 sm:$0xff]  }
 0x201   :  { %12027 = vmatprep.subr.bf16.mxu1 %v19288_v25  ;;  %12363 = vmatprep.subr.bf16.mxu0 %v19291_v26  ;;  %v19334_v25 = vld [vmem:[#allocation7 + $0x16f8] ss:$60 sps:$4 sm:$0xff]   ;;  %v19337_v26 = vld [vmem:[#allocation7 + $0x2060] ss:$60 sps:$4 sm:$0xff]   ;;  %v19372_v53 = vld [vmem:[#allocation7 + $0x19cc] ss:$60 sps:$4 sm:$0xff]  }
 0x202   :  { %v19373_v57 = vld [vmem:[#allocation7 + $0x2330] ss:$60 sps:$4 sm:$0xff]  }
 0x204   :  { %12028 = vmatpush1.bf16.msra.mxu1 %v19286_v27  ;;  %12364 = vmatpush1.bf16.msra.mxu0 %v19289_v28  ;;  %v19342_v27 = vld [vmem:[#allocation7 + $0x1774] ss:$60 sps:$4 sm:$0xff]  }
 0x205   :  { %12029 = vmatprep.subr.bf16.mxu1 %v19294_v30  ;;  %12365 = vmatprep.subr.bf16.mxu0 %v19297_v31  ;;  %v19340_v28 = vld [vmem:[#allocation7 + $0x1770] ss:$60 sps:$4 sm:$0xff]   ;;  %v19343_v30 = vld [vmem:[#allocation7 + $0x20d8] ss:$60 sps:$4 sm:$0xff]  }
 0x206   :  { %v19348_v31 = vld [vmem:[#allocation7 + $0x17ec] ss:$60 sps:$4 sm:$0xff]  }
 0x208   :  { %12030 = vmatpush1.bf16.msra.mxu1 %v19292_v33  ;;  %12366 = vmatpush1.bf16.msra.mxu0 %v19295_v35  ;;  %v19346_v33 = vld [vmem:[#allocation7 + $0x17e8] ss:$60 sps:$4 sm:$0xff]   ;;  %v19351_v35 = vld [vmem:[#allocation7 + $0x2154] ss:$60 sps:$4 sm:$0xff]  }
 0x209   :  { %12031 = vmatprep.subr.bf16.mxu1 %v19300_v39  ;;  %12367 = vmatprep.subr.bf16.mxu0 %v19303_v40  ;;  %v19352_v39 = vld [vmem:[#allocation7 + $0x1860] ss:$60 sps:$4 sm:$0xff]   ;;  %v19357_v40 = vld [vmem:[#allocation7 + $0x21cc] ss:$60 sps:$4 sm:$0xff]  }
 0x20c   :  { %12032 = vmatpush1.bf16.msra.mxu1 %v19298_v1  ;;  %12368 = vmatpush1.bf16.msra.mxu0 %v19301_v12  ;;  %v19355_v1 = vld [vmem:[#allocation7 + $0x21c8] ss:$60 sps:$4 sm:$0xff]   ;;  %v19360_v12 = vld [vmem:[#allocation7 + $0x18dc] ss:$60 sps:$4 sm:$0xff]  }
 0x20d   :  { %12033 = vmatprep.subr.bf16.mxu1 %v19306_v47  ;;  %12378 = vmatprep.subr.bf16.mxu0 %v19309_v48  ;;  %v19361_v47 = vld [vmem:[#allocation7 + $0x2240] ss:$60 sps:$4 sm:$0xff]   ;;  %v19366_v48 = vld [vmem:[#allocation7 + $0x1954] ss:$60 sps:$4 sm:$0xff]  }
 0x20f   :  { %12370 = vmatmul.mubr.bf16.vlgmr.msra.gmra.mrb[16].mxu0 %v22400_v54 }
 0x210   :  { %12034 = vmatpush1.bf16.msra.mxu1 %v19304_v49  ;;  %12379 = vmatpush1.bf16.msra.mxu0 %v19307_v50  ;;  %v19364_v49 = vld [vmem:[#allocation7 + $0x1950] ss:$60 sps:$4 sm:$0xff]   ;;  %v19369_v50 = vld [vmem:[#allocation7 + $0x22bc] ss:$60 sps:$4 sm:$0xff]  }
 0x211   :  { %12035 = vmatprep.subr.bf16.mxu1 %v19312_v55  ;;  %12380 = vmatprep.subr.bf16.mxu0 %v19315_v56  ;;  %v19370_v55 = vld [vmem:[#allocation7 + $0x19c8] ss:$60 sps:$4 sm:$0xff]   ;;  %v19375_v56 = vld [vmem:[#allocation7 + $0x2334] ss:$60 sps:$4 sm:$0xff]  }
 0x212   :  { %12410 = vmatprep.mubr.bf16.mxu0 %v22402_v59 }
 0x214   :  { %12036 = vmatpush1.bf16.msra.mxu1 %v19310_v58  ;;  %12381 = vmatpush1.bf16.msra.mxu0 %v19313_v60  ;;  %v19378_v58 = vld [vmem:[#allocation7 + $0x1a44] ss:$60 sps:$4 sm:$0xff]  }
 0x215   :  { %12037 = vmatprep.subr.bf16.mxu1 %v19318_v62  ;;  %12382 = vmatprep.subr.bf16.mxu0 %v19321_v5  ;;  %v19376_v60 = vld [vmem:[#allocation7 + $0x1a40] ss:$60 sps:$4 sm:$0xff]   ;;  %v19381_v62 = vld [vmem:[#allocation7 + $0x23ac] ss:$60 sps:$4 sm:$0xff]  }
 0x216   :  { %v19379_v5 = vld [vmem:[#allocation7 + $0x23a8] ss:$60 sps:$4 sm:$0xff]  }
 0x218   :  { %12038 = vmatpush1.bf16.msra.mxu1 %v19316_v6  ;;  %12383 = vmatpush1.bf16.msra.mxu0 %v19319_v7  ;;  %v19384_v6 = vld [vmem:[#allocation7 + $0x1abc] ss:$60 sps:$4 sm:$0xff]  }
 0x219   :  { %12039 = vmatprep.subr.bf16.mxu1 %v19324_v8  ;;  %12384 = vmatprep.subr.bf16.mxu0 %v19327_v9  ;;  %v19382_v7 = vld [vmem:[#allocation7 + $0x1ab8] ss:$60 sps:$4 sm:$0xff]   ;;  %v19387_v8 = vld [vmem:[#allocation7 + $0x2424] ss:$60 sps:$4 sm:$0xff]   ;;  %v336_v9 = vrot.slane %v22391_v32, %v22322_v0 }
 0x21c   :  { %12040 = vmatpush1.bf16.msra.mxu1 %v19322_v10  ;;  %12385 = vmatpush1.bf16.msra.mxu0 %v19325_v13  ;;  %v19385_v10 = vld [vmem:[#allocation7 + $0x2420] ss:$60 sps:$4 sm:$0xff]   ;;  %v19390_v13 = vld [vmem:[#allocation7 + $0x1b34] ss:$60 sps:$4 sm:$0xff]  }
 0x21d   :  { %12050 = vmatprep.subr.bf16.mxu1 %v19330_v14  ;;  %12386 = vmatprep.subr.bf16.mxu0 %v19333_v18  ;;  %v19388_v14 = vld [vmem:[#allocation7 + $0x1b30] ss:$60 sps:$4 sm:$0xff]   ;;  %v19393_v18 = vld [vmem:[#allocation7 + $0x249c] ss:$60 sps:$4 sm:$0xff]  }
 0x21f   :  { %12042 = vmatmul.mubr.bf16.vlgmr.msra.gmra.mrb[12].mxu1 %v22359_v63 }
 0x220   :  { %12051 = vmatpush1.bf16.msra.mxu1 %v19328_v19  ;;  %12082 = vmatprep.mubr.bf16.mxu1 %v22380_v41  ;;  %v348_v19 = vrot.slane %v22391_v32, %v22340_v21 }
 0x221   :  { %12387 = vmatpush1.bf16.msra.mxu0 %v19331_v20  ;;  %12052 = vmatprep.subr.bf16.mxu1 %v19336_v22  ;;  %v1428_v20 = vadd.f32 %v22384_v11, %v336_v9  ;;  %v19391_v22 = vld [vmem:[#allocation7 + $0x2498] ss:$60 sps:$4 sm:$0xff]   ;;  %v19397_v11 = vld [vmem:[#allocation7 + $0x2510] ss:$60 sps:$4 sm:$0xff]  }
 0x222   :  { %12388 = vmatprep.subr.bf16.mxu0 %v19339_v23  ;;  %v19396_v23 = vld [vmem:[#allocation7 + $0x1bac] ss:$60 sps:$4 sm:$0xff]   ;;  %v19438_v9 = vld [vmem:[#allocation7 + $0x1ef4] ss:$60 sps:$4 sm:$0xff]  }
 0x224   :  { %12053 = vmatpush1.bf16.msra.mxu1 %v19334_v25 }
 0x225   :  { %12389 = vmatpush1.bf16.msra.mxu0 %v19337_v26  ;;  %12054 = vmatprep.subr.bf16.mxu1 %v19342_v27  ;;  %v19394_v26 = vld [vmem:[#allocation7 + $0x1ba8] ss:$60 sps:$4 sm:$0xff]   ;;  %v19399_v27 = vld [vmem:[#allocation7 + $0x2514] ss:$60 sps:$4 sm:$0xff]  }
 0x226   :  { %12390 = vmatprep.subr.bf16.mxu0 %v19345_v29  ;;  %v22413_v25 = vpop.f32.mrb[12].mxu0  ;;  %v1471_v29 = vadd.f32 %v22398_v44, %v348_v19  ;;  %v19411_v44 = vld [vmem:[#allocation7 + $0x2604] ss:$60 sps:$4 sm:$0xff]  }
 0x227   :  { %v19442_v19 = vld [vmem:[#allocation7 + $0x1f68] ss:$60 sps:$4 sm:$0xff]  }
 0x228   :  { %12055 = vmatpush1.bf16.msra.mxu1 %v19340_v28  ;;  %v22415_v28 = vpop.f32.mrb[13].mxu0 }
 0x229   :  { %12391 = vmatpush1.bf16.msra.mxu0 %v19343_v30  ;;  %12056 = vmatprep.subr.bf16.mxu1 %v19348_v31  ;;  %v1513_v30 = vpop.f32.mrb[14].mxu0  ;;  %v1524_v31 = vmax.f32 %v1428_v20, 0.0  ;;  %v19447_v20 = vld [vmem:[#allocation7 + $0x28d4] ss:$60 sps:$4 sm:$0xff]  }
 0x22a   :  { %12392 = vmatprep.subr.bf16.mxu0 %v19351_v35  ;;  %v1514_v32 = vpop.f32.mrb[15].mxu0  ;;  %v19400_v35 = vld [vmem:[#allocation7 + $0x1c20] ss:$60 sps:$4 sm:$0xff]  }
 0x22b   :  { %v19456_v30 = vld [vmem:[#allocation7 + $0x205c] ss:$60 sps:$4 sm:$0xff]   ;;  %v19459_v32 = vld [vmem:[#allocation7 + $0x29c4] ss:$60 sps:$4 sm:$0xff]  }
 0x22c   :  { %12057 = vmatpush1.bf16.msra.mxu1 %v19346_v33  ;;  %v19402_v33 = vld [vmem:[#allocation7 + $0x1c24] ss:$60 sps:$4 sm:$0xff]  }
 0x22d   :  { %12393 = vmatpush1.bf16.msra.mxu0 %v19349_v37  ;;  %12058 = vmatprep.subr.bf16.mxu1 %v19354_v38  ;;  %v19405_v37 = vld [vmem:[#allocation7 + $0x258c] ss:$60 sps:$4 sm:$0xff]   ;;  %v1527_v38 = vmax.f32 %v1471_v29, 0.0 }
 0x22e   :  { %12394 = vmatprep.subr.bf16.mxu0 %v19357_v40  ;;  %v19403_v40 = vld [vmem:[#allocation7 + $0x2588] ss:$60 sps:$4 sm:$0xff]  }
 0x22f   :  { %v19451_v29 = vld [vmem:[#allocation7 + $0x2948] ss:$60 sps:$4 sm:$0xff]  }
 0x230   :  { %12059 = vmatpush1.bf16.msra.mxu1 %v19352_v39  ;;  %v22418_v39 = vpack.c.bf16 %v1524_v31, %v1524_v31  ;;  %v19454_v31 = vld [vmem:[#allocation7 + $0x2058] ss:$60 sps:$4 sm:$0xff]  }
 0x231   :  { %12395 = vmatpush1.bf16.msra.mxu0 %v19355_v1  ;;  %12060 = vmatprep.subr.bf16.mxu1 %v19360_v12  ;;  %v19408_v1 = vld [vmem:[#allocation7 + $0x1c9c] ss:$60 sps:$4 sm:$0xff]   ;;  %v22420_v12 = vpack.c.bf16 %v1527_v38, %v1527_v38 }
 0x232   :  { %12396 = vmatprep.subr.bf16.mxu0 %v19363_v46  ;;  %v19409_v46 = vld [vmem:[#allocation7 + $0x2600] ss:$60 sps:$4 sm:$0xff]   ;;  %v19463_v38 = vld [vmem:[#allocation7 + $0x2a38] ss:$60 sps:$4 sm:$0xff]  }
 0x234   :  { %12061 = vmatpush1.bf16.msra.mxu1 %v19358_v45  ;;  %v19406_v45 = vld [vmem:[#allocation7 + $0x1c98] ss:$60 sps:$4 sm:$0xff]  }
 0x235   :  { %12397 = vmatpush1.bf16.msra.mxu0 %v19361_v47  ;;  %12062 = vmatprep.subr.bf16.mxu1 %v19366_v48  ;;  %v19414_v47 = vld [vmem:[#allocation7 + $0x1d14] ss:$60 sps:$4 sm:$0xff]  }
 0x236   :  { %12398 = vmatprep.subr.bf16.mxu0 %v19369_v50  ;;  %v19412_v48 = vld [vmem:[#allocation7 + $0x1d10] ss:$60 sps:$4 sm:$0xff]   ;;  %v19415_v50 = vld [vmem:[#allocation7 + $0x2678] ss:$60 sps:$4 sm:$0xff]  }
 0x238   :  { %12063 = vmatpush1.bf16.msra.mxu1 %v19364_v49  ;;  %v19417_v49 = vld [vmem:[#allocation7 + $0x267c] ss:$60 sps:$4 sm:$0xff]  }
 0x239   :  { %12399 = vmatpush1.bf16.msra.mxu0 %v19367_v52  ;;  %12064 = vmatprep.subr.bf16.mxu1 %v19372_v53  ;;  %v19420_v52 = vld [vmem:[#allocation7 + $0x1d8c] ss:$60 sps:$4 sm:$0xff]  }
 0x23a   :  { %12400 = vmatprep.subr.bf16.mxu0 %v19375_v56  ;;  %v19418_v53 = vld [vmem:[#allocation7 + $0x1d88] ss:$60 sps:$4 sm:$0xff]   ;;  %v19421_v56 = vld [vmem:[#allocation7 + $0x26f0] ss:$60 sps:$4 sm:$0xff]  }
 0x23c   :  { %12065 = vmatpush1.bf16.msra.mxu1 %v19370_v55  ;;  %v19423_v55 = vld [vmem:[#allocation7 + $0x26f4] ss:$60 sps:$4 sm:$0xff]  }
 0x23d   :  { %12401 = vmatpush1.bf16.msra.mxu0 %v19373_v57  ;;  %12066 = vmatprep.subr.bf16.mxu1 %v19378_v58  ;;  %v19426_v57 = vld [vmem:[#allocation7 + $0x1e04] ss:$60 sps:$4 sm:$0xff]   ;;  %v19429_v58 = vld [vmem:[#allocation7 + $0x276c] ss:$60 sps:$4 sm:$0xff]  }
 0x23e   :  { %12402 = vmatprep.subr.bf16.mxu0 %v19381_v62  ;;  %v19427_v62 = vld [vmem:[#allocation7 + $0x2768] ss:$60 sps:$4 sm:$0xff]  }
 0x240   :  { %12067 = vmatpush1.bf16.msra.mxu1 %v19376_v60  ;;  %v19424_v60 = vld [vmem:[#allocation7 + $0x1e00] ss:$60 sps:$4 sm:$0xff]  }
 0x241   :  { %12403 = vmatpush1.bf16.msra.mxu0 %v19379_v5  ;;  %12068 = vmatprep.subr.bf16.mxu1 %v19384_v6  ;;  %v19432_v5 = vld [vmem:[#allocation7 + $0x1e7c] ss:$60 sps:$4 sm:$0xff]   ;;  %v19435_v6 = vld [vmem:[#allocation7 + $0x27e4] ss:$60 sps:$4 sm:$0xff]  }
 0x242   :  { %12404 = vmatprep.subr.bf16.mxu0 %v19387_v8  ;;  %v19433_v8 = vld [vmem:[#allocation7 + $0x27e0] ss:$60 sps:$4 sm:$0xff]  }
 0x244   :  { %12069 = vmatpush1.bf16.msra.mxu1 %v19382_v7  ;;  %v19430_v7 = vld [vmem:[#allocation7 + $0x1e78] ss:$60 sps:$4 sm:$0xff]  }
 0x245   :  { %12405 = vmatpush1.bf16.msra.mxu0 %v19385_v10  ;;  %12070 = vmatprep.subr.bf16.mxu1 %v19390_v13  ;;  %v19436_v10 = vld [vmem:[#allocation7 + $0x1ef0] ss:$60 sps:$4 sm:$0xff]   ;;  %v19441_v13 = vld [vmem:[#allocation7 + $0x285c] ss:$60 sps:$4 sm:$0xff]  }
 0x246   :  { %12406 = vmatprep.subr.bf16.mxu0 %v19393_v18  ;;  %v19444_v18 = vld [vmem:[#allocation7 + $0x1f6c] ss:$60 sps:$4 sm:$0xff]  }
 0x248   :  { %12071 = vmatpush1.bf16.msra.mxu1 %v19388_v14  ;;  %v19439_v14 = vld [vmem:[#allocation7 + $0x2858] ss:$60 sps:$4 sm:$0xff]  }
 0x249   :  { %12407 = vmatpush1.bf16.msra.mxu0 %v19391_v22  ;;  %12072 = vmatprep.subr.bf16.mxu1 %v19396_v23  ;;  %v19445_v22 = vld [vmem:[#allocation7 + $0x28d0] ss:$60 sps:$4 sm:$0xff]   ;;  %v19450_v23 = vld [vmem:[#allocation7 + $0x1fe4] ss:$60 sps:$4 sm:$0xff]  }
 0x24a   :  { %12408 = vmatprep.subr.bf16.mxu0 %v19399_v27  ;;  %v19453_v27 = vld [vmem:[#allocation7 + $0x294c] ss:$60 sps:$4 sm:$0xff]  }
 0x24c   :  { %12073 = vmatpush1.bf16.msra.mxu1 %v19394_v26  ;;  %v19448_v26 = vld [vmem:[#allocation7 + $0x1fe0] ss:$60 sps:$4 sm:$0xff]  }
 0x24d   :  { %12409 = vmatpush1.bf16.msra.mxu0 %v19397_v11  ;;  %12074 = vmatprep.subr.bf16.mxu1 %v19402_v33  ;;  %v19457_v11 = vld [vmem:[#allocation7 + $0x29c0] ss:$60 sps:$4 sm:$0xff]   ;;  %v19462_v33 = vld [vmem:[#allocation7 + $0x20d4] ss:$60 sps:$4 sm:$0xff]  }
 0x24e   :  { %12419 = vmatprep.subr.bf16.mxu0 %v19405_v37  ;;  %v19465_v37 = vld [vmem:[#allocation7 + $0x2a3c] ss:$60 sps:$4 sm:$0xff]  }
 0x250   :  { %12411 = vmatmul.mubr.bf16.vlgmr.msra.gmra.mrb[16].mxu0 %v22418_v39  ;;  %12075 = vmatpush1.bf16.msra.mxu1 %v19400_v35  ;;  %v19460_v35 = vld [vmem:[#allocation7 + $0x20d0] ss:$60 sps:$4 sm:$0xff]  }
 0x251   :  { %12420 = vmatpush1.bf16.msra.mxu0 %v19403_v40  ;;  %12451 = vmatprep.mubr.bf16.mxu0 %v22420_v12  ;;  %v19468_v40 = vld [vmem:[#allocation7 + $0x214c] ss:$60 sps:$4 sm:$0xff]  }
 0x252   :  { %12076 = vmatprep.subr.bf16.mxu1 %v19408_v1  ;;  %12421 = vmatprep.subr.bf16.mxu0 %v19411_v44  ;;  %v19466_v1 = vld [vmem:[#allocation7 + $0x2148] ss:$60 sps:$4 sm:$0xff]   ;;  %v19471_v44 = vld [vmem:[#allocation7 + $0x2ab4] ss:$60 sps:$4 sm:$0xff]  }
 0x254   :  { %12077 = vmatpush1.bf16.msra.mxu1 %v19406_v45  ;;  %v19469_v45 = vld [vmem:[#allocation7 + $0x2ab0] ss:$60 sps:$4 sm:$0xff]  }
 0x255   :  { %12422 = vmatpush1.bf16.msra.mxu0 %v19409_v46  ;;  %12078 = vmatprep.subr.bf16.mxu1 %v19414_v47  ;;  %v19474_v46 = vld [vmem:[#allocation7 + $0x21c4] ss:$60 sps:$4 sm:$0xff]  }
 0x256   :  { %12423 = vmatprep.subr.bf16.mxu0 %v19417_v49  ;;  %v19472_v47 = vld [vmem:[#allocation7 + $0x21c0] ss:$60 sps:$4 sm:$0xff]   ;;  %v19475_v49 = vld [vmem:[#allocation7 + $0x2b28] ss:$60 sps:$4 sm:$0xff]  }
 0x258   :  { %12079 = vmatpush1.bf16.msra.mxu1 %v19412_v48  ;;  %v19477_v48 = vld [vmem:[#allocation7 + $0x2b2c] ss:$60 sps:$4 sm:$0xff]  }
 0x259   :  { %12424 = vmatpush1.bf16.msra.mxu0 %v19415_v50  ;;  %12080 = vmatprep.subr.bf16.mxu1 %v19420_v52  ;;  %v19480_v50 = vld [vmem:[#allocation7 + $0x223c] ss:$60 sps:$4 sm:$0xff]  }
 0x25a   :  { %12425 = vmatprep.subr.bf16.mxu0 %v19423_v55  ;;  %v19478_v52 = vld [vmem:[#allocation7 + $0x2238] ss:$60 sps:$4 sm:$0xff]   ;;  %v19481_v55 = vld [vmem:[#allocation7 + $0x2ba0] ss:$60 sps:$4 sm:$0xff]  }
 0x25c   :  { %12081 = vmatpush1.bf16.msra.mxu1 %v19418_v53  ;;  %v19483_v53 = vld [vmem:[#allocation7 + $0x2ba4] ss:$60 sps:$4 sm:$0xff]  }
 0x25d   :  { %12426 = vmatpush1.bf16.msra.mxu0 %v19421_v56  ;;  %12091 = vmatprep.subr.bf16.mxu1 %v19426_v57  ;;  %v19486_v56 = vld [vmem:[#allocation7 + $0x22b4] ss:$60 sps:$4 sm:$0xff]   ;;  %v22426_v57 = vld [vmem:[#allocation6 + $0x8] sm:$0x3f] }
 0x25e   :  { %12427 = vmatprep.subr.bf16.mxu0 %v19429_v58  ;;  %v344_v58 = vrot.slane %v22426_v57, %v22364_v4 }
 0x25f   :  { %12083 = vmatmul.mubr.bf16.vlgmr.msra.gmra.mrb[12].mxu1 %v22400_v54 }
 0x260   :  { %12092 = vmatpush1.bf16.msra.mxu1 %v19424_v60  ;;  %12123 = vmatprep.mubr.bf16.mxu1 %v22402_v59  ;;  %v19484_v60 = vld [vmem:[#allocation7 + $0x22b0] ss:$60 sps:$4 sm:$0xff]  }
 0x261   :  { %12428 = vmatpush1.bf16.msra.mxu0 %v19427_v62  ;;  %12093 = vmatprep.subr.bf16.mxu1 %v19432_v5  ;;  %v19489_v62 = vld [vmem:[#allocation7 + $0x2c1c] ss:$60 sps:$4 sm:$0xff]   ;;  %v356_v5 = vrot.slane %v22426_v57, %v22353_v43 }
 0x262   :  { %12429 = vmatprep.subr.bf16.mxu0 %v19435_v6  ;;  %v19487_v6 = vld [vmem:[#allocation7 + $0x2c18] ss:$60 sps:$4 sm:$0xff]  }
 0x264   :  { %12094 = vmatpush1.bf16.msra.mxu1 %v19430_v7  ;;  %v19492_v7 = vld [vmem:[#allocation7 + $0x232c] ss:$60 sps:$4 sm:$0xff]  }
 0x265   :  { %12430 = vmatpush1.bf16.msra.mxu0 %v19433_v8  ;;  %12095 = vmatprep.subr.bf16.mxu1 %v19438_v9  ;;  %v1469_v8 = vadd.f32 %v22396_v51, %v344_v58  ;;  %v19490_v9 = vld [vmem:[#allocation7 + $0x2328] ss:$60 sps:$4 sm:$0xff]   ;;  %v19504_v51 = vld [vmem:[#allocation7 + $0x241c] ss:$60 sps:$4 sm:$0xff]  }
 0x266   :  { %12431 = vmatprep.subr.bf16.mxu0 %v19441_v13  ;;  %v1512_v13 = vadd.f32 %v22415_v28, %v356_v5  ;;  %v19535_v58 = vld [vmem:[#allocation7 + $0x2fd8] ss:$60 sps:$4 sm:$0xff]  }
 0x267   :  { %v19543_v5 = vld [vmem:[#allocation7 + $0x3054] ss:$60 sps:$4 sm:$0xff]  }
 0x268   :  { %12096 = vmatpush1.bf16.msra.mxu1 %v19436_v10  ;;  %v19495_v10 = vld [vmem:[#allocation7 + $0x2c94] ss:$60 sps:$4 sm:$0xff]  }
 0x269   :  { %12432 = vmatpush1.bf16.msra.mxu0 %v19439_v14  ;;  %12097 = vmatprep.subr.bf16.mxu1 %v19444_v18  ;;  %v19493_v14 = vld [vmem:[#allocation7 + $0x2c90] ss:$60 sps:$4 sm:$0xff]   ;;  %v19498_v18 = vld [vmem:[#allocation7 + $0x23a4] ss:$60 sps:$4 sm:$0xff]  }
 0x26a   :  { %12433 = vmatprep.subr.bf16.mxu0 %v19447_v20  ;;  %v19496_v20 = vld [vmem:[#allocation7 + $0x23a0] ss:$60 sps:$4 sm:$0xff]  }
 0x26c   :  { %12098 = vmatpush1.bf16.msra.mxu1 %v19442_v19  ;;  %v1526_v19 = vmax.f32 %v1469_v8, 0.0  ;;  %v19544_v8 = vld [vmem:[#allocation7 + $0x2760] ss:$60 sps:$4 sm:$0xff]  }
 0x26d   :  { %12434 = vmatpush1.bf16.msra.mxu0 %v19445_v22  ;;  %12099 = vmatprep.subr.bf16.mxu1 %v19450_v23  ;;  %v19501_v22 = vld [vmem:[#allocation7 + $0x2d0c] ss:$60 sps:$4 sm:$0xff]   ;;  %v1529_v23 = vmax.f32 %v1512_v13, 0.0  ;;  %v19552_v13 = vld [vmem:[#allocation7 + $0x27dc] ss:$60 sps:$4 sm:$0xff]  }
 0x26e   :  { %12435 = vmatprep.subr.bf16.mxu0 %v19453_v27  ;;  %v22434_v27 = vpack.c.bf16 %v1526_v19, %v1526_v19  ;;  %v19553_v19 = vld [vmem:[#allocation7 + $0x3140] ss:$60 sps:$4 sm:$0xff]  }
 0x26f   :  { %v22436_v28 = vpack.c.bf16 %v1529_v23, %v1529_v23  ;;  %v19561_v23 = vld [vmem:[#allocation7 + $0x31bc] ss:$60 sps:$4 sm:$0xff]  }
 0x270   :  { %12100 = vmatpush1.bf16.msra.mxu1 %v19448_v26  ;;  %v19499_v26 = vld [vmem:[#allocation7 + $0x2d08] ss:$60 sps:$4 sm:$0xff]  }
 0x271   :  { %12436 = vmatpush1.bf16.msra.mxu0 %v19451_v29  ;;  %12101 = vmatprep.subr.bf16.mxu1 %v19456_v30  ;;  %v19507_v29 = vld [vmem:[#allocation7 + $0x2d84] ss:$60 sps:$4 sm:$0xff]   ;;  %v19502_v30 = vld [vmem:[#allocation7 + $0x2418] ss:$60 sps:$4 sm:$0xff]  }
 0x272   :  { %12437 = vmatprep.subr.bf16.mxu0 %v19459_v32  ;;  %v19510_v32 = vld [vmem:[#allocation7 + $0x2494] ss:$60 sps:$4 sm:$0xff]  }
 0x274   :  { %12102 = vmatpush1.bf16.msra.mxu1 %v19454_v31  ;;  %v19505_v31 = vld [vmem:[#allocation7 + $0x2d80] ss:$60 sps:$4 sm:$0xff]  }
 0x275   :  { %12438 = vmatpush1.bf16.msra.mxu0 %v19457_v11  ;;  %12103 = vmatprep.subr.bf16.mxu1 %v19462_v33  ;;  %v19508_v11 = vld [vmem:[#allocation7 + $0x2490] ss:$60 sps:$4 sm:$0xff]   ;;  %v19513_v33 = vld [vmem:[#allocation7 + $0x2dfc] ss:$60 sps:$4 sm:$0xff]  }
 0x276   :  { %12439 = vmatprep.subr.bf16.mxu0 %v19465_v37  ;;  %v19516_v37 = vld [vmem:[#allocation7 + $0x250c] ss:$60 sps:$4 sm:$0xff]  }
 0x278   :  { %12104 = vmatpush1.bf16.msra.mxu1 %v19460_v35  ;;  %v19511_v35 = vld [vmem:[#allocation7 + $0x2df8] ss:$60 sps:$4 sm:$0xff]  }
 0x279   :  { %12440 = vmatpush1.bf16.msra.mxu0 %v19463_v38  ;;  %12105 = vmatprep.subr.bf16.mxu1 %v19468_v40  ;;  %v19514_v38 = vld [vmem:[#allocation7 + $0x2508] ss:$60 sps:$4 sm:$0xff]   ;;  %v19519_v40 = vld [vmem:[#allocation7 + $0x2e74] ss:$60 sps:$4 sm:$0xff]  }
 0x27a   :  { %12441 = vmatprep.subr.bf16.mxu0 %v19471_v44  ;;  %v19522_v44 = vld [vmem:[#allocation7 + $0x2584] ss:$60 sps:$4 sm:$0xff]  }
 0x27c   :  { %12106 = vmatpush1.bf16.msra.mxu1 %v19466_v1  ;;  %v19517_v1 = vld [vmem:[#allocation7 + $0x2e70] ss:$60 sps:$4 sm:$0xff]  }
 0x27d   :  { %12442 = vmatpush1.bf16.msra.mxu0 %v19469_v45  ;;  %12107 = vmatprep.subr.bf16.mxu1 %v19474_v46  ;;  %v19525_v45 = vld [vmem:[#allocation7 + $0x2eec] ss:$60 sps:$4 sm:$0xff]   ;;  %v19520_v46 = vld [vmem:[#allocation7 + $0x2580] ss:$60 sps:$4 sm:$0xff]  }
 0x27e   :  { %12443 = vmatprep.subr.bf16.mxu0 %v19477_v48  ;;  %v19528_v48 = vld [vmem:[#allocation7 + $0x25fc] ss:$60 sps:$4 sm:$0xff]  }
 0x280   :  { %12108 = vmatpush1.bf16.msra.mxu1 %v19472_v47  ;;  %v19523_v47 = vld [vmem:[#allocation7 + $0x2ee8] ss:$60 sps:$4 sm:$0xff]  }
 0x281   :  { %12444 = vmatpush1.bf16.msra.mxu0 %v19475_v49  ;;  %12109 = vmatprep.subr.bf16.mxu1 %v19480_v50  ;;  %v19531_v49 = vld [vmem:[#allocation7 + $0x2f64] ss:$60 sps:$4 sm:$0xff]   ;;  %v19526_v50 = vld [vmem:[#allocation7 + $0x25f8] ss:$60 sps:$4 sm:$0xff]  }
 0x282   :  { %12445 = vmatprep.subr.bf16.mxu0 %v19483_v53  ;;  %v19534_v53 = vld [vmem:[#allocation7 + $0x2674] ss:$60 sps:$4 sm:$0xff]  }
 0x284   :  { %12110 = vmatpush1.bf16.msra.mxu1 %v19478_v52  ;;  %v19529_v52 = vld [vmem:[#allocation7 + $0x2f60] ss:$60 sps:$4 sm:$0xff]  }
 0x285   :  { %12446 = vmatpush1.bf16.msra.mxu0 %v19481_v55  ;;  %12111 = vmatprep.subr.bf16.mxu1 %v19486_v56  ;;  %v19532_v55 = vld [vmem:[#allocation7 + $0x2670] ss:$60 sps:$4 sm:$0xff]   ;;  %v19537_v56 = vld [vmem:[#allocation7 + $0x2fdc] ss:$60 sps:$4 sm:$0xff]  }
 0x286   :  { %12447 = vmatprep.subr.bf16.mxu0 %v19489_v62  ;;  %v19538_v62 = vld [vmem:[#allocation7 + $0x26e8] ss:$60 sps:$4 sm:$0xff]  }
 0x288   :  { %12112 = vmatpush1.bf16.msra.mxu1 %v19484_v60  ;;  %v19540_v60 = vld [vmem:[#allocation7 + $0x26ec] ss:$60 sps:$4 sm:$0xff]  }
 0x289   :  { %12448 = vmatpush1.bf16.msra.mxu0 %v19487_v6  ;;  %12113 = vmatprep.subr.bf16.mxu1 %v19492_v7  ;;  %v19541_v6 = vld [vmem:[#allocation7 + $0x3050] ss:$60 sps:$4 sm:$0xff]   ;;  %v19546_v7 = vld [vmem:[#allocation7 + $0x2764] ss:$60 sps:$4 sm:$0xff]  }
 0x28a   :  { %12449 = vmatprep.subr.bf16.mxu0 %v19495_v10  ;;  %v19547_v10 = vld [vmem:[#allocation7 + $0x30c8] ss:$60 sps:$4 sm:$0xff]  }
 0x28c   :  { %12114 = vmatpush1.bf16.msra.mxu1 %v19490_v9  ;;  %v19549_v9 = vld [vmem:[#allocation7 + $0x30cc] ss:$60 sps:$4 sm:$0xff]  }
 0x28d   :  { %12450 = vmatpush1.bf16.msra.mxu0 %v19493_v14  ;;  %12115 = vmatprep.subr.bf16.mxu1 %v19498_v18  ;;  %v19550_v14 = vld [vmem:[#allocation7 + $0x27d8] ss:$60 sps:$4 sm:$0xff]   ;;  %v19555_v18 = vld [vmem:[#allocation7 + $0x3144] ss:$60 sps:$4 sm:$0xff]  }
 0x28e   :  { %12460 = vmatprep.subr.bf16.mxu0 %v19501_v22  ;;  %v19556_v22 = vld [vmem:[#allocation7 + $0x2850] ss:$60 sps:$4 sm:$0xff]  }
 0x290   :  { %12452 = vmatmul.mubr.bf16.vlgmr.msra.gmra.mrb[16].mxu0 %v22434_v27  ;;  %12116 = vmatpush1.bf16.msra.mxu1 %v19496_v20  ;;  %v19558_v20 = vld [vmem:[#allocation7 + $0x2854] ss:$60 sps:$4 sm:$0xff]  }
 0x291   :  { %12461 = vmatpush1.bf16.msra.mxu0 %v19499_v26  ;;  %12117 = vmatprep.subr.bf16.mxu1 %v19504_v51  ;;  %v19559_v26 = vld [vmem:[#allocation7 + $0x31b8] ss:$60 sps:$4 sm:$0xff]   ;;  %v19564_v51 = vld [vmem:[#allocation7 + $0x28cc] ss:$60 sps:$4 sm:$0xff]  }
 0x292   :  { %12462 = vmatprep.subr.bf16.mxu0 %v19507_v29  ;;  %12492 = vmatprep.mubr.bf16.mxu0 %v22436_v28  ;;  %v19562_v29 = vld [vmem:[#allocation7 + $0x28c8] ss:$60 sps:$4 sm:$0xff]  }
 0x294   :  { %12118 = vmatpush1.bf16.msra.mxu1 %v19502_v30  ;;  %v19567_v30 = vld [vmem:[#allocation7 + $0x3234] ss:$60 sps:$4 sm:$0xff]  }
 0x295   :  { %12463 = vmatpush1.bf16.msra.mxu0 %v19505_v31  ;;  %12119 = vmatprep.subr.bf16.mxu1 %v19510_v32  ;;  %v19565_v31 = vld [vmem:[#allocation7 + $0x3230] ss:$60 sps:$4 sm:$0xff]   ;;  %v19570_v32 = vld [vmem:[#allocation7 + $0x2944] ss:$60 sps:$4 sm:$0xff]  }
 0x296   :  { %12464 = vmatprep.subr.bf16.mxu0 %v19513_v33  ;;  %v19573_v33 = vld [vmem:[#allocation7 + $0x32ac] ss:$60 sps:$4 sm:$0xff]  }
 0x298   :  { %12120 = vmatpush1.bf16.msra.mxu1 %v19508_v11  ;;  %v19568_v11 = vld [vmem:[#allocation7 + $0x2940] ss:$60 sps:$4 sm:$0xff]  }
 0x299   :  { %12465 = vmatpush1.bf16.msra.mxu0 %v19511_v35  ;;  %12121 = vmatprep.subr.bf16.mxu1 %v19516_v37  ;;  %v19571_v35 = vld [vmem:[#allocation7 + $0x32a8] ss:$60 sps:$4 sm:$0xff]   ;;  %v19576_v37 = vld [vmem:[#allocation7 + $0x29bc] ss:$60 sps:$4 sm:$0xff]  }
 0x29a   :  { %12466 = vmatprep.subr.bf16.mxu0 %v19519_v40  ;;  %v19579_v40 = vld [vmem:[#allocation7 + $0x3324] ss:$60 sps:$4 sm:$0xff]  }
 0x29c   :  { %12122 = vmatpush1.bf16.msra.mxu1 %v19514_v38  ;;  %v19574_v38 = vld [vmem:[#allocation7 + $0x29b8] ss:$60 sps:$4 sm:$0xff]  }
 0x29d   :  { %12467 = vmatpush1.bf16.msra.mxu0 %v19517_v1  ;;  %12132 = vmatprep.subr.bf16.mxu1 %v19522_v44  ;;  %v352_v1 = vrot.slane %v22426_v57, %v22350_v42  ;;  %v19577_v44 = vld [vmem:[#allocation7 + $0x3320] ss:$60 sps:$4 sm:$0xff]   ;;  %v19589_v57 = vld [vmem:[#allocation7 + $0x3410] ss:$60 sps:$4 sm:$0xff]  }
 0x29e   :  { %12468 = vmatprep.subr.bf16.mxu0 %v19525_v45  ;;  %v19582_v45 = vld [vmem:[#allocation7 + $0x2a34] ss:$60 sps:$4 sm:$0xff]  }
 0x29f   :  { %12124 = vmatmul.mubr.bf16.vlgmr.msra.gmra.mrb[12].mxu1 %v22418_v39 }
 0x2a0   :  { %12133 = vmatpush1.bf16.msra.mxu1 %v19520_v46  ;;  %12164 = vmatprep.mubr.bf16.mxu1 %v22420_v12  ;;  %v19580_v46 = vld [vmem:[#allocation7 + $0x2a30] ss:$60 sps:$4 sm:$0xff]  }
 0x2a1   :  { %12469 = vmatpush1.bf16.msra.mxu0 %v19523_v47  ;;  %12134 = vmatprep.subr.bf16.mxu1 %v19528_v48  ;;  %v19585_v47 = vld [vmem:[#allocation7 + $0x339c] ss:$60 sps:$4 sm:$0xff]   ;;  %v1510_v48 = vadd.f32 %v22413_v25, %v352_v1  ;;  %v19634_v1 = vld [vmem:[#allocation7 + $0x2e68] ss:$60 sps:$4 sm:$0xff]  }
 0x2a2   :  { %12470 = vmatprep.subr.bf16.mxu0 %v19531_v49  ;;  %v19583_v49 = vld [vmem:[#allocation7 + $0x3398] ss:$60 sps:$4 sm:$0xff]  }
 0x2a3   :  { %v19595_v25 = vld [vmem:[#allocation7 + $0x18] ss:$60 sps:$4 sm:$0xff]  }
 0x2a4   :  { %12135 = vmatpush1.bf16.msra.mxu1 %v19526_v50  ;;  %v19588_v50 = vld [vmem:[#allocation7 + $0x2aac] ss:$60 sps:$4 sm:$0xff]  }
 0x2a5   :  { %12471 = vmatpush1.bf16.msra.mxu0 %v19529_v52  ;;  %12136 = vmatprep.subr.bf16.mxu1 %v19534_v53  ;;  %v19586_v52 = vld [vmem:[#allocation7 + $0x2aa8] ss:$60 sps:$4 sm:$0xff]   ;;  %v19591_v53 = vld [vmem:[#allocation7 + $0x3414] ss:$60 sps:$4 sm:$0xff]  }
 0x2a6   :  { %12472 = vmatprep.subr.bf16.mxu0 %v19537_v56  ;;  %v19594_v56 = vld [vmem:[#allocation7 + $0x2b24] ss:$60 sps:$4 sm:$0xff]  }
 0x2a8   :  { %12137 = vmatpush1.bf16.msra.mxu1 %v19532_v55  ;;  %v1528_v55 = vmax.f32 %v1510_v48, 0.0  ;;  %v19645_v48 = vld [vmem:[#allocation7 + $0x3dc] ss:$60 sps:$4 sm:$0xff]  }
 0x2a9   :  { %12473 = vmatpush1.bf16.msra.mxu0 %v19535_v58  ;;  %12138 = vmatprep.subr.bf16.mxu1 %v19540_v60  ;;  %v19592_v58 = vld [vmem:[#allocation7 + $0x2b20] ss:$60 sps:$4 sm:$0xff]  }
 0x2aa   :  { %12474 = vmatprep.subr.bf16.mxu0 %v19543_v5  ;;  %v19597_v60 = vld [vmem:[#allocation7 + $0x1c] ss:$60 sps:$4 sm:$0xff]  }
 0x2ab   :  { %v19600_v5 = vld [vmem:[#allocation7 + $0x2b9c] ss:$60 sps:$4 sm:$0xff]  }
 0x2ac   :  { %12139 = vmatpush1.bf16.msra.mxu1 %v19538_v62  ;;  %v22445_v62 = vpack.c.bf16 %v1528_v55, %v1528_v55  ;;  %v19649_v55 = vld [vmem:[#allocation7 + $0x450] ss:$60 sps:$4 sm:$0xff]  }
 0x2ad   :  { %12475 = vmatpush1.bf16.msra.mxu0 %v19541_v6  ;;  %12140 = vmatprep.subr.bf16.mxu1 %v19546_v7  ;;  %v19603_v6 = vld [vmem:[#allocation7 + $0x94] ss:$60 sps:$4 sm:$0xff]  }
 0x2ae   :  { %12476 = vmatprep.subr.bf16.mxu0 %v19549_v9  ;;  %v19598_v7 = vld [vmem:[#allocation7 + $0x2b98] ss:$60 sps:$4 sm:$0xff]  }
 0x2af   :  { %v19606_v9 = vld [vmem:[#allocation7 + $0x2c14] ss:$60 sps:$4 sm:$0xff]  }
 0x2b0   :  { %12141 = vmatpush1.bf16.msra.mxu1 %v19544_v8  ;;  %v19601_v8 = vld [vmem:[#allocation7 + $0x90] ss:$60 sps:$4 sm:$0xff]  }
 0x2b1   :  { %12477 = vmatpush1.bf16.msra.mxu0 %v19547_v10  ;;  %12142 = vmatprep.subr.bf16.mxu1 %v19552_v13  ;;  %v19604_v10 = vld [vmem:[#allocation7 + $0x2c10] ss:$60 sps:$4 sm:$0xff]  }
 0x2b2   :  { %12478 = vmatprep.subr.bf16.mxu0 %v19555_v18  ;;  %v19609_v13 = vld [vmem:[#allocation7 + $0x10c] ss:$60 sps:$4 sm:$0xff]  }
 0x2b3   :  { %v19612_v18 = vld [vmem:[#allocation7 + $0x2c8c] ss:$60 sps:$4 sm:$0xff]  }
 0x2b4   :  { %12143 = vmatpush1.bf16.msra.mxu1 %v19550_v14  ;;  %v19607_v14 = vld [vmem:[#allocation7 + $0x108] ss:$60 sps:$4 sm:$0xff]  }
 0x2b5   :  { %12479 = vmatpush1.bf16.msra.mxu0 %v19553_v19  ;;  %12144 = vmatprep.subr.bf16.mxu1 %v19558_v20  ;;  %v19610_v19 = vld [vmem:[#allocation7 + $0x2c88] ss:$60 sps:$4 sm:$0xff]  }
 0x2b6   :  { %12480 = vmatprep.subr.bf16.mxu0 %v19561_v23  ;;  %v19615_v20 = vld [vmem:[#allocation7 + $0x184] ss:$60 sps:$4 sm:$0xff]  }
 0x2b7   :  { %v19618_v23 = vld [vmem:[#allocation7 + $0x2d04] ss:$60 sps:$4 sm:$0xff]  }
 0x2b8   :  { %12145 = vmatpush1.bf16.msra.mxu1 %v19556_v22  ;;  %v19613_v22 = vld [vmem:[#allocation7 + $0x180] ss:$60 sps:$4 sm:$0xff]  }
 0x2b9   :  { %12481 = vmatpush1.bf16.msra.mxu0 %v19559_v26  ;;  %12146 = vmatprep.subr.bf16.mxu1 %v19564_v51  ;;  %v19621_v26 = vld [vmem:[#allocation7 + $0x1fc] ss:$60 sps:$4 sm:$0xff]  }
 0x2ba   :  { %12482 = vmatprep.subr.bf16.mxu0 %v19567_v30  ;;  %v19616_v51 = vld [vmem:[#allocation7 + $0x2d00] ss:$60 sps:$4 sm:$0xff]  }
 0x2bb   :  { %v19624_v30 = vld [vmem:[#allocation7 + $0x2d7c] ss:$60 sps:$4 sm:$0xff]  }
 0x2bc   :  { %12147 = vmatpush1.bf16.msra.mxu1 %v19562_v29  ;;  %v19619_v29 = vld [vmem:[#allocation7 + $0x1f8] ss:$60 sps:$4 sm:$0xff]  }
 0x2bd   :  { %12483 = vmatpush1.bf16.msra.mxu0 %v19565_v31  ;;  %12148 = vmatprep.subr.bf16.mxu1 %v19570_v32  ;;  %v19627_v31 = vld [vmem:[#allocation7 + $0x274] ss:$60 sps:$4 sm:$0xff]  }
 0x2be   :  { %12484 = vmatprep.subr.bf16.mxu0 %v19573_v33  ;;  %v19622_v32 = vld [vmem:[#allocation7 + $0x2d78] ss:$60 sps:$4 sm:$0xff]  }
 0x2bf   :  { %v19630_v33 = vld [vmem:[#allocation7 + $0x2df4] ss:$60 sps:$4 sm:$0xff]  }
 0x2c0   :  { %12149 = vmatpush1.bf16.msra.mxu1 %v19568_v11  ;;  %v19625_v11 = vld [vmem:[#allocation7 + $0x270] ss:$60 sps:$4 sm:$0xff]  }
 0x2c1   :  { %12485 = vmatpush1.bf16.msra.mxu0 %v19571_v35  ;;  %12150 = vmatprep.subr.bf16.mxu1 %v19576_v37  ;;  %v19628_v35 = vld [vmem:[#allocation7 + $0x2df0] ss:$60 sps:$4 sm:$0xff]  }
 0x2c2   :  { %12486 = vmatprep.subr.bf16.mxu0 %v19579_v40  ;;  %v19633_v37 = vld [vmem:[#allocation7 + $0x2ec] ss:$60 sps:$4 sm:$0xff]  }
 0x2c3   :  { %v19636_v40 = vld [vmem:[#allocation7 + $0x2e6c] ss:$60 sps:$4 sm:$0xff]  }
 0x2c4   :  { %12151 = vmatpush1.bf16.msra.mxu1 %v19574_v38  ;;  %v19631_v38 = vld [vmem:[#allocation7 + $0x2e8] ss:$60 sps:$4 sm:$0xff]  }
 0x2c5   :  { %12487 = vmatpush1.bf16.msra.mxu0 %v19577_v44  ;;  %12152 = vmatprep.subr.bf16.mxu1 %v19582_v45  ;;  %v19639_v44 = vld [vmem:[#allocation7 + $0x364] ss:$60 sps:$4 sm:$0xff]  }
 0x2c6   :  { %12488 = vmatprep.subr.bf16.mxu0 %v19585_v47  ;;  %v19637_v45 = vld [vmem:[#allocation7 + $0x360] ss:$60 sps:$4 sm:$0xff]  }
 0x2c7   :  { %v19640_v47 = vld [vmem:[#allocation7 + $0x2ee0] ss:$60 sps:$4 sm:$0xff]  }
 0x2c8   :  { %12153 = vmatpush1.bf16.msra.mxu1 %v19580_v46  ;;  %v19642_v46 = vld [vmem:[#allocation7 + $0x2ee4] ss:$60 sps:$4 sm:$0xff]  }
 0x2c9   :  { %12489 = vmatpush1.bf16.msra.mxu0 %v19583_v49  ;;  %12154 = vmatprep.subr.bf16.mxu1 %v19588_v50  ;;  %v19643_v49 = vld [vmem:[#allocation7 + $0x3d8] ss:$60 sps:$4 sm:$0xff]  }
 0x2ca   :  { %12490 = vmatprep.subr.bf16.mxu0 %v19591_v53  ;;  %v19648_v50 = vld [vmem:[#allocation7 + $0x2f5c] ss:$60 sps:$4 sm:$0xff]   ;;  %v19651_v53 = vld [vmem:[#allocation7 + $0x454] ss:$60 sps:$4 sm:$0xff]  }
 0x2cc   :  { %12155 = vmatpush1.bf16.msra.mxu1 %v19586_v52  ;;  %v19646_v52 = vld [vmem:[#allocation7 + $0x2f58] ss:$60 sps:$4 sm:$0xff]  }
 0x2cd   :  { %12491 = vmatpush1.bf16.msra.mxu0 %v19589_v57  ;;  %12156 = vmatprep.subr.bf16.mxu1 %v19594_v56  ;;  %v19654_v57 = vld [vmem:[#allocation7 + $0x2fd4] ss:$60 sps:$4 sm:$0xff]  }
 0x2ce   :  { %12788 = vmatprep.subr.bf16.mxu0 %v19597_v60  ;;  %v19652_v56 = vld [vmem:[#allocation7 + $0x2fd0] ss:$60 sps:$4 sm:$0xff]   ;;  %v19655_v60 = vld [vmem:[#allocation7 + $0x4c8] ss:$60 sps:$4 sm:$0xff]  }
 0x2d0   :  { %12493 = vmatmul.mubr.bf16.vlgmr.msra.gmra.mrb[16].mxu0 %v22445_v62  ;;  %12157 = vmatpush1.bf16.msra.mxu1 %v19592_v58  ;;  %v19657_v58 = vld [vmem:[#allocation7 + $0x4cc] ss:$60 sps:$4 sm:$0xff]  }
 0x2d1   :  { %12789 = vmatpush1.bf16.msra.mxu0 %v19595_v25  ;;  %12820 = vmatprep.mubr.bf16.mxu0 %v22333_v15  ;;  %v19660_v25 = vld [vmem:[#allocation7 + $0x304c] ss:$60 sps:$4 sm:$0xff]  }
 0x2d2   :  { %12158 = vmatprep.subr.bf16.mxu1 %v19600_v5  ;;  %12790 = vmatprep.subr.bf16.mxu0 %v19603_v6  ;;  %v19658_v5 = vld [vmem:[#allocation7 + $0x3048] ss:$60 sps:$4 sm:$0xff]  }
 0x2d3   :  { %v19663_v6 = vld [vmem:[#allocation7 + $0x544] ss:$60 sps:$4 sm:$0xff]  }
 0x2d4   :  { %12159 = vmatpush1.bf16.msra.mxu1 %v19598_v7  ;;  %v19661_v7 = vld [vmem:[#allocation7 + $0x540] ss:$60 sps:$4 sm:$0xff]  }
 0x2d5   :  { %12791 = vmatpush1.bf16.msra.mxu0 %v19601_v8  ;;  %12160 = vmatprep.subr.bf16.mxu1 %v19606_v9  ;;  %v19666_v8 = vld [vmem:[#allocation7 + $0x30c4] ss:$60 sps:$4 sm:$0xff]  }
 0x2d6   :  { %12792 = vmatprep.subr.bf16.mxu0 %v19609_v13  ;;  %v19664_v9 = vld [vmem:[#allocation7 + $0x30c0] ss:$60 sps:$4 sm:$0xff]   ;;  %v19667_v13 = vld [vmem:[#allocation7 + $0x5b8] ss:$60 sps:$4 sm:$0xff]  }
 0x2d8   :  { %12161 = vmatpush1.bf16.msra.mxu1 %v19604_v10  ;;  %v19669_v10 = vld [vmem:[#allocation7 + $0x5bc] ss:$60 sps:$4 sm:$0xff]  }
 0x2d9   :  { %12793 = vmatpush1.bf16.msra.mxu0 %v19607_v14  ;;  %12162 = vmatprep.subr.bf16.mxu1 %v19612_v18  ;;  %v19672_v14 = vld [vmem:[#allocation7 + $0x313c] ss:$60 sps:$4 sm:$0xff]  }
 0x2da   :  { %12794 = vmatprep.subr.bf16.mxu0 %v19615_v20  ;;  %v19670_v18 = vld [vmem:[#allocation7 + $0x3138] ss:$60 sps:$4 sm:$0xff]   ;;  %v19673_v20 = vld [vmem:[#allocation7 + $0x630] ss:$60 sps:$4 sm:$0xff]  }
 0x2dc   :  { %12163 = vmatpush1.bf16.msra.mxu1 %v19610_v19  ;;  %v19675_v19 = vld [vmem:[#allocation7 + $0x634] ss:$60 sps:$4 sm:$0xff]  }
 0x2dd   :  { %12795 = vmatpush1.bf16.msra.mxu0 %v19613_v22  ;;  %12173 = vmatprep.subr.bf16.mxu1 %v19618_v23  ;;  %v19678_v22 = vld [vmem:[#allocation7 + $0x31b4] ss:$60 sps:$4 sm:$0xff]  }
 0x2de   :  { %12796 = vmatprep.subr.bf16.mxu0 %v19621_v26  ;;  %v19676_v23 = vld [vmem:[#allocation7 + $0x31b0] ss:$60 sps:$4 sm:$0xff]  }
 0x2df   :  { %12165 = vmatmul.mubr.bf16.vlgmr.msra.gmra.mrb[12].mxu1 %v22434_v27  ;;  %v19681_v26 = vld [vmem:[#allocation7 + $0x6ac] ss:$60 sps:$4 sm:$0xff]  }
 0x2e0   :  { %12174 = vmatpush1.bf16.msra.mxu1 %v19616_v51  ;;  %12205 = vmatprep.mubr.bf16.mxu1 %v22436_v28  ;;  %v19679_v51 = vld [vmem:[#allocation7 + $0x6a8] ss:$60 sps:$4 sm:$0xff]  }
 0x2e1   :  { %12797 = vmatpush1.bf16.msra.mxu0 %v19619_v29  ;;  %12175 = vmatprep.subr.bf16.mxu1 %v19624_v30  ;;  %v19684_v29 = vld [vmem:[#allocation7 + $0x322c] ss:$60 sps:$4 sm:$0xff]  }
 0x2e2   :  { %12798 = vmatprep.subr.bf16.mxu0 %v19627_v31  ;;  %v19682_v30 = vld [vmem:[#allocation7 + $0x3228] ss:$60 sps:$4 sm:$0xff]  }
 0x2e3   :  { %v19687_v31 = vld [vmem:[#allocation7 + $0x724] ss:$60 sps:$4 sm:$0xff]  }
 0x2e4   :  { %12176 = vmatpush1.bf16.msra.mxu1 %v19622_v32  ;;  %v19685_v32 = vld [vmem:[#allocation7 + $0x720] ss:$60 sps:$4 sm:$0xff]  }
 0x2e5   :  { %12799 = vmatpush1.bf16.msra.mxu0 %v19625_v11  ;;  %12177 = vmatprep.subr.bf16.mxu1 %v19630_v33  ;;  %v19690_v11 = vld [vmem:[#allocation7 + $0x32a4] ss:$60 sps:$4 sm:$0xff]  }
 0x2e6   :  { %12800 = vmatprep.subr.bf16.mxu0 %v19633_v37  ;;  %v19688_v33 = vld [vmem:[#allocation7 + $0x32a0] ss:$60 sps:$4 sm:$0xff]   ;;  %v19691_v37 = vld [vmem:[#allocation7 + $0x798] ss:$60 sps:$4 sm:$0xff]  }
 0x2e8   :  { %12178 = vmatpush1.bf16.msra.mxu1 %v19628_v35  ;;  %v19693_v35 = vld [vmem:[#allocation7 + $0x79c] ss:$60 sps:$4 sm:$0xff]  }
 0x2e9   :  { %12801 = vmatpush1.bf16.msra.mxu0 %v19631_v38  ;;  %12179 = vmatprep.subr.bf16.mxu1 %v19636_v40  ;;  %v19696_v38 = vld [vmem:[#allocation7 + $0x331c] ss:$60 sps:$4 sm:$0xff]   ;;  %v19699_v40 = vld [vmem:[#allocation7 + $0x814] ss:$60 sps:$4 sm:$0xff]  }
 0x2ea   :  { %12802 = vmatprep.subr.bf16.mxu0 %v19639_v44  ;;  %v19697_v44 = vld [vmem:[#allocation7 + $0x810] ss:$60 sps:$4 sm:$0xff]  }
 0x2ec   :  { %12180 = vmatpush1.bf16.msra.mxu1 %v19634_v1  ;;  %v19694_v1 = vld [vmem:[#allocation7 + $0x3318] ss:$60 sps:$4 sm:$0xff]  }
 0x2ed   :  { %12803 = vmatpush1.bf16.msra.mxu0 %v19637_v45  ;;  %12181 = vmatprep.subr.bf16.mxu1 %v19642_v46  ;;  %v19702_v45 = vld [vmem:[#allocation7 + $0x3394] ss:$60 sps:$4 sm:$0xff]  }
 0x2ee   :  { %12804 = vmatprep.subr.bf16.mxu0 %v19645_v48  ;;  %v19700_v46 = vld [vmem:[#allocation7 + $0x3390] ss:$60 sps:$4 sm:$0xff]   ;;  %v19703_v48 = vld [vmem:[#allocation7 + $0x888] ss:$60 sps:$4 sm:$0xff]  }
 0x2f0   :  { %12182 = vmatpush1.bf16.msra.mxu1 %v19640_v47  ;;  %v19705_v47 = vld [vmem:[#allocation7 + $0x88c] ss:$60 sps:$4 sm:$0xff]  }
 0x2f1   :  { %12805 = vmatpush1.bf16.msra.mxu0 %v19643_v49  ;;  %12183 = vmatprep.subr.bf16.mxu1 %v19648_v50  ;;  %v19708_v49 = vld [vmem:[#allocation7 + $0x340c] ss:$60 sps:$4 sm:$0xff]  }
 0x2f2   :  { %12806 = vmatprep.subr.bf16.mxu0 %v19651_v53  ;;  %v19706_v50 = vld [vmem:[#allocation7 + $0x3408] ss:$60 sps:$4 sm:$0xff]   ;;  %v19709_v53 = vld [vmem:[#allocation7 + $0x900] ss:$60 sps:$4 sm:$0xff]  }
 0x2f4   :  { %12184 = vmatpush1.bf16.msra.mxu1 %v19646_v52  ;;  %v19711_v52 = vld [vmem:[#allocation7 + $0x904] ss:$60 sps:$4 sm:$0xff]  }
 0x2f5   :  { %12807 = vmatpush1.bf16.msra.mxu0 %v19649_v55  ;;  %12185 = vmatprep.subr.bf16.mxu1 %v19654_v57  ;;  %v19714_v55 = vld [vmem:[#allocation7 + $0xc] ss:$60 sps:$4 sm:$0xff]   ;;  %v19717_v57 = vld [vmem:[#allocation7 + $0x97c] ss:$60 sps:$4 sm:$0xff]  }
 0x2f6   :  { %12808 = vmatprep.subr.bf16.mxu0 %v19657_v58  ;;  %v19715_v58 = vld [vmem:[#allocation7 + $0x978] ss:$60 sps:$4 sm:$0xff]  }
 0x2f8   :  { %12186 = vmatpush1.bf16.msra.mxu1 %v19652_v56  ;;  %v19712_v56 = vld [vmem:[#allocation7 + $0x8] ss:$60 sps:$4 sm:$0xff]  }
 0x2f9   :  { %12809 = vmatpush1.bf16.msra.mxu0 %v19655_v60  ;;  %12187 = vmatprep.subr.bf16.mxu1 %v19660_v25  ;;  %v19720_v60 = vld [vmem:[#allocation7 + $0x84] ss:$60 sps:$4 sm:$0xff]  }
 0x2fa   :  { %12810 = vmatprep.subr.bf16.mxu0 %v19663_v6  ;;  %v19718_v25 = vld [vmem:[#allocation7 + $0x80] ss:$60 sps:$4 sm:$0xff]   ;;  %v19721_v6 = vld [vmem:[#allocation7 + $0x9f0] ss:$60 sps:$4 sm:$0xff]  }
 0x2fc   :  { %12188 = vmatpush1.bf16.msra.mxu1 %v19658_v5  ;;  %v19723_v5 = vld [vmem:[#allocation7 + $0x9f4] ss:$60 sps:$4 sm:$0xff]  }
 0x2fd   :  { %12811 = vmatpush1.bf16.msra.mxu0 %v19661_v7  ;;  %12189 = vmatprep.subr.bf16.mxu1 %v19666_v8  ;;  %v19726_v7 = vld [vmem:[#allocation7 + $0xfc] ss:$60 sps:$4 sm:$0xff]  }
 0x2fe   :  { %12812 = vmatprep.subr.bf16.mxu0 %v19669_v10  ;;  %v19724_v8 = vld [vmem:[#allocation7 + $0xf8] ss:$60 sps:$4 sm:$0xff]   ;;  %v19727_v10 = vld [vmem:[#allocation7 + $0xa68] ss:$60 sps:$4 sm:$0xff]  }
 0x300   :  { %12190 = vmatpush1.bf16.msra.mxu1 %v19664_v9  ;;  %v19729_v9 = vld [vmem:[#allocation7 + $0xa6c] ss:$60 sps:$4 sm:$0xff]  }
 0x301   :  { %12813 = vmatpush1.bf16.msra.mxu0 %v19667_v13  ;;  %12191 = vmatprep.subr.bf16.mxu1 %v19672_v14  ;;  %v19732_v13 = vld [vmem:[#allocation7 + $0x174] ss:$60 sps:$4 sm:$0xff]   ;;  %v19735_v14 = vld [vmem:[#allocation7 + $0xae4] ss:$60 sps:$4 sm:$0xff]  }
 0x302   :  { %12814 = vmatprep.subr.bf16.mxu0 %v19675_v19  ;;  %v19733_v19 = vld [vmem:[#allocation7 + $0xae0] ss:$60 sps:$4 sm:$0xff]  }
 0x304   :  { %12192 = vmatpush1.bf16.msra.mxu1 %v19670_v18  ;;  %v19730_v18 = vld [vmem:[#allocation7 + $0x170] ss:$60 sps:$4 sm:$0xff]  }
 0x305   :  { %12815 = vmatpush1.bf16.msra.mxu0 %v19673_v20  ;;  %12193 = vmatprep.subr.bf16.mxu1 %v19678_v22  ;;  %v19738_v20 = vld [vmem:[#allocation7 + $0x1ec] ss:$60 sps:$4 sm:$0xff]  }
 0x306   :  { %12816 = vmatprep.subr.bf16.mxu0 %v19681_v26  ;;  %v19736_v22 = vld [vmem:[#allocation7 + $0x1e8] ss:$60 sps:$4 sm:$0xff]   ;;  %v19739_v26 = vld [vmem:[#allocation7 + $0xb58] ss:$60 sps:$4 sm:$0xff]  }
 0x308   :  { %12194 = vmatpush1.bf16.msra.mxu1 %v19676_v23  ;;  %v19741_v23 = vld [vmem:[#allocation7 + $0xb5c] ss:$60 sps:$4 sm:$0xff]  }
 0x309   :  { %12817 = vmatpush1.bf16.msra.mxu0 %v19679_v51  ;;  %12195 = vmatprep.subr.bf16.mxu1 %v19684_v29  ;;  %v19744_v51 = vld [vmem:[#allocation7 + $0x264] ss:$60 sps:$4 sm:$0xff]  }
 0x30a   :  { %12818 = vmatprep.subr.bf16.mxu0 %v19687_v31  ;;  %v19742_v29 = vld [vmem:[#allocation7 + $0x260] ss:$60 sps:$4 sm:$0xff]   ;;  %v19745_v31 = vld [vmem:[#allocation7 + $0xbd0] ss:$60 sps:$4 sm:$0xff]  }
 0x30c   :  { %12196 = vmatpush1.bf16.msra.mxu1 %v19682_v30  ;;  %v19747_v30 = vld [vmem:[#allocation7 + $0xbd4] ss:$60 sps:$4 sm:$0xff]  }
 0x30d   :  { %12819 = vmatpush1.bf16.msra.mxu0 %v19685_v32  ;;  %12197 = vmatprep.subr.bf16.mxu1 %v19690_v11  ;;  %v19750_v32 = vld [vmem:[#allocation7 + $0x2dc] ss:$60 sps:$4 sm:$0xff]  }
 0x30e   :  { %12829 = vmatprep.subr.bf16.mxu0 %v19693_v35  ;;  %v19748_v11 = vld [vmem:[#allocation7 + $0x2d8] ss:$60 sps:$4 sm:$0xff]   ;;  %v19751_v35 = vld [vmem:[#allocation7 + $0xc48] ss:$60 sps:$4 sm:$0xff]  }
 0x310   :  { %12821 = vmatmul.mubr.bf16.vlgmr.msra.gmra.mrb[20].mxu0 %v22335_v16  ;;  %12198 = vmatpush1.bf16.msra.mxu1 %v19688_v33  ;;  %v19753_v33 = vld [vmem:[#allocation7 + $0xc4c] ss:$60 sps:$4 sm:$0xff]  }
 0x311   :  { %12830 = vmatpush1.bf16.msra.mxu0 %v19691_v37  ;;  %12861 = vmatprep.mubr.bf16.mxu0 %v22346_v34  ;;  %v19756_v37 = vld [vmem:[#allocation7 + $0x354] ss:$60 sps:$4 sm:$0xff]  }
 0x312   :  { %12199 = vmatprep.subr.bf16.mxu1 %v19696_v38  ;;  %12831 = vmatprep.subr.bf16.mxu0 %v19699_v40  ;;  %v19754_v38 = vld [vmem:[#allocation7 + $0x350] ss:$60 sps:$4 sm:$0xff]   ;;  %v19759_v40 = vld [vmem:[#allocation7 + $0xcc4] ss:$60 sps:$4 sm:$0xff]  }
 0x314   :  { %12200 = vmatpush1.bf16.msra.mxu1 %v19694_v1  ;;  %v19757_v1 = vld [vmem:[#allocation7 + $0xcc0] ss:$60 sps:$4 sm:$0xff]  }
 0x315   :  { %12832 = vmatpush1.bf16.msra.mxu0 %v19697_v44  ;;  %12201 = vmatprep.subr.bf16.mxu1 %v19702_v45  ;;  %v19762_v44 = vld [vmem:[#allocation7 + $0x3cc] ss:$60 sps:$4 sm:$0xff]  }
 0x316   :  { %12833 = vmatprep.subr.bf16.mxu0 %v19705_v47  ;;  %v19760_v45 = vld [vmem:[#allocation7 + $0x3c8] ss:$60 sps:$4 sm:$0xff]   ;;  %v19763_v47 = vld [vmem:[#allocation7 + $0xd38] ss:$60 sps:$4 sm:$0xff]  }
 0x318   :  { %12202 = vmatpush1.bf16.msra.mxu1 %v19700_v46  ;;  %v19765_v46 = vld [vmem:[#allocation7 + $0xd3c] ss:$60 sps:$4 sm:$0xff]  }
 0x319   :  { %12834 = vmatpush1.bf16.msra.mxu0 %v19703_v48  ;;  %12203 = vmatprep.subr.bf16.mxu1 %v19708_v49  ;;  %v19768_v48 = vld [vmem:[#allocation7 + $0x444] ss:$60 sps:$4 sm:$0xff]  }
 0x31a   :  { %12835 = vmatprep.subr.bf16.mxu0 %v19711_v52  ;;  %v19766_v49 = vld [vmem:[#allocation7 + $0x440] ss:$60 sps:$4 sm:$0xff]   ;;  %v19769_v52 = vld [vmem:[#allocation7 + $0xdb0] ss:$60 sps:$4 sm:$0xff]  }
 0x31c   :  { %12204 = vmatpush1.bf16.msra.mxu1 %v19706_v50  ;;  %v19771_v50 = vld [vmem:[#allocation7 + $0xdb4] ss:$60 sps:$4 sm:$0xff]  }
 0x31d   :  { %12836 = vmatpush1.bf16.msra.mxu0 %v19709_v53  ;;  %12214 = vmatprep.subr.bf16.mxu1 %v19714_v55  ;;  %v19774_v53 = vld [vmem:[#allocation7 + $0x4bc] ss:$60 sps:$4 sm:$0xff]  }
 0x31e   :  { %12837 = vmatprep.subr.bf16.mxu0 %v19717_v57  ;;  %v19772_v55 = vld [vmem:[#allocation7 + $0x4b8] ss:$60 sps:$4 sm:$0xff]   ;;  %v19777_v57 = vld [vmem:[#allocation7 + $0xe2c] ss:$60 sps:$4 sm:$0xff]  }
 0x31f   :  { %12206 = vmatmul.mubr.bf16.vlgmr.msra.gmra.mrb[12].mxu1 %v22445_v62 }
 0x320   :  { %12215 = vmatpush1.bf16.msra.mxu1 %v19712_v56  ;;  %12246 = vmatprep.mubr.bf16.mxu1 %v22333_v15  ;;  %v19775_v56 = vld [vmem:[#allocation7 + $0xe28] ss:$60 sps:$4 sm:$0xff]  }
 0x321   :  { %12838 = vmatpush1.bf16.msra.mxu0 %v19715_v58  ;;  %12216 = vmatprep.subr.bf16.mxu1 %v19720_v60  ;;  %v19780_v58 = vld [vmem:[#allocation7 + $0x534] ss:$60 sps:$4 sm:$0xff]  }
 0x322   :  { %12839 = vmatprep.subr.bf16.mxu0 %v19723_v5  ;;  %v19778_v60 = vld [vmem:[#allocation7 + $0x530] ss:$60 sps:$4 sm:$0xff]   ;;  %v19781_v5 = vld [vmem:[#allocation7 + $0xea0] ss:$60 sps:$4 sm:$0xff]  }
 0x324   :  { %12217 = vmatpush1.bf16.msra.mxu1 %v19718_v25  ;;  %v19783_v25 = vld [vmem:[#allocation7 + $0xea4] ss:$60 sps:$4 sm:$0xff]  }
 0x325   :  { %12840 = vmatpush1.bf16.msra.mxu0 %v19721_v6  ;;  %12218 = vmatprep.subr.bf16.mxu1 %v19726_v7  ;;  %v19786_v6 = vld [vmem:[#allocation7 + $0x5ac] ss:$60 sps:$4 sm:$0xff]  }
 0x326   :  { %12841 = vmatprep.subr.bf16.mxu0 %v19729_v9  ;;  %v19784_v7 = vld [vmem:[#allocation7 + $0x5a8] ss:$60 sps:$4 sm:$0xff]   ;;  %v19787_v9 = vld [vmem:[#allocation7 + $0xf18] ss:$60 sps:$4 sm:$0xff]  }
 0x328   :  { %12219 = vmatpush1.bf16.msra.mxu1 %v19724_v8  ;;  %v19789_v8 = vld [vmem:[#allocation7 + $0xf1c] ss:$60 sps:$4 sm:$0xff]  }
 0x329   :  { %12842 = vmatpush1.bf16.msra.mxu0 %v19727_v10  ;;  %12220 = vmatprep.subr.bf16.mxu1 %v19732_v13  ;;  %v19792_v10 = vld [vmem:[#allocation7 + $0x624] ss:$60 sps:$4 sm:$0xff]   ;;  %v19795_v13 = vld [vmem:[#allocation7 + $0xf94] ss:$60 sps:$4 sm:$0xff]  }
 0x32a   :  { %12843 = vmatprep.subr.bf16.mxu0 %v19735_v14  ;;  %v19790_v14 = vld [vmem:[#allocation7 + $0x620] ss:$60 sps:$4 sm:$0xff]  }
 0x32c   :  { %12221 = vmatpush1.bf16.msra.mxu1 %v19730_v18  ;;  %v19793_v18 = vld [vmem:[#allocation7 + $0xf90] ss:$60 sps:$4 sm:$0xff]  }
 0x32d   :  { %12844 = vmatpush1.bf16.msra.mxu0 %v19733_v19  ;;  %12222 = vmatprep.subr.bf16.mxu1 %v19738_v20  ;;  %v19798_v19 = vld [vmem:[#allocation7 + $0x69c] ss:$60 sps:$4 sm:$0xff]  }
 0x32e   :  { %12845 = vmatprep.subr.bf16.mxu0 %v19741_v23  ;;  %v19796_v20 = vld [vmem:[#allocation7 + $0x698] ss:$60 sps:$4 sm:$0xff]   ;;  %v19799_v23 = vld [vmem:[#allocation7 + $0x1008] ss:$60 sps:$4 sm:$0xff]  }
 0x330   :  { %12223 = vmatpush1.bf16.msra.mxu1 %v19736_v22  ;;  %v19801_v22 = vld [vmem:[#allocation7 + $0x100c] ss:$60 sps:$4 sm:$0xff]  }
 0x331   :  { %12846 = vmatpush1.bf16.msra.mxu0 %v19739_v26  ;;  %12224 = vmatprep.subr.bf16.mxu1 %v19744_v51  ;;  %v19804_v26 = vld [vmem:[#allocation7 + $0x714] ss:$60 sps:$4 sm:$0xff]  }
 0x332   :  { %12847 = vmatprep.subr.bf16.mxu0 %v19747_v30  ;;  %v19802_v51 = vld [vmem:[#allocation7 + $0x710] ss:$60 sps:$4 sm:$0xff]   ;;  %v19805_v30 = vld [vmem:[#allocation7 + $0x1080] ss:$60 sps:$4 sm:$0xff]  }
 0x334   :  { %12225 = vmatpush1.bf16.msra.mxu1 %v19742_v29  ;;  %v19807_v29 = vld [vmem:[#allocation7 + $0x1084] ss:$60 sps:$4 sm:$0xff]  }
 0x335   :  { %12848 = vmatpush1.bf16.msra.mxu0 %v19745_v31  ;;  %12226 = vmatprep.subr.bf16.mxu1 %v19750_v32  ;;  %v19810_v31 = vld [vmem:[#allocation7 + $0x78c] ss:$60 sps:$4 sm:$0xff]   ;;  %v19813_v32 = vld [vmem:[#allocation7 + $0x10fc] ss:$60 sps:$4 sm:$0xff]  }
 0x336   :  { %12849 = vmatprep.subr.bf16.mxu0 %v19753_v33  ;;  %v19811_v33 = vld [vmem:[#allocation7 + $0x10f8] ss:$60 sps:$4 sm:$0xff]  }
 0x338   :  { %12227 = vmatpush1.bf16.msra.mxu1 %v19748_v11  ;;  %v19808_v11 = vld [vmem:[#allocation7 + $0x788] ss:$60 sps:$4 sm:$0xff]  }
 0x339   :  { %12850 = vmatpush1.bf16.msra.mxu0 %v19751_v35  ;;  %12228 = vmatprep.subr.bf16.mxu1 %v19756_v37  ;;  %v19816_v35 = vld [vmem:[#allocation7 + $0x804] ss:$60 sps:$4 sm:$0xff]   ;;  %v19819_v37 = vld [vmem:[#allocation7 + $0x1174] ss:$60 sps:$4 sm:$0xff]  }
 0x33a   :  { %12851 = vmatprep.subr.bf16.mxu0 %v19759_v40  ;;  %v19817_v40 = vld [vmem:[#allocation7 + $0x1170] ss:$60 sps:$4 sm:$0xff]  }
 0x33c   :  { %12229 = vmatpush1.bf16.msra.mxu1 %v19754_v38  ;;  %v19814_v38 = vld [vmem:[#allocation7 + $0x800] ss:$60 sps:$4 sm:$0xff]  }
 0x33d   :  { %12852 = vmatpush1.bf16.msra.mxu0 %v19757_v1  ;;  %12230 = vmatprep.subr.bf16.mxu1 %v19762_v44  ;;  %v19822_v1 = vld [vmem:[#allocation7 + $0x87c] ss:$60 sps:$4 sm:$0xff]  }
 0x33e   :  { %12853 = vmatprep.subr.bf16.mxu0 %v19765_v46  ;;  %v19820_v44 = vld [vmem:[#allocation7 + $0x878] ss:$60 sps:$4 sm:$0xff]   ;;  %v19823_v46 = vld [vmem:[#allocation7 + $0x11e8] ss:$60 sps:$4 sm:$0xff]  }
 0x340   :  { %12231 = vmatpush1.bf16.msra.mxu1 %v19760_v45  ;;  %v19825_v45 = vld [vmem:[#allocation7 + $0x11ec] ss:$60 sps:$4 sm:$0xff]  }
 0x341   :  { %12854 = vmatpush1.bf16.msra.mxu0 %v19763_v47  ;;  %12232 = vmatprep.subr.bf16.mxu1 %v19768_v48  ;;  %v19828_v47 = vld [vmem:[#allocation7 + $0x8f4] ss:$60 sps:$4 sm:$0xff]  }
 0x342   :  { %12855 = vmatprep.subr.bf16.mxu0 %v19771_v50  ;;  %v19826_v48 = vld [vmem:[#allocation7 + $0x8f0] ss:$60 sps:$4 sm:$0xff]   ;;  %v19829_v50 = vld [vmem:[#allocation7 + $0x1260] ss:$60 sps:$4 sm:$0xff]  }
 0x344   :  { %12233 = vmatpush1.bf16.msra.mxu1 %v19766_v49  ;;  %v19831_v49 = vld [vmem:[#allocation7 + $0x1264] ss:$60 sps:$4 sm:$0xff]  }
 0x345   :  { %12856 = vmatpush1.bf16.msra.mxu0 %v19769_v52  ;;  %12234 = vmatprep.subr.bf16.mxu1 %v19774_v53  ;;  %v19834_v52 = vld [vmem:[#allocation7 + $0x96c] ss:$60 sps:$4 sm:$0xff]  }
 0x346   :  { %12857 = vmatprep.subr.bf16.mxu0 %v19777_v57  ;;  %v19832_v53 = vld [vmem:[#allocation7 + $0x968] ss:$60 sps:$4 sm:$0xff]   ;;  %v19835_v57 = vld [vmem:[#allocation7 + $0x12d8] ss:$60 sps:$4 sm:$0xff]  }
 0x348   :  { %12235 = vmatpush1.bf16.msra.mxu1 %v19772_v55  ;;  %v19837_v55 = vld [vmem:[#allocation7 + $0x12dc] ss:$60 sps:$4 sm:$0xff]  }
 0x349   :  { %12858 = vmatpush1.bf16.msra.mxu0 %v19775_v56  ;;  %12236 = vmatprep.subr.bf16.mxu1 %v19780_v58  ;;  %v19840_v56 = vld [vmem:[#allocation7 + $0x9e4] ss:$60 sps:$4 sm:$0xff]  }
 0x34a   :  { %12859 = vmatprep.subr.bf16.mxu0 %v19783_v25  ;;  %v19838_v58 = vld [vmem:[#allocation7 + $0x9e0] ss:$60 sps:$4 sm:$0xff]   ;;  %v19841_v25 = vld [vmem:[#allocation7 + $0x1350] ss:$60 sps:$4 sm:$0xff]  }
 0x34c   :  { %12237 = vmatpush1.bf16.msra.mxu1 %v19778_v60  ;;  %v19843_v60 = vld [vmem:[#allocation7 + $0x1354] ss:$60 sps:$4 sm:$0xff]  }
 0x34d   :  { %12860 = vmatpush1.bf16.msra.mxu0 %v19781_v5  ;;  %12238 = vmatprep.subr.bf16.mxu1 %v19786_v6  ;;  %v19846_v5 = vld [vmem:[#allocation7 + $0xa5c] ss:$60 sps:$4 sm:$0xff]  }
 0x34e   :  { %12870 = vmatprep.subr.bf16.mxu0 %v19789_v8  ;;  %v19844_v6 = vld [vmem:[#allocation7 + $0xa58] ss:$60 sps:$4 sm:$0xff]   ;;  %v19847_v8 = vld [vmem:[#allocation7 + $0x13c8] ss:$60 sps:$4 sm:$0xff]  }
 0x350   :  { %12862 = vmatmul.mubr.bf16.vlgmr.msra.gmra.mrb[20].mxu0 %v22377_v36  ;;  %12239 = vmatpush1.bf16.msra.mxu1 %v19784_v7  ;;  %v19849_v7 = vld [vmem:[#allocation7 + $0x13cc] ss:$60 sps:$4 sm:$0xff]  }
 0x351   :  { %12871 = vmatpush1.bf16.msra.mxu0 %v19787_v9  ;;  %12902 = vmatprep.mubr.bf16.mxu0 %v22361_v3  ;;  %v19852_v9 = vld [vmem:[#allocation7 + $0xad4] ss:$60 sps:$4 sm:$0xff]  }
 0x352   :  { %12240 = vmatprep.subr.bf16.mxu1 %v19792_v10  ;;  %12872 = vmatprep.subr.bf16.mxu0 %v19795_v13  ;;  %v19855_v10 = vld [vmem:[#allocation7 + $0x1444] ss:$60 sps:$4 sm:$0xff]   ;;  %v19850_v13 = vld [vmem:[#allocation7 + $0xad0] ss:$60 sps:$4 sm:$0xff]  }
 0x354   :  { %12241 = vmatpush1.bf16.msra.mxu1 %v19790_v14  ;;  %v19853_v14 = vld [vmem:[#allocation7 + $0x1440] ss:$60 sps:$4 sm:$0xff]  }
 0x355   :  { %12873 = vmatpush1.bf16.msra.mxu0 %v19793_v18  ;;  %12242 = vmatprep.subr.bf16.mxu1 %v19798_v19  ;;  %v19858_v18 = vld [vmem:[#allocation7 + $0xb4c] ss:$60 sps:$4 sm:$0xff]  }
 0x356   :  { %12874 = vmatprep.subr.bf16.mxu0 %v19801_v22  ;;  %v19856_v19 = vld [vmem:[#allocation7 + $0xb48] ss:$60 sps:$4 sm:$0xff]   ;;  %v19859_v22 = vld [vmem:[#allocation7 + $0x14b8] ss:$60 sps:$4 sm:$0xff]  }
 0x358   :  { %12243 = vmatpush1.bf16.msra.mxu1 %v19796_v20  ;;  %v19861_v20 = vld [vmem:[#allocation7 + $0x14bc] ss:$60 sps:$4 sm:$0xff]  }
 0x359   :  { %12875 = vmatpush1.bf16.msra.mxu0 %v19799_v23  ;;  %12244 = vmatprep.subr.bf16.mxu1 %v19804_v26  ;;  %v19864_v23 = vld [vmem:[#allocation7 + $0xbc4] ss:$60 sps:$4 sm:$0xff]  }
 0x35a   :  { %12876 = vmatprep.subr.bf16.mxu0 %v19807_v29  ;;  %v19862_v26 = vld [vmem:[#allocation7 + $0xbc0] ss:$60 sps:$4 sm:$0xff]   ;;  %v19865_v29 = vld [vmem:[#allocation7 + $0x1530] ss:$60 sps:$4 sm:$0xff]  }
 0x35c   :  { %12245 = vmatpush1.bf16.msra.mxu1 %v19802_v51  ;;  %v19867_v51 = vld [vmem:[#allocation7 + $0x1534] ss:$60 sps:$4 sm:$0xff]  }
 0x35d   :  { %12877 = vmatpush1.bf16.msra.mxu0 %v19805_v30  ;;  %12255 = vmatprep.subr.bf16.mxu1 %v19810_v31  ;;  %v19870_v30 = vld [vmem:[#allocation7 + $0xc3c] ss:$60 sps:$4 sm:$0xff]  }
 0x35e   :  { %12878 = vmatprep.subr.bf16.mxu0 %v19813_v32  ;;  %v19868_v31 = vld [vmem:[#allocation7 + $0xc38] ss:$60 sps:$4 sm:$0xff]   ;;  %v19873_v32 = vld [vmem:[#allocation7 + $0x15ac] ss:$60 sps:$4 sm:$0xff]  }
 0x35f   :  { %12247 = vmatmul.mubr.bf16.vlgmr.msra.gmra.mrb[16].mxu1 %v22335_v16 }
 0x360   :  { %12256 = vmatpush1.bf16.msra.mxu1 %v19808_v11  ;;  %12287 = vmatprep.mubr.bf16.mxu1 %v22346_v34  ;;  %v19871_v11 = vld [vmem:[#allocation7 + $0x15a8] ss:$60 sps:$4 sm:$0xff]  }
 0x361   :  { %12879 = vmatpush1.bf16.msra.mxu0 %v19811_v33  ;;  %12257 = vmatprep.subr.bf16.mxu1 %v19816_v35  ;;  %v19876_v33 = vld [vmem:[#allocation7 + $0xcb4] ss:$60 sps:$4 sm:$0xff]  }
 0x362   :  { %12880 = vmatprep.subr.bf16.mxu0 %v19819_v37  ;;  %v19874_v35 = vld [vmem:[#allocation7 + $0xcb0] ss:$60 sps:$4 sm:$0xff]   ;;  %v19879_v37 = vld [vmem:[#allocation7 + $0x1624] ss:$60 sps:$4 sm:$0xff]  }
 0x364   :  { %12258 = vmatpush1.bf16.msra.mxu1 %v19814_v38  ;;  %v19877_v38 = vld [vmem:[#allocation7 + $0x1620] ss:$60 sps:$4 sm:$0xff]  }
 0x365   :  { %12881 = vmatpush1.bf16.msra.mxu0 %v19817_v40  ;;  %12259 = vmatprep.subr.bf16.mxu1 %v19822_v1  ;;  %v19882_v40 = vld [vmem:[#allocation7 + $0xd2c] ss:$60 sps:$4 sm:$0xff]  }
 0x366   :  { %12882 = vmatprep.subr.bf16.mxu0 %v19825_v45  ;;  %v19880_v1 = vld [vmem:[#allocation7 + $0xd28] ss:$60 sps:$4 sm:$0xff]   ;;  %v19883_v45 = vld [vmem:[#allocation7 + $0x1698] ss:$60 sps:$4 sm:$0xff]  }
 0x368   :  { %12260 = vmatpush1.bf16.msra.mxu1 %v19820_v44  ;;  %v19885_v44 = vld [vmem:[#allocation7 + $0x169c] ss:$60 sps:$4 sm:$0xff]  }
 0x369   :  { %12883 = vmatpush1.bf16.msra.mxu0 %v19823_v46  ;;  %12261 = vmatprep.subr.bf16.mxu1 %v19828_v47  ;;  %v19888_v46 = vld [vmem:[#allocation7 + $0xda4] ss:$60 sps:$4 sm:$0xff]   ;;  %v19891_v47 = vld [vmem:[#allocation7 + $0x1714] ss:$60 sps:$4 sm:$0xff]  }
 0x36a   :  { %12884 = vmatprep.subr.bf16.mxu0 %v19831_v49  ;;  %v19889_v49 = vld [vmem:[#allocation7 + $0x1710] ss:$60 sps:$4 sm:$0xff]  }
 0x36c   :  { %12262 = vmatpush1.bf16.msra.mxu1 %v19826_v48  ;;  %v19886_v48 = vld [vmem:[#allocation7 + $0xda0] ss:$60 sps:$4 sm:$0xff]  }
 0x36d   :  { %12885 = vmatpush1.bf16.msra.mxu0 %v19829_v50  ;;  %12263 = vmatprep.subr.bf16.mxu1 %v19834_v52  ;;  %v19894_v50 = vld [vmem:[#allocation7 + $0xe1c] ss:$60 sps:$4 sm:$0xff]  }
 0x36e   :  { %12886 = vmatprep.subr.bf16.mxu0 %v19837_v55  ;;  %v19892_v52 = vld [vmem:[#allocation7 + $0xe18] ss:$60 sps:$4 sm:$0xff]   ;;  %v19895_v55 = vld [vmem:[#allocation7 + $0x1788] ss:$60 sps:$4 sm:$0xff]  }
 0x370   :  { %12264 = vmatpush1.bf16.msra.mxu1 %v19832_v53  ;;  %v19897_v53 = vld [vmem:[#allocation7 + $0x178c] ss:$60 sps:$4 sm:$0xff]  }
 0x371   :  { %12887 = vmatpush1.bf16.msra.mxu0 %v19835_v57  ;;  %12265 = vmatprep.subr.bf16.mxu1 %v19840_v56  ;;  %v19900_v57 = vld [vmem:[#allocation7 + $0xe94] ss:$60 sps:$4 sm:$0xff]  }
 0x372   :  { %12888 = vmatprep.subr.bf16.mxu0 %v19843_v60  ;;  %v19898_v56 = vld [vmem:[#allocation7 + $0xe90] ss:$60 sps:$4 sm:$0xff]   ;;  %v19901_v60 = vld [vmem:[#allocation7 + $0x1800] ss:$60 sps:$4 sm:$0xff]  }
 0x374   :  { %12266 = vmatpush1.bf16.msra.mxu1 %v19838_v58  ;;  %v19903_v58 = vld [vmem:[#allocation7 + $0x1804] ss:$60 sps:$4 sm:$0xff]  }
 0x375   :  { %12889 = vmatpush1.bf16.msra.mxu0 %v19841_v25  ;;  %12267 = vmatprep.subr.bf16.mxu1 %v19846_v5  ;;  %v19906_v25 = vld [vmem:[#allocation7 + $0x14] ss:$60 sps:$4 sm:$0xff]   ;;  %v19909_v5 = vld [vmem:[#allocation7 + $0x187c] ss:$60 sps:$4 sm:$0xff]  }
 0x376   :  { %12890 = vmatprep.subr.bf16.mxu0 %v19849_v7  ;;  %v19907_v7 = vld [vmem:[#allocation7 + $0x1878] ss:$60 sps:$4 sm:$0xff]  }
 0x378   :  { %12268 = vmatpush1.bf16.msra.mxu1 %v19844_v6  ;;  %v19904_v6 = vld [vmem:[#allocation7 + $0x10] ss:$60 sps:$4 sm:$0xff]  }
 0x379   :  { %12891 = vmatpush1.bf16.msra.mxu0 %v19847_v8  ;;  %12269 = vmatprep.subr.bf16.mxu1 %v19852_v9  ;;  %v19912_v8 = vld [vmem:[#allocation7 + $0x8c] ss:$60 sps:$4 sm:$0xff]   ;;  %v19915_v9 = vld [vmem:[#allocation7 + $0x18f4] ss:$60 sps:$4 sm:$0xff]  }
 0x37a   :  { %12892 = vmatprep.subr.bf16.mxu0 %v19855_v10  ;;  %v19910_v10 = vld [vmem:[#allocation7 + $0x88] ss:$60 sps:$4 sm:$0xff]  }
 0x37c   :  { %12270 = vmatpush1.bf16.msra.mxu1 %v19850_v13  ;;  %v19913_v13 = vld [vmem:[#allocation7 + $0x18f0] ss:$60 sps:$4 sm:$0xff]  }
 0x37d   :  { %12893 = vmatpush1.bf16.msra.mxu0 %v19853_v14  ;;  %12271 = vmatprep.subr.bf16.mxu1 %v19858_v18  ;;  %v19918_v14 = vld [vmem:[#allocation7 + $0x104] ss:$60 sps:$4 sm:$0xff]  }
 0x37e   :  { %12894 = vmatprep.subr.bf16.mxu0 %v19861_v20  ;;  %v19916_v18 = vld [vmem:[#allocation7 + $0x100] ss:$60 sps:$4 sm:$0xff]  }
 0x380   :  { %12272 = vmatpush1.bf16.msra.mxu1 %v19856_v19  ;;  %v19921_v19 = vld [vmem:[#allocation7 + $0x196c] ss:$60 sps:$4 sm:$0xff]  }
 0x381   :  { %12895 = vmatpush1.bf16.msra.mxu0 %v19859_v22  ;;  %12273 = vmatprep.subr.bf16.mxu1 %v19864_v23 }
 0x382   :  { %12896 = vmatprep.subr.bf16.mxu0 %v19867_v51  ;;  %v19924_v51 = vld [vmem:[#allocation7 + $0x17c] ss:$60 sps:$4 sm:$0xff]  }
 0x384   :  { %12274 = vmatpush1.bf16.msra.mxu1 %v19862_v26  ;;  %v19919_v26 = vld [vmem:[#allocation7 + $0x1968] ss:$60 sps:$4 sm:$0xff]  }
 0x385   :  { %12897 = vmatpush1.bf16.msra.mxu0 %v19865_v29  ;;  %12275 = vmatprep.subr.bf16.mxu1 %v19870_v30  ;;  %v19922_v30 = vld [vmem:[#allocation7 + $0x178] ss:$60 sps:$4 sm:$0xff]  }
 0x386   :  { %12898 = vmatprep.subr.bf16.mxu0 %v19873_v32  ;;  %v19925_v32 = vld [vmem:[#allocation7 + $0x19e0] ss:$60 sps:$4 sm:$0xff]  }
 0x388   :  { %12276 = vmatpush1.bf16.msra.mxu1 %v19868_v31  ;;  %v19927_v31 = vld [vmem:[#allocation7 + $0x19e4] ss:$60 sps:$4 sm:$0xff]  }
 0x389   :  { %12899 = vmatpush1.bf16.msra.mxu0 %v19871_v11  ;;  %12277 = vmatprep.subr.bf16.mxu1 %v19876_v33  ;;  %v19930_v11 = vld [vmem:[#allocation7 + $0x1f4] ss:$60 sps:$4 sm:$0xff]  }
 0x38a   :  { %12900 = vmatprep.subr.bf16.mxu0 %v19879_v37  ;;  %v19928_v33 = vld [vmem:[#allocation7 + $0x1f0] ss:$60 sps:$4 sm:$0xff]   ;;  %v19931_v37 = vld [vmem:[#allocation7 + $0x1a58] ss:$60 sps:$4 sm:$0xff]  }
 0x38c   :  { %12278 = vmatpush1.bf16.msra.mxu1 %v19874_v35  ;;  %v19933_v35 = vld [vmem:[#allocation7 + $0x1a5c] ss:$60 sps:$4 sm:$0xff]  }
 0x38d   :  { %12901 = vmatpush1.bf16.msra.mxu0 %v19877_v38  ;;  %12279 = vmatprep.subr.bf16.mxu1 %v19882_v40  ;;  %v19936_v38 = vld [vmem:[#allocation7 + $0x26c] ss:$60 sps:$4 sm:$0xff]  }
 0x38e   :  { %12911 = vmatprep.subr.bf16.mxu0 %v19885_v44  ;;  %v19934_v40 = vld [vmem:[#allocation7 + $0x268] ss:$60 sps:$4 sm:$0xff]   ;;  %v19937_v44 = vld [vmem:[#allocation7 + $0x1ad0] ss:$60 sps:$4 sm:$0xff]  }
 0x390   :  { %12903 = vmatmul.mubr.bf16.vlgmr.msra.gmra.mrb[20].mxu0 %v22359_v63  ;;  %12280 = vmatpush1.bf16.msra.mxu1 %v19880_v1  ;;  %v19939_v1 = vld [vmem:[#allocation7 + $0x1ad4] ss:$60 sps:$4 sm:$0xff]  }
 0x391   :  { %12912 = vmatpush1.bf16.msra.mxu0 %v19883_v45  ;;  %12943 = vmatprep.mubr.bf16.mxu0 %v22380_v41  ;;  %v19942_v45 = vld [vmem:[#allocation7 + $0x2e4] ss:$60 sps:$4 sm:$0xff]  }
 0x392   :  { %12281 = vmatprep.subr.bf16.mxu1 %v19888_v46  ;;  %12913 = vmatprep.subr.bf16.mxu0 %v19891_v47  ;;  %v19940_v46 = vld [vmem:[#allocation7 + $0x2e0] ss:$60 sps:$4 sm:$0xff]   ;;  %v19945_v47 = vld [vmem:[#allocation7 + $0x1b4c] ss:$60 sps:$4 sm:$0xff]  }
 0x394   :  { %12282 = vmatpush1.bf16.msra.mxu1 %v19886_v48  ;;  %v19943_v48 = vld [vmem:[#allocation7 + $0x1b48] ss:$60 sps:$4 sm:$0xff]  }
 0x395   :  { %12914 = vmatpush1.bf16.msra.mxu0 %v19889_v49  ;;  %12283 = vmatprep.subr.bf16.mxu1 %v19894_v50  ;;  %v19948_v49 = vld [vmem:[#allocation7 + $0x35c] ss:$60 sps:$4 sm:$0xff]  }
 0x396   :  { %12915 = vmatprep.subr.bf16.mxu0 %v19897_v53  ;;  %v19946_v50 = vld [vmem:[#allocation7 + $0x358] ss:$60 sps:$4 sm:$0xff]   ;;  %v19949_v53 = vld [vmem:[#allocation7 + $0x1bc0] ss:$60 sps:$4 sm:$0xff]  }
 0x398   :  { %12284 = vmatpush1.bf16.msra.mxu1 %v19892_v52  ;;  %v19951_v52 = vld [vmem:[#allocation7 + $0x1bc4] ss:$60 sps:$4 sm:$0xff]  }
 0x399   :  { %12916 = vmatpush1.bf16.msra.mxu0 %v19895_v55  ;;  %12285 = vmatprep.subr.bf16.mxu1 %v19900_v57  ;;  %v19954_v55 = vld [vmem:[#allocation7 + $0x3d4] ss:$60 sps:$4 sm:$0xff]  }
 0x39a   :  { %12917 = vmatprep.subr.bf16.mxu0 %v19903_v58  ;;  %v19952_v57 = vld [vmem:[#allocation7 + $0x3d0] ss:$60 sps:$4 sm:$0xff]   ;;  %v19955_v58 = vld [vmem:[#allocation7 + $0x1c38] ss:$60 sps:$4 sm:$0xff]  }
 0x39c   :  { %12286 = vmatpush1.bf16.msra.mxu1 %v19898_v56  ;;  %v19957_v56 = vld [vmem:[#allocation7 + $0x1c3c] ss:$60 sps:$4 sm:$0xff]  }
 0x39d   :  { %12918 = vmatpush1.bf16.msra.mxu0 %v19901_v60  ;;  %12501 = vmatprep.subr.bf16.mxu1 %v19906_v25  ;;  %v19960_v60 = vld [vmem:[#allocation7 + $0x44c] ss:$60 sps:$4 sm:$0xff]  }
 0x39e   :  { %12919 = vmatprep.subr.bf16.mxu0 %v19909_v5  ;;  %v19958_v25 = vld [vmem:[#allocation7 + $0x448] ss:$60 sps:$4 sm:$0xff]   ;;  %v19963_v5 = vld [vmem:[#allocation7 + $0x1cb4] ss:$60 sps:$4 sm:$0xff]  }
 0x39f   :  { %12288 = vmatmul.mubr.bf16.vlgmr.msra.gmra.mrb[16].mxu1 %v22377_v36 }
 0x3a0   :  { %12502 = vmatpush1.bf16.msra.mxu1 %v19904_v6  ;;  %12533 = vmatprep.mubr.bf16.mxu1 %v22333_v15  ;;  %v19961_v6 = vld [vmem:[#allocation7 + $0x1cb0] ss:$60 sps:$4 sm:$0xff]  }
 0x3a1   :  { %12920 = vmatpush1.bf16.msra.mxu0 %v19907_v7  ;;  %12503 = vmatprep.subr.bf16.mxu1 %v19912_v8  ;;  %v19966_v7 = vld [vmem:[#allocation7 + $0x4c4] ss:$60 sps:$4 sm:$0xff]  }
 0x3a2   :  { %12921 = vmatprep.subr.bf16.mxu0 %v19915_v9  ;;  %v19964_v8 = vld [vmem:[#allocation7 + $0x4c0] ss:$60 sps:$4 sm:$0xff]   ;;  %v19969_v9 = vld [vmem:[#allocation7 + $0x1d2c] ss:$60 sps:$4 sm:$0xff]  }
 0x3a3   :  { %v22463_v20 = vpop.f32.mrb[16].mxu0 }
 0x3a4   :  { %v22465_v22 = vpop.f32.mrb[17].mxu0  ;;  %12504 = vmatpush1.bf16.msra.mxu1 %v19910_v10  ;;  %v19967_v10 = vld [vmem:[#allocation7 + $0x1d28] ss:$60 sps:$4 sm:$0xff]  }
 0x3a5   :  { %v12498_v23 = vpop.f32.mrb[18].mxu0  ;;  %12922 = vmatpush1.bf16.msra.mxu0 %v19913_v13  ;;  %12505 = vmatprep.subr.bf16.mxu1 %v19918_v14  ;;  %v19972_v13 = vld [vmem:[#allocation7 + $0x53c] ss:$60 sps:$4 sm:$0xff]  }
 0x3a6   :  { %v12499_v29 = vpop.f32.mrb[19].mxu0  ;;  %12923 = vmatprep.subr.bf16.mxu0 %v19921_v19  ;;  %v19970_v14 = vld [vmem:[#allocation7 + $0x538] ss:$60 sps:$4 sm:$0xff]   ;;  %v19973_v19 = vld [vmem:[#allocation7 + $0x1da0] ss:$60 sps:$4 sm:$0xff]  }
 0x3a7   :  { %v19978_v23 = vld [vmem:[#allocation7 + $0x5b4] ss:$60 sps:$4 sm:$0xff]  }
 0x3a8   :  { %12506 = vmatpush1.bf16.msra.mxu1 %v19916_v18  ;;  %v19975_v18 = vld [vmem:[#allocation7 + $0x1da4] ss:$60 sps:$4 sm:$0xff]   ;;  %v19979_v29 = vld [vmem:[#allocation7 + $0x1e18] ss:$60 sps:$4 sm:$0xff]  }
 0x3a9   :  { %12924 = vmatpush1.bf16.msra.mxu0 %v19919_v26  ;;  %12507 = vmatprep.subr.bf16.mxu1 %v19924_v51  ;;  %v19976_v26 = vld [vmem:[#allocation7 + $0x5b0] ss:$60 sps:$4 sm:$0xff]   ;;  %v19981_v51 = vld [vmem:[#allocation7 + $0x1e1c] ss:$60 sps:$4 sm:$0xff]  }
 0x3aa   :  { %12925 = vmatprep.subr.bf16.mxu0 %v19927_v31  ;;  %v19987_v31 = vld [vmem:[#allocation7 + $0x1e94] ss:$60 sps:$4 sm:$0xff]  }
 0x3ac   :  { %12508 = vmatpush1.bf16.msra.mxu1 %v19922_v30  ;;  %v19984_v30 = vld [vmem:[#allocation7 + $0x62c] ss:$60 sps:$4 sm:$0xff]  }
 0x3ad   :  { %12926 = vmatpush1.bf16.msra.mxu0 %v19925_v32  ;;  %12509 = vmatprep.subr.bf16.mxu1 %v19930_v11  ;;  %v19982_v32 = vld [vmem:[#allocation7 + $0x628] ss:$60 sps:$4 sm:$0xff]   ;;  %v19985_v11 = vld [vmem:[#allocation7 + $0x1e90] ss:$60 sps:$4 sm:$0xff]  }
 0x3ae   :  { %12927 = vmatprep.subr.bf16.mxu0 %v19933_v35  ;;  %v19988_v35 = vld [vmem:[#allocation7 + $0x6a0] ss:$60 sps:$4 sm:$0xff]  }
 0x3b0   :  { %12510 = vmatpush1.bf16.msra.mxu1 %v19928_v33  ;;  %v19990_v33 = vld [vmem:[#allocation7 + $0x6a4] ss:$60 sps:$4 sm:$0xff]  }
 0x3b1   :  { %12928 = vmatpush1.bf16.msra.mxu0 %v19931_v37  ;;  %12511 = vmatprep.subr.bf16.mxu1 %v19936_v38  ;;  %v19993_v37 = vld [vmem:[#allocation7 + $0x1f0c] ss:$60 sps:$4 sm:$0xff]  }
 0x3b2   :  { %12929 = vmatprep.subr.bf16.mxu0 %v19939_v1  ;;  %v19991_v38 = vld [vmem:[#allocation7 + $0x1f08] ss:$60 sps:$4 sm:$0xff]   ;;  %v19994_v1 = vld [vmem:[#allocation7 + $0x718] ss:$60 sps:$4 sm:$0xff]  }
 0x3b4   :  { %12512 = vmatpush1.bf16.msra.mxu1 %v19934_v40  ;;  %v19996_v40 = vld [vmem:[#allocation7 + $0x71c] ss:$60 sps:$4 sm:$0xff]  }
 0x3b5   :  { %12930 = vmatpush1.bf16.msra.mxu0 %v19937_v44  ;;  %12513 = vmatprep.subr.bf16.mxu1 %v19942_v45  ;;  %v19999_v44 = vld [vmem:[#allocation7 + $0x1f84] ss:$60 sps:$4 sm:$0xff]  }
 0x3b6   :  { %12931 = vmatprep.subr.bf16.mxu0 %v19945_v47  ;;  %v19997_v45 = vld [vmem:[#allocation7 + $0x1f80] ss:$60 sps:$4 sm:$0xff]  }
 0x3b7   :  { %v20005_v47 = vld [vmem:[#allocation7 + $0x1ffc] ss:$60 sps:$4 sm:$0xff]  }
 0x3b8   :  { %12514 = vmatpush1.bf16.msra.mxu1 %v19940_v46  ;;  %v20002_v46 = vld [vmem:[#allocation7 + $0x794] ss:$60 sps:$4 sm:$0xff]  }
 0x3b9   :  { %12932 = vmatpush1.bf16.msra.mxu0 %v19943_v48  ;;  %12515 = vmatprep.subr.bf16.mxu1 %v19948_v49  ;;  %v20000_v48 = vld [vmem:[#allocation7 + $0x790] ss:$60 sps:$4 sm:$0xff]   ;;  %v20003_v49 = vld [vmem:[#allocation7 + $0x1ff8] ss:$60 sps:$4 sm:$0xff]  }
 0x3ba   :  { %12933 = vmatprep.subr.bf16.mxu0 %v19951_v52  ;;  %v20011_v52 = vld [vmem:[#allocation7 + $0x2074] ss:$60 sps:$4 sm:$0xff]  }
 0x3bc   :  { %12516 = vmatpush1.bf16.msra.mxu1 %v19946_v50  ;;  %v20008_v50 = vld [vmem:[#allocation7 + $0x80c] ss:$60 sps:$4 sm:$0xff]  }
 0x3bd   :  { %12934 = vmatpush1.bf16.msra.mxu0 %v19949_v53  ;;  %12517 = vmatprep.subr.bf16.mxu1 %v19954_v55  ;;  %v20006_v53 = vld [vmem:[#allocation7 + $0x808] ss:$60 sps:$4 sm:$0xff]   ;;  %v20009_v55 = vld [vmem:[#allocation7 + $0x2070] ss:$60 sps:$4 sm:$0xff]  }
 0x3be   :  { %12935 = vmatprep.subr.bf16.mxu0 %v19957_v56  ;;  %v20012_v56 = vld [vmem:[#allocation7 + $0x880] ss:$60 sps:$4 sm:$0xff]  }
 0x3c0   :  { %12518 = vmatpush1.bf16.msra.mxu1 %v19952_v57  ;;  %v20014_v57 = vld [vmem:[#allocation7 + $0x884] ss:$60 sps:$4 sm:$0xff]  }
 0x3c1   :  { %12936 = vmatpush1.bf16.msra.mxu0 %v19955_v58  ;;  %12519 = vmatprep.subr.bf16.mxu1 %v19960_v60  ;;  %v20017_v58 = vld [vmem:[#allocation7 + $0x20ec] ss:$60 sps:$4 sm:$0xff]  }
 0x3c2   :  { %12937 = vmatprep.subr.bf16.mxu0 %v19963_v5  ;;  %v20015_v60 = vld [vmem:[#allocation7 + $0x20e8] ss:$60 sps:$4 sm:$0xff]   ;;  %v20018_v5 = vld [vmem:[#allocation7 + $0x8f8] ss:$60 sps:$4 sm:$0xff]  }
 0x3c4   :  { %12520 = vmatpush1.bf16.msra.mxu1 %v19958_v25  ;;  %v20020_v25 = vld [vmem:[#allocation7 + $0x8fc] ss:$60 sps:$4 sm:$0xff]  }
 0x3c5   :  { %12938 = vmatpush1.bf16.msra.mxu0 %v19961_v6  ;;  %12521 = vmatprep.subr.bf16.mxu1 %v19966_v7  ;;  %v20023_v6 = vld [vmem:[#allocation7 + $0x2164] ss:$60 sps:$4 sm:$0xff]  }
 0x3c6   :  { %12939 = vmatprep.subr.bf16.mxu0 %v19969_v9  ;;  %v20021_v7 = vld [vmem:[#allocation7 + $0x2160] ss:$60 sps:$4 sm:$0xff]   ;;  %v20024_v9 = vld [vmem:[#allocation7 + $0x970] ss:$60 sps:$4 sm:$0xff]  }
 0x3c8   :  { %12522 = vmatpush1.bf16.msra.mxu1 %v19964_v8  ;;  %v20026_v8 = vld [vmem:[#allocation7 + $0x974] ss:$60 sps:$4 sm:$0xff]  }
 0x3c9   :  { %12940 = vmatpush1.bf16.msra.mxu0 %v19967_v10  ;;  %12523 = vmatprep.subr.bf16.mxu1 %v19972_v13  ;;  %v20029_v10 = vld [vmem:[#allocation7 + $0x21dc] ss:$60 sps:$4 sm:$0xff]  }
 0x3ca   :  { %12941 = vmatprep.subr.bf16.mxu0 %v19975_v18  ;;  %v20027_v13 = vld [vmem:[#allocation7 + $0x21d8] ss:$60 sps:$4 sm:$0xff]  }
 0x3cb   :  { %v20035_v18 = vld [vmem:[#allocation7 + $0x2254] ss:$60 sps:$4 sm:$0xff]  }
 0x3cc   :  { %12524 = vmatpush1.bf16.msra.mxu1 %v19970_v14  ;;  %v20032_v14 = vld [vmem:[#allocation7 + $0x9ec] ss:$60 sps:$4 sm:$0xff]  }
 0x3cd   :  { %12942 = vmatpush1.bf16.msra.mxu0 %v19973_v19  ;;  %12525 = vmatprep.subr.bf16.mxu1 %v19978_v23  ;;  %v20030_v19 = vld [vmem:[#allocation7 + $0x9e8] ss:$60 sps:$4 sm:$0xff]   ;;  %v20033_v23 = vld [vmem:[#allocation7 + $0x2250] ss:$60 sps:$4 sm:$0xff]  }
 0x3ce   :  { %12952 = vmatprep.subr.bf16.mxu0 %v19981_v51 }
 0x3d0   :  { %12944 = vmatmul.mubr.bf16.vlgmr.msra.gmra.mrb[20].mxu0 %v22400_v54  ;;  %12526 = vmatpush1.bf16.msra.mxu1 %v19976_v26  ;;  %v20038_v26 = vld [vmem:[#allocation7 + $0xa64] ss:$60 sps:$4 sm:$0xff]  }
 0x3d1   :  { %12953 = vmatpush1.bf16.msra.mxu0 %v19979_v29  ;;  %12984 = vmatprep.mubr.bf16.mxu0 %v22402_v59  ;;  %v20036_v29 = vld [vmem:[#allocation7 + $0xa60] ss:$60 sps:$4 sm:$0xff]  }
 0x3d2   :  { %12527 = vmatprep.subr.bf16.mxu1 %v19984_v30  ;;  %12954 = vmatprep.subr.bf16.mxu0 %v19987_v31  ;;  %v20041_v30 = vld [vmem:[#allocation7 + $0x22cc] ss:$60 sps:$4 sm:$0xff]  }
 0x3d4   :  { %12528 = vmatpush1.bf16.msra.mxu1 %v19982_v32  ;;  %v20039_v32 = vld [vmem:[#allocation7 + $0x22c8] ss:$60 sps:$4 sm:$0xff]  }
 0x3d5   :  { %12955 = vmatpush1.bf16.msra.mxu0 %v19985_v11  ;;  %12529 = vmatprep.subr.bf16.mxu1 %v19990_v33  ;;  %v20044_v11 = vld [vmem:[#allocation7 + $0xadc] ss:$60 sps:$4 sm:$0xff]  }
 0x3d6   :  { %12956 = vmatprep.subr.bf16.mxu0 %v19993_v37  ;;  %v20042_v37 = vld [vmem:[#allocation7 + $0xad8] ss:$60 sps:$4 sm:$0xff]  }
 0x3d8   :  { %12530 = vmatpush1.bf16.msra.mxu1 %v19988_v35 }
 0x3d9   :  { %12957 = vmatpush1.bf16.msra.mxu0 %v19991_v38  ;;  %12531 = vmatprep.subr.bf16.mxu1 %v19996_v40  ;;  %v20047_v38 = vld [vmem:[#allocation7 + $0x2344] ss:$60 sps:$4 sm:$0xff]  }
 0x3da   :  { %12958 = vmatprep.subr.bf16.mxu0 %v19999_v44  ;;  %v20045_v40 = vld [vmem:[#allocation7 + $0x2340] ss:$60 sps:$4 sm:$0xff]  }
 0x3db   :  { %v20053_v44 = vld [vmem:[#allocation7 + $0x23bc] ss:$60 sps:$4 sm:$0xff]  }
 0x3dc   :  { %12532 = vmatpush1.bf16.msra.mxu1 %v19994_v1  ;;  %v20050_v1 = vld [vmem:[#allocation7 + $0xb54] ss:$60 sps:$4 sm:$0xff]  }
 0x3dd   :  { %12959 = vmatpush1.bf16.msra.mxu0 %v19997_v45  ;;  %12542 = vmatprep.subr.bf16.mxu1 %v20002_v46  ;;  %v20048_v45 = vld [vmem:[#allocation7 + $0xb50] ss:$60 sps:$4 sm:$0xff]   ;;  %v20051_v46 = vld [vmem:[#allocation7 + $0x23b8] ss:$60 sps:$4 sm:$0xff]  }
 0x3de   :  { %12960 = vmatprep.subr.bf16.mxu0 %v20005_v47  ;;  %v20056_v47 = vld [vmem:[#allocation7 + $0xbcc] ss:$60 sps:$4 sm:$0xff]  }
 0x3df   :  { %12534 = vmatmul.mubr.bf16.vlgmr.msra.gmra.mrb[20].mxu1 %v22335_v16 }
 0x3e0   :  { %12543 = vmatpush1.bf16.msra.mxu1 %v20000_v48  ;;  %12574 = vmatprep.mubr.bf16.mxu1 %v22346_v34  ;;  %v20054_v48 = vld [vmem:[#allocation7 + $0xbc8] ss:$60 sps:$4 sm:$0xff]  }
 0x3e1   :  { %12961 = vmatpush1.bf16.msra.mxu0 %v20003_v49  ;;  %12544 = vmatprep.subr.bf16.mxu1 %v20008_v50  ;;  %v20059_v49 = vld [vmem:[#allocation7 + $0x2434] ss:$60 sps:$4 sm:$0xff]  }
 0x3e2   :  { %12962 = vmatprep.subr.bf16.mxu0 %v20011_v52  ;;  %v20057_v50 = vld [vmem:[#allocation7 + $0x2430] ss:$60 sps:$4 sm:$0xff]   ;;  %v20062_v52 = vld [vmem:[#allocation7 + $0xc44] ss:$60 sps:$4 sm:$0xff]  }
 0x3e4   :  { %12545 = vmatpush1.bf16.msra.mxu1 %v20006_v53  ;;  %v20060_v53 = vld [vmem:[#allocation7 + $0xc40] ss:$60 sps:$4 sm:$0xff]  }
 0x3e5   :  { %12963 = vmatpush1.bf16.msra.mxu0 %v20009_v55  ;;  %12546 = vmatprep.subr.bf16.mxu1 %v20014_v57  ;;  %v20065_v55 = vld [vmem:[#allocation7 + $0x24ac] ss:$60 sps:$4 sm:$0xff]  }
 0x3e6   :  { %12964 = vmatprep.subr.bf16.mxu0 %v20017_v58  ;;  %v20063_v57 = vld [vmem:[#allocation7 + $0x24a8] ss:$60 sps:$4 sm:$0xff]   ;;  %v20066_v58 = vld [vmem:[#allocation7 + $0xcb8] ss:$60 sps:$4 sm:$0xff]  }
 0x3e8   :  { %12547 = vmatpush1.bf16.msra.mxu1 %v20012_v56  ;;  %v20068_v56 = vld [vmem:[#allocation7 + $0xcbc] ss:$60 sps:$4 sm:$0xff]  }
 0x3e9   :  { %12965 = vmatpush1.bf16.msra.mxu0 %v20015_v60  ;;  %12548 = vmatprep.subr.bf16.mxu1 %v20020_v25  ;;  %v20071_v60 = vld [vmem:[#allocation7 + $0x2524] ss:$60 sps:$4 sm:$0xff]  }
 0x3ea   :  { %12966 = vmatprep.subr.bf16.mxu0 %v20023_v6  ;;  %v20069_v25 = vld [vmem:[#allocation7 + $0x2520] ss:$60 sps:$4 sm:$0xff]   ;;  %v20072_v6 = vld [vmem:[#allocation7 + $0xd30] ss:$60 sps:$4 sm:$0xff]  }
 0x3ec   :  { %12549 = vmatpush1.bf16.msra.mxu1 %v20018_v5  ;;  %v20074_v5 = vld [vmem:[#allocation7 + $0xd34] ss:$60 sps:$4 sm:$0xff]  }
 0x3ed   :  { %12967 = vmatpush1.bf16.msra.mxu0 %v20021_v7  ;;  %12550 = vmatprep.subr.bf16.mxu1 %v20026_v8  ;;  %v20077_v7 = vld [vmem:[#allocation7 + $0x259c] ss:$60 sps:$4 sm:$0xff]  }
 0x3ee   :  { %12968 = vmatprep.subr.bf16.mxu0 %v20029_v10  ;;  %v20075_v8 = vld [vmem:[#allocation7 + $0x2598] ss:$60 sps:$4 sm:$0xff]  }
 0x3ef   :  { %v20083_v10 = vld [vmem:[#allocation7 + $0x2614] ss:$60 sps:$4 sm:$0xff]  }
 0x3f0   :  { %12551 = vmatpush1.bf16.msra.mxu1 %v20024_v9  ;;  %v20080_v9 = vld [vmem:[#allocation7 + $0xdac] ss:$60 sps:$4 sm:$0xff]  }
 0x3f1   :  { %12969 = vmatpush1.bf16.msra.mxu0 %v20027_v13  ;;  %12552 = vmatprep.subr.bf16.mxu1 %v20032_v14  ;;  %v20078_v13 = vld [vmem:[#allocation7 + $0xda8] ss:$60 sps:$4 sm:$0xff]   ;;  %v20081_v14 = vld [vmem:[#allocation7 + $0x2610] ss:$60 sps:$4 sm:$0xff]  }
 0x3f2   :  { %v22471_v51 = vpop.f32.mrb[12].mxu1  ;;  %12970 = vmatprep.subr.bf16.mxu0 %v20035_v18  ;;  %v20086_v18 = vld [vmem:[#allocation7 + $0xe24] ss:$60 sps:$4 sm:$0xff]  }
 0x3f3   :  { %v22473_v31 = vpop.f32.mrb[13].mxu1 }
 0x3f4   :  { %v12211_v33 = vpop.f32.mrb[14].mxu1  ;;  %12553 = vmatpush1.bf16.msra.mxu1 %v20030_v19  ;;  %v20084_v19 = vld [vmem:[#allocation7 + $0xe20] ss:$60 sps:$4 sm:$0xff]  }
 0x3f5   :  { %12971 = vmatpush1.bf16.msra.mxu0 %v20033_v23  ;;  %v12212_v35 = vpop.f32.mrb[15].mxu1  ;;  %12554 = vmatprep.subr.bf16.mxu1 %v20038_v26  ;;  %v20089_v23 = vld [vmem:[#allocation7 + $0x268c] ss:$60 sps:$4 sm:$0xff]   ;;  %v20098_v33 = vld [vmem:[#allocation7 + $0xf14] ss:$60 sps:$4 sm:$0xff]  }
 0x3f6   :  { %12972 = vmatprep.subr.bf16.mxu0 %v20041_v30  ;;  %v20087_v26 = vld [vmem:[#allocation7 + $0x2688] ss:$60 sps:$4 sm:$0xff]   ;;  %v20090_v30 = vld [vmem:[#allocation7 + $0xe98] ss:$60 sps:$4 sm:$0xff]  }
 0x3f7   :  { %v20101_v35 = vld [vmem:[#allocation7 + $0x277c] ss:$60 sps:$4 sm:$0xff]  }
 0x3f8   :  { %12555 = vmatpush1.bf16.msra.mxu1 %v20036_v29  ;;  %v20092_v29 = vld [vmem:[#allocation7 + $0xe9c] ss:$60 sps:$4 sm:$0xff]  }
 0x3f9   :  { %12973 = vmatpush1.bf16.msra.mxu0 %v20039_v32  ;;  %12556 = vmatprep.subr.bf16.mxu1 %v20044_v11  ;;  %v20095_v32 = vld [vmem:[#allocation7 + $0x2704] ss:$60 sps:$4 sm:$0xff]  }
 0x3fa   :  { %12974 = vmatprep.subr.bf16.mxu0 %v20047_v38  ;;  %v20093_v11 = vld [vmem:[#allocation7 + $0x2700] ss:$60 sps:$4 sm:$0xff]   ;;  %v20099_v38 = vld [vmem:[#allocation7 + $0x2778] ss:$60 sps:$4 sm:$0xff]  }
 0x3fc   :  { %12557 = vmatpush1.bf16.msra.mxu1 %v20042_v37  ;;  %v20096_v37 = vld [vmem:[#allocation7 + $0xf10] ss:$60 sps:$4 sm:$0xff]  }
 0x3fd   :  { %12975 = vmatpush1.bf16.msra.mxu0 %v20045_v40  ;;  %12558 = vmatprep.subr.bf16.mxu1 %v20050_v1  ;;  %v20104_v40 = vld [vmem:[#allocation7 + $0xf8c] ss:$60 sps:$4 sm:$0xff]   ;;  %v20107_v1 = vld [vmem:[#allocation7 + $0x27f4] ss:$60 sps:$4 sm:$0xff]  }
 0x3fe   :  { %12976 = vmatprep.subr.bf16.mxu0 %v20053_v44  ;;  %v20102_v44 = vld [vmem:[#allocation7 + $0xf88] ss:$60 sps:$4 sm:$0xff]  }
 0x400   :  { %12559 = vmatpush1.bf16.msra.mxu1 %v20048_v45  ;;  %v20105_v45 = vld [vmem:[#allocation7 + $0x27f0] ss:$60 sps:$4 sm:$0xff]  }
 0x401   :  { %12977 = vmatpush1.bf16.msra.mxu0 %v20051_v46  ;;  %12560 = vmatprep.subr.bf16.mxu1 %v20056_v47  ;;  %v20110_v46 = vld [vmem:[#allocation7 + $0x1004] ss:$60 sps:$4 sm:$0xff]  }
 0x402   :  { %12978 = vmatprep.subr.bf16.mxu0 %v20059_v49  ;;  %v20108_v47 = vld [vmem:[#allocation7 + $0x1000] ss:$60 sps:$4 sm:$0xff]   ;;  %v20111_v49 = vld [vmem:[#allocation7 + $0x2868] ss:$60 sps:$4 sm:$0xff]  }
 0x404   :  { %12561 = vmatpush1.bf16.msra.mxu1 %v20054_v48  ;;  %v20113_v48 = vld [vmem:[#allocation7 + $0x286c] ss:$60 sps:$4 sm:$0xff]  }
 0x405   :  { %12979 = vmatpush1.bf16.msra.mxu0 %v20057_v50  ;;  %12562 = vmatprep.subr.bf16.mxu1 %v20062_v52  ;;  %v20116_v50 = vld [vmem:[#allocation7 + $0x107c] ss:$60 sps:$4 sm:$0xff]  }
 0x406   :  { %12980 = vmatprep.subr.bf16.mxu0 %v20065_v55  ;;  %v20114_v52 = vld [vmem:[#allocation7 + $0x1078] ss:$60 sps:$4 sm:$0xff]   ;;  %v20117_v55 = vld [vmem:[#allocation7 + $0x28e0] ss:$60 sps:$4 sm:$0xff]  }
 0x408   :  { %12563 = vmatpush1.bf16.msra.mxu1 %v20060_v53  ;;  %v20119_v53 = vld [vmem:[#allocation7 + $0x28e4] ss:$60 sps:$4 sm:$0xff]  }
 0x409   :  { %12981 = vmatpush1.bf16.msra.mxu0 %v20063_v57  ;;  %12564 = vmatprep.subr.bf16.mxu1 %v20068_v56  ;;  %v20122_v57 = vld [vmem:[#allocation7 + $0x10f4] ss:$60 sps:$4 sm:$0xff]  }
 0x40a   :  { %12982 = vmatprep.subr.bf16.mxu0 %v20071_v60  ;;  %v20120_v56 = vld [vmem:[#allocation7 + $0x10f0] ss:$60 sps:$4 sm:$0xff]   ;;  %v20123_v60 = vld [vmem:[#allocation7 + $0x2958] ss:$60 sps:$4 sm:$0xff]  }
 0x40c   :  { %12565 = vmatpush1.bf16.msra.mxu1 %v20066_v58  ;;  %v20125_v58 = vld [vmem:[#allocation7 + $0x295c] ss:$60 sps:$4 sm:$0xff]  }
 0x40d   :  { %12983 = vmatpush1.bf16.msra.mxu0 %v20069_v25  ;;  %12566 = vmatprep.subr.bf16.mxu1 %v20074_v5  ;;  %v20128_v25 = vld [vmem:[#allocation7 + $0x116c] ss:$60 sps:$4 sm:$0xff]  }
 0x40e   :  { %12993 = vmatprep.subr.bf16.mxu0 %v20077_v7  ;;  %v20126_v5 = vld [vmem:[#allocation7 + $0x1168] ss:$60 sps:$4 sm:$0xff]   ;;  %v20129_v7 = vld [vmem:[#allocation7 + $0x29d0] ss:$60 sps:$4 sm:$0xff]  }
 0x410   :  { %12985 = vmatmul.mubr.bf16.vlgmr.msra.gmra.mrb[20].mxu0 %v22418_v39  ;;  %12567 = vmatpush1.bf16.msra.mxu1 %v20072_v6  ;;  %v20131_v6 = vld [vmem:[#allocation7 + $0x29d4] ss:$60 sps:$4 sm:$0xff]  }
 0x411   :  { %12994 = vmatpush1.bf16.msra.mxu0 %v20075_v8  ;;  %13025 = vmatprep.mubr.bf16.mxu0 %v22420_v12  ;;  %v20134_v8 = vld [vmem:[#allocation7 + $0x11e4] ss:$60 sps:$4 sm:$0xff]  }
 0x412   :  { %12568 = vmatprep.subr.bf16.mxu1 %v20080_v9  ;;  %12995 = vmatprep.subr.bf16.mxu0 %v20083_v10  ;;  %v20132_v9 = vld [vmem:[#allocation7 + $0x11e0] ss:$60 sps:$4 sm:$0xff]   ;;  %v20137_v10 = vld [vmem:[#allocation7 + $0x2a4c] ss:$60 sps:$4 sm:$0xff]  }
 0x414   :  { %12569 = vmatpush1.bf16.msra.mxu1 %v20078_v13  ;;  %v20135_v13 = vld [vmem:[#allocation7 + $0x2a48] ss:$60 sps:$4 sm:$0xff]  }
 0x415   :  { %12996 = vmatpush1.bf16.msra.mxu0 %v20081_v14  ;;  %12570 = vmatprep.subr.bf16.mxu1 %v20086_v18  ;;  %v20140_v14 = vld [vmem:[#allocation7 + $0x125c] ss:$60 sps:$4 sm:$0xff]  }
 0x416   :  { %12997 = vmatprep.subr.bf16.mxu0 %v20089_v23  ;;  %v20138_v18 = vld [vmem:[#allocation7 + $0x1258] ss:$60 sps:$4 sm:$0xff]   ;;  %v20141_v23 = vld [vmem:[#allocation7 + $0x2ac0] ss:$60 sps:$4 sm:$0xff]  }
 0x418   :  { %12571 = vmatpush1.bf16.msra.mxu1 %v20084_v19  ;;  %v20143_v19 = vld [vmem:[#allocation7 + $0x2ac4] ss:$60 sps:$4 sm:$0xff]  }
 0x419   :  { %12998 = vmatpush1.bf16.msra.mxu0 %v20087_v26  ;;  %12572 = vmatprep.subr.bf16.mxu1 %v20092_v29  ;;  %v20146_v26 = vld [vmem:[#allocation7 + $0x12d4] ss:$60 sps:$4 sm:$0xff]  }
 0x41a   :  { %12999 = vmatprep.subr.bf16.mxu0 %v20095_v32  ;;  %v20144_v29 = vld [vmem:[#allocation7 + $0x12d0] ss:$60 sps:$4 sm:$0xff]   ;;  %v20147_v32 = vld [vmem:[#allocation7 + $0x2b38] ss:$60 sps:$4 sm:$0xff]  }
 0x41c   :  { %12573 = vmatpush1.bf16.msra.mxu1 %v20090_v30  ;;  %v20149_v30 = vld [vmem:[#allocation7 + $0x2b3c] ss:$60 sps:$4 sm:$0xff]  }
 0x41d   :  { %13000 = vmatpush1.bf16.msra.mxu0 %v20093_v11  ;;  %12583 = vmatprep.subr.bf16.mxu1 %v20098_v33  ;;  %v20152_v11 = vld [vmem:[#allocation7 + $0x134c] ss:$60 sps:$4 sm:$0xff]  }
 0x41e   :  { %13001 = vmatprep.subr.bf16.mxu0 %v20101_v35  ;;  %v20150_v33 = vld [vmem:[#allocation7 + $0x1348] ss:$60 sps:$4 sm:$0xff]   ;;  %v20155_v35 = vld [vmem:[#allocation7 + $0x2bb4] ss:$60 sps:$4 sm:$0xff]  }
 0x41f   :  { %12575 = vmatmul.mubr.bf16.vlgmr.msra.gmra.mrb[20].mxu1 %v22377_v36 }
 0x420   :  { %12584 = vmatpush1.bf16.msra.mxu1 %v20096_v37  ;;  %12615 = vmatprep.mubr.bf16.mxu1 %v22361_v3  ;;  %v20153_v37 = vld [vmem:[#allocation7 + $0x2bb0] ss:$60 sps:$4 sm:$0xff]  }
 0x421   :  { %13002 = vmatpush1.bf16.msra.mxu0 %v20099_v38  ;;  %12585 = vmatprep.subr.bf16.mxu1 %v20104_v40  ;;  %v20158_v38 = vld [vmem:[#allocation7 + $0x13c4] ss:$60 sps:$4 sm:$0xff]  }
 0x422   :  { %13003 = vmatprep.subr.bf16.mxu0 %v20107_v1  ;;  %v20156_v40 = vld [vmem:[#allocation7 + $0x13c0] ss:$60 sps:$4 sm:$0xff]   ;;  %v20161_v1 = vld [vmem:[#allocation7 + $0x2c2c] ss:$60 sps:$4 sm:$0xff]  }
 0x424   :  { %12586 = vmatpush1.bf16.msra.mxu1 %v20102_v44  ;;  %v20159_v44 = vld [vmem:[#allocation7 + $0x2c28] ss:$60 sps:$4 sm:$0xff]  }
 0x425   :  { %13004 = vmatpush1.bf16.msra.mxu0 %v20105_v45  ;;  %12587 = vmatprep.subr.bf16.mxu1 %v20110_v46  ;;  %v20164_v45 = vld [vmem:[#allocation7 + $0x143c] ss:$60 sps:$4 sm:$0xff]  }
 0x426   :  { %13005 = vmatprep.subr.bf16.mxu0 %v20113_v48  ;;  %v20162_v46 = vld [vmem:[#allocation7 + $0x1438] ss:$60 sps:$4 sm:$0xff]   ;;  %v20165_v48 = vld [vmem:[#allocation7 + $0x2ca0] ss:$60 sps:$4 sm:$0xff]  }
 0x428   :  { %12588 = vmatpush1.bf16.msra.mxu1 %v20108_v47  ;;  %v20167_v47 = vld [vmem:[#allocation7 + $0x2ca4] ss:$60 sps:$4 sm:$0xff]  }
 0x429   :  { %13006 = vmatpush1.bf16.msra.mxu0 %v20111_v49  ;;  %12589 = vmatprep.subr.bf16.mxu1 %v20116_v50  ;;  %v20170_v49 = vld [vmem:[#allocation7 + $0x14b4] ss:$60 sps:$4 sm:$0xff]  }
 0x42a   :  { %13007 = vmatprep.subr.bf16.mxu0 %v20119_v53  ;;  %v20168_v50 = vld [vmem:[#allocation7 + $0x14b0] ss:$60 sps:$4 sm:$0xff]   ;;  %v20171_v53 = vld [vmem:[#allocation7 + $0x2d18] ss:$60 sps:$4 sm:$0xff]  }
 0x42c   :  { %12590 = vmatpush1.bf16.msra.mxu1 %v20114_v52  ;;  %v20173_v52 = vld [vmem:[#allocation7 + $0x2d1c] ss:$60 sps:$4 sm:$0xff]  }
 0x42d   :  { %13008 = vmatpush1.bf16.msra.mxu0 %v20117_v55  ;;  %12591 = vmatprep.subr.bf16.mxu1 %v20122_v57  ;;  %v20176_v55 = vld [vmem:[#allocation7 + $0x152c] ss:$60 sps:$4 sm:$0xff]   ;;  %v20179_v57 = vld [vmem:[#allocation7 + $0x2d94] ss:$60 sps:$4 sm:$0xff]  }
 0x42e   :  { %13009 = vmatprep.subr.bf16.mxu0 %v20125_v58  ;;  %v20177_v58 = vld [vmem:[#allocation7 + $0x2d90] ss:$60 sps:$4 sm:$0xff]  }
 0x430   :  { %12592 = vmatpush1.bf16.msra.mxu1 %v20120_v56  ;;  %v20174_v56 = vld [vmem:[#allocation7 + $0x1528] ss:$60 sps:$4 sm:$0xff]  }
 0x431   :  { %13010 = vmatpush1.bf16.msra.mxu0 %v20123_v60  ;;  %12593 = vmatprep.subr.bf16.mxu1 %v20128_v25  ;;  %v20182_v60 = vld [vmem:[#allocation7 + $0x15a4] ss:$60 sps:$4 sm:$0xff]  }
 0x432   :  { %13011 = vmatprep.subr.bf16.mxu0 %v20131_v6  ;;  %v20180_v25 = vld [vmem:[#allocation7 + $0x15a0] ss:$60 sps:$4 sm:$0xff]   ;;  %v20183_v6 = vld [vmem:[#allocation7 + $0x2e08] ss:$60 sps:$4 sm:$0xff]  }
 0x434   :  { %12594 = vmatpush1.bf16.msra.mxu1 %v20126_v5  ;;  %v20185_v5 = vld [vmem:[#allocation7 + $0x2e0c] ss:$60 sps:$4 sm:$0xff]  }
 0x435   :  { %13012 = vmatpush1.bf16.msra.mxu0 %v20129_v7  ;;  %12595 = vmatprep.subr.bf16.mxu1 %v20134_v8  ;;  %v20188_v7 = vld [vmem:[#allocation7 + $0x161c] ss:$60 sps:$4 sm:$0xff]  }
 0x436   :  { %13013 = vmatprep.subr.bf16.mxu0 %v20137_v10  ;;  %v20186_v8 = vld [vmem:[#allocation7 + $0x1618] ss:$60 sps:$4 sm:$0xff]   ;;  %v20189_v10 = vld [vmem:[#allocation7 + $0x2e80] ss:$60 sps:$4 sm:$0xff]  }
 0x438   :  { %12596 = vmatpush1.bf16.msra.mxu1 %v20132_v9  ;;  %v20191_v9 = vld [vmem:[#allocation7 + $0x2e84] ss:$60 sps:$4 sm:$0xff]  }
 0x439   :  { %13014 = vmatpush1.bf16.msra.mxu0 %v20135_v13  ;;  %12597 = vmatprep.subr.bf16.mxu1 %v20140_v14  ;;  %v20194_v13 = vld [vmem:[#allocation7 + $0x1694] ss:$60 sps:$4 sm:$0xff]   ;;  %v20197_v14 = vld [vmem:[#allocation7 + $0x2efc] ss:$60 sps:$4 sm:$0xff]  }
 0x43a   :  { %13015 = vmatprep.subr.bf16.mxu0 %v20143_v19  ;;  %v20195_v19 = vld [vmem:[#allocation7 + $0x2ef8] ss:$60 sps:$4 sm:$0xff]  }
 0x43c   :  { %12598 = vmatpush1.bf16.msra.mxu1 %v20138_v18  ;;  %v20192_v18 = vld [vmem:[#allocation7 + $0x1690] ss:$60 sps:$4 sm:$0xff]  }
 0x43d   :  { %13016 = vmatpush1.bf16.msra.mxu0 %v20141_v23  ;;  %12599 = vmatprep.subr.bf16.mxu1 %v20146_v26  ;;  %v20200_v23 = vld [vmem:[#allocation7 + $0x170c] ss:$60 sps:$4 sm:$0xff]   ;;  %v20203_v26 = vld [vmem:[#allocation7 + $0x2f74] ss:$60 sps:$4 sm:$0xff]  }
 0x43e   :  { %13017 = vmatprep.subr.bf16.mxu0 %v20149_v30  ;;  %v20201_v30 = vld [vmem:[#allocation7 + $0x2f70] ss:$60 sps:$4 sm:$0xff]  }
 0x440   :  { %12600 = vmatpush1.bf16.msra.mxu1 %v20144_v29  ;;  %v20198_v29 = vld [vmem:[#allocation7 + $0x1708] ss:$60 sps:$4 sm:$0xff]  }
 0x441   :  { %13018 = vmatpush1.bf16.msra.mxu0 %v20147_v32  ;;  %12601 = vmatprep.subr.bf16.mxu1 %v20152_v11  ;;  %v20206_v32 = vld [vmem:[#allocation7 + $0x1784] ss:$60 sps:$4 sm:$0xff]  }
 0x442   :  { %13019 = vmatprep.subr.bf16.mxu0 %v20155_v35  ;;  %v20204_v11 = vld [vmem:[#allocation7 + $0x1780] ss:$60 sps:$4 sm:$0xff]   ;;  %v20207_v35 = vld [vmem:[#allocation7 + $0x2fe8] ss:$60 sps:$4 sm:$0xff]  }
 0x444   :  { %12602 = vmatpush1.bf16.msra.mxu1 %v20150_v33  ;;  %v20209_v33 = vld [vmem:[#allocation7 + $0x2fec] ss:$60 sps:$4 sm:$0xff]  }
 0x445   :  { %13020 = vmatpush1.bf16.msra.mxu0 %v20153_v37  ;;  %12603 = vmatprep.subr.bf16.mxu1 %v20158_v38  ;;  %v20212_v37 = vld [vmem:[#allocation7 + $0x17fc] ss:$60 sps:$4 sm:$0xff]  }
 0x446   :  { %13021 = vmatprep.subr.bf16.mxu0 %v20161_v1  ;;  %v20210_v38 = vld [vmem:[#allocation7 + $0x17f8] ss:$60 sps:$4 sm:$0xff]   ;;  %v20213_v1 = vld [vmem:[#allocation7 + $0x3060] ss:$60 sps:$4 sm:$0xff]  }
 0x448   :  { %12604 = vmatpush1.bf16.msra.mxu1 %v20156_v40  ;;  %v20215_v40 = vld [vmem:[#allocation7 + $0x3064] ss:$60 sps:$4 sm:$0xff]  }
 0x449   :  { %13022 = vmatpush1.bf16.msra.mxu0 %v20159_v44  ;;  %12605 = vmatprep.subr.bf16.mxu1 %v20164_v45  ;;  %v20218_v44 = vld [vmem:[#allocation7 + $0x1874] ss:$60 sps:$4 sm:$0xff]  }
 0x44a   :  { %13023 = vmatprep.subr.bf16.mxu0 %v20167_v47  ;;  %v20216_v45 = vld [vmem:[#allocation7 + $0x1870] ss:$60 sps:$4 sm:$0xff]   ;;  %v3336_v47 = vld [vmem:[#allocation9] sm:$0xff] }
 0x44c   :  { %12606 = vmatpush1.bf16.msra.mxu1 %v20162_v46  ;;  %v20221_v46 = vld [vmem:[#allocation7 + $0x30dc] ss:$60 sps:$4 sm:$0xff]  }
 0x44d   :  { %13024 = vmatpush1.bf16.msra.mxu0 %v20165_v48  ;;  %12607 = vmatprep.subr.bf16.mxu1 %v20170_v49  ;;  %v20219_v48 = vld [vmem:[#allocation7 + $0x30d8] ss:$60 sps:$4 sm:$0xff]   ;;  %v20224_v49 = vld [vmem:[#allocation7 + $0x18ec] ss:$60 sps:$4 sm:$0xff]  }
 0x44e   :  { %13034 = vmatprep.subr.bf16.mxu0 %v20173_v52  ;;  %v20222_v52 = vld [vmem:[#allocation7 + $0x18e8] ss:$60 sps:$4 sm:$0xff]  }
 0x450   :  { %13026 = vmatmul.mubr.bf16.vlgmr.msra.gmra.mrb[20].mxu0 %v22434_v27  ;;  %12608 = vmatpush1.bf16.msra.mxu1 %v20168_v50  ;;  %v20227_v50 = vld [vmem:[#allocation7 + $0x3154] ss:$60 sps:$4 sm:$0xff]  }
 0x451   :  { %13035 = vmatpush1.bf16.msra.mxu0 %v20171_v53  ;;  %13066 = vmatprep.mubr.bf16.mxu0 %v22436_v28  ;;  %v3351_v53 = vrot.slane %v3336_v47, %v22364_v4 }
 0x452   :  { %12609 = vmatprep.subr.bf16.mxu1 %v20176_v55  ;;  %13036 = vmatprep.subr.bf16.mxu0 %v20179_v57  ;;  %v3355_v55 = vrot.slane %v3336_v47, %v22340_v21  ;;  %v20225_v57 = vld [vmem:[#allocation7 + $0x3150] ss:$60 sps:$4 sm:$0xff]   ;;  %v20261_v47 = vld [vmem:[#allocation7 + $0x3420] ss:$60 sps:$4 sm:$0xff]  }
 0x454   :  { %12610 = vmatpush1.bf16.msra.mxu1 %v20174_v56  ;;  %v20230_v56 = vld [vmem:[#allocation7 + $0x1964] ss:$60 sps:$4 sm:$0xff]  }
 0x455   :  { %13037 = vmatpush1.bf16.msra.mxu0 %v20177_v58  ;;  %12611 = vmatprep.subr.bf16.mxu1 %v20182_v60  ;;  %v20233_v58 = vld [vmem:[#allocation7 + $0x31cc] ss:$60 sps:$4 sm:$0xff]  }
 0x456   :  { %13038 = vmatprep.subr.bf16.mxu0 %v20185_v5 }
 0x458   :  { %12612 = vmatpush1.bf16.msra.mxu1 %v20180_v25  ;;  %v20228_v25 = vld [vmem:[#allocation7 + $0x1960] ss:$60 sps:$4 sm:$0xff]  }
 0x459   :  { %13039 = vmatpush1.bf16.msra.mxu0 %v20183_v6  ;;  %12613 = vmatprep.subr.bf16.mxu1 %v20188_v7 }
 0x45a   :  { %13040 = vmatprep.subr.bf16.mxu0 %v20191_v9 }
 0x45c   :  { %12614 = vmatpush1.bf16.msra.mxu1 %v20186_v8 }
 0x45d   :  { %13041 = vmatpush1.bf16.msra.mxu0 %v20189_v10  ;;  %12624 = vmatprep.subr.bf16.mxu1 %v20194_v13  ;;  %v20231_v13 = vld [vmem:[#allocation7 + $0x31c8] ss:$60 sps:$4 sm:$0xff]  }
 0x45e   :  { %13042 = vmatprep.subr.bf16.mxu0 %v20197_v14  ;;  %v20236_v14 = vld [vmem:[#allocation7 + $0x19dc] ss:$60 sps:$4 sm:$0xff]  }
 0x45f   :  { %12616 = vmatmul.mubr.bf16.vlgmr.msra.gmra.mrb[20].mxu1 %v22359_v63 }
 0x460   :  { %12625 = vmatpush1.bf16.msra.mxu1 %v20192_v18  ;;  %12656 = vmatprep.mubr.bf16.mxu1 %v22380_v41 }
 0x461   :  { %13043 = vmatpush1.bf16.msra.mxu0 %v20195_v19  ;;  %12626 = vmatprep.subr.bf16.mxu1 %v20200_v23  ;;  %v20234_v19 = vld [vmem:[#allocation7 + $0x19d8] ss:$60 sps:$4 sm:$0xff]   ;;  %v20239_v23 = vld [vmem:[#allocation7 + $0x3244] ss:$60 sps:$4 sm:$0xff]  }
 0x462   :  { %13044 = vmatprep.subr.bf16.mxu0 %v20203_v26  ;;  %v20237_v26 = vld [vmem:[#allocation7 + $0x3240] ss:$60 sps:$4 sm:$0xff]  }
 0x464   :  { %12627 = vmatpush1.bf16.msra.mxu1 %v20198_v29  ;;  %v20242_v29 = vld [vmem:[#allocation7 + $0x1a54] ss:$60 sps:$4 sm:$0xff]  }
 0x465   :  { %13045 = vmatpush1.bf16.msra.mxu0 %v20201_v30  ;;  %12628 = vmatprep.subr.bf16.mxu1 %v20206_v32  ;;  %v20240_v30 = vld [vmem:[#allocation7 + $0x1a50] ss:$60 sps:$4 sm:$0xff]   ;;  %v20243_v32 = vld [vmem:[#allocation7 + $0x32b8] ss:$60 sps:$4 sm:$0xff]  }
 0x466   :  { %13046 = vmatprep.subr.bf16.mxu0 %v20209_v33  ;;  %v20246_v33 = vld [vmem:[#allocation7 + $0x1ac8] ss:$60 sps:$4 sm:$0xff]  }
 0x468   :  { %12629 = vmatpush1.bf16.msra.mxu1 %v20204_v11  ;;  %v20248_v11 = vld [vmem:[#allocation7 + $0x1acc] ss:$60 sps:$4 sm:$0xff]  }
 0x469   :  { %13047 = vmatpush1.bf16.msra.mxu0 %v20207_v35  ;;  %12630 = vmatprep.subr.bf16.mxu1 %v20212_v37  ;;  %v20249_v35 = vld [vmem:[#allocation7 + $0x3330] ss:$60 sps:$4 sm:$0xff]   ;;  %v20254_v37 = vld [vmem:[#allocation7 + $0x1b44] ss:$60 sps:$4 sm:$0xff]  }
 0x46a   :  { %13048 = vmatprep.subr.bf16.mxu0 %v20215_v40  ;;  %v20257_v40 = vld [vmem:[#allocation7 + $0x33ac] ss:$60 sps:$4 sm:$0xff]  }
 0x46c   :  { %12631 = vmatpush1.bf16.msra.mxu1 %v20210_v38  ;;  %v20252_v38 = vld [vmem:[#allocation7 + $0x1b40] ss:$60 sps:$4 sm:$0xff]  }
 0x46d   :  { %13049 = vmatpush1.bf16.msra.mxu0 %v20213_v1  ;;  %12632 = vmatprep.subr.bf16.mxu1 %v20218_v44  ;;  %v20255_v1 = vld [vmem:[#allocation7 + $0x33a8] ss:$60 sps:$4 sm:$0xff]   ;;  %v20260_v44 = vld [vmem:[#allocation7 + $0x1bbc] ss:$60 sps:$4 sm:$0xff]  }
 0x46e   :  { %13050 = vmatprep.subr.bf16.mxu0 %v20221_v46  ;;  %v20263_v46 = vld [vmem:[#allocation7 + $0x3424] ss:$60 sps:$4 sm:$0xff]  }
 0x470   :  { %12633 = vmatpush1.bf16.msra.mxu1 %v20216_v45  ;;  %v20258_v45 = vld [vmem:[#allocation7 + $0x1bb8] ss:$60 sps:$4 sm:$0xff]  }
 0x471   :  { %13051 = vmatpush1.bf16.msra.mxu0 %v20219_v48  ;;  %12634 = vmatprep.subr.bf16.mxu1 %v20224_v49  ;;  %v20266_v48 = vld [vmem:[#allocation7 + $0x1c34] ss:$60 sps:$4 sm:$0xff]  }
 0x472   :  { %v12289_v60 = vpop.f32.mrb[16].mxu1  ;;  %13052 = vmatprep.subr.bf16.mxu0 %v20227_v50  ;;  %v20264_v49 = vld [vmem:[#allocation7 + $0x1c30] ss:$60 sps:$4 sm:$0xff]  }
 0x473   :  { %v18604_v5 = vadd.f32 %v12289_v60, %v3351_v53  ;;  %v12291_v6 = vpop.f32.mrb[17].mxu1  ;;  %v20269_v50 = vld [vmem:[#allocation7 + $0x2c] ss:$60 sps:$4 sm:$0xff]   ;;  %v20276_v60 = vld [vmem:[#allocation7 + $0x1d20] ss:$60 sps:$4 sm:$0xff]  }
 0x474   :  { %v18606_v7 = vadd.f32 %v12291_v6, %v3355_v55  ;;  %v12293_v8 = vpop.f32.mrb[18].mxu1  ;;  %12635 = vmatpush1.bf16.msra.mxu1 %v20222_v52  ;;  %v20267_v52 = vld [vmem:[#allocation7 + $0x28] ss:$60 sps:$4 sm:$0xff]   ;;  %v20284_v6 = vld [vmem:[#allocation7 + $0x1d9c] ss:$60 sps:$4 sm:$0xff]  }
 0x475   :  { %v22486_v9 = vadd.f32 %v18604_v5, %v22463_v20  ;;  %13053 = vmatpush1.bf16.msra.mxu0 %v20225_v57  ;;  %v12294_v10 = vpop.f32.mrb[19].mxu1  ;;  %12636 = vmatprep.subr.bf16.mxu1 %v20230_v56  ;;  %v20245_v20 = vld [vmem:[#allocation7 + $0x32bc] ss:$60 sps:$4 sm:$0xff]   ;;  %v20272_v53 = vld [vmem:[#allocation7 + $0x1cac] ss:$60 sps:$4 sm:$0xff]  }
 0x476   :  { %v22489_v18 = vadd.f32 %v18606_v7, %v22465_v22  ;;  %13054 = vmatprep.subr.bf16.mxu0 %v20233_v58  ;;  %v20251_v22 = vld [vmem:[#allocation7 + $0x3334] ss:$60 sps:$4 sm:$0xff]   ;;  %v20275_v55 = vld [vmem:[#allocation7 + $0xa4] ss:$60 sps:$4 sm:$0xff]  }
 0x477   :  { %v20270_v57 = vld [vmem:[#allocation7 + $0x1ca8] ss:$60 sps:$4 sm:$0xff]   ;;  %v20273_v56 = vld [vmem:[#allocation7 + $0xa0] ss:$60 sps:$4 sm:$0xff]   ;;  %v20279_v5 = vld [vmem:[#allocation7 + $0x118] ss:$60 sps:$4 sm:$0xff]  }
 0x478   :  { %12637 = vmatpush1.bf16.msra.mxu1 %v20228_v25  ;;  %v20278_v58 = vld [vmem:[#allocation7 + $0x1d24] ss:$60 sps:$4 sm:$0xff]   ;;  %v20281_v25 = vld [vmem:[#allocation7 + $0x11c] ss:$60 sps:$4 sm:$0xff]   ;;  %v20287_v8 = vld [vmem:[#allocation7 + $0x194] ss:$60 sps:$4 sm:$0xff]  }
 0x479   :  { %13055 = vmatpush1.bf16.msra.mxu0 %v20231_v13  ;;  %12638 = vmatprep.subr.bf16.mxu1 %v20236_v14  ;;  %v20282_v7 = vld [vmem:[#allocation7 + $0x1d98] ss:$60 sps:$4 sm:$0xff]   ;;  %v20285_v10 = vld [vmem:[#allocation7 + $0x190] ss:$60 sps:$4 sm:$0xff]  }
 0x47a   :  { %13056 = vmatprep.subr.bf16.mxu0 %v20239_v23  ;;  %v20290_v13 = vld [vmem:[#allocation7 + $0x1e14] ss:$60 sps:$4 sm:$0xff]   ;;  %v20293_v14 = vld [vmem:[#allocation7 + $0x20c] ss:$60 sps:$4 sm:$0xff]  }
 0x47b   :  { %v20291_v23 = vld [vmem:[#allocation7 + $0x208] ss:$60 sps:$4 sm:$0xff]  }
 0x47c   :  { %12639 = vmatpush1.bf16.msra.mxu1 %v20234_v19  ;;  %v20288_v19 = vld [vmem:[#allocation7 + $0x1e10] ss:$60 sps:$4 sm:$0xff]  }
 0x47d   :  { %13057 = vmatpush1.bf16.msra.mxu0 %v20237_v26  ;;  %12640 = vmatprep.subr.bf16.mxu1 %v20242_v29  ;;  %v20296_v26 = vld [vmem:[#allocation7 + $0x1e8c] ss:$60 sps:$4 sm:$0xff]   ;;  %v20299_v29 = vld [vmem:[#allocation7 + $0x284] ss:$60 sps:$4 sm:$0xff]  }
 0x47e   :  { %13058 = vmatprep.subr.bf16.mxu0 %v20245_v20  ;;  %v20297_v20 = vld [vmem:[#allocation7 + $0x280] ss:$60 sps:$4 sm:$0xff]  }
 0x480   :  { %12641 = vmatpush1.bf16.msra.mxu1 %v20240_v30  ;;  %v20294_v30 = vld [vmem:[#allocation7 + $0x1e88] ss:$60 sps:$4 sm:$0xff]  }
 0x481   :  { %13059 = vmatpush1.bf16.msra.mxu0 %v20243_v32  ;;  %12642 = vmatprep.subr.bf16.mxu1 %v20248_v11  ;;  %v20302_v32 = vld [vmem:[#allocation7 + $0x1f04] ss:$60 sps:$4 sm:$0xff]  }
 0x482   :  { %13060 = vmatprep.subr.bf16.mxu0 %v20251_v22  ;;  %v20300_v11 = vld [vmem:[#allocation7 + $0x1f00] ss:$60 sps:$4 sm:$0xff]   ;;  %v20303_v22 = vld [vmem:[#allocation7 + $0x2f8] ss:$60 sps:$4 sm:$0xff]  }
 0x484   :  { %12643 = vmatpush1.bf16.msra.mxu1 %v20246_v33  ;;  %v20305_v33 = vld [vmem:[#allocation7 + $0x2fc] ss:$60 sps:$4 sm:$0xff]  }
 0x485   :  { %13061 = vmatpush1.bf16.msra.mxu0 %v20249_v35  ;;  %12644 = vmatprep.subr.bf16.mxu1 %v20254_v37  ;;  %v20308_v35 = vld [vmem:[#allocation7 + $0x1f7c] ss:$60 sps:$4 sm:$0xff]  }
 0x486   :  { %13062 = vmatprep.subr.bf16.mxu0 %v20257_v40  ;;  %v20306_v37 = vld [vmem:[#allocation7 + $0x1f78] ss:$60 sps:$4 sm:$0xff]   ;;  %v20309_v40 = vld [vmem:[#allocation7 + $0x370] ss:$60 sps:$4 sm:$0xff]  }
 0x488   :  { %12645 = vmatpush1.bf16.msra.mxu1 %v20252_v38  ;;  %v20311_v38 = vld [vmem:[#allocation7 + $0x374] ss:$60 sps:$4 sm:$0xff]  }
 0x489   :  { %13063 = vmatpush1.bf16.msra.mxu0 %v20255_v1  ;;  %12646 = vmatprep.subr.bf16.mxu1 %v20260_v44  ;;  %v20314_v1 = vld [vmem:[#allocation7 + $0x1ff4] ss:$60 sps:$4 sm:$0xff]  }
 0x48a   :  { %13064 = vmatprep.subr.bf16.mxu0 %v20263_v46  ;;  %v20312_v44 = vld [vmem:[#allocation7 + $0x1ff0] ss:$60 sps:$4 sm:$0xff]   ;;  %v20315_v46 = vld [vmem:[#allocation7 + $0x3e8] ss:$60 sps:$4 sm:$0xff]  }
 0x48c   :  { %12647 = vmatpush1.bf16.msra.mxu1 %v20258_v45  ;;  %v20317_v45 = vld [vmem:[#allocation7 + $0x3ec] ss:$60 sps:$4 sm:$0xff]  }
 0x48d   :  { %13065 = vmatpush1.bf16.msra.mxu0 %v20261_v47  ;;  %12648 = vmatprep.subr.bf16.mxu1 %v20266_v48  ;;  %v20320_v47 = vld [vmem:[#allocation7 + $0x206c] ss:$60 sps:$4 sm:$0xff]  }
 0x48e   :  { %13362 = vmatprep.subr.bf16.mxu0 %v20269_v50  ;;  %v20318_v48 = vld [vmem:[#allocation7 + $0x2068] ss:$60 sps:$4 sm:$0xff]   ;;  %v20321_v50 = vld [vmem:[#allocation7 + $0x460] ss:$60 sps:$4 sm:$0xff]  }
 0x490   :  { %13067 = vmatmul.mubr.bf16.vlgmr.msra.gmra.mrb[20].mxu0 %v22445_v62  ;;  %12649 = vmatpush1.bf16.msra.mxu1 %v20264_v49  ;;  %v20323_v49 = vld [vmem:[#allocation7 + $0x464] ss:$60 sps:$4 sm:$0xff]  }
 0x491   :  { %13363 = vmatpush1.bf16.msra.mxu0 %v20267_v52  ;;  %13394 = vmatprep.mubr.bf16.mxu0 %v22333_v15  ;;  %v20326_v52 = vld [vmem:[#allocation7 + $0x20e4] ss:$60 sps:$4 sm:$0xff]  }
 0x492   :  { %12650 = vmatprep.subr.bf16.mxu1 %v20272_v53  ;;  %13364 = vmatprep.subr.bf16.mxu0 %v20275_v55  ;;  %v20324_v53 = vld [vmem:[#allocation7 + $0x20e0] ss:$60 sps:$4 sm:$0xff]  }
 0x493   :  { %v20329_v55 = vld [vmem:[#allocation7 + $0x4dc] ss:$60 sps:$4 sm:$0xff]  }
 0x494   :  { %12651 = vmatpush1.bf16.msra.mxu1 %v20270_v57  ;;  %v20327_v57 = vld [vmem:[#allocation7 + $0x4d8] ss:$60 sps:$4 sm:$0xff]  }
 0x495   :  { %13365 = vmatpush1.bf16.msra.mxu0 %v20273_v56  ;;  %12652 = vmatprep.subr.bf16.mxu1 %v20278_v58  ;;  %v20332_v56 = vld [vmem:[#allocation7 + $0x215c] ss:$60 sps:$4 sm:$0xff]  }
 0x496   :  { %13366 = vmatprep.subr.bf16.mxu0 %v20281_v25  ;;  %v20330_v58 = vld [vmem:[#allocation7 + $0x2158] ss:$60 sps:$4 sm:$0xff]   ;;  %v20333_v25 = vld [vmem:[#allocation7 + $0x550] ss:$60 sps:$4 sm:$0xff]  }
 0x498   :  { %12653 = vmatpush1.bf16.msra.mxu1 %v20276_v60  ;;  %v20335_v60 = vld [vmem:[#allocation7 + $0x554] ss:$60 sps:$4 sm:$0xff]  }
 0x499   :  { %13367 = vmatpush1.bf16.msra.mxu0 %v20279_v5  ;;  %12654 = vmatprep.subr.bf16.mxu1 %v20284_v6  ;;  %v20338_v5 = vld [vmem:[#allocation7 + $0x21d4] ss:$60 sps:$4 sm:$0xff]  }
 0x49a   :  { %13368 = vmatprep.subr.bf16.mxu0 %v20287_v8  ;;  %v20336_v6 = vld [vmem:[#allocation7 + $0x21d0] ss:$60 sps:$4 sm:$0xff]   ;;  %v20339_v8 = vld [vmem:[#allocation7 + $0x5c8] ss:$60 sps:$4 sm:$0xff]  }
 0x49c   :  { %12655 = vmatpush1.bf16.msra.mxu1 %v20282_v7  ;;  %v20341_v7 = vld [vmem:[#allocation7 + $0x5cc] ss:$60 sps:$4 sm:$0xff]  }
 0x49d   :  { %13369 = vmatpush1.bf16.msra.mxu0 %v20285_v10  ;;  %12665 = vmatprep.subr.bf16.mxu1 %v20290_v13  ;;  %v20344_v10 = vld [vmem:[#allocation7 + $0x224c] ss:$60 sps:$4 sm:$0xff]  }
 0x49e   :  { %13370 = vmatprep.subr.bf16.mxu0 %v20293_v14  ;;  %v20342_v13 = vld [vmem:[#allocation7 + $0x2248] ss:$60 sps:$4 sm:$0xff]  }
 0x49f   :  { %12657 = vmatmul.mubr.bf16.vlgmr.msra.gmra.mrb[20].mxu1 %v22400_v54  ;;  %v20347_v14 = vld [vmem:[#allocation7 + $0x644] ss:$60 sps:$4 sm:$0xff]  }
 0x4a0   :  { %12666 = vmatpush1.bf16.msra.mxu1 %v20288_v19  ;;  %12697 = vmatprep.mubr.bf16.mxu1 %v22402_v59  ;;  %v20345_v19 = vld [vmem:[#allocation7 + $0x640] ss:$60 sps:$4 sm:$0xff]  }
 0x4a1   :  { %13371 = vmatpush1.bf16.msra.mxu0 %v20291_v23  ;;  %12667 = vmatprep.subr.bf16.mxu1 %v20296_v26  ;;  %v20350_v23 = vld [vmem:[#allocation7 + $0x22c4] ss:$60 sps:$4 sm:$0xff]  }
 0x4a2   :  { %13372 = vmatprep.subr.bf16.mxu0 %v20299_v29  ;;  %v20348_v26 = vld [vmem:[#allocation7 + $0x22c0] ss:$60 sps:$4 sm:$0xff]  }
 0x4a3   :  { %v20353_v29 = vld [vmem:[#allocation7 + $0x6bc] ss:$60 sps:$4 sm:$0xff]  }
 0x4a4   :  { %12668 = vmatpush1.bf16.msra.mxu1 %v20294_v30  ;;  %v20351_v30 = vld [vmem:[#allocation7 + $0x6b8] ss:$60 sps:$4 sm:$0xff]  }
 0x4a5   :  { %13373 = vmatpush1.bf16.msra.mxu0 %v20297_v20  ;;  %12669 = vmatprep.subr.bf16.mxu1 %v20302_v32  ;;  %v20356_v20 = vld [vmem:[#allocation7 + $0x233c] ss:$60 sps:$4 sm:$0xff]  }
 0x4a6   :  { %13374 = vmatprep.subr.bf16.mxu0 %v20305_v33  ;;  %v20354_v32 = vld [vmem:[#allocation7 + $0x2338] ss:$60 sps:$4 sm:$0xff]   ;;  %v20357_v33 = vld [vmem:[#allocation7 + $0x730] ss:$60 sps:$4 sm:$0xff]  }
 0x4a8   :  { %12670 = vmatpush1.bf16.msra.mxu1 %v20300_v11  ;;  %v20359_v11 = vld [vmem:[#allocation7 + $0x734] ss:$60 sps:$4 sm:$0xff]  }
 0x4a9   :  { %13375 = vmatpush1.bf16.msra.mxu0 %v20303_v22  ;;  %12671 = vmatprep.subr.bf16.mxu1 %v20308_v35  ;;  %v20362_v22 = vld [vmem:[#allocation7 + $0x23b4] ss:$60 sps:$4 sm:$0xff]  }
 0x4aa   :  { %13376 = vmatprep.subr.bf16.mxu0 %v20311_v38  ;;  %v20360_v35 = vld [vmem:[#allocation7 + $0x23b0] ss:$60 sps:$4 sm:$0xff]   ;;  %v20363_v38 = vld [vmem:[#allocation7 + $0x7a8] ss:$60 sps:$4 sm:$0xff]  }
 0x4ac   :  { %12672 = vmatpush1.bf16.msra.mxu1 %v20306_v37  ;;  %v20365_v37 = vld [vmem:[#allocation7 + $0x7ac] ss:$60 sps:$4 sm:$0xff]  }
 0x4ad   :  { %13377 = vmatpush1.bf16.msra.mxu0 %v20309_v40  ;;  %12673 = vmatprep.subr.bf16.mxu1 %v20314_v1  ;;  %v20368_v40 = vld [vmem:[#allocation7 + $0x242c] ss:$60 sps:$4 sm:$0xff]   ;;  %v20371_v1 = vld [vmem:[#allocation7 + $0x824] ss:$60 sps:$4 sm:$0xff]  }
 0x4ae   :  { %13378 = vmatprep.subr.bf16.mxu0 %v20317_v45  ;;  %v20369_v45 = vld [vmem:[#allocation7 + $0x820] ss:$60 sps:$4 sm:$0xff]  }
 0x4b0   :  { %12674 = vmatpush1.bf16.msra.mxu1 %v20312_v44  ;;  %v20366_v44 = vld [vmem:[#allocation7 + $0x2428] ss:$60 sps:$4 sm:$0xff]  }
 0x4b1   :  { %13379 = vmatpush1.bf16.msra.mxu0 %v20315_v46  ;;  %12675 = vmatprep.subr.bf16.mxu1 %v20320_v47  ;;  %v20374_v46 = vld [vmem:[#allocation7 + $0x24a4] ss:$60 sps:$4 sm:$0xff]  }
 0x4b2   :  { %13380 = vmatprep.subr.bf16.mxu0 %v20323_v49  ;;  %v20372_v47 = vld [vmem:[#allocation7 + $0x24a0] ss:$60 sps:$4 sm:$0xff]   ;;  %v20375_v49 = vld [vmem:[#allocation7 + $0x898] ss:$60 sps:$4 sm:$0xff]  }
 0x4b4   :  { %12676 = vmatpush1.bf16.msra.mxu1 %v20318_v48  ;;  %v20377_v48 = vld [vmem:[#allocation7 + $0x89c] ss:$60 sps:$4 sm:$0xff]  }
 0x4b5   :  { %13381 = vmatpush1.bf16.msra.mxu0 %v20321_v50  ;;  %12677 = vmatprep.subr.bf16.mxu1 %v20326_v52  ;;  %v20380_v50 = vld [vmem:[#allocation7 + $0x251c] ss:$60 sps:$4 sm:$0xff]  }
 0x4b6   :  { %13382 = vmatprep.subr.bf16.mxu0 %v20329_v55  ;;  %v20378_v52 = vld [vmem:[#allocation7 + $0x2518] ss:$60 sps:$4 sm:$0xff]   ;;  %v20381_v55 = vld [vmem:[#allocation7 + $0x910] ss:$60 sps:$4 sm:$0xff]  }
 0x4b8   :  { %12678 = vmatpush1.bf16.msra.mxu1 %v20324_v53  ;;  %v20383_v53 = vld [vmem:[#allocation7 + $0x914] ss:$60 sps:$4 sm:$0xff]  }
 0x4b9   :  { %13383 = vmatpush1.bf16.msra.mxu0 %v20327_v57  ;;  %12679 = vmatprep.subr.bf16.mxu1 %v20332_v56  ;;  %v20386_v57 = vld [vmem:[#allocation7 + $0x2594] ss:$60 sps:$4 sm:$0xff]   ;;  %v20389_v56 = vld [vmem:[#allocation7 + $0x98c] ss:$60 sps:$4 sm:$0xff]  }
 0x4ba   :  { %13384 = vmatprep.subr.bf16.mxu0 %v20335_v60  ;;  %v20387_v60 = vld [vmem:[#allocation7 + $0x988] ss:$60 sps:$4 sm:$0xff]  }
 0x4bc   :  { %12680 = vmatpush1.bf16.msra.mxu1 %v20330_v58  ;;  %v20384_v58 = vld [vmem:[#allocation7 + $0x2590] ss:$60 sps:$4 sm:$0xff]  }
 0x4bd   :  { %13385 = vmatpush1.bf16.msra.mxu0 %v20333_v25  ;;  %12681 = vmatprep.subr.bf16.mxu1 %v20338_v5  ;;  %v20392_v25 = vld [vmem:[#allocation7 + $0x260c] ss:$60 sps:$4 sm:$0xff]  }
 0x4be   :  { %13386 = vmatprep.subr.bf16.mxu0 %v20341_v7  ;;  %v20390_v5 = vld [vmem:[#allocation7 + $0x2608] ss:$60 sps:$4 sm:$0xff]   ;;  %v20393_v7 = vld [vmem:[#allocation7 + $0xa00] ss:$60 sps:$4 sm:$0xff]  }
 0x4c0   :  { %12682 = vmatpush1.bf16.msra.mxu1 %v20336_v6  ;;  %v20395_v6 = vld [vmem:[#allocation7 + $0xa04] ss:$60 sps:$4 sm:$0xff]  }
 0x4c1   :  { %13387 = vmatpush1.bf16.msra.mxu0 %v20339_v8  ;;  %12683 = vmatprep.subr.bf16.mxu1 %v20344_v10  ;;  %v20398_v8 = vld [vmem:[#allocation7 + $0x2684] ss:$60 sps:$4 sm:$0xff]  }
 0x4c2   :  { %13388 = vmatprep.subr.bf16.mxu0 %v20347_v14  ;;  %v20396_v10 = vld [vmem:[#allocation7 + $0x2680] ss:$60 sps:$4 sm:$0xff]   ;;  %v20399_v14 = vld [vmem:[#allocation7 + $0xa78] ss:$60 sps:$4 sm:$0xff]  }
 0x4c4   :  { %12684 = vmatpush1.bf16.msra.mxu1 %v20342_v13  ;;  %v20401_v13 = vld [vmem:[#allocation7 + $0xa7c] ss:$60 sps:$4 sm:$0xff]  }
 0x4c5   :  { %13389 = vmatpush1.bf16.msra.mxu0 %v20345_v19  ;;  %12685 = vmatprep.subr.bf16.mxu1 %v20350_v23  ;;  %v20404_v19 = vld [vmem:[#allocation7 + $0x26fc] ss:$60 sps:$4 sm:$0xff]   ;;  %v20407_v23 = vld [vmem:[#allocation7 + $0xaf4] ss:$60 sps:$4 sm:$0xff]  }
 0x4c6   :  { %13390 = vmatprep.subr.bf16.mxu0 %v20353_v29  ;;  %v20405_v29 = vld [vmem:[#allocation7 + $0xaf0] ss:$60 sps:$4 sm:$0xff]  }
 0x4c8   :  { %12686 = vmatpush1.bf16.msra.mxu1 %v20348_v26  ;;  %v20402_v26 = vld [vmem:[#allocation7 + $0x26f8] ss:$60 sps:$4 sm:$0xff]  }
 0x4c9   :  { %13391 = vmatpush1.bf16.msra.mxu0 %v20351_v30  ;;  %12687 = vmatprep.subr.bf16.mxu1 %v20356_v20  ;;  %v20410_v30 = vld [vmem:[#allocation7 + $0x2774] ss:$60 sps:$4 sm:$0xff]  }
 0x4ca   :  { %13392 = vmatprep.subr.bf16.mxu0 %v20359_v11  ;;  %v20408_v20 = vld [vmem:[#allocation7 + $0x2770] ss:$60 sps:$4 sm:$0xff]   ;;  %v20411_v11 = vld [vmem:[#allocation7 + $0xb68] ss:$60 sps:$4 sm:$0xff]  }
 0x4cc   :  { %12688 = vmatpush1.bf16.msra.mxu1 %v20354_v32  ;;  %v20413_v32 = vld [vmem:[#allocation7 + $0xb6c] ss:$60 sps:$4 sm:$0xff]  }
 0x4cd   :  { %13393 = vmatpush1.bf16.msra.mxu0 %v20357_v33  ;;  %12689 = vmatprep.subr.bf16.mxu1 %v20362_v22  ;;  %v20416_v33 = vld [vmem:[#allocation7 + $0x27ec] ss:$60 sps:$4 sm:$0xff]  }
 0x4ce   :  { %13403 = vmatprep.subr.bf16.mxu0 %v20365_v37  ;;  %v20414_v22 = vld [vmem:[#allocation7 + $0x27e8] ss:$60 sps:$4 sm:$0xff]   ;;  %v20417_v37 = vld [vmem:[#allocation7 + $0xbe0] ss:$60 sps:$4 sm:$0xff]  }
 0x4d0   :  { %13395 = vmatmul.mubr.bf16.vlgmr.msra.gmra.mrb[24].mxu0 %v22335_v16  ;;  %12690 = vmatpush1.bf16.msra.mxu1 %v20360_v35  ;;  %v20419_v35 = vld [vmem:[#allocation7 + $0xbe4] ss:$60 sps:$4 sm:$0xff]  }
 0x4d1   :  { %13404 = vmatpush1.bf16.msra.mxu0 %v20363_v38  ;;  %13435 = vmatprep.mubr.bf16.mxu0 %v22346_v34  ;;  %v20422_v38 = vld [vmem:[#allocation7 + $0x2864] ss:$60 sps:$4 sm:$0xff]  }
 0x4d2   :  { %12691 = vmatprep.subr.bf16.mxu1 %v20368_v40  ;;  %13405 = vmatprep.subr.bf16.mxu0 %v20371_v1  ;;  %v20420_v40 = vld [vmem:[#allocation7 + $0x2860] ss:$60 sps:$4 sm:$0xff]  }
 0x4d3   :  { %v20425_v1 = vld [vmem:[#allocation7 + $0xc5c] ss:$60 sps:$4 sm:$0xff]  }
 0x4d4   :  { %12692 = vmatpush1.bf16.msra.mxu1 %v20366_v44  ;;  %v20423_v44 = vld [vmem:[#allocation7 + $0xc58] ss:$60 sps:$4 sm:$0xff]  }
 0x4d5   :  { %13406 = vmatpush1.bf16.msra.mxu0 %v20369_v45  ;;  %12693 = vmatprep.subr.bf16.mxu1 %v20374_v46  ;;  %v20428_v45 = vld [vmem:[#allocation7 + $0x28dc] ss:$60 sps:$4 sm:$0xff]  }
 0x4d6   :  { %13407 = vmatprep.subr.bf16.mxu0 %v20377_v48  ;;  %v20426_v46 = vld [vmem:[#allocation7 + $0x28d8] ss:$60 sps:$4 sm:$0xff]   ;;  %v20429_v48 = vld [vmem:[#allocation7 + $0xcd0] ss:$60 sps:$4 sm:$0xff]  }
 0x4d8   :  { %12694 = vmatpush1.bf16.msra.mxu1 %v20372_v47  ;;  %v20431_v47 = vld [vmem:[#allocation7 + $0xcd4] ss:$60 sps:$4 sm:$0xff]  }
 0x4d9   :  { %13408 = vmatpush1.bf16.msra.mxu0 %v20375_v49  ;;  %12695 = vmatprep.subr.bf16.mxu1 %v20380_v50  ;;  %v20434_v49 = vld [vmem:[#allocation7 + $0x2954] ss:$60 sps:$4 sm:$0xff]  }
 0x4da   :  { %13409 = vmatprep.subr.bf16.mxu0 %v20383_v53  ;;  %v20432_v50 = vld [vmem:[#allocation7 + $0x2950] ss:$60 sps:$4 sm:$0xff]   ;;  %v20435_v53 = vld [vmem:[#allocation7 + $0xd48] ss:$60 sps:$4 sm:$0xff]  }
 0x4dc   :  { %12696 = vmatpush1.bf16.msra.mxu1 %v20378_v52  ;;  %v20437_v52 = vld [vmem:[#allocation7 + $0xd4c] ss:$60 sps:$4 sm:$0xff]  }
 0x4dd   :  { %13410 = vmatpush1.bf16.msra.mxu0 %v20381_v55  ;;  %12706 = vmatprep.subr.bf16.mxu1 %v20386_v57  ;;  %v20440_v55 = vld [vmem:[#allocation7 + $0x29cc] ss:$60 sps:$4 sm:$0xff]  }
 0x4de   :  { %13411 = vmatprep.subr.bf16.mxu0 %v20389_v56  ;;  %v20438_v57 = vld [vmem:[#allocation7 + $0x29c8] ss:$60 sps:$4 sm:$0xff]  }
 0x4df   :  { %12698 = vmatmul.mubr.bf16.vlgmr.msra.gmra.mrb[20].mxu1 %v22418_v39  ;;  %v20443_v56 = vld [vmem:[#allocation7 + $0xdc4] ss:$60 sps:$4 sm:$0xff]  }
 0x4e0   :  { %12707 = vmatpush1.bf16.msra.mxu1 %v20384_v58  ;;  %12738 = vmatprep.mubr.bf16.mxu1 %v22420_v12  ;;  %v20441_v58 = vld [vmem:[#allocation7 + $0xdc0] ss:$60 sps:$4 sm:$0xff]  }
 0x4e1   :  { %13412 = vmatpush1.bf16.msra.mxu0 %v20387_v60  ;;  %12708 = vmatprep.subr.bf16.mxu1 %v20392_v25  ;;  %v20446_v60 = vld [vmem:[#allocation7 + $0x2a44] ss:$60 sps:$4 sm:$0xff]  }
 0x4e2   :  { %13413 = vmatprep.subr.bf16.mxu0 %v20395_v6  ;;  %v20444_v25 = vld [vmem:[#allocation7 + $0x2a40] ss:$60 sps:$4 sm:$0xff]   ;;  %v20447_v6 = vld [vmem:[#allocation7 + $0xe38] ss:$60 sps:$4 sm:$0xff]  }
 0x4e4   :  { %12709 = vmatpush1.bf16.msra.mxu1 %v20390_v5  ;;  %v20449_v5 = vld [vmem:[#allocation7 + $0xe3c] ss:$60 sps:$4 sm:$0xff]  }
 0x4e5   :  { %13414 = vmatpush1.bf16.msra.mxu0 %v20393_v7  ;;  %12710 = vmatprep.subr.bf16.mxu1 %v20398_v8  ;;  %v20452_v7 = vld [vmem:[#allocation7 + $0x2abc] ss:$60 sps:$4 sm:$0xff]  }
 0x4e6   :  { %13415 = vmatprep.subr.bf16.mxu0 %v20401_v13  ;;  %v20450_v8 = vld [vmem:[#allocation7 + $0x2ab8] ss:$60 sps:$4 sm:$0xff]   ;;  %v20453_v13 = vld [vmem:[#allocation7 + $0xeb0] ss:$60 sps:$4 sm:$0xff]  }
 0x4e8   :  { %12711 = vmatpush1.bf16.msra.mxu1 %v20396_v10  ;;  %v20455_v10 = vld [vmem:[#allocation7 + $0xeb4] ss:$60 sps:$4 sm:$0xff]  }
 0x4e9   :  { %13416 = vmatpush1.bf16.msra.mxu0 %v20399_v14  ;;  %12712 = vmatprep.subr.bf16.mxu1 %v20404_v19  ;;  %v20458_v14 = vld [vmem:[#allocation7 + $0x2b34] ss:$60 sps:$4 sm:$0xff]   ;;  %v20461_v19 = vld [vmem:[#allocation7 + $0xf2c] ss:$60 sps:$4 sm:$0xff]  }
 0x4ea   :  { %13417 = vmatprep.subr.bf16.mxu0 %v20407_v23  ;;  %v20456_v23 = vld [vmem:[#allocation7 + $0x2b30] ss:$60 sps:$4 sm:$0xff]  }
 0x4ec   :  { %12713 = vmatpush1.bf16.msra.mxu1 %v20402_v26  ;;  %v20459_v26 = vld [vmem:[#allocation7 + $0xf28] ss:$60 sps:$4 sm:$0xff]  }
 0x4ed   :  { %13418 = vmatpush1.bf16.msra.mxu0 %v20405_v29  ;;  %12714 = vmatprep.subr.bf16.mxu1 %v20410_v30  ;;  %v20464_v29 = vld [vmem:[#allocation7 + $0x2bac] ss:$60 sps:$4 sm:$0xff]   ;;  %v20467_v30 = vld [vmem:[#allocation7 + $0xfa4] ss:$60 sps:$4 sm:$0xff]  }
 0x4ee   :  { %13419 = vmatprep.subr.bf16.mxu0 %v20413_v32  ;;  %v20465_v32 = vld [vmem:[#allocation7 + $0xfa0] ss:$60 sps:$4 sm:$0xff]  }
 0x4f0   :  { %12715 = vmatpush1.bf16.msra.mxu1 %v20408_v20  ;;  %v20462_v20 = vld [vmem:[#allocation7 + $0x2ba8] ss:$60 sps:$4 sm:$0xff]  }
 0x4f1   :  { %13420 = vmatpush1.bf16.msra.mxu0 %v20411_v11  ;;  %12716 = vmatprep.subr.bf16.mxu1 %v20416_v33  ;;  %v20470_v11 = vld [vmem:[#allocation7 + $0x2c24] ss:$60 sps:$4 sm:$0xff]   ;;  %v20473_v33 = vld [vmem:[#allocation7 + $0x101c] ss:$60 sps:$4 sm:$0xff]  }
 0x4f2   :  { %13421 = vmatprep.subr.bf16.mxu0 %v20419_v35  ;;  %v20471_v35 = vld [vmem:[#allocation7 + $0x1018] ss:$60 sps:$4 sm:$0xff]  }
 0x4f4   :  { %12717 = vmatpush1.bf16.msra.mxu1 %v20414_v22  ;;  %v20468_v22 = vld [vmem:[#allocation7 + $0x2c20] ss:$60 sps:$4 sm:$0xff]  }
 0x4f5   :  { %13422 = vmatpush1.bf16.msra.mxu0 %v20417_v37  ;;  %12718 = vmatprep.subr.bf16.mxu1 %v20422_v38  ;;  %v20476_v37 = vld [vmem:[#allocation7 + $0x2c9c] ss:$60 sps:$4 sm:$0xff]   ;;  %v20479_v38 = vld [vmem:[#allocation7 + $0x1094] ss:$60 sps:$4 sm:$0xff]  }
 0x4f6   :  { %13423 = vmatprep.subr.bf16.mxu0 %v20425_v1  ;;  %v20477_v1 = vld [vmem:[#allocation7 + $0x1090] ss:$60 sps:$4 sm:$0xff]  }
 0x4f8   :  { %12719 = vmatpush1.bf16.msra.mxu1 %v20420_v40  ;;  %v20474_v40 = vld [vmem:[#allocation7 + $0x2c98] ss:$60 sps:$4 sm:$0xff]  }
 0x4f9   :  { %13424 = vmatpush1.bf16.msra.mxu0 %v20423_v44  ;;  %12720 = vmatprep.subr.bf16.mxu1 %v20428_v45  ;;  %v20482_v44 = vld [vmem:[#allocation7 + $0x2d14] ss:$60 sps:$4 sm:$0xff]   ;;  %v20485_v45 = vld [vmem:[#allocation7 + $0x110c] ss:$60 sps:$4 sm:$0xff]  }
 0x4fa   :  { %13425 = vmatprep.subr.bf16.mxu0 %v20431_v47  ;;  %v20483_v47 = vld [vmem:[#allocation7 + $0x1108] ss:$60 sps:$4 sm:$0xff]  }
 0x4fc   :  { %12721 = vmatpush1.bf16.msra.mxu1 %v20426_v46  ;;  %v20480_v46 = vld [vmem:[#allocation7 + $0x2d10] ss:$60 sps:$4 sm:$0xff]  }
 0x4fd   :  { %13426 = vmatpush1.bf16.msra.mxu0 %v20429_v48  ;;  %12722 = vmatprep.subr.bf16.mxu1 %v20434_v49  ;;  %v20488_v48 = vld [vmem:[#allocation7 + $0x2d8c] ss:$60 sps:$4 sm:$0xff]   ;;  %v20491_v49 = vld [vmem:[#allocation7 + $0x1184] ss:$60 sps:$4 sm:$0xff]  }
 0x4fe   :  { %13427 = vmatprep.subr.bf16.mxu0 %v20437_v52  ;;  %v20489_v52 = vld [vmem:[#allocation7 + $0x1180] ss:$60 sps:$4 sm:$0xff]  }
 0x500   :  { %12723 = vmatpush1.bf16.msra.mxu1 %v20432_v50  ;;  %v20486_v50 = vld [vmem:[#allocation7 + $0x2d88] ss:$60 sps:$4 sm:$0xff]  }
 0x501   :  { %13428 = vmatpush1.bf16.msra.mxu0 %v20435_v53  ;;  %12724 = vmatprep.subr.bf16.mxu1 %v20440_v55  ;;  %v20494_v53 = vld [vmem:[#allocation7 + $0x2e04] ss:$60 sps:$4 sm:$0xff]   ;;  %v20497_v55 = vld [vmem:[#allocation7 + $0x11fc] ss:$60 sps:$4 sm:$0xff]  }
 0x502   :  { %13429 = vmatprep.subr.bf16.mxu0 %v20443_v56  ;;  %v20495_v56 = vld [vmem:[#allocation7 + $0x11f8] ss:$60 sps:$4 sm:$0xff]  }
 0x504   :  { %12725 = vmatpush1.bf16.msra.mxu1 %v20438_v57  ;;  %v20492_v57 = vld [vmem:[#allocation7 + $0x2e00] ss:$60 sps:$4 sm:$0xff]  }
 0x505   :  { %13430 = vmatpush1.bf16.msra.mxu0 %v20441_v58  ;;  %12726 = vmatprep.subr.bf16.mxu1 %v20446_v60  ;;  %v20500_v58 = vld [vmem:[#allocation7 + $0x2e7c] ss:$60 sps:$4 sm:$0xff]   ;;  %v20503_v60 = vld [vmem:[#allocation7 + $0x1274] ss:$60 sps:$4 sm:$0xff]  }
 0x506   :  { %13431 = vmatprep.subr.bf16.mxu0 %v20449_v5  ;;  %v20501_v5 = vld [vmem:[#allocation7 + $0x1270] ss:$60 sps:$4 sm:$0xff]  }
 0x508   :  { %12727 = vmatpush1.bf16.msra.mxu1 %v20444_v25  ;;  %v20498_v25 = vld [vmem:[#allocation7 + $0x2e78] ss:$60 sps:$4 sm:$0xff]  }
 0x509   :  { %13432 = vmatpush1.bf16.msra.mxu0 %v20447_v6  ;;  %12728 = vmatprep.subr.bf16.mxu1 %v20452_v7  ;;  %v20506_v6 = vld [vmem:[#allocation7 + $0x2ef4] ss:$60 sps:$4 sm:$0xff]   ;;  %v20509_v7 = vld [vmem:[#allocation7 + $0x12ec] ss:$60 sps:$4 sm:$0xff]  }
 0x50a   :  { %13433 = vmatprep.subr.bf16.mxu0 %v20455_v10  ;;  %v20507_v10 = vld [vmem:[#allocation7 + $0x12e8] ss:$60 sps:$4 sm:$0xff]  }
 0x50c   :  { %12729 = vmatpush1.bf16.msra.mxu1 %v20450_v8  ;;  %v20504_v8 = vld [vmem:[#allocation7 + $0x2ef0] ss:$60 sps:$4 sm:$0xff]  }
 0x50d   :  { %13434 = vmatpush1.bf16.msra.mxu0 %v20453_v13  ;;  %12730 = vmatprep.subr.bf16.mxu1 %v20458_v14  ;;  %v20512_v13 = vld [vmem:[#allocation7 + $0x2f6c] ss:$60 sps:$4 sm:$0xff]   ;;  %v20515_v14 = vld [vmem:[#allocation7 + $0x1364] ss:$60 sps:$4 sm:$0xff]  }
 0x50e   :  { %13444 = vmatprep.subr.bf16.mxu0 %v20461_v19  ;;  %v20510_v19 = vld [vmem:[#allocation7 + $0x2f68] ss:$60 sps:$4 sm:$0xff]  }
 0x510   :  { %13436 = vmatmul.mubr.bf16.vlgmr.msra.gmra.mrb[24].mxu0 %v22377_v36  ;;  %12731 = vmatpush1.bf16.msra.mxu1 %v20456_v23  ;;  %v20513_v23 = vld [vmem:[#allocation7 + $0x1360] ss:$60 sps:$4 sm:$0xff]  }
 0x511   :  { %13445 = vmatpush1.bf16.msra.mxu0 %v20459_v26  ;;  %13476 = vmatprep.mubr.bf16.mxu0 %v22361_v3  ;;  %v20518_v26 = vld [vmem:[#allocation7 + $0x2fe4] ss:$60 sps:$4 sm:$0xff]  }
 0x512   :  { %12732 = vmatprep.subr.bf16.mxu1 %v20464_v29  ;;  %13446 = vmatprep.subr.bf16.mxu0 %v20467_v30  ;;  %v20521_v29 = vld [vmem:[#allocation7 + $0x13dc] ss:$60 sps:$4 sm:$0xff]  }
 0x513   :  { %v20516_v30 = vld [vmem:[#allocation7 + $0x2fe0] ss:$60 sps:$4 sm:$0xff]  }
 0x514   :  { %12733 = vmatpush1.bf16.msra.mxu1 %v20462_v20  ;;  %v20519_v20 = vld [vmem:[#allocation7 + $0x13d8] ss:$60 sps:$4 sm:$0xff]  }
 0x515   :  { %13447 = vmatpush1.bf16.msra.mxu0 %v20465_v32  ;;  %12734 = vmatprep.subr.bf16.mxu1 %v20470_v11  ;;  %v20524_v32 = vld [vmem:[#allocation7 + $0x305c] ss:$60 sps:$4 sm:$0xff]   ;;  %v20527_v11 = vld [vmem:[#allocation7 + $0x1454] ss:$60 sps:$4 sm:$0xff]  }
 0x516   :  { %13448 = vmatprep.subr.bf16.mxu0 %v20473_v33  ;;  %v20522_v33 = vld [vmem:[#allocation7 + $0x3058] ss:$60 sps:$4 sm:$0xff]  }
 0x518   :  { %12735 = vmatpush1.bf16.msra.mxu1 %v20468_v22  ;;  %v20525_v22 = vld [vmem:[#allocation7 + $0x1450] ss:$60 sps:$4 sm:$0xff]  }
 0x519   :  { %13449 = vmatpush1.bf16.msra.mxu0 %v20471_v35  ;;  %12736 = vmatprep.subr.bf16.mxu1 %v20476_v37  ;;  %v20530_v35 = vld [vmem:[#allocation7 + $0x30d4] ss:$60 sps:$4 sm:$0xff]   ;;  %v20533_v37 = vld [vmem:[#allocation7 + $0x14cc] ss:$60 sps:$4 sm:$0xff]  }
 0x51a   :  { %13450 = vmatprep.subr.bf16.mxu0 %v20479_v38  ;;  %v20528_v38 = vld [vmem:[#allocation7 + $0x30d0] ss:$60 sps:$4 sm:$0xff]  }
 0x51c   :  { %12737 = vmatpush1.bf16.msra.mxu1 %v20474_v40  ;;  %v20531_v40 = vld [vmem:[#allocation7 + $0x14c8] ss:$60 sps:$4 sm:$0xff]  }
 0x51d   :  { %13451 = vmatpush1.bf16.msra.mxu0 %v20477_v1  ;;  %12747 = vmatprep.subr.bf16.mxu1 %v20482_v44  ;;  %v20536_v1 = vld [vmem:[#allocation7 + $0x314c] ss:$60 sps:$4 sm:$0xff]   ;;  %v20539_v44 = vld [vmem:[#allocation7 + $0x1544] ss:$60 sps:$4 sm:$0xff]  }
 0x51e   :  { %13452 = vmatprep.subr.bf16.mxu0 %v20485_v45  ;;  %v20534_v45 = vld [vmem:[#allocation7 + $0x3148] ss:$60 sps:$4 sm:$0xff]  }
 0x51f   :  { %12739 = vmatmul.mubr.bf16.vlgmr.msra.gmra.mrb[20].mxu1 %v22434_v27 }
 0x520   :  { %12748 = vmatpush1.bf16.msra.mxu1 %v20480_v46  ;;  %12779 = vmatprep.mubr.bf16.mxu1 %v22436_v28  ;;  %v20537_v46 = vld [vmem:[#allocation7 + $0x1540] ss:$60 sps:$4 sm:$0xff]  }
 0x521   :  { %13453 = vmatpush1.bf16.msra.mxu0 %v20483_v47  ;;  %12749 = vmatprep.subr.bf16.mxu1 %v20488_v48  ;;  %v20542_v47 = vld [vmem:[#allocation7 + $0x31c4] ss:$60 sps:$4 sm:$0xff]   ;;  %v20545_v48 = vld [vmem:[#allocation7 + $0x15bc] ss:$60 sps:$4 sm:$0xff]  }
 0x522   :  { %13454 = vmatprep.subr.bf16.mxu0 %v20491_v49  ;;  %v20540_v49 = vld [vmem:[#allocation7 + $0x31c0] ss:$60 sps:$4 sm:$0xff]  }
 0x524   :  { %12750 = vmatpush1.bf16.msra.mxu1 %v20486_v50  ;;  %v20543_v50 = vld [vmem:[#allocation7 + $0x15b8] ss:$60 sps:$4 sm:$0xff]  }
 0x525   :  { %13455 = vmatpush1.bf16.msra.mxu0 %v20489_v52  ;;  %12751 = vmatprep.subr.bf16.mxu1 %v20494_v53  ;;  %v20548_v52 = vld [vmem:[#allocation7 + $0x323c] ss:$60 sps:$4 sm:$0xff]   ;;  %v20551_v53 = vld [vmem:[#allocation7 + $0x1634] ss:$60 sps:$4 sm:$0xff]  }
 0x526   :  { %13456 = vmatprep.subr.bf16.mxu0 %v20497_v55  ;;  %v20546_v55 = vld [vmem:[#allocation7 + $0x3238] ss:$60 sps:$4 sm:$0xff]  }
 0x528   :  { %12752 = vmatpush1.bf16.msra.mxu1 %v20492_v57  ;;  %v20549_v57 = vld [vmem:[#allocation7 + $0x1630] ss:$60 sps:$4 sm:$0xff]  }
 0x529   :  { %13457 = vmatpush1.bf16.msra.mxu0 %v20495_v56  ;;  %12753 = vmatprep.subr.bf16.mxu1 %v20500_v58  ;;  %v20554_v56 = vld [vmem:[#allocation7 + $0x32b4] ss:$60 sps:$4 sm:$0xff]   ;;  %v20557_v58 = vld [vmem:[#allocation7 + $0x16ac] ss:$60 sps:$4 sm:$0xff]  }
 0x52a   :  { %13458 = vmatprep.subr.bf16.mxu0 %v20503_v60  ;;  %v20552_v60 = vld [vmem:[#allocation7 + $0x32b0] ss:$60 sps:$4 sm:$0xff]  }
 0x52c   :  { %12754 = vmatpush1.bf16.msra.mxu1 %v20498_v25  ;;  %v20555_v25 = vld [vmem:[#allocation7 + $0x16a8] ss:$60 sps:$4 sm:$0xff]  }
 0x52d   :  { %13459 = vmatpush1.bf16.msra.mxu0 %v20501_v5  ;;  %12755 = vmatprep.subr.bf16.mxu1 %v20506_v6  ;;  %v20560_v5 = vld [vmem:[#allocation7 + $0x332c] ss:$60 sps:$4 sm:$0xff]   ;;  %v20563_v6 = vld [vmem:[#allocation7 + $0x1724] ss:$60 sps:$4 sm:$0xff]  }
 0x52e   :  { %13460 = vmatprep.subr.bf16.mxu0 %v20509_v7  ;;  %v20558_v7 = vld [vmem:[#allocation7 + $0x3328] ss:$60 sps:$4 sm:$0xff]  }
 0x530   :  { %12756 = vmatpush1.bf16.msra.mxu1 %v20504_v8  ;;  %v20561_v8 = vld [vmem:[#allocation7 + $0x1720] ss:$60 sps:$4 sm:$0xff]  }
 0x531   :  { %13461 = vmatpush1.bf16.msra.mxu0 %v20507_v10  ;;  %12757 = vmatprep.subr.bf16.mxu1 %v20512_v13  ;;  %v20566_v10 = vld [vmem:[#allocation7 + $0x33a4] ss:$60 sps:$4 sm:$0xff]   ;;  %v20569_v13 = vld [vmem:[#allocation7 + $0x179c] ss:$60 sps:$4 sm:$0xff]  }
 0x532   :  { %13462 = vmatprep.subr.bf16.mxu0 %v20515_v14  ;;  %v20564_v14 = vld [vmem:[#allocation7 + $0x33a0] ss:$60 sps:$4 sm:$0xff]  }
 0x534   :  { %12758 = vmatpush1.bf16.msra.mxu1 %v20510_v19  ;;  %v20567_v19 = vld [vmem:[#allocation7 + $0x1798] ss:$60 sps:$4 sm:$0xff]  }
 0x535   :  { %13463 = vmatpush1.bf16.msra.mxu0 %v20513_v23  ;;  %12759 = vmatprep.subr.bf16.mxu1 %v20518_v26  ;;  %v20572_v23 = vld [vmem:[#allocation7 + $0x341c] ss:$60 sps:$4 sm:$0xff]   ;;  %v20575_v26 = vld [vmem:[#allocation7 + $0x1814] ss:$60 sps:$4 sm:$0xff]  }
 0x536   :  { %13464 = vmatprep.subr.bf16.mxu0 %v20521_v29  ;;  %v20570_v29 = vld [vmem:[#allocation7 + $0x3418] ss:$60 sps:$4 sm:$0xff]  }
 0x538   :  { %12760 = vmatpush1.bf16.msra.mxu1 %v20516_v30  ;;  %v20573_v30 = vld [vmem:[#allocation7 + $0x1810] ss:$60 sps:$4 sm:$0xff]  }
 0x539   :  { %13465 = vmatpush1.bf16.msra.mxu0 %v20519_v20  ;;  %12761 = vmatprep.subr.bf16.mxu1 %v20524_v32  ;;  %v20578_v20 = vld [vmem:[#allocation7 + $0x24] ss:$60 sps:$4 sm:$0xff]   ;;  %v20581_v32 = vld [vmem:[#allocation7 + $0x188c] ss:$60 sps:$4 sm:$0xff]  }
 0x53a   :  { %13466 = vmatprep.subr.bf16.mxu0 %v20527_v11  ;;  %v20576_v11 = vld [vmem:[#allocation7 + $0x20] ss:$60 sps:$4 sm:$0xff]  }
 0x53c   :  { %12762 = vmatpush1.bf16.msra.mxu1 %v20522_v33  ;;  %v20579_v33 = vld [vmem:[#allocation7 + $0x1888] ss:$60 sps:$4 sm:$0xff]  }
 0x53d   :  { %13467 = vmatpush1.bf16.msra.mxu0 %v20525_v22  ;;  %12763 = vmatprep.subr.bf16.mxu1 %v20530_v35  ;;  %v20584_v22 = vld [vmem:[#allocation7 + $0x9c] ss:$60 sps:$4 sm:$0xff]   ;;  %v20587_v35 = vld [vmem:[#allocation7 + $0x1904] ss:$60 sps:$4 sm:$0xff]  }
 0x53e   :  { %13468 = vmatprep.subr.bf16.mxu0 %v20533_v37  ;;  %v20582_v37 = vld [vmem:[#allocation7 + $0x98] ss:$60 sps:$4 sm:$0xff]  }
 0x540   :  { %12764 = vmatpush1.bf16.msra.mxu1 %v20528_v38  ;;  %v20585_v38 = vld [vmem:[#allocation7 + $0x1900] ss:$60 sps:$4 sm:$0xff]  }
 0x541   :  { %13469 = vmatpush1.bf16.msra.mxu0 %v20531_v40  ;;  %12765 = vmatprep.subr.bf16.mxu1 %v20536_v1  ;;  %v20590_v40 = vld [vmem:[#allocation7 + $0x114] ss:$60 sps:$4 sm:$0xff]   ;;  %v20593_v1 = vld [vmem:[#allocation7 + $0x197c] ss:$60 sps:$4 sm:$0xff]  }
 0x542   :  { %13470 = vmatprep.subr.bf16.mxu0 %v20539_v44 }
 0x544   :  { %12766 = vmatpush1.bf16.msra.mxu1 %v20534_v45 }
 0x545   :  { %13471 = vmatpush1.bf16.msra.mxu0 %v20537_v46  ;;  %12767 = vmatprep.subr.bf16.mxu1 %v20542_v47  ;;  %v20588_v46 = vld [vmem:[#allocation7 + $0x110] ss:$60 sps:$4 sm:$0xff]  }
 0x546   :  { %13472 = vmatprep.subr.bf16.mxu0 %v20545_v48  ;;  %v20591_v48 = vld [vmem:[#allocation7 + $0x1978] ss:$60 sps:$4 sm:$0xff]  }
 0x548   :  { %12768 = vmatpush1.bf16.msra.mxu1 %v20540_v49  ;;  %v20596_v49 = vld [vmem:[#allocation7 + $0x18c] ss:$60 sps:$4 sm:$0xff]  }
 0x549   :  { %13473 = vmatpush1.bf16.msra.mxu0 %v20543_v50  ;;  %12769 = vmatprep.subr.bf16.mxu1 %v20548_v52  ;;  %v20599_v52 = vld [vmem:[#allocation7 + $0x19f4] ss:$60 sps:$4 sm:$0xff]  }
 0x54a   :  { %13474 = vmatprep.subr.bf16.mxu0 %v20551_v53  ;;  %v20594_v53 = vld [vmem:[#allocation7 + $0x188] ss:$60 sps:$4 sm:$0xff]  }
 0x54c   :  { %12770 = vmatpush1.bf16.msra.mxu1 %v20546_v55  ;;  %v20597_v55 = vld [vmem:[#allocation7 + $0x19f0] ss:$60 sps:$4 sm:$0xff]  }
 0x54d   :  { %13475 = vmatpush1.bf16.msra.mxu0 %v20549_v57  ;;  %12771 = vmatprep.subr.bf16.mxu1 %v20554_v56  ;;  %v20602_v57 = vld [vmem:[#allocation7 + $0x204] ss:$60 sps:$4 sm:$0xff]   ;;  %v20605_v56 = vld [vmem:[#allocation7 + $0x1a6c] ss:$60 sps:$4 sm:$0xff]  }
 0x54e   :  { %13485 = vmatprep.subr.bf16.mxu0 %v20557_v58  ;;  %v20600_v58 = vld [vmem:[#allocation7 + $0x200] ss:$60 sps:$4 sm:$0xff]  }
 0x550   :  { %13477 = vmatmul.mubr.bf16.vlgmr.msra.gmra.mrb[24].mxu0 %v22359_v63  ;;  %12772 = vmatpush1.bf16.msra.mxu1 %v20552_v60  ;;  %v20603_v60 = vld [vmem:[#allocation7 + $0x1a68] ss:$60 sps:$4 sm:$0xff]  }
 0x551   :  { %13486 = vmatpush1.bf16.msra.mxu0 %v20555_v25  ;;  %13517 = vmatprep.mubr.bf16.mxu0 %v22380_v41  ;;  %v20608_v25 = vld [vmem:[#allocation7 + $0x27c] ss:$60 sps:$4 sm:$0xff]  }
 0x552   :  { %12773 = vmatprep.subr.bf16.mxu1 %v20560_v5  ;;  %13487 = vmatprep.subr.bf16.mxu0 %v20563_v6  ;;  %v20611_v5 = vld [vmem:[#allocation7 + $0x1ae4] ss:$60 sps:$4 sm:$0xff]   ;;  %v20606_v6 = vld [vmem:[#allocation7 + $0x278] ss:$60 sps:$4 sm:$0xff]  }
 0x554   :  { %12774 = vmatpush1.bf16.msra.mxu1 %v20558_v7  ;;  %v20609_v7 = vld [vmem:[#allocation7 + $0x1ae0] ss:$60 sps:$4 sm:$0xff]  }
 0x555   :  { %13488 = vmatpush1.bf16.msra.mxu0 %v20561_v8  ;;  %12775 = vmatprep.subr.bf16.mxu1 %v20566_v10  ;;  %v20614_v8 = vld [vmem:[#allocation7 + $0x2f4] ss:$60 sps:$4 sm:$0xff]   ;;  %v20617_v10 = vld [vmem:[#allocation7 + $0x1b5c] ss:$60 sps:$4 sm:$0xff]  }
 0x556   :  { %13489 = vmatprep.subr.bf16.mxu0 %v20569_v13  ;;  %v20612_v13 = vld [vmem:[#allocation7 + $0x2f0] ss:$60 sps:$4 sm:$0xff]  }
 0x558   :  { %12776 = vmatpush1.bf16.msra.mxu1 %v20564_v14  ;;  %v20615_v14 = vld [vmem:[#allocation7 + $0x1b58] ss:$60 sps:$4 sm:$0xff]  }
 0x559   :  { %13490 = vmatpush1.bf16.msra.mxu0 %v20567_v19  ;;  %12777 = vmatprep.subr.bf16.mxu1 %v20572_v23  ;;  %v20620_v19 = vld [vmem:[#allocation7 + $0x36c] ss:$60 sps:$4 sm:$0xff]   ;;  %v20623_v23 = vld [vmem:[#allocation7 + $0x1bd4] ss:$60 sps:$4 sm:$0xff]  }
 0x55a   :  { %13491 = vmatprep.subr.bf16.mxu0 %v20575_v26  ;;  %v20618_v26 = vld [vmem:[#allocation7 + $0x368] ss:$60 sps:$4 sm:$0xff]  }
 0x55c   :  { %12778 = vmatpush1.bf16.msra.mxu1 %v20570_v29  ;;  %v20621_v29 = vld [vmem:[#allocation7 + $0x1bd0] ss:$60 sps:$4 sm:$0xff]  }
 0x55d   :  { %13492 = vmatpush1.bf16.msra.mxu0 %v20573_v30  ;;  %13075 = vmatprep.subr.bf16.mxu1 %v20578_v20  ;;  %v20626_v30 = vld [vmem:[#allocation7 + $0x3e4] ss:$60 sps:$4 sm:$0xff]   ;;  %v20629_v20 = vld [vmem:[#allocation7 + $0x1c4c] ss:$60 sps:$4 sm:$0xff]  }
 0x55e   :  { %13493 = vmatprep.subr.bf16.mxu0 %v20581_v32  ;;  %v20624_v32 = vld [vmem:[#allocation7 + $0x3e0] ss:$60 sps:$4 sm:$0xff]  }
 0x55f   :  { %12780 = vmatmul.mubr.bf16.vlgmr.msra.gmra.mrb[20].mxu1 %v22445_v62 }
 0x560   :  { %13076 = vmatpush1.bf16.msra.mxu1 %v20576_v11  ;;  %13107 = vmatprep.mubr.bf16.mxu1 %v22333_v15  ;;  %v20627_v11 = vld [vmem:[#allocation7 + $0x1c48] ss:$60 sps:$4 sm:$0xff]  }
 0x561   :  { %13494 = vmatpush1.bf16.msra.mxu0 %v20579_v33  ;;  %13077 = vmatprep.subr.bf16.mxu1 %v20584_v22  ;;  %v20632_v33 = vld [vmem:[#allocation7 + $0x45c] ss:$60 sps:$4 sm:$0xff]   ;;  %v20635_v22 = vld [vmem:[#allocation7 + $0x1cc4] ss:$60 sps:$4 sm:$0xff]  }
 0x562   :  { %13495 = vmatprep.subr.bf16.mxu0 %v20587_v35  ;;  %v20630_v35 = vld [vmem:[#allocation7 + $0x458] ss:$60 sps:$4 sm:$0xff]  }
 0x563   :  { %v22507_v44 = vpop.f32.mrb[20].mxu0 }
 0x564   :  { %v22509_v45 = vpop.f32.mrb[21].mxu0  ;;  %13078 = vmatpush1.bf16.msra.mxu1 %v20582_v37  ;;  %v20633_v37 = vld [vmem:[#allocation7 + $0x1cc0] ss:$60 sps:$4 sm:$0xff]  }
 0x565   :  { %v13072_v47 = vpop.f32.mrb[22].mxu0  ;;  %13496 = vmatpush1.bf16.msra.mxu0 %v20585_v38  ;;  %13079 = vmatprep.subr.bf16.mxu1 %v20590_v40  ;;  %v20638_v38 = vld [vmem:[#allocation7 + $0x4d4] ss:$60 sps:$4 sm:$0xff]   ;;  %v20641_v40 = vld [vmem:[#allocation7 + $0x1d3c] ss:$60 sps:$4 sm:$0xff]  }
 0x566   :  { %v13073_v50 = vpop.f32.mrb[23].mxu0  ;;  %13497 = vmatprep.subr.bf16.mxu0 %v20593_v1  ;;  %v20636_v1 = vld [vmem:[#allocation7 + $0x4d0] ss:$60 sps:$4 sm:$0xff]  }
 0x567   :  { %v20644_v47 = vld [vmem:[#allocation7 + $0x54c] ss:$60 sps:$4 sm:$0xff]  }
 0x568   :  { %13080 = vmatpush1.bf16.msra.mxu1 %v20588_v46  ;;  %v20639_v46 = vld [vmem:[#allocation7 + $0x1d38] ss:$60 sps:$4 sm:$0xff]   ;;  %v20645_v50 = vld [vmem:[#allocation7 + $0x1db0] ss:$60 sps:$4 sm:$0xff]  }
 0x569   :  { %13498 = vmatpush1.bf16.msra.mxu0 %v20591_v48  ;;  %13081 = vmatprep.subr.bf16.mxu1 %v20596_v49  ;;  %v20647_v48 = vld [vmem:[#allocation7 + $0x1db4] ss:$60 sps:$4 sm:$0xff]   ;;  %v20642_v49 = vld [vmem:[#allocation7 + $0x548] ss:$60 sps:$4 sm:$0xff]  }
 0x56a   :  { %13499 = vmatprep.subr.bf16.mxu0 %v20599_v52  ;;  %v20650_v52 = vld [vmem:[#allocation7 + $0x5c4] ss:$60 sps:$4 sm:$0xff]  }
 0x56c   :  { %13082 = vmatpush1.bf16.msra.mxu1 %v20594_v53  ;;  %v20653_v53 = vld [vmem:[#allocation7 + $0x1e2c] ss:$60 sps:$4 sm:$0xff]  }
 0x56d   :  { %13500 = vmatpush1.bf16.msra.mxu0 %v20597_v55  ;;  %13083 = vmatprep.subr.bf16.mxu1 %v20602_v57  ;;  %v20648_v55 = vld [vmem:[#allocation7 + $0x5c0] ss:$60 sps:$4 sm:$0xff]   ;;  %v20651_v57 = vld [vmem:[#allocation7 + $0x1e28] ss:$60 sps:$4 sm:$0xff]  }
 0x56e   :  { %13501 = vmatprep.subr.bf16.mxu0 %v20605_v56  ;;  %v20656_v56 = vld [vmem:[#allocation7 + $0x63c] ss:$60 sps:$4 sm:$0xff]  }
 0x570   :  { %13084 = vmatpush1.bf16.msra.mxu1 %v20600_v58  ;;  %v20659_v58 = vld [vmem:[#allocation7 + $0x1ea4] ss:$60 sps:$4 sm:$0xff]  }
 0x571   :  { %13502 = vmatpush1.bf16.msra.mxu0 %v20603_v60  ;;  %13085 = vmatprep.subr.bf16.mxu1 %v20608_v25  ;;  %v20654_v60 = vld [vmem:[#allocation7 + $0x638] ss:$60 sps:$4 sm:$0xff]   ;;  %v20657_v25 = vld [vmem:[#allocation7 + $0x1ea0] ss:$60 sps:$4 sm:$0xff]  }
 0x572   :  { %13503 = vmatprep.subr.bf16.mxu0 %v20611_v5  ;;  %v20662_v5 = vld [vmem:[#allocation7 + $0x6b4] ss:$60 sps:$4 sm:$0xff]  }
 0x574   :  { %13086 = vmatpush1.bf16.msra.mxu1 %v20606_v6  ;;  %v20665_v6 = vld [vmem:[#allocation7 + $0x1f1c] ss:$60 sps:$4 sm:$0xff]  }
 0x575   :  { %13504 = vmatpush1.bf16.msra.mxu0 %v20609_v7  ;;  %13087 = vmatprep.subr.bf16.mxu1 %v20614_v8  ;;  %v20660_v7 = vld [vmem:[#allocation7 + $0x6b0] ss:$60 sps:$4 sm:$0xff]   ;;  %v20663_v8 = vld [vmem:[#allocation7 + $0x1f18] ss:$60 sps:$4 sm:$0xff]  }
 0x576   :  { %13505 = vmatprep.subr.bf16.mxu0 %v20617_v10  ;;  %v20668_v10 = vld [vmem:[#allocation7 + $0x72c] ss:$60 sps:$4 sm:$0xff]  }
 0x578   :  { %13088 = vmatpush1.bf16.msra.mxu1 %v20612_v13  ;;  %v20671_v13 = vld [vmem:[#allocation7 + $0x1f94] ss:$60 sps:$4 sm:$0xff]  }
 0x579   :  { %13506 = vmatpush1.bf16.msra.mxu0 %v20615_v14  ;;  %13089 = vmatprep.subr.bf16.mxu1 %v20620_v19  ;;  %v20666_v14 = vld [vmem:[#allocation7 + $0x728] ss:$60 sps:$4 sm:$0xff]   ;;  %v20669_v19 = vld [vmem:[#allocation7 + $0x1f90] ss:$60 sps:$4 sm:$0xff]  }
 0x57a   :  { %13507 = vmatprep.subr.bf16.mxu0 %v20623_v23  ;;  %v20674_v23 = vld [vmem:[#allocation7 + $0x7a4] ss:$60 sps:$4 sm:$0xff]  }
 0x57c   :  { %13090 = vmatpush1.bf16.msra.mxu1 %v20618_v26  ;;  %v20677_v26 = vld [vmem:[#allocation7 + $0x200c] ss:$60 sps:$4 sm:$0xff]  }
 0x57d   :  { %13508 = vmatpush1.bf16.msra.mxu0 %v20621_v29  ;;  %13091 = vmatprep.subr.bf16.mxu1 %v20626_v30  ;;  %v20672_v29 = vld [vmem:[#allocation7 + $0x7a0] ss:$60 sps:$4 sm:$0xff]   ;;  %v20675_v30 = vld [vmem:[#allocation7 + $0x2008] ss:$60 sps:$4 sm:$0xff]  }
 0x57e   :  { %13509 = vmatprep.subr.bf16.mxu0 %v20629_v20  ;;  %v20680_v20 = vld [vmem:[#allocation7 + $0x81c] ss:$60 sps:$4 sm:$0xff]  }
 0x580   :  { %13092 = vmatpush1.bf16.msra.mxu1 %v20624_v32  ;;  %v20683_v32 = vld [vmem:[#allocation7 + $0x2084] ss:$60 sps:$4 sm:$0xff]  }
 0x581   :  { %13510 = vmatpush1.bf16.msra.mxu0 %v20627_v11  ;;  %13093 = vmatprep.subr.bf16.mxu1 %v20632_v33  ;;  %v20678_v11 = vld [vmem:[#allocation7 + $0x818] ss:$60 sps:$4 sm:$0xff]   ;;  %v20681_v33 = vld [vmem:[#allocation7 + $0x2080] ss:$60 sps:$4 sm:$0xff]  }
 0x582   :  { %13511 = vmatprep.subr.bf16.mxu0 %v20635_v22  ;;  %v20686_v22 = vld [vmem:[#allocation7 + $0x894] ss:$60 sps:$4 sm:$0xff]  }
 0x584   :  { %13094 = vmatpush1.bf16.msra.mxu1 %v20630_v35  ;;  %v20689_v35 = vld [vmem:[#allocation7 + $0x20fc] ss:$60 sps:$4 sm:$0xff]  }
 0x585   :  { %13512 = vmatpush1.bf16.msra.mxu0 %v20633_v37  ;;  %13095 = vmatprep.subr.bf16.mxu1 %v20638_v38  ;;  %v20684_v37 = vld [vmem:[#allocation7 + $0x890] ss:$60 sps:$4 sm:$0xff]   ;;  %v20687_v38 = vld [vmem:[#allocation7 + $0x20f8] ss:$60 sps:$4 sm:$0xff]  }
 0x586   :  { %13513 = vmatprep.subr.bf16.mxu0 %v20641_v40  ;;  %v20692_v40 = vld [vmem:[#allocation7 + $0x90c] ss:$60 sps:$4 sm:$0xff]  }
 0x588   :  { %13096 = vmatpush1.bf16.msra.mxu1 %v20636_v1  ;;  %v20695_v1 = vld [vmem:[#allocation7 + $0x2174] ss:$60 sps:$4 sm:$0xff]  }
 0x589   :  { %13514 = vmatpush1.bf16.msra.mxu0 %v20639_v46  ;;  %13097 = vmatprep.subr.bf16.mxu1 %v20644_v47  ;;  %v20690_v46 = vld [vmem:[#allocation7 + $0x908] ss:$60 sps:$4 sm:$0xff]   ;;  %v20693_v47 = vld [vmem:[#allocation7 + $0x2170] ss:$60 sps:$4 sm:$0xff]  }
 0x58a   :  { %13515 = vmatprep.subr.bf16.mxu0 %v20647_v48  ;;  %v20698_v48 = vld [vmem:[#allocation7 + $0x984] ss:$60 sps:$4 sm:$0xff]  }
 0x58c   :  { %13098 = vmatpush1.bf16.msra.mxu1 %v20642_v49  ;;  %v20701_v49 = vld [vmem:[#allocation7 + $0x21ec] ss:$60 sps:$4 sm:$0xff]  }
 0x58d   :  { %13516 = vmatpush1.bf16.msra.mxu0 %v20645_v50  ;;  %13099 = vmatprep.subr.bf16.mxu1 %v20650_v52  ;;  %v20696_v50 = vld [vmem:[#allocation7 + $0x980] ss:$60 sps:$4 sm:$0xff]   ;;  %v20699_v52 = vld [vmem:[#allocation7 + $0x21e8] ss:$60 sps:$4 sm:$0xff]  }
 0x58e   :  { %13526 = vmatprep.subr.bf16.mxu0 %v20653_v53  ;;  %v20704_v53 = vld [vmem:[#allocation7 + $0x9fc] ss:$60 sps:$4 sm:$0xff]  }
 0x590   :  { %13518 = vmatmul.mubr.bf16.vlgmr.msra.gmra.mrb[24].mxu0 %v22400_v54  ;;  %13100 = vmatpush1.bf16.msra.mxu1 %v20648_v55  ;;  %v20707_v55 = vld [vmem:[#allocation7 + $0x2264] ss:$60 sps:$4 sm:$0xff]  }
 0x591   :  { %13527 = vmatpush1.bf16.msra.mxu0 %v20651_v57  ;;  %13558 = vmatprep.mubr.bf16.mxu0 %v22402_v59  ;;  %v20702_v57 = vld [vmem:[#allocation7 + $0x9f8] ss:$60 sps:$4 sm:$0xff]  }
 0x592   :  { %13101 = vmatprep.subr.bf16.mxu1 %v20656_v56  ;;  %13528 = vmatprep.subr.bf16.mxu0 %v20659_v58  ;;  %v20705_v56 = vld [vmem:[#allocation7 + $0x2260] ss:$60 sps:$4 sm:$0xff]   ;;  %v20710_v58 = vld [vmem:[#allocation7 + $0xa74] ss:$60 sps:$4 sm:$0xff]  }
 0x594   :  { %13102 = vmatpush1.bf16.msra.mxu1 %v20654_v60  ;;  %v20713_v60 = vld [vmem:[#allocation7 + $0x22dc] ss:$60 sps:$4 sm:$0xff]  }
 0x595   :  { %13529 = vmatpush1.bf16.msra.mxu0 %v20657_v25  ;;  %13103 = vmatprep.subr.bf16.mxu1 %v20662_v5  ;;  %v20708_v25 = vld [vmem:[#allocation7 + $0xa70] ss:$60 sps:$4 sm:$0xff]   ;;  %v20711_v5 = vld [vmem:[#allocation7 + $0x22d8] ss:$60 sps:$4 sm:$0xff]  }
 0x596   :  { %13530 = vmatprep.subr.bf16.mxu0 %v20665_v6  ;;  %v20716_v6 = vld [vmem:[#allocation7 + $0xaec] ss:$60 sps:$4 sm:$0xff]  }
 0x598   :  { %13104 = vmatpush1.bf16.msra.mxu1 %v20660_v7  ;;  %v20719_v7 = vld [vmem:[#allocation7 + $0x2354] ss:$60 sps:$4 sm:$0xff]  }
 0x599   :  { %13531 = vmatpush1.bf16.msra.mxu0 %v20663_v8  ;;  %13105 = vmatprep.subr.bf16.mxu1 %v20668_v10  ;;  %v20714_v8 = vld [vmem:[#allocation7 + $0xae8] ss:$60 sps:$4 sm:$0xff]   ;;  %v20717_v10 = vld [vmem:[#allocation7 + $0x2350] ss:$60 sps:$4 sm:$0xff]  }
 0x59a   :  { %13532 = vmatprep.subr.bf16.mxu0 %v20671_v13  ;;  %v20722_v13 = vld [vmem:[#allocation7 + $0xb64] ss:$60 sps:$4 sm:$0xff]  }
 0x59c   :  { %13106 = vmatpush1.bf16.msra.mxu1 %v20666_v14  ;;  %v20725_v14 = vld [vmem:[#allocation7 + $0x23cc] ss:$60 sps:$4 sm:$0xff]  }
 0x59d   :  { %13533 = vmatpush1.bf16.msra.mxu0 %v20669_v19  ;;  %13116 = vmatprep.subr.bf16.mxu1 %v20674_v23  ;;  %v20720_v19 = vld [vmem:[#allocation7 + $0xb60] ss:$60 sps:$4 sm:$0xff]   ;;  %v20723_v23 = vld [vmem:[#allocation7 + $0x23c8] ss:$60 sps:$4 sm:$0xff]  }
 0x59e   :  { %13534 = vmatprep.subr.bf16.mxu0 %v20677_v26  ;;  %v20728_v26 = vld [vmem:[#allocation7 + $0xbdc] ss:$60 sps:$4 sm:$0xff]  }
 0x59f   :  { %13108 = vmatmul.mubr.bf16.vlgmr.msra.gmra.mrb[24].mxu1 %v22335_v16 }
 0x5a0   :  { %13117 = vmatpush1.bf16.msra.mxu1 %v20672_v29  ;;  %13148 = vmatprep.mubr.bf16.mxu1 %v22346_v34  ;;  %v20731_v29 = vld [vmem:[#allocation7 + $0x2444] ss:$60 sps:$4 sm:$0xff]  }
 0x5a1   :  { %13535 = vmatpush1.bf16.msra.mxu0 %v20675_v30  ;;  %13118 = vmatprep.subr.bf16.mxu1 %v20680_v20  ;;  %v20726_v30 = vld [vmem:[#allocation7 + $0xbd8] ss:$60 sps:$4 sm:$0xff]   ;;  %v20729_v20 = vld [vmem:[#allocation7 + $0x2440] ss:$60 sps:$4 sm:$0xff]  }
 0x5a2   :  { %13536 = vmatprep.subr.bf16.mxu0 %v20683_v32  ;;  %v20734_v32 = vld [vmem:[#allocation7 + $0xc54] ss:$60 sps:$4 sm:$0xff]  }
 0x5a4   :  { %13119 = vmatpush1.bf16.msra.mxu1 %v20678_v11  ;;  %v20737_v11 = vld [vmem:[#allocation7 + $0x24bc] ss:$60 sps:$4 sm:$0xff]  }
 0x5a5   :  { %13537 = vmatpush1.bf16.msra.mxu0 %v20681_v33  ;;  %13120 = vmatprep.subr.bf16.mxu1 %v20686_v22  ;;  %v20732_v33 = vld [vmem:[#allocation7 + $0xc50] ss:$60 sps:$4 sm:$0xff]   ;;  %v20735_v22 = vld [vmem:[#allocation7 + $0x24b8] ss:$60 sps:$4 sm:$0xff]  }
 0x5a6   :  { %13538 = vmatprep.subr.bf16.mxu0 %v20689_v35  ;;  %v20740_v35 = vld [vmem:[#allocation7 + $0xccc] ss:$60 sps:$4 sm:$0xff]  }
 0x5a8   :  { %13121 = vmatpush1.bf16.msra.mxu1 %v20684_v37  ;;  %v20743_v37 = vld [vmem:[#allocation7 + $0x2534] ss:$60 sps:$4 sm:$0xff]  }
 0x5a9   :  { %13539 = vmatpush1.bf16.msra.mxu0 %v20687_v38  ;;  %13122 = vmatprep.subr.bf16.mxu1 %v20692_v40  ;;  %v20738_v38 = vld [vmem:[#allocation7 + $0xcc8] ss:$60 sps:$4 sm:$0xff]   ;;  %v20741_v40 = vld [vmem:[#allocation7 + $0x2530] ss:$60 sps:$4 sm:$0xff]  }
 0x5aa   :  { %13540 = vmatprep.subr.bf16.mxu0 %v20695_v1  ;;  %v20746_v1 = vld [vmem:[#allocation7 + $0xd44] ss:$60 sps:$4 sm:$0xff]  }
 0x5ac   :  { %13123 = vmatpush1.bf16.msra.mxu1 %v20690_v46  ;;  %v20749_v46 = vld [vmem:[#allocation7 + $0x25ac] ss:$60 sps:$4 sm:$0xff]  }
 0x5ad   :  { %13541 = vmatpush1.bf16.msra.mxu0 %v20693_v47  ;;  %13124 = vmatprep.subr.bf16.mxu1 %v20698_v48  ;;  %v20744_v47 = vld [vmem:[#allocation7 + $0xd40] ss:$60 sps:$4 sm:$0xff]   ;;  %v20747_v48 = vld [vmem:[#allocation7 + $0x25a8] ss:$60 sps:$4 sm:$0xff]  }
 0x5ae   :  { %13542 = vmatprep.subr.bf16.mxu0 %v20701_v49  ;;  %v20752_v49 = vld [vmem:[#allocation7 + $0xdbc] ss:$60 sps:$4 sm:$0xff]  }
 0x5b0   :  { %13125 = vmatpush1.bf16.msra.mxu1 %v20696_v50  ;;  %v20755_v50 = vld [vmem:[#allocation7 + $0x2624] ss:$60 sps:$4 sm:$0xff]  }
 0x5b1   :  { %13543 = vmatpush1.bf16.msra.mxu0 %v20699_v52  ;;  %13126 = vmatprep.subr.bf16.mxu1 %v20704_v53  ;;  %v20750_v52 = vld [vmem:[#allocation7 + $0xdb8] ss:$60 sps:$4 sm:$0xff]   ;;  %v20753_v53 = vld [vmem:[#allocation7 + $0x2620] ss:$60 sps:$4 sm:$0xff]  }
 0x5b2   :  { %13544 = vmatprep.subr.bf16.mxu0 %v20707_v55  ;;  %v20758_v55 = vld [vmem:[#allocation7 + $0xe34] ss:$60 sps:$4 sm:$0xff]  }
 0x5b4   :  { %13127 = vmatpush1.bf16.msra.mxu1 %v20702_v57  ;;  %v20761_v57 = vld [vmem:[#allocation7 + $0x269c] ss:$60 sps:$4 sm:$0xff]  }
 0x5b5   :  { %13545 = vmatpush1.bf16.msra.mxu0 %v20705_v56  ;;  %13128 = vmatprep.subr.bf16.mxu1 %v20710_v58  ;;  %v20756_v56 = vld [vmem:[#allocation7 + $0xe30] ss:$60 sps:$4 sm:$0xff]   ;;  %v20759_v58 = vld [vmem:[#allocation7 + $0x2698] ss:$60 sps:$4 sm:$0xff]  }
 0x5b6   :  { %13546 = vmatprep.subr.bf16.mxu0 %v20713_v60  ;;  %v20764_v60 = vld [vmem:[#allocation7 + $0xeac] ss:$60 sps:$4 sm:$0xff]  }
 0x5b8   :  { %13129 = vmatpush1.bf16.msra.mxu1 %v20708_v25  ;;  %v20767_v25 = vld [vmem:[#allocation7 + $0x2714] ss:$60 sps:$4 sm:$0xff]  }
 0x5b9   :  { %13547 = vmatpush1.bf16.msra.mxu0 %v20711_v5  ;;  %13130 = vmatprep.subr.bf16.mxu1 %v20716_v6  ;;  %v20762_v5 = vld [vmem:[#allocation7 + $0xea8] ss:$60 sps:$4 sm:$0xff]   ;;  %v20765_v6 = vld [vmem:[#allocation7 + $0x2710] ss:$60 sps:$4 sm:$0xff]  }
 0x5ba   :  { %13548 = vmatprep.subr.bf16.mxu0 %v20719_v7  ;;  %v20770_v7 = vld [vmem:[#allocation7 + $0xf24] ss:$60 sps:$4 sm:$0xff]  }
 0x5bc   :  { %13131 = vmatpush1.bf16.msra.mxu1 %v20714_v8  ;;  %v20773_v8 = vld [vmem:[#allocation7 + $0x278c] ss:$60 sps:$4 sm:$0xff]  }
 0x5bd   :  { %13549 = vmatpush1.bf16.msra.mxu0 %v20717_v10  ;;  %13132 = vmatprep.subr.bf16.mxu1 %v20722_v13  ;;  %v20768_v10 = vld [vmem:[#allocation7 + $0xf20] ss:$60 sps:$4 sm:$0xff]   ;;  %v20771_v13 = vld [vmem:[#allocation7 + $0x2788] ss:$60 sps:$4 sm:$0xff]  }
 0x5be   :  { %13550 = vmatprep.subr.bf16.mxu0 %v20725_v14  ;;  %v20776_v14 = vld [vmem:[#allocation7 + $0xf9c] ss:$60 sps:$4 sm:$0xff]  }
 0x5c0   :  { %13133 = vmatpush1.bf16.msra.mxu1 %v20720_v19  ;;  %v20779_v19 = vld [vmem:[#allocation7 + $0x2804] ss:$60 sps:$4 sm:$0xff]  }
 0x5c1   :  { %13551 = vmatpush1.bf16.msra.mxu0 %v20723_v23  ;;  %13134 = vmatprep.subr.bf16.mxu1 %v20728_v26  ;;  %v20774_v23 = vld [vmem:[#allocation7 + $0xf98] ss:$60 sps:$4 sm:$0xff]   ;;  %v20777_v26 = vld [vmem:[#allocation7 + $0x2800] ss:$60 sps:$4 sm:$0xff]  }
 0x5c2   :  { %13552 = vmatprep.subr.bf16.mxu0 %v20731_v29  ;;  %v20782_v29 = vld [vmem:[#allocation7 + $0x1014] ss:$60 sps:$4 sm:$0xff]  }
 0x5c4   :  { %13135 = vmatpush1.bf16.msra.mxu1 %v20726_v30  ;;  %v20785_v30 = vld [vmem:[#allocation7 + $0x287c] ss:$60 sps:$4 sm:$0xff]  }
 0x5c5   :  { %13553 = vmatpush1.bf16.msra.mxu0 %v20729_v20  ;;  %13136 = vmatprep.subr.bf16.mxu1 %v20734_v32  ;;  %v20780_v20 = vld [vmem:[#allocation7 + $0x1010] ss:$60 sps:$4 sm:$0xff]   ;;  %v20783_v32 = vld [vmem:[#allocation7 + $0x2878] ss:$60 sps:$4 sm:$0xff]  }
 0x5c6   :  { %13554 = vmatprep.subr.bf16.mxu0 %v20737_v11  ;;  %v20788_v11 = vld [vmem:[#allocation7 + $0x108c] ss:$60 sps:$4 sm:$0xff]  }
 0x5c8   :  { %13137 = vmatpush1.bf16.msra.mxu1 %v20732_v33  ;;  %v20791_v33 = vld [vmem:[#allocation7 + $0x28f4] ss:$60 sps:$4 sm:$0xff]  }
 0x5c9   :  { %13555 = vmatpush1.bf16.msra.mxu0 %v20735_v22  ;;  %13138 = vmatprep.subr.bf16.mxu1 %v20740_v35  ;;  %v20786_v22 = vld [vmem:[#allocation7 + $0x1088] ss:$60 sps:$4 sm:$0xff]   ;;  %v20789_v35 = vld [vmem:[#allocation7 + $0x28f0] ss:$60 sps:$4 sm:$0xff]  }
 0x5ca   :  { %13556 = vmatprep.subr.bf16.mxu0 %v20743_v37  ;;  %v20794_v37 = vld [vmem:[#allocation7 + $0x1104] ss:$60 sps:$4 sm:$0xff]  }
 0x5cc   :  { %13139 = vmatpush1.bf16.msra.mxu1 %v20738_v38  ;;  %v20797_v38 = vld [vmem:[#allocation7 + $0x296c] ss:$60 sps:$4 sm:$0xff]  }
 0x5cd   :  { %13557 = vmatpush1.bf16.msra.mxu0 %v20741_v40  ;;  %13140 = vmatprep.subr.bf16.mxu1 %v20746_v1  ;;  %v20792_v40 = vld [vmem:[#allocation7 + $0x1100] ss:$60 sps:$4 sm:$0xff]   ;;  %v20795_v1 = vld [vmem:[#allocation7 + $0x2968] ss:$60 sps:$4 sm:$0xff]  }
 0x5ce   :  { %13567 = vmatprep.subr.bf16.mxu0 %v20749_v46  ;;  %v20800_v46 = vld [vmem:[#allocation7 + $0x117c] ss:$60 sps:$4 sm:$0xff]  }
 0x5d0   :  { %13559 = vmatmul.mubr.bf16.vlgmr.msra.gmra.mrb[24].mxu0 %v22418_v39  ;;  %13141 = vmatpush1.bf16.msra.mxu1 %v20744_v47  ;;  %v20803_v47 = vld [vmem:[#allocation7 + $0x29e4] ss:$60 sps:$4 sm:$0xff]  }
 0x5d1   :  { %13568 = vmatpush1.bf16.msra.mxu0 %v20747_v48  ;;  %13599 = vmatprep.mubr.bf16.mxu0 %v22420_v12  ;;  %v20798_v48 = vld [vmem:[#allocation7 + $0x1178] ss:$60 sps:$4 sm:$0xff]  }
 0x5d2   :  { %13142 = vmatprep.subr.bf16.mxu1 %v20752_v49  ;;  %13569 = vmatprep.subr.bf16.mxu0 %v20755_v50  ;;  %v20801_v49 = vld [vmem:[#allocation7 + $0x29e0] ss:$60 sps:$4 sm:$0xff]   ;;  %v20806_v50 = vld [vmem:[#allocation7 + $0x11f4] ss:$60 sps:$4 sm:$0xff]  }
 0x5d4   :  { %13143 = vmatpush1.bf16.msra.mxu1 %v20750_v52  ;;  %v20809_v52 = vld [vmem:[#allocation7 + $0x2a5c] ss:$60 sps:$4 sm:$0xff]  }
 0x5d5   :  { %13570 = vmatpush1.bf16.msra.mxu0 %v20753_v53  ;;  %13144 = vmatprep.subr.bf16.mxu1 %v20758_v55  ;;  %v20804_v53 = vld [vmem:[#allocation7 + $0x11f0] ss:$60 sps:$4 sm:$0xff]   ;;  %v20807_v55 = vld [vmem:[#allocation7 + $0x2a58] ss:$60 sps:$4 sm:$0xff]  }
 0x5d6   :  { %13571 = vmatprep.subr.bf16.mxu0 %v20761_v57  ;;  %v20812_v57 = vld [vmem:[#allocation7 + $0x126c] ss:$60 sps:$4 sm:$0xff]  }
 0x5d8   :  { %13145 = vmatpush1.bf16.msra.mxu1 %v20756_v56  ;;  %v20815_v56 = vld [vmem:[#allocation7 + $0x2ad4] ss:$60 sps:$4 sm:$0xff]  }
 0x5d9   :  { %13572 = vmatpush1.bf16.msra.mxu0 %v20759_v58  ;;  %13146 = vmatprep.subr.bf16.mxu1 %v20764_v60  ;;  %v20810_v58 = vld [vmem:[#allocation7 + $0x1268] ss:$60 sps:$4 sm:$0xff]   ;;  %v20813_v60 = vld [vmem:[#allocation7 + $0x2ad0] ss:$60 sps:$4 sm:$0xff]  }
 0x5da   :  { %13573 = vmatprep.subr.bf16.mxu0 %v20767_v25  ;;  %v20818_v25 = vld [vmem:[#allocation7 + $0x12e4] ss:$60 sps:$4 sm:$0xff]  }
 0x5dc   :  { %13147 = vmatpush1.bf16.msra.mxu1 %v20762_v5  ;;  %v20821_v5 = vld [vmem:[#allocation7 + $0x2b4c] ss:$60 sps:$4 sm:$0xff]  }
 0x5dd   :  { %13574 = vmatpush1.bf16.msra.mxu0 %v20765_v6  ;;  %13157 = vmatprep.subr.bf16.mxu1 %v20770_v7  ;;  %v20816_v6 = vld [vmem:[#allocation7 + $0x12e0] ss:$60 sps:$4 sm:$0xff]   ;;  %v20819_v7 = vld [vmem:[#allocation7 + $0x2b48] ss:$60 sps:$4 sm:$0xff]  }
 0x5de   :  { %13575 = vmatprep.subr.bf16.mxu0 %v20773_v8  ;;  %v20824_v8 = vld [vmem:[#allocation7 + $0x135c] ss:$60 sps:$4 sm:$0xff]  }
 0x5df   :  { %13149 = vmatmul.mubr.bf16.vlgmr.msra.gmra.mrb[24].mxu1 %v22377_v36 }
 0x5e0   :  { %13158 = vmatpush1.bf16.msra.mxu1 %v20768_v10  ;;  %13189 = vmatprep.mubr.bf16.mxu1 %v22361_v3  ;;  %v20827_v10 = vld [vmem:[#allocation7 + $0x2bc4] ss:$60 sps:$4 sm:$0xff]  }
 0x5e1   :  { %13576 = vmatpush1.bf16.msra.mxu0 %v20771_v13  ;;  %13159 = vmatprep.subr.bf16.mxu1 %v20776_v14  ;;  %v20822_v13 = vld [vmem:[#allocation7 + $0x1358] ss:$60 sps:$4 sm:$0xff]   ;;  %v20825_v14 = vld [vmem:[#allocation7 + $0x2bc0] ss:$60 sps:$4 sm:$0xff]  }
 0x5e2   :  { %13577 = vmatprep.subr.bf16.mxu0 %v20779_v19  ;;  %v20830_v19 = vld [vmem:[#allocation7 + $0x13d4] ss:$60 sps:$4 sm:$0xff]  }
 0x5e4   :  { %13160 = vmatpush1.bf16.msra.mxu1 %v20774_v23  ;;  %v20833_v23 = vld [vmem:[#allocation7 + $0x2c3c] ss:$60 sps:$4 sm:$0xff]  }
 0x5e5   :  { %13578 = vmatpush1.bf16.msra.mxu0 %v20777_v26  ;;  %13161 = vmatprep.subr.bf16.mxu1 %v20782_v29  ;;  %v20828_v26 = vld [vmem:[#allocation7 + $0x13d0] ss:$60 sps:$4 sm:$0xff]   ;;  %v20831_v29 = vld [vmem:[#allocation7 + $0x2c38] ss:$60 sps:$4 sm:$0xff]  }
 0x5e6   :  { %13579 = vmatprep.subr.bf16.mxu0 %v20785_v30  ;;  %v20836_v30 = vld [vmem:[#allocation7 + $0x144c] ss:$60 sps:$4 sm:$0xff]  }
 0x5e8   :  { %13162 = vmatpush1.bf16.msra.mxu1 %v20780_v20  ;;  %v20839_v20 = vld [vmem:[#allocation7 + $0x2cb4] ss:$60 sps:$4 sm:$0xff]  }
 0x5e9   :  { %13580 = vmatpush1.bf16.msra.mxu0 %v20783_v32  ;;  %13163 = vmatprep.subr.bf16.mxu1 %v20788_v11  ;;  %v20834_v32 = vld [vmem:[#allocation7 + $0x1448] ss:$60 sps:$4 sm:$0xff]   ;;  %v20837_v11 = vld [vmem:[#allocation7 + $0x2cb0] ss:$60 sps:$4 sm:$0xff]  }
 0x5ea   :  { %13581 = vmatprep.subr.bf16.mxu0 %v20791_v33  ;;  %v20842_v33 = vld [vmem:[#allocation7 + $0x14c4] ss:$60 sps:$4 sm:$0xff]  }
 0x5ec   :  { %13164 = vmatpush1.bf16.msra.mxu1 %v20786_v22  ;;  %v20845_v22 = vld [vmem:[#allocation7 + $0x2d2c] ss:$60 sps:$4 sm:$0xff]  }
 0x5ed   :  { %13582 = vmatpush1.bf16.msra.mxu0 %v20789_v35  ;;  %13165 = vmatprep.subr.bf16.mxu1 %v20794_v37  ;;  %v20840_v35 = vld [vmem:[#allocation7 + $0x14c0] ss:$60 sps:$4 sm:$0xff]   ;;  %v20843_v37 = vld [vmem:[#allocation7 + $0x2d28] ss:$60 sps:$4 sm:$0xff]  }
 0x5ee   :  { %13583 = vmatprep.subr.bf16.mxu0 %v20797_v38  ;;  %v20848_v38 = vld [vmem:[#allocation7 + $0x153c] ss:$60 sps:$4 sm:$0xff]  }
 0x5f0   :  { %13166 = vmatpush1.bf16.msra.mxu1 %v20792_v40  ;;  %v20851_v40 = vld [vmem:[#allocation7 + $0x2da4] ss:$60 sps:$4 sm:$0xff]  }
 0x5f1   :  { %13584 = vmatpush1.bf16.msra.mxu0 %v20795_v1  ;;  %13167 = vmatprep.subr.bf16.mxu1 %v20800_v46  ;;  %v20846_v1 = vld [vmem:[#allocation7 + $0x1538] ss:$60 sps:$4 sm:$0xff]   ;;  %v20849_v46 = vld [vmem:[#allocation7 + $0x2da0] ss:$60 sps:$4 sm:$0xff]  }
 0x5f2   :  { %13585 = vmatprep.subr.bf16.mxu0 %v20803_v47  ;;  %v20854_v47 = vld [vmem:[#allocation7 + $0x15b4] ss:$60 sps:$4 sm:$0xff]  }
 0x5f4   :  { %13168 = vmatpush1.bf16.msra.mxu1 %v20798_v48  ;;  %v20857_v48 = vld [vmem:[#allocation7 + $0x2e1c] ss:$60 sps:$4 sm:$0xff]  }
 0x5f5   :  { %13586 = vmatpush1.bf16.msra.mxu0 %v20801_v49  ;;  %13169 = vmatprep.subr.bf16.mxu1 %v20806_v50  ;;  %v20852_v49 = vld [vmem:[#allocation7 + $0x15b0] ss:$60 sps:$4 sm:$0xff]   ;;  %v20855_v50 = vld [vmem:[#allocation7 + $0x2e18] ss:$60 sps:$4 sm:$0xff]  }
 0x5f6   :  { %13587 = vmatprep.subr.bf16.mxu0 %v20809_v52  ;;  %v20860_v52 = vld [vmem:[#allocation7 + $0x162c] ss:$60 sps:$4 sm:$0xff]  }
 0x5f8   :  { %13170 = vmatpush1.bf16.msra.mxu1 %v20804_v53  ;;  %v20863_v53 = vld [vmem:[#allocation7 + $0x2e94] ss:$60 sps:$4 sm:$0xff]  }
 0x5f9   :  { %13588 = vmatpush1.bf16.msra.mxu0 %v20807_v55  ;;  %13171 = vmatprep.subr.bf16.mxu1 %v20812_v57  ;;  %v20858_v55 = vld [vmem:[#allocation7 + $0x1628] ss:$60 sps:$4 sm:$0xff]   ;;  %v20861_v57 = vld [vmem:[#allocation7 + $0x2e90] ss:$60 sps:$4 sm:$0xff]  }
 0x5fa   :  { %13589 = vmatprep.subr.bf16.mxu0 %v20815_v56  ;;  %v20866_v56 = vld [vmem:[#allocation7 + $0x16a4] ss:$60 sps:$4 sm:$0xff]  }
 0x5fc   :  { %13172 = vmatpush1.bf16.msra.mxu1 %v20810_v58  ;;  %v20869_v58 = vld [vmem:[#allocation7 + $0x2f0c] ss:$60 sps:$4 sm:$0xff]  }
 0x5fd   :  { %13590 = vmatpush1.bf16.msra.mxu0 %v20813_v60  ;;  %13173 = vmatprep.subr.bf16.mxu1 %v20818_v25  ;;  %v20864_v60 = vld [vmem:[#allocation7 + $0x16a0] ss:$60 sps:$4 sm:$0xff]   ;;  %v20867_v25 = vld [vmem:[#allocation7 + $0x2f08] ss:$60 sps:$4 sm:$0xff]  }
 0x5fe   :  { %13591 = vmatprep.subr.bf16.mxu0 %v20821_v5  ;;  %v20872_v5 = vld [vmem:[#allocation7 + $0x171c] ss:$60 sps:$4 sm:$0xff]  }
 0x600   :  { %13174 = vmatpush1.bf16.msra.mxu1 %v20816_v6  ;;  %v20875_v6 = vld [vmem:[#allocation7 + $0x2f84] ss:$60 sps:$4 sm:$0xff]  }
 0x601   :  { %13592 = vmatpush1.bf16.msra.mxu0 %v20819_v7  ;;  %13175 = vmatprep.subr.bf16.mxu1 %v20824_v8  ;;  %v20870_v7 = vld [vmem:[#allocation7 + $0x1718] ss:$60 sps:$4 sm:$0xff]   ;;  %v20873_v8 = vld [vmem:[#allocation7 + $0x2f80] ss:$60 sps:$4 sm:$0xff]  }
 0x602   :  { %13593 = vmatprep.subr.bf16.mxu0 %v20827_v10  ;;  %v20878_v10 = vld [vmem:[#allocation7 + $0x1794] ss:$60 sps:$4 sm:$0xff]  }
 0x604   :  { %13176 = vmatpush1.bf16.msra.mxu1 %v20822_v13  ;;  %v20881_v13 = vld [vmem:[#allocation7 + $0x2ffc] ss:$60 sps:$4 sm:$0xff]  }
 0x605   :  { %13594 = vmatpush1.bf16.msra.mxu0 %v20825_v14  ;;  %13177 = vmatprep.subr.bf16.mxu1 %v20830_v19  ;;  %v20876_v14 = vld [vmem:[#allocation7 + $0x1790] ss:$60 sps:$4 sm:$0xff]   ;;  %v20879_v19 = vld [vmem:[#allocation7 + $0x2ff8] ss:$60 sps:$4 sm:$0xff]  }
 0x606   :  { %13595 = vmatprep.subr.bf16.mxu0 %v20833_v23  ;;  %v20884_v23 = vld [vmem:[#allocation7 + $0x180c] ss:$60 sps:$4 sm:$0xff]  }
 0x608   :  { %13178 = vmatpush1.bf16.msra.mxu1 %v20828_v26  ;;  %v20887_v26 = vld [vmem:[#allocation7 + $0x3074] ss:$60 sps:$4 sm:$0xff]  }
 0x609   :  { %13596 = vmatpush1.bf16.msra.mxu0 %v20831_v29  ;;  %13179 = vmatprep.subr.bf16.mxu1 %v20836_v30  ;;  %v20882_v29 = vld [vmem:[#allocation7 + $0x1808] ss:$60 sps:$4 sm:$0xff]   ;;  %v20885_v30 = vld [vmem:[#allocation7 + $0x3070] ss:$60 sps:$4 sm:$0xff]  }
 0x60a   :  { %13597 = vmatprep.subr.bf16.mxu0 %v20839_v20  ;;  %v20890_v20 = vld [vmem:[#allocation7 + $0x1884] ss:$60 sps:$4 sm:$0xff]  }
 0x60c   :  { %13180 = vmatpush1.bf16.msra.mxu1 %v20834_v32  ;;  %v20893_v32 = vld [vmem:[#allocation7 + $0x30ec] ss:$60 sps:$4 sm:$0xff]  }
 0x60d   :  { %13598 = vmatpush1.bf16.msra.mxu0 %v20837_v11  ;;  %13181 = vmatprep.subr.bf16.mxu1 %v20842_v33  ;;  %v20888_v11 = vld [vmem:[#allocation7 + $0x1880] ss:$60 sps:$4 sm:$0xff]   ;;  %v20891_v33 = vld [vmem:[#allocation7 + $0x30e8] ss:$60 sps:$4 sm:$0xff]  }
 0x60e   :  { %13608 = vmatprep.subr.bf16.mxu0 %v20845_v22  ;;  %v20896_v22 = vld [vmem:[#allocation7 + $0x18fc] ss:$60 sps:$4 sm:$0xff]  }
 0x610   :  { %13600 = vmatmul.mubr.bf16.vlgmr.msra.gmra.mrb[24].mxu0 %v22434_v27  ;;  %13182 = vmatpush1.bf16.msra.mxu1 %v20840_v35  ;;  %v20899_v35 = vld [vmem:[#allocation7 + $0x3164] ss:$60 sps:$4 sm:$0xff]  }
 0x611   :  { %13609 = vmatpush1.bf16.msra.mxu0 %v20843_v37  ;;  %13640 = vmatprep.mubr.bf16.mxu0 %v22436_v28  ;;  %v20894_v37 = vld [vmem:[#allocation7 + $0x18f8] ss:$60 sps:$4 sm:$0xff]  }
 0x612   :  { %13183 = vmatprep.subr.bf16.mxu1 %v20848_v38  ;;  %13610 = vmatprep.subr.bf16.mxu0 %v20851_v40  ;;  %v20897_v38 = vld [vmem:[#allocation7 + $0x3160] ss:$60 sps:$4 sm:$0xff]   ;;  %v20902_v40 = vld [vmem:[#allocation7 + $0x1974] ss:$60 sps:$4 sm:$0xff]  }
 0x614   :  { %13184 = vmatpush1.bf16.msra.mxu1 %v20846_v1 }
 0x615   :  { %13611 = vmatpush1.bf16.msra.mxu0 %v20849_v46  ;;  %13185 = vmatprep.subr.bf16.mxu1 %v20854_v47  ;;  %v20905_v46 = vld [vmem:[#allocation7 + $0x31dc] ss:$60 sps:$4 sm:$0xff]  }
 0x616   :  { %13612 = vmatprep.subr.bf16.mxu0 %v20857_v48 }
 0x618   :  { %13186 = vmatpush1.bf16.msra.mxu1 %v20852_v49  ;;  %v20900_v49 = vld [vmem:[#allocation7 + $0x1970] ss:$60 sps:$4 sm:$0xff]  }
 0x619   :  { %13613 = vmatpush1.bf16.msra.mxu0 %v20855_v50  ;;  %13187 = vmatprep.subr.bf16.mxu1 %v20860_v52  ;;  %v20903_v52 = vld [vmem:[#allocation7 + $0x31d8] ss:$60 sps:$4 sm:$0xff]  }
 0x61a   :  { %13614 = vmatprep.subr.bf16.mxu0 %v20863_v53  ;;  %v20908_v53 = vld [vmem:[#allocation7 + $0x19ec] ss:$60 sps:$4 sm:$0xff]  }
 0x61c   :  { %13188 = vmatpush1.bf16.msra.mxu1 %v20858_v55  ;;  %v20911_v55 = vld [vmem:[#allocation7 + $0x3254] ss:$60 sps:$4 sm:$0xff]  }
 0x61d   :  { %13615 = vmatpush1.bf16.msra.mxu0 %v20861_v57  ;;  %13198 = vmatprep.subr.bf16.mxu1 %v20866_v56  ;;  %v20906_v57 = vld [vmem:[#allocation7 + $0x19e8] ss:$60 sps:$4 sm:$0xff]   ;;  %v20909_v56 = vld [vmem:[#allocation7 + $0x3250] ss:$60 sps:$4 sm:$0xff]  }
 0x61e   :  { %13616 = vmatprep.subr.bf16.mxu0 %v20869_v58  ;;  %v20914_v58 = vld [vmem:[#allocation7 + $0x1a64] ss:$60 sps:$4 sm:$0xff]  }
 0x61f   :  { %13190 = vmatmul.mubr.bf16.vlgmr.msra.gmra.mrb[24].mxu1 %v22359_v63 }
 0x620   :  { %13199 = vmatpush1.bf16.msra.mxu1 %v20864_v60  ;;  %13230 = vmatprep.mubr.bf16.mxu1 %v22380_v41  ;;  %v20917_v60 = vld [vmem:[#allocation7 + $0x32cc] ss:$60 sps:$4 sm:$0xff]  }
 0x621   :  { %13617 = vmatpush1.bf16.msra.mxu0 %v20867_v25  ;;  %13200 = vmatprep.subr.bf16.mxu1 %v20872_v5  ;;  %v20912_v25 = vld [vmem:[#allocation7 + $0x1a60] ss:$60 sps:$4 sm:$0xff]   ;;  %v20915_v5 = vld [vmem:[#allocation7 + $0x32c8] ss:$60 sps:$4 sm:$0xff]  }
 0x622   :  { %13618 = vmatprep.subr.bf16.mxu0 %v20875_v6  ;;  %v20920_v6 = vld [vmem:[#allocation7 + $0x1adc] ss:$60 sps:$4 sm:$0xff]  }
 0x624   :  { %13201 = vmatpush1.bf16.msra.mxu1 %v20870_v7  ;;  %v20923_v7 = vld [vmem:[#allocation7 + $0x3344] ss:$60 sps:$4 sm:$0xff]  }
 0x625   :  { %13619 = vmatpush1.bf16.msra.mxu0 %v20873_v8  ;;  %13202 = vmatprep.subr.bf16.mxu1 %v20878_v10  ;;  %v20918_v8 = vld [vmem:[#allocation7 + $0x1ad8] ss:$60 sps:$4 sm:$0xff]   ;;  %v20921_v10 = vld [vmem:[#allocation7 + $0x3340] ss:$60 sps:$4 sm:$0xff]  }
 0x626   :  { %13620 = vmatprep.subr.bf16.mxu0 %v20881_v13  ;;  %v20926_v13 = vld [vmem:[#allocation7 + $0x1b54] ss:$60 sps:$4 sm:$0xff]  }
 0x628   :  { %13203 = vmatpush1.bf16.msra.mxu1 %v20876_v14  ;;  %v20929_v14 = vld [vmem:[#allocation7 + $0x33bc] ss:$60 sps:$4 sm:$0xff]  }
 0x629   :  { %13621 = vmatpush1.bf16.msra.mxu0 %v20879_v19  ;;  %13204 = vmatprep.subr.bf16.mxu1 %v20884_v23  ;;  %v20924_v19 = vld [vmem:[#allocation7 + $0x1b50] ss:$60 sps:$4 sm:$0xff]   ;;  %v20927_v23 = vld [vmem:[#allocation7 + $0x33b8] ss:$60 sps:$4 sm:$0xff]  }
 0x62a   :  { %13622 = vmatprep.subr.bf16.mxu0 %v20887_v26  ;;  %v20932_v26 = vld [vmem:[#allocation7 + $0x1bcc] ss:$60 sps:$4 sm:$0xff]  }
 0x62c   :  { %13205 = vmatpush1.bf16.msra.mxu1 %v20882_v29  ;;  %v20935_v29 = vld [vmem:[#allocation7 + $0x3434] ss:$60 sps:$4 sm:$0xff]  }
 0x62d   :  { %13623 = vmatpush1.bf16.msra.mxu0 %v20885_v30  ;;  %13206 = vmatprep.subr.bf16.mxu1 %v20890_v20  ;;  %v20930_v30 = vld [vmem:[#allocation7 + $0x1bc8] ss:$60 sps:$4 sm:$0xff]   ;;  %v20933_v20 = vld [vmem:[#allocation7 + $0x3430] ss:$60 sps:$4 sm:$0xff]  }
 0x62e   :  { %13624 = vmatprep.subr.bf16.mxu0 %v20893_v32  ;;  %v20938_v32 = vld [vmem:[#allocation7 + $0x1c44] ss:$60 sps:$4 sm:$0xff]  }
 0x630   :  { %13207 = vmatpush1.bf16.msra.mxu1 %v20888_v11  ;;  %v20939_v11 = vld [vmem:[#allocation7 + $0x3f8] ss:$60 sps:$4 sm:$0xff]  }
 0x631   :  { %13625 = vmatpush1.bf16.msra.mxu0 %v20891_v33  ;;  %13208 = vmatprep.subr.bf16.mxu1 %v20896_v22  ;;  %v20936_v33 = vld [vmem:[#allocation7 + $0x1c40] ss:$60 sps:$4 sm:$0xff]   ;;  %v20940_v22 = vld [vmem:[#allocation7 + $0x38] ss:$60 sps:$4 sm:$0xff]  }
 0x632   :  { %v22523_v1 = vpop.f32.mrb[20].mxu1  ;;  %13626 = vmatprep.subr.bf16.mxu0 %v20899_v35  ;;  %v20943_v35 = vld [vmem:[#allocation7 + $0x1cbc] ss:$60 sps:$4 sm:$0xff]  }
 0x633   :  { %v22525_v47 = vpop.f32.mrb[21].mxu1 }
 0x634   :  { %v12785_v48 = vpop.f32.mrb[22].mxu1  ;;  %13209 = vmatpush1.bf16.msra.mxu1 %v20894_v37  ;;  %v20944_v37 = vld [vmem:[#allocation7 + $0x470] ss:$60 sps:$4 sm:$0xff]  }
 0x635   :  { %13627 = vmatpush1.bf16.msra.mxu0 %v20897_v38  ;;  %v12786_v50 = vpop.f32.mrb[23].mxu1  ;;  %13210 = vmatprep.subr.bf16.mxu1 %v20902_v40  ;;  %v20941_v38 = vld [vmem:[#allocation7 + $0x1cb8] ss:$60 sps:$4 sm:$0xff]   ;;  %v20945_v40 = vld [vmem:[#allocation7 + $0xb0] ss:$60 sps:$4 sm:$0xff]  }
 0x636   :  { %13628 = vmatprep.subr.bf16.mxu0 %v20905_v46  ;;  %v20948_v46 = vld [vmem:[#allocation7 + $0x1d34] ss:$60 sps:$4 sm:$0xff]   ;;  %v20949_v48 = vld [vmem:[#allocation7 + $0x4e8] ss:$60 sps:$4 sm:$0xff]  }
 0x637   :  { %v20950_v50 = vld [vmem:[#allocation7 + $0x128] ss:$60 sps:$4 sm:$0xff]  }
 0x638   :  { %13211 = vmatpush1.bf16.msra.mxu1 %v20900_v49  ;;  %v20946_v49 = vld [vmem:[#allocation7 + $0x1d30] ss:$60 sps:$4 sm:$0xff]  }
 0x639   :  { %13629 = vmatpush1.bf16.msra.mxu0 %v20903_v52  ;;  %13212 = vmatprep.subr.bf16.mxu1 %v20908_v53  ;;  %v20953_v52 = vld [vmem:[#allocation7 + $0x1dac] ss:$60 sps:$4 sm:$0xff]   ;;  %v20954_v53 = vld [vmem:[#allocation7 + $0x560] ss:$60 sps:$4 sm:$0xff]  }
 0x63a   :  { %13630 = vmatprep.subr.bf16.mxu0 %v20911_v55  ;;  %v20951_v55 = vld [vmem:[#allocation7 + $0x1da8] ss:$60 sps:$4 sm:$0xff]  }
 0x63c   :  { %13213 = vmatpush1.bf16.msra.mxu1 %v20906_v57  ;;  %v20955_v57 = vld [vmem:[#allocation7 + $0x1a0] ss:$60 sps:$4 sm:$0xff]  }
 0x63d   :  { %13631 = vmatpush1.bf16.msra.mxu0 %v20909_v56  ;;  %13214 = vmatprep.subr.bf16.mxu1 %v20914_v58  ;;  %v20958_v56 = vld [vmem:[#allocation7 + $0x1e24] ss:$60 sps:$4 sm:$0xff]   ;;  %v20959_v58 = vld [vmem:[#allocation7 + $0x5d8] ss:$60 sps:$4 sm:$0xff]  }
 0x63e   :  { %13632 = vmatprep.subr.bf16.mxu0 %v20917_v60  ;;  %v20956_v60 = vld [vmem:[#allocation7 + $0x1e20] ss:$60 sps:$4 sm:$0xff]  }
 0x640   :  { %13215 = vmatpush1.bf16.msra.mxu1 %v20912_v25  ;;  %v20960_v25 = vld [vmem:[#allocation7 + $0x218] ss:$60 sps:$4 sm:$0xff]  }
 0x641   :  { %13633 = vmatpush1.bf16.msra.mxu0 %v20915_v5  ;;  %13216 = vmatprep.subr.bf16.mxu1 %v20920_v6  ;;  %v20963_v5 = vld [vmem:[#allocation7 + $0x1e9c] ss:$60 sps:$4 sm:$0xff]   ;;  %v20964_v6 = vld [vmem:[#allocation7 + $0x650] ss:$60 sps:$4 sm:$0xff]  }
 0x642   :  { %13634 = vmatprep.subr.bf16.mxu0 %v20923_v7  ;;  %v20961_v7 = vld [vmem:[#allocation7 + $0x1e98] ss:$60 sps:$4 sm:$0xff]  }
 0x644   :  { %13217 = vmatpush1.bf16.msra.mxu1 %v20918_v8  ;;  %v20965_v8 = vld [vmem:[#allocation7 + $0x290] ss:$60 sps:$4 sm:$0xff]  }
 0x645   :  { %13635 = vmatpush1.bf16.msra.mxu0 %v20921_v10  ;;  %13218 = vmatprep.subr.bf16.mxu1 %v20926_v13  ;;  %v20968_v10 = vld [vmem:[#allocation7 + $0x1f14] ss:$60 sps:$4 sm:$0xff]   ;;  %v20969_v13 = vld [vmem:[#allocation7 + $0x6c8] ss:$60 sps:$4 sm:$0xff]  }
 0x646   :  { %13636 = vmatprep.subr.bf16.mxu0 %v20929_v14  ;;  %v20966_v14 = vld [vmem:[#allocation7 + $0x1f10] ss:$60 sps:$4 sm:$0xff]  }
 0x648   :  { %13219 = vmatpush1.bf16.msra.mxu1 %v20924_v19  ;;  %v20970_v19 = vld [vmem:[#allocation7 + $0x308] ss:$60 sps:$4 sm:$0xff]  }
 0x649   :  { %13637 = vmatpush1.bf16.msra.mxu0 %v20927_v23  ;;  %13220 = vmatprep.subr.bf16.mxu1 %v20932_v26  ;;  %v20973_v23 = vld [vmem:[#allocation7 + $0x1f8c] ss:$60 sps:$4 sm:$0xff]   ;;  %v20974_v26 = vld [vmem:[#allocation7 + $0x740] ss:$60 sps:$4 sm:$0xff]  }
 0x64a   :  { %13638 = vmatprep.subr.bf16.mxu0 %v20935_v29  ;;  %v20971_v29 = vld [vmem:[#allocation7 + $0x1f88] ss:$60 sps:$4 sm:$0xff]  }
 0x64c   :  { %13221 = vmatpush1.bf16.msra.mxu1 %v20930_v30  ;;  %v20975_v30 = vld [vmem:[#allocation7 + $0x380] ss:$60 sps:$4 sm:$0xff]  }
 0x64d   :  { %13639 = vmatpush1.bf16.msra.mxu0 %v20933_v20  ;;  %13222 = vmatprep.subr.bf16.mxu1 %v20938_v32  ;;  %v20978_v20 = vld [vmem:[#allocation7 + $0x2004] ss:$60 sps:$4 sm:$0xff]   ;;  %v20979_v32 = vld [vmem:[#allocation7 + $0xb78] ss:$60 sps:$4 sm:$0xff]  }
 0x64e   :  { %18419 = vmatprep.subr.bf16.mxu0 %v20939_v11  ;;  %v20976_v11 = vld [vmem:[#allocation7 + $0x2000] ss:$60 sps:$4 sm:$0xff]  }
 0x650   :  { %13641 = vmatmul.mubr.bf16.vlgmr.msra.gmra.mrb[24].mxu0 %v22445_v62  ;;  %13223 = vmatpush1.bf16.msra.mxu1 %v20936_v33  ;;  %v20980_v33 = vld [vmem:[#allocation7 + $0x7b8] ss:$60 sps:$4 sm:$0xff]  }
 0x651   :  { %18420 = vmatpush3.bf16.msra.mxu0 %v20940_v22  ;;  %13968 = vmatprep.mubr.bf16.mxu0 %v22333_v15  ;;  %v20983_v22 = vld [vmem:[#allocation7 + $0x207c] ss:$60 sps:$4 sm:$0xff]  }
 0x652   :  { %13224 = vmatprep.subr.bf16.mxu1 %v20943_v35  ;;  %18421 = vmatprep.subr.bf16.mxu0 %v20944_v37  ;;  %v20984_v35 = vld [vmem:[#allocation7 + $0xbf0] ss:$60 sps:$4 sm:$0xff]   ;;  %v20981_v37 = vld [vmem:[#allocation7 + $0x2078] ss:$60 sps:$4 sm:$0xff]  }
 0x654   :  { %13225 = vmatpush1.bf16.msra.mxu1 %v20941_v38  ;;  %v20985_v38 = vld [vmem:[#allocation7 + $0x830] ss:$60 sps:$4 sm:$0xff]  }
 0x655   :  { %18422 = vmatpush3.bf16.msra.mxu0 %v20945_v40  ;;  %13226 = vmatprep.subr.bf16.mxu1 %v20948_v46  ;;  %v20988_v40 = vld [vmem:[#allocation7 + $0x20f4] ss:$60 sps:$4 sm:$0xff]   ;;  %v20989_v46 = vld [vmem:[#allocation7 + $0xc68] ss:$60 sps:$4 sm:$0xff]  }
 0x656   :  { %18423 = vmatprep.subr.bf16.mxu0 %v20949_v48  ;;  %v20986_v48 = vld [vmem:[#allocation7 + $0x20f0] ss:$60 sps:$4 sm:$0xff]  }
 0x658   :  { %13227 = vmatpush1.bf16.msra.mxu1 %v20946_v49  ;;  %v20990_v49 = vld [vmem:[#allocation7 + $0x8a8] ss:$60 sps:$4 sm:$0xff]  }
 0x659   :  { %18424 = vmatpush3.bf16.msra.mxu0 %v20950_v50  ;;  %13228 = vmatprep.subr.bf16.mxu1 %v20953_v52  ;;  %v20993_v50 = vld [vmem:[#allocation7 + $0x216c] ss:$60 sps:$4 sm:$0xff]   ;;  %v20994_v52 = vld [vmem:[#allocation7 + $0xce0] ss:$60 sps:$4 sm:$0xff]  }
 0x65a   :  { %18425 = vmatprep.subr.bf16.mxu0 %v20954_v53  ;;  %v20991_v53 = vld [vmem:[#allocation7 + $0x2168] ss:$60 sps:$4 sm:$0xff]  }
 0x65c   :  { %13229 = vmatpush1.bf16.msra.mxu1 %v20951_v55  ;;  %v20995_v55 = vld [vmem:[#allocation7 + $0x920] ss:$60 sps:$4 sm:$0xff]  }
 0x65d   :  { %18426 = vmatpush3.bf16.msra.mxu0 %v20955_v57  ;;  %13239 = vmatprep.subr.bf16.mxu1 %v20958_v56  ;;  %v20998_v57 = vld [vmem:[#allocation7 + $0x21e4] ss:$60 sps:$4 sm:$0xff]   ;;  %v20999_v56 = vld [vmem:[#allocation7 + $0xd58] ss:$60 sps:$4 sm:$0xff]  }
 0x65e   :  { %18427 = vmatprep.subr.bf16.mxu0 %v20959_v58  ;;  %v20996_v58 = vld [vmem:[#allocation7 + $0x21e0] ss:$60 sps:$4 sm:$0xff]  }
 0x65f   :  { %13231 = vmatmul.mubr.bf16.vlgmr.msra.gmra.mrb[24].mxu1 %v22400_v54 }
 0x660   :  { %13240 = vmatpush1.bf16.msra.mxu1 %v20956_v60  ;;  %13271 = vmatprep.mubr.bf16.mxu1 %v22402_v59  ;;  %v21000_v60 = vld [vmem:[#allocation7 + $0x998] ss:$60 sps:$4 sm:$0xff]  }
 0x661   :  { %18428 = vmatpush3.bf16.msra.mxu0 %v20960_v25  ;;  %13241 = vmatprep.subr.bf16.mxu1 %v20963_v5  ;;  %v21003_v25 = vld [vmem:[#allocation7 + $0x225c] ss:$60 sps:$4 sm:$0xff]   ;;  %v21004_v5 = vld [vmem:[#allocation7 + $0xdd0] ss:$60 sps:$4 sm:$0xff]  }
 0x662   :  { %18429 = vmatprep.subr.bf16.mxu0 %v20964_v6  ;;  %v21001_v6 = vld [vmem:[#allocation7 + $0x2258] ss:$60 sps:$4 sm:$0xff]  }
 0x664   :  { %13242 = vmatpush1.bf16.msra.mxu1 %v20961_v7  ;;  %v21005_v7 = vld [vmem:[#allocation7 + $0xa10] ss:$60 sps:$4 sm:$0xff]  }
 0x665   :  { %18430 = vmatpush3.bf16.msra.mxu0 %v20965_v8  ;;  %13243 = vmatprep.subr.bf16.mxu1 %v20968_v10  ;;  %v21008_v8 = vld [vmem:[#allocation7 + $0x22d4] ss:$60 sps:$4 sm:$0xff]   ;;  %v21009_v10 = vld [vmem:[#allocation7 + $0xe48] ss:$60 sps:$4 sm:$0xff]  }
 0x666   :  { %18431 = vmatprep.subr.bf16.mxu0 %v20969_v13  ;;  %v21006_v13 = vld [vmem:[#allocation7 + $0x22d0] ss:$60 sps:$4 sm:$0xff]  }
 0x668   :  { %13244 = vmatpush1.bf16.msra.mxu1 %v20966_v14  ;;  %v21010_v14 = vld [vmem:[#allocation7 + $0xa88] ss:$60 sps:$4 sm:$0xff]  }
 0x669   :  { %18432 = vmatpush3.bf16.msra.mxu0 %v20970_v19  ;;  %13245 = vmatprep.subr.bf16.mxu1 %v20973_v23  ;;  %v21013_v19 = vld [vmem:[#allocation7 + $0x234c] ss:$60 sps:$4 sm:$0xff]   ;;  %v21014_v23 = vld [vmem:[#allocation7 + $0xec0] ss:$60 sps:$4 sm:$0xff]  }
 0x66a   :  { %18433 = vmatprep.subr.bf16.mxu0 %v20974_v26  ;;  %v21011_v26 = vld [vmem:[#allocation7 + $0x2348] ss:$60 sps:$4 sm:$0xff]  }
 0x66c   :  { %13246 = vmatpush1.bf16.msra.mxu1 %v20971_v29  ;;  %v21015_v29 = vld [vmem:[#allocation7 + $0xb00] ss:$60 sps:$4 sm:$0xff]  }
 0x66d   :  { %18434 = vmatpush3.bf16.msra.mxu0 %v20975_v30  ;;  %13247 = vmatprep.subr.bf16.mxu1 %v20978_v20  ;;  %v21018_v30 = vld [vmem:[#allocation7 + $0x23c4] ss:$60 sps:$4 sm:$0xff]   ;;  %v21019_v20 = vld [vmem:[#allocation7 + $0x12f8] ss:$60 sps:$4 sm:$0xff]  }
 0x66e   :  { %18441 = vmatprep.subr.bf16.mxu0 %v20979_v32  ;;  %v21016_v32 = vld [vmem:[#allocation7 + $0x23c0] ss:$60 sps:$4 sm:$0xff]  }
 0x670   :  { %13969 = vmatmul.mubr.bf16.vlgmr.msra.gmra.mrb[28].mxu0 %v22335_v16  ;;  %13248 = vmatpush1.bf16.msra.mxu1 %v20976_v11  ;;  %v21020_v11 = vld [vmem:[#allocation7 + $0xf38] ss:$60 sps:$4 sm:$0xff]  }
 0x671   :  { %18442 = vmatpush3.bf16.msra.mxu0 %v20980_v33  ;;  %14008 = vmatprep.mubr.bf16.mxu0 %v22346_v34  ;;  %v21023_v33 = vld [vmem:[#allocation7 + $0x243c] ss:$60 sps:$4 sm:$0xff]  }
 0x672   :  { %13249 = vmatprep.subr.bf16.mxu1 %v20983_v22  ;;  %18443 = vmatprep.subr.bf16.mxu0 %v20984_v35  ;;  %v21024_v22 = vld [vmem:[#allocation7 + $0x1370] ss:$60 sps:$4 sm:$0xff]   ;;  %v21021_v35 = vld [vmem:[#allocation7 + $0x2438] ss:$60 sps:$4 sm:$0xff]  }
 0x674   :  { %13250 = vmatpush1.bf16.msra.mxu1 %v20981_v37  ;;  %v21025_v37 = vld [vmem:[#allocation7 + $0xfb0] ss:$60 sps:$4 sm:$0xff]  }
 0x675   :  { %18444 = vmatpush3.bf16.msra.mxu0 %v20985_v38  ;;  %13251 = vmatprep.subr.bf16.mxu1 %v20988_v40  ;;  %v21028_v38 = vld [vmem:[#allocation7 + $0x24b4] ss:$60 sps:$4 sm:$0xff]   ;;  %v21029_v40 = vld [vmem:[#allocation7 + $0x13e8] ss:$60 sps:$4 sm:$0xff]  }
 0x676   :  { %18445 = vmatprep.subr.bf16.mxu0 %v20989_v46  ;;  %v21026_v46 = vld [vmem:[#allocation7 + $0x24b0] ss:$60 sps:$4 sm:$0xff]  }
 0x678   :  { %13252 = vmatpush1.bf16.msra.mxu1 %v20986_v48  ;;  %v21030_v48 = vld [vmem:[#allocation7 + $0x1028] ss:$60 sps:$4 sm:$0xff]  }
 0x679   :  { %18446 = vmatpush3.bf16.msra.mxu0 %v20990_v49  ;;  %13253 = vmatprep.subr.bf16.mxu1 %v20993_v50  ;;  %v21033_v49 = vld [vmem:[#allocation7 + $0x252c] ss:$60 sps:$4 sm:$0xff]   ;;  %v21034_v50 = vld [vmem:[#allocation7 + $0x1460] ss:$60 sps:$4 sm:$0xff]  }
 0x67a   :  { %18447 = vmatprep.subr.bf16.mxu0 %v20994_v52  ;;  %v21031_v52 = vld [vmem:[#allocation7 + $0x2528] ss:$60 sps:$4 sm:$0xff]  }
 0x67c   :  { %13254 = vmatpush1.bf16.msra.mxu1 %v20991_v53  ;;  %v21035_v53 = vld [vmem:[#allocation7 + $0x10a0] ss:$60 sps:$4 sm:$0xff]  }
 0x67d   :  { %18448 = vmatpush3.bf16.msra.mxu0 %v20995_v55  ;;  %13255 = vmatprep.subr.bf16.mxu1 %v20998_v57  ;;  %v21038_v55 = vld [vmem:[#allocation7 + $0x25a4] ss:$60 sps:$4 sm:$0xff]   ;;  %v21039_v57 = vld [vmem:[#allocation7 + $0x14d8] ss:$60 sps:$4 sm:$0xff]  }
 0x67e   :  { %18449 = vmatprep.subr.bf16.mxu0 %v20999_v56  ;;  %v21036_v56 = vld [vmem:[#allocation7 + $0x25a0] ss:$60 sps:$4 sm:$0xff]  }
 0x680   :  { %13256 = vmatpush1.bf16.msra.mxu1 %v20996_v58  ;;  %v21040_v58 = vld [vmem:[#allocation7 + $0x1118] ss:$60 sps:$4 sm:$0xff]  }
 0x681   :  { %18450 = vmatpush3.bf16.msra.mxu0 %v21000_v60  ;;  %13257 = vmatprep.subr.bf16.mxu1 %v21003_v25  ;;  %v21043_v60 = vld [vmem:[#allocation7 + $0x261c] ss:$60 sps:$4 sm:$0xff]   ;;  %v21044_v25 = vld [vmem:[#allocation7 + $0x1550] ss:$60 sps:$4 sm:$0xff]  }
 0x682   :  { %18451 = vmatprep.subr.bf16.mxu0 %v21004_v5  ;;  %v21041_v5 = vld [vmem:[#allocation7 + $0x2618] ss:$60 sps:$4 sm:$0xff]  }
 0x684   :  { %13258 = vmatpush1.bf16.msra.mxu1 %v21001_v6  ;;  %v21045_v6 = vld [vmem:[#allocation7 + $0x1190] ss:$60 sps:$4 sm:$0xff]  }
 0x685   :  { %18452 = vmatpush3.bf16.msra.mxu0 %v21005_v7  ;;  %13259 = vmatprep.subr.bf16.mxu1 %v21008_v8  ;;  %v21048_v7 = vld [vmem:[#allocation7 + $0x2694] ss:$60 sps:$4 sm:$0xff]   ;;  %v21049_v8 = vld [vmem:[#allocation7 + $0x15c8] ss:$60 sps:$4 sm:$0xff]  }
 0x686   :  { %18453 = vmatprep.subr.bf16.mxu0 %v21009_v10  ;;  %v21046_v10 = vld [vmem:[#allocation7 + $0x2690] ss:$60 sps:$4 sm:$0xff]  }
 0x688   :  { %13260 = vmatpush1.bf16.msra.mxu1 %v21006_v13  ;;  %v21050_v13 = vld [vmem:[#allocation7 + $0x1208] ss:$60 sps:$4 sm:$0xff]  }
 0x689   :  { %18454 = vmatpush3.bf16.msra.mxu0 %v21010_v14  ;;  %13261 = vmatprep.subr.bf16.mxu1 %v21013_v19  ;;  %v21053_v14 = vld [vmem:[#allocation7 + $0x270c] ss:$60 sps:$4 sm:$0xff]   ;;  %v21054_v19 = vld [vmem:[#allocation7 + $0x1640] ss:$60 sps:$4 sm:$0xff]  }
 0x68a   :  { %18455 = vmatprep.subr.bf16.mxu0 %v21014_v23  ;;  %v21051_v23 = vld [vmem:[#allocation7 + $0x2708] ss:$60 sps:$4 sm:$0xff]  }
 0x68c   :  { %13262 = vmatpush1.bf16.msra.mxu1 %v21011_v26  ;;  %v21055_v26 = vld [vmem:[#allocation7 + $0x1280] ss:$60 sps:$4 sm:$0xff]  }
 0x68d   :  { %18456 = vmatpush3.bf16.msra.mxu0 %v21015_v29  ;;  %13263 = vmatprep.subr.bf16.mxu1 %v21018_v30  ;;  %v21058_v29 = vld [vmem:[#allocation7 + $0x2784] ss:$60 sps:$4 sm:$0xff]   ;;  %v21059_v30 = vld [vmem:[#allocation7 + $0x1a78] ss:$60 sps:$4 sm:$0xff]  }
 0x68e   :  { %18463 = vmatprep.subr.bf16.mxu0 %v21019_v20  ;;  %v21056_v20 = vld [vmem:[#allocation7 + $0x2780] ss:$60 sps:$4 sm:$0xff]  }
 0x690   :  { %14009 = vmatmul.mubr.bf16.vlgmr.msra.gmra.mrb[32].mxu0 %v22377_v36  ;;  %13264 = vmatpush1.bf16.msra.mxu1 %v21016_v32  ;;  %v21060_v32 = vld [vmem:[#allocation7 + $0x16b8] ss:$60 sps:$4 sm:$0xff]  }
 0x691   :  { %18464 = vmatpush3.bf16.msra.mxu0 %v21020_v11  ;;  %14048 = vmatprep.mubr.bf16.mxu0 %v22361_v3  ;;  %v21063_v11 = vld [vmem:[#allocation7 + $0x27fc] ss:$60 sps:$4 sm:$0xff]  }
 0x692   :  { %13265 = vmatprep.subr.bf16.mxu1 %v21023_v33  ;;  %18465 = vmatprep.subr.bf16.mxu0 %v21024_v22  ;;  %v21064_v33 = vld [vmem:[#allocation7 + $0x1af0] ss:$60 sps:$4 sm:$0xff]   ;;  %v21061_v22 = vld [vmem:[#allocation7 + $0x27f8] ss:$60 sps:$4 sm:$0xff]  }
 0x694   :  { %13266 = vmatpush1.bf16.msra.mxu1 %v21021_v35  ;;  %v21065_v35 = vld [vmem:[#allocation7 + $0x1730] ss:$60 sps:$4 sm:$0xff]  }
 0x695   :  { %18466 = vmatpush3.bf16.msra.mxu0 %v21025_v37  ;;  %13267 = vmatprep.subr.bf16.mxu1 %v21028_v38  ;;  %v21068_v37 = vld [vmem:[#allocation7 + $0x2874] ss:$60 sps:$4 sm:$0xff]   ;;  %v21069_v38 = vld [vmem:[#allocation7 + $0x1b68] ss:$60 sps:$4 sm:$0xff]  }
 0x696   :  { %18467 = vmatprep.subr.bf16.mxu0 %v21029_v40  ;;  %v21066_v40 = vld [vmem:[#allocation7 + $0x2870] ss:$60 sps:$4 sm:$0xff]  }
 0x698   :  { %13268 = vmatpush1.bf16.msra.mxu1 %v21026_v46  ;;  %v21070_v46 = vld [vmem:[#allocation7 + $0x17a8] ss:$60 sps:$4 sm:$0xff]  }
 0x699   :  { %18468 = vmatpush3.bf16.msra.mxu0 %v21030_v48  ;;  %13269 = vmatprep.subr.bf16.mxu1 %v21033_v49  ;;  %v21073_v48 = vld [vmem:[#allocation7 + $0x28ec] ss:$60 sps:$4 sm:$0xff]   ;;  %v21074_v49 = vld [vmem:[#allocation7 + $0x1be0] ss:$60 sps:$4 sm:$0xff]  }
 0x69a   :  { %18469 = vmatprep.subr.bf16.mxu0 %v21034_v50  ;;  %v21071_v50 = vld [vmem:[#allocation7 + $0x28e8] ss:$60 sps:$4 sm:$0xff]  }
 0x69c   :  { %13270 = vmatpush1.bf16.msra.mxu1 %v21031_v52  ;;  %v21075_v52 = vld [vmem:[#allocation7 + $0x1820] ss:$60 sps:$4 sm:$0xff]  }
 0x69d   :  { %18470 = vmatpush3.bf16.msra.mxu0 %v21035_v53  ;;  %13280 = vmatprep.subr.bf16.mxu1 %v21038_v55  ;;  %v21078_v53 = vld [vmem:[#allocation7 + $0x2964] ss:$60 sps:$4 sm:$0xff]   ;;  %v21079_v55 = vld [vmem:[#allocation7 + $0x1c58] ss:$60 sps:$4 sm:$0xff]  }
 0x69e   :  { %18471 = vmatprep.subr.bf16.mxu0 %v21039_v57  ;;  %v21076_v57 = vld [vmem:[#allocation7 + $0x2960] ss:$60 sps:$4 sm:$0xff]  }
 0x69f   :  { %13272 = vmatmul.mubr.bf16.vlgmr.msra.gmra.mrb[24].mxu1 %v22418_v39 }
 0x6a0   :  { %13281 = vmatpush1.bf16.msra.mxu1 %v21036_v56  ;;  %13312 = vmatprep.mubr.bf16.mxu1 %v22420_v12  ;;  %v21080_v56 = vld [vmem:[#allocation7 + $0x1898] ss:$60 sps:$4 sm:$0xff]  }
 0x6a1   :  { %18472 = vmatpush3.bf16.msra.mxu0 %v21040_v58  ;;  %13282 = vmatprep.subr.bf16.mxu1 %v21043_v60  ;;  %v21083_v58 = vld [vmem:[#allocation7 + $0x29dc] ss:$60 sps:$4 sm:$0xff]   ;;  %v21084_v60 = vld [vmem:[#allocation7 + $0x1cd0] ss:$60 sps:$4 sm:$0xff]  }
 0x6a2   :  { %18473 = vmatprep.subr.bf16.mxu0 %v21044_v25  ;;  %v21081_v25 = vld [vmem:[#allocation7 + $0x29d8] ss:$60 sps:$4 sm:$0xff]  }
 0x6a4   :  { %13283 = vmatpush1.bf16.msra.mxu1 %v21041_v5  ;;  %v21085_v5 = vld [vmem:[#allocation7 + $0x1910] ss:$60 sps:$4 sm:$0xff]  }
 0x6a5   :  { %18474 = vmatpush3.bf16.msra.mxu0 %v21045_v6  ;;  %13284 = vmatprep.subr.bf16.mxu1 %v21048_v7  ;;  %v21088_v6 = vld [vmem:[#allocation7 + $0x2a54] ss:$60 sps:$4 sm:$0xff]   ;;  %v21089_v7 = vld [vmem:[#allocation7 + $0x1d48] ss:$60 sps:$4 sm:$0xff]  }
 0x6a6   :  { %18475 = vmatprep.subr.bf16.mxu0 %v21049_v8  ;;  %v21086_v8 = vld [vmem:[#allocation7 + $0x2a50] ss:$60 sps:$4 sm:$0xff]  }
 0x6a8   :  { %13285 = vmatpush1.bf16.msra.mxu1 %v21046_v10  ;;  %v21090_v10 = vld [vmem:[#allocation7 + $0x1988] ss:$60 sps:$4 sm:$0xff]  }
 0x6a9   :  { %18476 = vmatpush3.bf16.msra.mxu0 %v21050_v13  ;;  %13286 = vmatprep.subr.bf16.mxu1 %v21053_v14  ;;  %v21093_v13 = vld [vmem:[#allocation7 + $0x2acc] ss:$60 sps:$4 sm:$0xff]   ;;  %v21094_v14 = vld [vmem:[#allocation7 + $0x1dc0] ss:$60 sps:$4 sm:$0xff]  }
 0x6aa   :  { %18477 = vmatprep.subr.bf16.mxu0 %v21054_v19  ;;  %v21091_v19 = vld [vmem:[#allocation7 + $0x2ac8] ss:$60 sps:$4 sm:$0xff]  }
 0x6ac   :  { %13287 = vmatpush1.bf16.msra.mxu1 %v21051_v23  ;;  %v21095_v23 = vld [vmem:[#allocation7 + $0x1a00] ss:$60 sps:$4 sm:$0xff]  }
 0x6ad   :  { %18478 = vmatpush3.bf16.msra.mxu0 %v21055_v26  ;;  %13288 = vmatprep.subr.bf16.mxu1 %v21058_v29  ;;  %v21098_v26 = vld [vmem:[#allocation7 + $0x2b44] ss:$60 sps:$4 sm:$0xff]   ;;  %v21099_v29 = vld [vmem:[#allocation7 + $0x21f8] ss:$60 sps:$4 sm:$0xff]  }
 0x6ae   :  { %18485 = vmatprep.subr.bf16.mxu0 %v21059_v30  ;;  %v21096_v30 = vld [vmem:[#allocation7 + $0x2b40] ss:$60 sps:$4 sm:$0xff]  }
 0x6b0   :  { %14049 = vmatmul.mubr.bf16.vlgmr.msra.gmra.mrb[36].mxu0 %v22359_v63  ;;  %13289 = vmatpush1.bf16.msra.mxu1 %v21056_v20  ;;  %v21100_v20 = vld [vmem:[#allocation7 + $0x1e38] ss:$60 sps:$4 sm:$0xff]  }
 0x6b1   :  { %18486 = vmatpush3.bf16.msra.mxu0 %v21060_v32  ;;  %14088 = vmatprep.mubr.bf16.mxu0 %v22380_v41  ;;  %v21103_v32 = vld [vmem:[#allocation7 + $0x2bbc] ss:$60 sps:$4 sm:$0xff]  }
 0x6b2   :  { %13290 = vmatprep.subr.bf16.mxu1 %v21063_v11  ;;  %18487 = vmatprep.subr.bf16.mxu0 %v21064_v33  ;;  %v21104_v11 = vld [vmem:[#allocation7 + $0x2270] ss:$60 sps:$4 sm:$0xff]   ;;  %v21101_v33 = vld [vmem:[#allocation7 + $0x2bb8] ss:$60 sps:$4 sm:$0xff]  }
 0x6b4   :  { %13291 = vmatpush1.bf16.msra.mxu1 %v21061_v22  ;;  %v21105_v22 = vld [vmem:[#allocation7 + $0x1eb0] ss:$60 sps:$4 sm:$0xff]  }
 0x6b5   :  { %18488 = vmatpush3.bf16.msra.mxu0 %v21065_v35  ;;  %13292 = vmatprep.subr.bf16.mxu1 %v21068_v37  ;;  %v21108_v35 = vld [vmem:[#allocation7 + $0x2c34] ss:$60 sps:$4 sm:$0xff]   ;;  %v21109_v37 = vld [vmem:[#allocation7 + $0x22e8] ss:$60 sps:$4 sm:$0xff]  }
 0x6b6   :  { %18489 = vmatprep.subr.bf16.mxu0 %v21069_v38  ;;  %v21106_v38 = vld [vmem:[#allocation7 + $0x2c30] ss:$60 sps:$4 sm:$0xff]  }
 0x6b8   :  { %13293 = vmatpush1.bf16.msra.mxu1 %v21066_v40  ;;  %v21110_v40 = vld [vmem:[#allocation7 + $0x1f28] ss:$60 sps:$4 sm:$0xff]  }
 0x6b9   :  { %18490 = vmatpush3.bf16.msra.mxu0 %v21070_v46  ;;  %13294 = vmatprep.subr.bf16.mxu1 %v21073_v48  ;;  %v21113_v46 = vld [vmem:[#allocation7 + $0x2cac] ss:$60 sps:$4 sm:$0xff]   ;;  %v21114_v48 = vld [vmem:[#allocation7 + $0x2360] ss:$60 sps:$4 sm:$0xff]  }
 0x6ba   :  { %18491 = vmatprep.subr.bf16.mxu0 %v21074_v49  ;;  %v21111_v49 = vld [vmem:[#allocation7 + $0x2ca8] ss:$60 sps:$4 sm:$0xff]  }
 0x6bc   :  { %13295 = vmatpush1.bf16.msra.mxu1 %v21071_v50  ;;  %v21115_v50 = vld [vmem:[#allocation7 + $0x1fa0] ss:$60 sps:$4 sm:$0xff]  }
 0x6bd   :  { %18492 = vmatpush3.bf16.msra.mxu0 %v21075_v52  ;;  %13296 = vmatprep.subr.bf16.mxu1 %v21078_v53  ;;  %v21118_v52 = vld [vmem:[#allocation7 + $0x2d24] ss:$60 sps:$4 sm:$0xff]   ;;  %v21119_v53 = vld [vmem:[#allocation7 + $0x23d8] ss:$60 sps:$4 sm:$0xff]  }
 0x6be   :  { %18493 = vmatprep.subr.bf16.mxu0 %v21079_v55  ;;  %v21116_v55 = vld [vmem:[#allocation7 + $0x2d20] ss:$60 sps:$4 sm:$0xff]  }
 0x6c0   :  { %13297 = vmatpush1.bf16.msra.mxu1 %v21076_v57  ;;  %v21120_v57 = vld [vmem:[#allocation7 + $0x2018] ss:$60 sps:$4 sm:$0xff]  }
 0x6c1   :  { %18494 = vmatpush3.bf16.msra.mxu0 %v21080_v56  ;;  %13298 = vmatprep.subr.bf16.mxu1 %v21083_v58  ;;  %v21123_v56 = vld [vmem:[#allocation7 + $0x2d9c] ss:$60 sps:$4 sm:$0xff]   ;;  %v21124_v58 = vld [vmem:[#allocation7 + $0x2450] ss:$60 sps:$4 sm:$0xff]  }
 0x6c2   :  { %18495 = vmatprep.subr.bf16.mxu0 %v21084_v60  ;;  %v21121_v60 = vld [vmem:[#allocation7 + $0x2d98] ss:$60 sps:$4 sm:$0xff]  }
 0x6c4   :  { %13299 = vmatpush1.bf16.msra.mxu1 %v21081_v25  ;;  %v21125_v25 = vld [vmem:[#allocation7 + $0x2090] ss:$60 sps:$4 sm:$0xff]  }
 0x6c5   :  { %18496 = vmatpush3.bf16.msra.mxu0 %v21085_v5  ;;  %13300 = vmatprep.subr.bf16.mxu1 %v21088_v6  ;;  %v21128_v5 = vld [vmem:[#allocation7 + $0x2e14] ss:$60 sps:$4 sm:$0xff]   ;;  %v21129_v6 = vld [vmem:[#allocation7 + $0x24c8] ss:$60 sps:$4 sm:$0xff]  }
 0x6c6   :  { %18497 = vmatprep.subr.bf16.mxu0 %v21089_v7  ;;  %v21126_v7 = vld [vmem:[#allocation7 + $0x2e10] ss:$60 sps:$4 sm:$0xff]  }
 0x6c8   :  { %13301 = vmatpush1.bf16.msra.mxu1 %v21086_v8  ;;  %v21130_v8 = vld [vmem:[#allocation7 + $0x2108] ss:$60 sps:$4 sm:$0xff]  }
 0x6c9   :  { %18498 = vmatpush3.bf16.msra.mxu0 %v21090_v10  ;;  %13302 = vmatprep.subr.bf16.mxu1 %v21093_v13  ;;  %v21133_v10 = vld [vmem:[#allocation7 + $0x2e8c] ss:$60 sps:$4 sm:$0xff]   ;;  %v21134_v13 = vld [vmem:[#allocation7 + $0x2540] ss:$60 sps:$4 sm:$0xff]  }
 0x6ca   :  { %18499 = vmatprep.subr.bf16.mxu0 %v21094_v14  ;;  %v21131_v14 = vld [vmem:[#allocation7 + $0x2e88] ss:$60 sps:$4 sm:$0xff]  }
 0x6cc   :  { %13303 = vmatpush1.bf16.msra.mxu1 %v21091_v19  ;;  %v21135_v19 = vld [vmem:[#allocation7 + $0x2180] ss:$60 sps:$4 sm:$0xff]  }
 0x6cd   :  { %18500 = vmatpush3.bf16.msra.mxu0 %v21095_v23  ;;  %13304 = vmatprep.subr.bf16.mxu1 %v21098_v26  ;;  %v21138_v23 = vld [vmem:[#allocation7 + $0x2f04] ss:$60 sps:$4 sm:$0xff]   ;;  %v21139_v26 = vld [vmem:[#allocation7 + $0x2978] ss:$60 sps:$4 sm:$0xff]  }
 0x6ce   :  { %18507 = vmatprep.subr.bf16.mxu0 %v21099_v29  ;;  %v21136_v29 = vld [vmem:[#allocation7 + $0x2f00] ss:$60 sps:$4 sm:$0xff]  }
 0x6d0   :  { %14089 = vmatmul.mubr.bf16.vlgmr.msra.gmra.mrb[40].mxu0 %v22400_v54  ;;  %13305 = vmatpush1.bf16.msra.mxu1 %v21096_v30  ;;  %v21140_v30 = vld [vmem:[#allocation7 + $0x25b8] ss:$60 sps:$4 sm:$0xff]  }
 0x6d1   :  { %18508 = vmatpush3.bf16.msra.mxu0 %v21100_v20  ;;  %14128 = vmatprep.mubr.bf16.mxu0 %v22402_v59  ;;  %v21143_v20 = vld [vmem:[#allocation7 + $0x2f7c] ss:$60 sps:$4 sm:$0xff]  }
 0x6d2   :  { %13306 = vmatprep.subr.bf16.mxu1 %v21103_v32  ;;  %18509 = vmatprep.subr.bf16.mxu0 %v21104_v11  ;;  %v21144_v32 = vld [vmem:[#allocation7 + $0x29f0] ss:$60 sps:$4 sm:$0xff]   ;;  %v21141_v11 = vld [vmem:[#allocation7 + $0x2f78] ss:$60 sps:$4 sm:$0xff]  }
 0x6d4   :  { %13307 = vmatpush1.bf16.msra.mxu1 %v21101_v33  ;;  %v21145_v33 = vld [vmem:[#allocation7 + $0x2630] ss:$60 sps:$4 sm:$0xff]  }
 0x6d5   :  { %18510 = vmatpush3.bf16.msra.mxu0 %v21105_v22  ;;  %13308 = vmatprep.subr.bf16.mxu1 %v21108_v35  ;;  %v21148_v22 = vld [vmem:[#allocation7 + $0x2ff4] ss:$60 sps:$4 sm:$0xff]   ;;  %v21149_v35 = vld [vmem:[#allocation7 + $0x2a68] ss:$60 sps:$4 sm:$0xff]  }
 0x6d6   :  { %18511 = vmatprep.subr.bf16.mxu0 %v21109_v37  ;;  %v21146_v37 = vld [vmem:[#allocation7 + $0x2ff0] ss:$60 sps:$4 sm:$0xff]  }
 0x6d8   :  { %13309 = vmatpush1.bf16.msra.mxu1 %v21106_v38  ;;  %v21150_v38 = vld [vmem:[#allocation7 + $0x26a8] ss:$60 sps:$4 sm:$0xff]  }
 0x6d9   :  { %18512 = vmatpush3.bf16.msra.mxu0 %v21110_v40  ;;  %13310 = vmatprep.subr.bf16.mxu1 %v21113_v46  ;;  %v21153_v40 = vld [vmem:[#allocation7 + $0x306c] ss:$60 sps:$4 sm:$0xff]   ;;  %v21154_v46 = vld [vmem:[#allocation7 + $0x2ae0] ss:$60 sps:$4 sm:$0xff]  }
 0x6da   :  { %18513 = vmatprep.subr.bf16.mxu0 %v21114_v48  ;;  %v21151_v48 = vld [vmem:[#allocation7 + $0x3068] ss:$60 sps:$4 sm:$0xff]  }
 0x6dc   :  { %13311 = vmatpush1.bf16.msra.mxu1 %v21111_v49  ;;  %v21155_v49 = vld [vmem:[#allocation7 + $0x2720] ss:$60 sps:$4 sm:$0xff]  }
 0x6dd   :  { %18514 = vmatpush3.bf16.msra.mxu0 %v21115_v50  ;;  %13321 = vmatprep.subr.bf16.mxu1 %v21118_v52  ;;  %v21158_v50 = vld [vmem:[#allocation7 + $0x30e4] ss:$60 sps:$4 sm:$0xff]   ;;  %v21159_v52 = vld [vmem:[#allocation7 + $0x2b58] ss:$60 sps:$4 sm:$0xff]  }
 0x6de   :  { %18515 = vmatprep.subr.bf16.mxu0 %v21119_v53  ;;  %v21156_v53 = vld [vmem:[#allocation7 + $0x30e0] ss:$60 sps:$4 sm:$0xff]  }
 0x6df   :  { %13313 = vmatmul.mubr.bf16.vlgmr.msra.gmra.mrb[24].mxu1 %v22434_v27 }
 0x6e0   :  { %13322 = vmatpush1.bf16.msra.mxu1 %v21116_v55  ;;  %13353 = vmatprep.mubr.bf16.mxu1 %v22436_v28  ;;  %v21160_v55 = vld [vmem:[#allocation7 + $0x2798] ss:$60 sps:$4 sm:$0xff]  }
 0x6e1   :  { %18516 = vmatpush3.bf16.msra.mxu0 %v21120_v57  ;;  %13323 = vmatprep.subr.bf16.mxu1 %v21123_v56  ;;  %v21163_v57 = vld [vmem:[#allocation7 + $0x315c] ss:$60 sps:$4 sm:$0xff]   ;;  %v21164_v56 = vld [vmem:[#allocation7 + $0x2bd0] ss:$60 sps:$4 sm:$0xff]  }
 0x6e2   :  { %18517 = vmatprep.subr.bf16.mxu0 %v21124_v58  ;;  %v21161_v58 = vld [vmem:[#allocation7 + $0x3158] ss:$60 sps:$4 sm:$0xff]  }
 0x6e4   :  { %13324 = vmatpush1.bf16.msra.mxu1 %v21121_v60  ;;  %v21165_v60 = vld [vmem:[#allocation7 + $0x2810] ss:$60 sps:$4 sm:$0xff]  }
 0x6e5   :  { %18518 = vmatpush3.bf16.msra.mxu0 %v21125_v25  ;;  %13325 = vmatprep.subr.bf16.mxu1 %v21128_v5  ;;  %v21168_v25 = vld [vmem:[#allocation7 + $0x31d4] ss:$60 sps:$4 sm:$0xff]   ;;  %v21169_v5 = vld [vmem:[#allocation7 + $0x2c48] ss:$60 sps:$4 sm:$0xff]  }
 0x6e6   :  { %18519 = vmatprep.subr.bf16.mxu0 %v21129_v6  ;;  %v21166_v6 = vld [vmem:[#allocation7 + $0x31d0] ss:$60 sps:$4 sm:$0xff]  }
 0x6e8   :  { %13326 = vmatpush1.bf16.msra.mxu1 %v21126_v7  ;;  %v21170_v7 = vld [vmem:[#allocation7 + $0x2888] ss:$60 sps:$4 sm:$0xff]  }
 0x6e9   :  { %18520 = vmatpush3.bf16.msra.mxu0 %v21130_v8  ;;  %13327 = vmatprep.subr.bf16.mxu1 %v21133_v10  ;;  %v21173_v8 = vld [vmem:[#allocation7 + $0x324c] ss:$60 sps:$4 sm:$0xff]   ;;  %v21174_v10 = vld [vmem:[#allocation7 + $0x2cc0] ss:$60 sps:$4 sm:$0xff]  }
 0x6ea   :  { %18521 = vmatprep.subr.bf16.mxu0 %v21134_v13  ;;  %v21171_v13 = vld [vmem:[#allocation7 + $0x3248] ss:$60 sps:$4 sm:$0xff]  }
 0x6ec   :  { %13328 = vmatpush1.bf16.msra.mxu1 %v21131_v14  ;;  %v21175_v14 = vld [vmem:[#allocation7 + $0x2900] ss:$60 sps:$4 sm:$0xff]  }
 0x6ed   :  { %18522 = vmatpush3.bf16.msra.mxu0 %v21135_v19  ;;  %13329 = vmatprep.subr.bf16.mxu1 %v21138_v23  ;;  %v21178_v19 = vld [vmem:[#allocation7 + $0x32c4] ss:$60 sps:$4 sm:$0xff]   ;;  %v21179_v23 = vld [vmem:[#allocation7 + $0x30f8] ss:$60 sps:$4 sm:$0xff]  }
 0x6ee   :  { %18529 = vmatprep.subr.bf16.mxu0 %v21139_v26  ;;  %v21176_v26 = vld [vmem:[#allocation7 + $0x32c0] ss:$60 sps:$4 sm:$0xff]  }
 0x6f0   :  { %14129 = vmatmul.mubr.bf16.vlgmr.msra.gmra.mrb[44].mxu0 %v22418_v39  ;;  %13330 = vmatpush1.bf16.msra.mxu1 %v21136_v29  ;;  %v21180_v29 = vld [vmem:[#allocation7 + $0x2d38] ss:$60 sps:$4 sm:$0xff]  }
 0x6f1   :  { %18530 = vmatpush3.bf16.msra.mxu0 %v21140_v30  ;;  %14168 = vmatprep.mubr.bf16.mxu0 %v22420_v12  ;;  %v21183_v30 = vld [vmem:[#allocation7 + $0x333c] ss:$60 sps:$4 sm:$0xff]  }
 0x6f2   :  { %13331 = vmatprep.subr.bf16.mxu1 %v21143_v20  ;;  %18531 = vmatprep.subr.bf16.mxu0 %v21144_v32  ;;  %v21184_v20 = vld [vmem:[#allocation7 + $0x3170] ss:$60 sps:$4 sm:$0xff]   ;;  %v21181_v32 = vld [vmem:[#allocation7 + $0x3338] ss:$60 sps:$4 sm:$0xff]  }
 0x6f4   :  { %13332 = vmatpush1.bf16.msra.mxu1 %v21141_v11  ;;  %v21185_v11 = vld [vmem:[#allocation7 + $0x2db0] ss:$60 sps:$4 sm:$0xff]  }
 0x6f5   :  { %18532 = vmatpush3.bf16.msra.mxu0 %v21145_v33  ;;  %13333 = vmatprep.subr.bf16.mxu1 %v21148_v22  ;;  %v21188_v33 = vld [vmem:[#allocation7 + $0x33b4] ss:$60 sps:$4 sm:$0xff]   ;;  %v21189_v22 = vld [vmem:[#allocation7 + $0x31e8] ss:$60 sps:$4 sm:$0xff]  }
 0x6f6   :  { %18533 = vmatprep.subr.bf16.mxu0 %v21149_v35  ;;  %v21186_v35 = vld [vmem:[#allocation7 + $0x33b0] ss:$60 sps:$4 sm:$0xff]  }
 0x6f8   :  { %13334 = vmatpush1.bf16.msra.mxu1 %v21146_v37  ;;  %v21190_v37 = vld [vmem:[#allocation7 + $0x2e28] ss:$60 sps:$4 sm:$0xff]  }
 0x6f9   :  { %18534 = vmatpush3.bf16.msra.mxu0 %v21150_v38  ;;  %13335 = vmatprep.subr.bf16.mxu1 %v21153_v40  ;;  %v21193_v38 = vld [vmem:[#allocation7 + $0x342c] ss:$60 sps:$4 sm:$0xff]   ;;  %v21194_v40 = vld [vmem:[#allocation7 + $0x3260] ss:$60 sps:$4 sm:$0xff]  }
 0x6fa   :  { %18535 = vmatprep.subr.bf16.mxu0 %v21154_v46  ;;  %v21191_v46 = vld [vmem:[#allocation7 + $0x3428] ss:$60 sps:$4 sm:$0xff]  }
 0x6fc   :  { %13336 = vmatpush1.bf16.msra.mxu1 %v21151_v48  ;;  %v21195_v48 = vld [vmem:[#allocation7 + $0x2ea0] ss:$60 sps:$4 sm:$0xff]  }
 0x6fd   :  { %18536 = vmatpush3.bf16.msra.mxu0 %v21155_v49  ;;  %13337 = vmatprep.subr.bf16.mxu1 %v21158_v50  ;;  %v21198_v49 = vld [vmem:[#allocation7 + $0x34] ss:$60 sps:$4 sm:$0xff]  }
 0x6fe   :  { %18537 = vmatprep.subr.bf16.mxu0 %v21159_v52  ;;  %v21199_v50 = vld [vmem:[#allocation7 + $0x32d8] ss:$60 sps:$4 sm:$0xff]   ;;  %v21196_v52 = vld [vmem:[#allocation7 + $0x30] ss:$60 sps:$4 sm:$0xff]  }
 0x700   :  { %13338 = vmatpush1.bf16.msra.mxu1 %v21156_v53  ;;  %v21200_v53 = vld [vmem:[#allocation7 + $0x2f18] ss:$60 sps:$4 sm:$0xff]  }
 0x701   :  { %18538 = vmatpush3.bf16.msra.mxu0 %v21160_v55  ;;  %13339 = vmatprep.subr.bf16.mxu1 %v21163_v57  ;;  %v21203_v55 = vld [vmem:[#allocation7 + $0xac] ss:$60 sps:$4 sm:$0xff]  }
 0x702   :  { %18539 = vmatprep.subr.bf16.mxu0 %v21164_v56  ;;  %v21204_v57 = vld [vmem:[#allocation7 + $0x3350] ss:$60 sps:$4 sm:$0xff]   ;;  %v21201_v56 = vld [vmem:[#allocation7 + $0xa8] ss:$60 sps:$4 sm:$0xff]  }
 0x704   :  { %13340 = vmatpush1.bf16.msra.mxu1 %v21161_v58  ;;  %v21205_v58 = vld [vmem:[#allocation7 + $0x2f90] ss:$60 sps:$4 sm:$0xff]  }
 0x705   :  { %18540 = vmatpush3.bf16.msra.mxu0 %v21165_v60  ;;  %13341 = vmatprep.subr.bf16.mxu1 %v21168_v25  ;;  %v21208_v60 = vld [vmem:[#allocation7 + $0x124] ss:$60 sps:$4 sm:$0xff]  }
 0x706   :  { %18541 = vmatprep.subr.bf16.mxu0 %v21169_v5  ;;  %v21209_v25 = vld [vmem:[#allocation7 + $0x33c8] ss:$60 sps:$4 sm:$0xff]  }
 0x707   :  { %v22549_v5 = vld [vmem:[#allocation9] sm:$0xff] }
 0x708   :  { %13342 = vmatpush1.bf16.msra.mxu1 %v21166_v6  ;;  %v3347_v6 = vrot.slane %v22549_v5, %v22327_v2 }
 0x709   :  { %18542 = vmatpush3.bf16.msra.mxu0 %v21170_v7  ;;  %13343 = vmatprep.subr.bf16.mxu1 %v21173_v8 }
 0x70a   :  { %18543 = vmatprep.subr.bf16.mxu0 %v21174_v10  ;;  %v21206_v10 = vld [vmem:[#allocation7 + $0x120] ss:$60 sps:$4 sm:$0xff]  }
 0x70c   :  { %13344 = vmatpush1.bf16.msra.mxu1 %v21171_v13 }
 0x70d   :  { %18544 = vmatpush3.bf16.msra.mxu0 %v21175_v14  ;;  %13345 = vmatprep.subr.bf16.mxu1 %v21178_v19  ;;  %v21213_v14 = vld [vmem:[#allocation7 + $0x19c] ss:$60 sps:$4 sm:$0xff]  }
 0x70e   :  { %18551 = vmatprep.subr.bf16.mxu0 %v21179_v23  ;;  %v21214_v23 = vld [vmem:[#allocation7 + $0x3440] ss:$60 sps:$4 sm:$0xff]  }
 0x710   :  { %14169 = vmatmul.mubr.bf16.vlgmr.msra.gmra.mrb[48].mxu0 %v22434_v27  ;;  %13346 = vmatpush1.bf16.msra.mxu1 %v21176_v26  ;;  %v18603_v26 = vadd.f32 %v22473_v31, %v3347_v6  ;;  %v21222_v31 = vld [vmem:[#allocation7 + $0x288] ss:$60 sps:$4 sm:$0xff]  }
 0x711   :  { %18552 = vmatpush3.bf16.msra.mxu0 %v21180_v29  ;;  %14208 = vmatprep.mubr.bf16.mxu0 %v22436_v28  ;;  %v21211_v29 = vld [vmem:[#allocation7 + $0x198] ss:$60 sps:$4 sm:$0xff]   ;;  %v21248_v6 = vld [vmem:[#allocation7 + $0x46c] ss:$60 sps:$4 sm:$0xff]  }
 0x712   :  { %13347 = vmatprep.subr.bf16.mxu1 %v21183_v30  ;;  %18553 = vmatprep.subr.bf16.mxu0 %v21184_v20  ;;  %v21215_v30 = vld [vmem:[#allocation7 + $0x3080] ss:$60 sps:$4 sm:$0xff]   ;;  %v21218_v20 = vld [vmem:[#allocation7 + $0x214] ss:$60 sps:$4 sm:$0xff]  }
 0x714   :  { %13348 = vmatpush1.bf16.msra.mxu1 %v21181_v32  ;;  %v21221_v32 = vld [vmem:[#allocation10 + $0x4] ss:$8 sps:$4 sm:$0xff]  }
 0x715   :  { %18554 = vmatpush3.bf16.msra.mxu0 %v21185_v11  ;;  %13349 = vmatprep.subr.bf16.mxu1 %v21188_v33  ;;  %v14217_v11 = vmax.f32 %v18603_v26, 0.0  ;;  %v21216_v33 = vld [vmem:[#allocation7 + $0x210] ss:$60 sps:$4 sm:$0xff]  }
 0x716   :  { %18555 = vmatprep.subr.bf16.mxu0 %v21189_v22  ;;  %v21219_v22 = vld [vmem:[#allocation10] ss:$8 sps:$4 sm:$0xff]  }
 0x718   :  { %13350 = vmatpush1.bf16.msra.mxu1 %v21186_v35  ;;  %v21224_v35 = vld [vmem:[#allocation7 + $0x28c] ss:$60 sps:$4 sm:$0xff]  }
 0x719   :  { %18556 = vmatpush3.bf16.msra.mxu0 %v21190_v37  ;;  %13351 = vmatprep.subr.bf16.mxu1 %v21193_v38  ;;  %v21227_v37 = vld [vmem:[#allocation10 + $0x14] ss:$8 sps:$4 sm:$0xff]   ;;  %v14232_v38 = vpack.c.bf16 %v14217_v11, %v14217_v11  ;;  %v21260_v11 = vld [vmem:[#allocation7 + $0x55c] ss:$60 sps:$4 sm:$0xff]  }
 0x71a   :  { %18557 = vmatprep.subr.bf16.mxu0 %v21194_v40  ;;  %v21225_v40 = vld [vmem:[#allocation10 + $0x10] ss:$8 sps:$4 sm:$0xff]  }
 0x71c   :  { %13352 = vmatpush1.bf16.msra.mxu1 %v21191_v46  ;;  %v21230_v46 = vld [vmem:[#allocation7 + $0x304] ss:$60 sps:$4 sm:$0xff]  }
 0x71d   :  { %18558 = vmatpush3.bf16.msra.mxu0 %v21195_v48  ;;  %13649 = vmatprep.subr.bf16.mxu1 %v21198_v49  ;;  %v21233_v48 = vld [vmem:[#allocation10 + $0x24] ss:$8 sps:$4 sm:$0xff]  }
 0x71e   :  { %18559 = vmatprep.subr.bf16.mxu0 %v21199_v50  ;;  %v21228_v49 = vld [vmem:[#allocation7 + $0x300] ss:$60 sps:$4 sm:$0xff]   ;;  %v21231_v50 = vld [vmem:[#allocation10 + $0x20] ss:$8 sps:$4 sm:$0xff]  }
 0x71f   :  { %13354 = vmatmul.mubr.bf16.vlgmr.msra.gmra.mrb[24].mxu1 %v22445_v62 }
 0x720   :  { %13650 = vmatpush1.bf16.msra.mxu1 %v21196_v52  ;;  %13681 = vmatprep.mubr.bf16.mxu1 %v22333_v15  ;;  %v21210_v15 = vld [vmem:[#allocation7 + $0x3008] ss:$60 sps:$4 sm:$0xff]   ;;  %v21236_v52 = vld [vmem:[#allocation7 + $0x37c] ss:$60 sps:$4 sm:$0xff]  }
 0x721   :  { %18560 = vmatpush3.bf16.msra.mxu0 %v21200_v53  ;;  %13651 = vmatprep.subr.bf16.mxu1 %v21203_v55  ;;  %v21239_v53 = vld [vmem:[#allocation10 + $0x34] ss:$8 sps:$4 sm:$0xff]   ;;  %v21234_v55 = vld [vmem:[#allocation7 + $0x378] ss:$60 sps:$4 sm:$0xff]  }
 0x722   :  { %18561 = vmatprep.subr.bf16.mxu0 %v21204_v57  ;;  %v21237_v57 = vld [vmem:[#allocation10 + $0x30] ss:$8 sps:$4 sm:$0xff]  }
 0x723   :  { %v22553_v7 = vpop.f32.mrb[24].mxu0 }
 0x724   :  { %v22555_v8 = vpop.f32.mrb[25].mxu0  ;;  %13652 = vmatpush1.bf16.msra.mxu1 %v21201_v56  ;;  %v21242_v56 = vld [vmem:[#allocation7 + $0x3f4] ss:$60 sps:$4 sm:$0xff]  }
 0x725   :  { %v13646_v13 = vpop.f32.mrb[26].mxu0  ;;  %18562 = vmatpush3.bf16.msra.mxu0 %v21205_v58  ;;  %13653 = vmatprep.subr.bf16.mxu1 %v21208_v60  ;;  %v21245_v58 = vld [vmem:[#allocation10 + $0x44] ss:$8 sps:$4 sm:$0xff]   ;;  %v21240_v60 = vld [vmem:[#allocation7 + $0x3f0] ss:$60 sps:$4 sm:$0xff]  }
 0x726   :  { %v13647_v19 = vpop.f32.mrb[27].mxu0  ;;  %18563 = vmatprep.subr.bf16.mxu0 %v21209_v25  ;;  %v21243_v25 = vld [vmem:[#allocation10 + $0x40] ss:$8 sps:$4 sm:$0xff]   ;;  %v21246_v13 = vld [vmem:[#allocation7 + $0x468] ss:$60 sps:$4 sm:$0xff]  }
 0x727   :  { %v21257_v19 = vld [vmem:[#allocation10 + $0x64] ss:$8 sps:$4 sm:$0xff]  }
 0x728   :  { %13654 = vmatpush1.bf16.msra.mxu1 %v21206_v10  ;;  %v21251_v10 = vld [vmem:[#allocation10 + $0x54] ss:$8 sps:$4 sm:$0xff]  }
 0x729   :  { %18564 = vmatpush3.bf16.msra.mxu0 %v21210_v15  ;;  %13655 = vmatprep.subr.bf16.mxu1 %v21213_v14  ;;  %v21249_v15 = vld [vmem:[#allocation10 + $0x50] ss:$8 sps:$4 sm:$0xff]  }
 0x72a   :  { %18565 = vmatprep.subr.bf16.mxu0 %v21214_v23  ;;  %v21254_v14 = vld [vmem:[#allocation7 + $0x4e4] ss:$60 sps:$4 sm:$0xff]  }
 0x72c   :  { %13656 = vmatpush1.bf16.msra.mxu1 %v21211_v29  ;;  %v21252_v29 = vld [vmem:[#allocation7 + $0x4e0] ss:$60 sps:$4 sm:$0xff]  }
 0x72d   :  { %18566 = vmatpush3.bf16.msra.mxu0 %v21215_v30  ;;  %13657 = vmatprep.subr.bf16.mxu1 %v21218_v20 }
 0x72e   :  { %15698 = vmatprep.subr.bf16.mxu0 %v21221_v32  ;;  %v21255_v32 = vld [vmem:[#allocation10 + $0x60] ss:$8 sps:$4 sm:$0xff]  }
 0x730   :  { %14209 = vmatmul.mubr.bf16.vlgmr.msra.gmra.mrb[52].mxu0 %v22445_v62  ;;  %13658 = vmatpush1.bf16.msra.mxu1 %v21216_v33 }
 0x731   :  { %15699 = vmatpush1.bf16.msra.mxu0 %v21219_v22  ;;  %15730 = vmatprep.mubr.bf16.mxu0 %v14232_v38  ;;  %v21263_v22 = vld [vmem:[#allocation10 + $0x74] ss:$8 sps:$4 sm:$0xff]   ;;  %v21266_v38 = vld [vmem:[#allocation7 + $0x5d4] ss:$60 sps:$4 sm:$0xff]  }
 0x732   :  { %13659 = vmatprep.subr.bf16.mxu1 %v21224_v35  ;;  %15700 = vmatprep.subr.bf16.mxu0 %v21227_v37  ;;  %v21258_v35 = vld [vmem:[#allocation7 + $0x558] ss:$60 sps:$4 sm:$0xff]   ;;  %v21261_v37 = vld [vmem:[#allocation10 + $0x70] ss:$8 sps:$4 sm:$0xff]  }
 0x734   :  { %13660 = vmatpush1.bf16.msra.mxu1 %v21222_v31  ;;  %v21269_v31 = vld [vmem:[#allocation10 + $0x84] ss:$8 sps:$4 sm:$0xff]  }
 0x735   :  { %15701 = vmatpush1.bf16.msra.mxu0 %v21225_v40  ;;  %13661 = vmatprep.subr.bf16.mxu1 %v21230_v46  ;;  %v21264_v40 = vld [vmem:[#allocation7 + $0x5d0] ss:$60 sps:$4 sm:$0xff]  }
 0x736   :  { %15702 = vmatprep.subr.bf16.mxu0 %v21233_v48  ;;  %v21267_v46 = vld [vmem:[#allocation10 + $0x80] ss:$8 sps:$4 sm:$0xff]   ;;  %v21272_v48 = vld [vmem:[#allocation7 + $0x64c] ss:$60 sps:$4 sm:$0xff]  }
 0x738   :  { %13662 = vmatpush1.bf16.msra.mxu1 %v21228_v49  ;;  %v21275_v49 = vld [vmem:[#allocation10 + $0x94] ss:$8 sps:$4 sm:$0xff]  }
 0x739   :  { %15703 = vmatpush1.bf16.msra.mxu0 %v21231_v50  ;;  %13663 = vmatprep.subr.bf16.mxu1 %v21236_v52  ;;  %v21270_v50 = vld [vmem:[#allocation7 + $0x648] ss:$60 sps:$4 sm:$0xff]  }
 0x73a   :  { %15704 = vmatprep.subr.bf16.mxu0 %v21239_v53  ;;  %v21273_v52 = vld [vmem:[#allocation10 + $0x90] ss:$8 sps:$4 sm:$0xff]  }
 0x73b   :  { %v21278_v53 = vld [vmem:[#allocation7 + $0x6c4] ss:$60 sps:$4 sm:$0xff]  }
 0x73c   :  { %13664 = vmatpush1.bf16.msra.mxu1 %v21234_v55  ;;  %v21281_v55 = vld [vmem:[#allocation10 + $0xa4] ss:$8 sps:$4 sm:$0xff]  }
 0x73d   :  { %15705 = vmatpush1.bf16.msra.mxu0 %v21237_v57  ;;  %13665 = vmatprep.subr.bf16.mxu1 %v21242_v56  ;;  %v21276_v57 = vld [vmem:[#allocation7 + $0x6c0] ss:$60 sps:$4 sm:$0xff]   ;;  %v21279_v56 = vld [vmem:[#allocation10 + $0xa0] ss:$8 sps:$4 sm:$0xff]  }
 0x73e   :  { %15706 = vmatprep.subr.bf16.mxu0 %v21245_v58  ;;  %v21284_v58 = vld [vmem:[#allocation7 + $0x73c] ss:$60 sps:$4 sm:$0xff]  }
 0x740   :  { %13666 = vmatpush1.bf16.msra.mxu1 %v21240_v60  ;;  %v21287_v60 = vld [vmem:[#allocation10 + $0xb4] ss:$8 sps:$4 sm:$0xff]  }
 0x741   :  { %15707 = vmatpush1.bf16.msra.mxu0 %v21243_v25  ;;  %13667 = vmatprep.subr.bf16.mxu1 %v21248_v6  ;;  %v21282_v25 = vld [vmem:[#allocation7 + $0x738] ss:$60 sps:$4 sm:$0xff]   ;;  %v21285_v6 = vld [vmem:[#allocation10 + $0xb0] ss:$8 sps:$4 sm:$0xff]  }
 0x742   :  { %15708 = vmatprep.subr.bf16.mxu0 %v21251_v10  ;;  %v21290_v10 = vld [vmem:[#allocation7 + $0x7b4] ss:$60 sps:$4 sm:$0xff]  }
 0x743   :  { %v18435_v23 = vpop.f32.mrb[28].mxu0 }
 0x744   :  { %v18436_v26 = vpop.f32.mrb[29].mxu0  ;;  %13668 = vmatpush1.bf16.msra.mxu1 %v21246_v13  ;;  %v21293_v13 = vld [vmem:[#allocation10 + $0xc4] ss:$8 sps:$4 sm:$0xff]  }
 0x745   :  { %v22559_v30 = vadd.f32 %v18436_v26, %v18435_v23  ;;  %v18438_v20 = vpop.f32.mrb[30].mxu0  ;;  %15709 = vmatpush1.bf16.msra.mxu0 %v21249_v15  ;;  %13669 = vmatprep.subr.bf16.mxu1 %v21254_v14  ;;  %v21288_v15 = vld [vmem:[#allocation7 + $0x7b0] ss:$60 sps:$4 sm:$0xff]  }
 0x746   :  { %v18439_v33 = vpop.f32.mrb[31].mxu0  ;;  %15710 = vmatprep.subr.bf16.mxu0 %v21257_v19  ;;  %v21291_v14 = vld [vmem:[#allocation10 + $0xc0] ss:$8 sps:$4 sm:$0xff]   ;;  %v21296_v19 = vld [vmem:[#allocation7 + $0x82c] ss:$60 sps:$4 sm:$0xff]  }
 0x747   :  { %v21299_v23 = vld [vmem:[#allocation10 + $0xd4] ss:$8 sps:$4 sm:$0xff]   ;;  %v3343_v33 = vrot.slane %v22549_v5, %v22322_v0 }
 0x748   :  { %13670 = vmatpush1.bf16.msra.mxu1 %v21252_v29  ;;  %v22562_v26 = vld [vmem:[#allocation9 + $0x8] sm:$0xff] }
 0x749   :  { %15711 = vmatpush1.bf16.msra.mxu0 %v21255_v32  ;;  %13671 = vmatprep.subr.bf16.mxu1 %v21260_v11  ;;  %v21294_v29 = vld [vmem:[#allocation7 + $0x828] ss:$60 sps:$4 sm:$0xff]   ;;  %v3399_v20 = vrot.slane %v22562_v26, %v22387_v24 }
 0x74a   :  { %15712 = vmatprep.subr.bf16.mxu0 %v21263_v22  ;;  %v21297_v32 = vld [vmem:[#allocation10 + $0xd0] ss:$8 sps:$4 sm:$0xff]   ;;  %v21305_v22 = vld [vmem:[#allocation10 + $0xe4] ss:$8 sps:$4 sm:$0xff]  }
 0x74b   :  { %v21302_v11 = vld [vmem:[#allocation7 + $0x8a4] ss:$60 sps:$4 sm:$0xff]  }
 0x74c   :  { %13672 = vmatpush1.bf16.msra.mxu1 %v21258_v35 }
 0x74d   :  { %15713 = vmatpush1.bf16.msra.mxu0 %v21261_v37  ;;  %13673 = vmatprep.subr.bf16.mxu1 %v21266_v38  ;;  %v21300_v37 = vld [vmem:[#allocation7 + $0x8a0] ss:$60 sps:$4 sm:$0xff]   ;;  %v13971_v38 = vadd.f32 %v22559_v30, %v3399_v20 }
 0x74e   :  { %15714 = vmatprep.subr.bf16.mxu0 %v21269_v31  ;;  %v21332_v20 = vld [vmem:[#allocation7 + $0xafc] ss:$60 sps:$4 sm:$0xff]  }
 0x750   :  { %13674 = vmatpush1.bf16.msra.mxu1 %v21264_v40  ;;  %v21303_v40 = vld [vmem:[#allocation10 + $0xe0] ss:$8 sps:$4 sm:$0xff]  }
 0x751   :  { %15715 = vmatpush1.bf16.msra.mxu0 %v21267_v46  ;;  %13675 = vmatprep.subr.bf16.mxu1 %v21272_v48  ;;  %v21308_v46 = vld [vmem:[#allocation7 + $0x91c] ss:$60 sps:$4 sm:$0xff]   ;;  %v18602_v48 = vadd.f32 %v22471_v51, %v3343_v33  ;;  %v21333_v33 = vld [vmem:[#allocation10 + $0x130] ss:$8 sps:$4 sm:$0xff]  }
 0x752   :  { %15716 = vmatprep.subr.bf16.mxu0 %v21275_v49  ;;  %v21315_v51 = vld [vmem:[#allocation10 + $0x100] ss:$8 sps:$4 sm:$0xff]  }
 0x753   :  { %v14216_v30 = vmax.f32 %v18602_v48, 0.0  ;;  %v21353_v48 = vld [vmem:[#allocation10 + $0x164] ss:$8 sps:$4 sm:$0xff]  }
 0x754   :  { %13676 = vmatpush1.bf16.msra.mxu1 %v21270_v50  ;;  %v21311_v50 = vld [vmem:[#allocation10 + $0xf4] ss:$8 sps:$4 sm:$0xff]  }
 0x755   :  { %15717 = vmatpush1.bf16.msra.mxu0 %v21273_v52  ;;  %13677 = vmatprep.subr.bf16.mxu1 %v21278_v53  ;;  %v21306_v53 = vld [vmem:[#allocation7 + $0x918] ss:$60 sps:$4 sm:$0xff]  }
 0x756   :  { %15718 = vmatprep.subr.bf16.mxu0 %v21281_v55  ;;  %v21309_v55 = vld [vmem:[#allocation10 + $0xf0] ss:$8 sps:$4 sm:$0xff]  }
 0x758   :  { %13678 = vmatpush1.bf16.msra.mxu1 %v21276_v57  ;;  %v21314_v57 = vld [vmem:[#allocation7 + $0x994] ss:$60 sps:$4 sm:$0xff]  }
 0x759   :  { %15719 = vmatpush1.bf16.msra.mxu0 %v21279_v56  ;;  %13679 = vmatprep.subr.bf16.mxu1 %v21284_v58  ;;  %v21317_v56 = vld [vmem:[#allocation10 + $0x104] ss:$8 sps:$4 sm:$0xff]   ;;  %v14219_v58 = vmax.f32 %v22489_v18, 0.0 }
 0x75a   :  { %15720 = vmatprep.subr.bf16.mxu0 %v21287_v60  ;;  %v21312_v60 = vld [vmem:[#allocation7 + $0x990] ss:$60 sps:$4 sm:$0xff]   ;;  %v21329_v18 = vld [vmem:[#allocation10 + $0x124] ss:$8 sps:$4 sm:$0xff]  }
 0x75c   :  { %13680 = vmatpush1.bf16.msra.mxu1 %v21282_v25  ;;  %v14231_v25 = vpack.c.bf16 %v14216_v30, %v14216_v30  ;;  %v21351_v30 = vld [vmem:[#allocation10 + $0x160] ss:$8 sps:$4 sm:$0xff]  }
 0x75d   :  { %15721 = vmatpush1.bf16.msra.mxu0 %v21285_v6  ;;  %13690 = vmatprep.subr.bf16.mxu1 %v21290_v10  ;;  %v21320_v6 = vld [vmem:[#allocation7 + $0xa0c] ss:$60 sps:$4 sm:$0xff]  }
 0x75e   :  { %15722 = vmatprep.subr.bf16.mxu0 %v21293_v13  ;;  %v21323_v10 = vld [vmem:[#allocation10 + $0x114] ss:$8 sps:$4 sm:$0xff]   ;;  %v14234_v13 = vpack.c.bf16 %v14219_v58, %v14219_v58 }
 0x75f   :  { %13682 = vmatmul.mubr.bf16.vlgmr.msra.gmra.mrb[28].mxu1 %v22335_v16 }
 0x760   :  { %13691 = vmatpush1.bf16.msra.mxu1 %v21288_v15  ;;  %13722 = vmatprep.mubr.bf16.mxu1 %v22346_v34  ;;  %v21318_v15 = vld [vmem:[#allocation7 + $0xa08] ss:$60 sps:$4 sm:$0xff]  }
 0x761   :  { %15723 = vmatpush1.bf16.msra.mxu0 %v21291_v14  ;;  %13692 = vmatprep.subr.bf16.mxu1 %v21296_v19  ;;  %v21321_v14 = vld [vmem:[#allocation10 + $0x110] ss:$8 sps:$4 sm:$0xff]  }
 0x762   :  { %15724 = vmatprep.subr.bf16.mxu0 %v21299_v23  ;;  %v21326_v19 = vld [vmem:[#allocation7 + $0xa84] ss:$60 sps:$4 sm:$0xff]  }
 0x763   :  { %v18457_v35 = vpop.f32.mrb[32].mxu0  ;;  %v21324_v23 = vld [vmem:[#allocation7 + $0xa80] ss:$60 sps:$4 sm:$0xff]  }
 0x764   :  { %v18458_v16 = vpop.f32.mrb[33].mxu0  ;;  %13693 = vmatpush1.bf16.msra.mxu1 %v21294_v29  ;;  %v21327_v29 = vld [vmem:[#allocation10 + $0x120] ss:$8 sps:$4 sm:$0xff]  }
 0x765   :  { %v18459_v34 = vadd.f32 %v18458_v16, %v18457_v35  ;;  %v18460_v31 = vpop.f32.mrb[34].mxu0  ;;  %15725 = vmatpush1.bf16.msra.mxu0 %v21297_v32  ;;  %13694 = vmatprep.subr.bf16.mxu1 %v21302_v11  ;;  %v21335_v32 = vld [vmem:[#allocation10 + $0x134] ss:$8 sps:$4 sm:$0xff]   ;;  %v21330_v11 = vld [vmem:[#allocation7 + $0xaf8] ss:$60 sps:$4 sm:$0xff]  }
 0x766   :  { %v18461_v49 = vpop.f32.mrb[35].mxu0  ;;  %15726 = vmatprep.subr.bf16.mxu0 %v21305_v22  ;;  %v21338_v22 = vld [vmem:[#allocation7 + $0xb74] ss:$60 sps:$4 sm:$0xff]   ;;  %v21342_v31 = vld [vmem:[#allocation7 + $0xbe8] ss:$60 sps:$4 sm:$0xff]  }
 0x767   :  { %v22571_v52 = vadd.f32 %v18459_v34, %v13971_v38  ;;  %v21341_v35 = vld [vmem:[#allocation10 + $0x144] ss:$8 sps:$4 sm:$0xff]   ;;  %v21336_v16 = vld [vmem:[#allocation7 + $0xb70] ss:$60 sps:$4 sm:$0xff]  }
 0x768   :  { %13695 = vmatpush1.bf16.msra.mxu1 %v21300_v37  ;;  %v21339_v37 = vld [vmem:[#allocation10 + $0x140] ss:$8 sps:$4 sm:$0xff]   ;;  %v21344_v38 = vld [vmem:[#allocation7 + $0xbec] ss:$60 sps:$4 sm:$0xff]  }
 0x769   :  { %15727 = vmatpush1.bf16.msra.mxu0 %v21303_v40  ;;  %13696 = vmatprep.subr.bf16.mxu1 %v21308_v46  ;;  %v21347_v34 = vld [vmem:[#allocation10 + $0x154] ss:$8 sps:$4 sm:$0xff]   ;;  %v21345_v40 = vld [vmem:[#allocation10 + $0x150] ss:$8 sps:$4 sm:$0xff]  }
 0x76a   :  { %15728 = vmatprep.subr.bf16.mxu0 %v21311_v50  ;;  %v21350_v46 = vld [vmem:[#allocation7 + $0xc64] ss:$60 sps:$4 sm:$0xff]  }
 0x76c   :  { %13697 = vmatpush1.bf16.msra.mxu1 %v21306_v53  ;;  %v21348_v53 = vld [vmem:[#allocation7 + $0xc60] ss:$60 sps:$4 sm:$0xff]  }
 0x76d   :  { %15729 = vmatpush1.bf16.msra.mxu0 %v21309_v55  ;;  %13698 = vmatprep.subr.bf16.mxu1 %v21314_v57 }
 0x76e   :  { %15739 = vmatprep.subr.bf16.mxu0 %v21317_v56  ;;  %v21356_v56 = vld [vmem:[#allocation7 + $0xcdc] ss:$60 sps:$4 sm:$0xff]  }
 0x770   :  { %15731 = vmatmul.mubr.bf16.vlgmr.msra.gmra.mrb[56].mxu0 %v14231_v25  ;;  %13699 = vmatpush1.bf16.msra.mxu1 %v21312_v60  ;;  %v21359_v60 = vld [vmem:[#allocation10 + $0x174] ss:$8 sps:$4 sm:$0xff]   ;;  %v21354_v25 = vld [vmem:[#allocation7 + $0xcd8] ss:$60 sps:$4 sm:$0xff]  }
 0x771   :  { %15740 = vmatpush1.bf16.msra.mxu0 %v21315_v51  ;;  %15771 = vmatprep.mubr.bf16.mxu0 %v14234_v13  ;;  %v21365_v13 = vld [vmem:[#allocation10 + $0x184] ss:$8 sps:$4 sm:$0xff]  }
 0x772   :  { %13700 = vmatprep.subr.bf16.mxu1 %v21320_v6  ;;  %15741 = vmatprep.subr.bf16.mxu0 %v21323_v10  ;;  %v21357_v6 = vld [vmem:[#allocation10 + $0x170] ss:$8 sps:$4 sm:$0xff]   ;;  %v21362_v10 = vld [vmem:[#allocation7 + $0xd54] ss:$60 sps:$4 sm:$0xff]  }
 0x774   :  { %13701 = vmatpush1.bf16.msra.mxu1 %v21318_v15  ;;  %v21360_v15 = vld [vmem:[#allocation7 + $0xd50] ss:$60 sps:$4 sm:$0xff]  }
 0x775   :  { %15742 = vmatpush1.bf16.msra.mxu0 %v21321_v14  ;;  %13702 = vmatprep.subr.bf16.mxu1 %v21326_v19  ;;  %v21363_v14 = vld [vmem:[#allocation10 + $0x180] ss:$8 sps:$4 sm:$0xff]   ;;  %v21368_v19 = vld [vmem:[#allocation7 + $0xdcc] ss:$60 sps:$4 sm:$0xff]  }
 0x776   :  { %15743 = vmatprep.subr.bf16.mxu0 %v21329_v18  ;;  %v21371_v18 = vld [vmem:[#allocation10 + $0x194] ss:$8 sps:$4 sm:$0xff]  }
 0x778   :  { %13703 = vmatpush1.bf16.msra.mxu1 %v21324_v23  ;;  %v21366_v23 = vld [vmem:[#allocation7 + $0xdc8] ss:$60 sps:$4 sm:$0xff]  }
 0x779   :  { %15744 = vmatpush1.bf16.msra.mxu0 %v21327_v29  ;;  %13704 = vmatprep.subr.bf16.mxu1 %v21332_v20  ;;  %v21374_v29 = vld [vmem:[#allocation7 + $0xe44] ss:$60 sps:$4 sm:$0xff]   ;;  %v21377_v20 = vld [vmem:[#allocation10 + $0x1a4] ss:$8 sps:$4 sm:$0xff]  }
 0x77a   :  { %15745 = vmatprep.subr.bf16.mxu0 %v21335_v32  ;;  %v21372_v32 = vld [vmem:[#allocation7 + $0xe40] ss:$60 sps:$4 sm:$0xff]  }
 0x77c   :  { %13705 = vmatpush1.bf16.msra.mxu1 %v21330_v11  ;;  %v21375_v11 = vld [vmem:[#allocation10 + $0x1a0] ss:$8 sps:$4 sm:$0xff]  }
 0x77d   :  { %15746 = vmatpush1.bf16.msra.mxu0 %v21333_v33  ;;  %13706 = vmatprep.subr.bf16.mxu1 %v21338_v22  ;;  %v21380_v33 = vld [vmem:[#allocation7 + $0xebc] ss:$60 sps:$4 sm:$0xff]   ;;  %v21383_v22 = vld [vmem:[#allocation10 + $0x1b4] ss:$8 sps:$4 sm:$0xff]  }
 0x77e   :  { %15747 = vmatprep.subr.bf16.mxu0 %v21341_v35  ;;  %v21378_v35 = vld [vmem:[#allocation7 + $0xeb8] ss:$60 sps:$4 sm:$0xff]  }
 0x780   :  { %13707 = vmatpush1.bf16.msra.mxu1 %v21336_v16  ;;  %v21381_v16 = vld [vmem:[#allocation10 + $0x1b0] ss:$8 sps:$4 sm:$0xff]  }
 0x781   :  { %15748 = vmatpush1.bf16.msra.mxu0 %v21339_v37  ;;  %13708 = vmatprep.subr.bf16.mxu1 %v21344_v38  ;;  %v21386_v37 = vld [vmem:[#allocation7 + $0xf34] ss:$60 sps:$4 sm:$0xff]  }
 0x782   :  { %15749 = vmatprep.subr.bf16.mxu0 %v21347_v34  ;;  %v21389_v38 = vld [vmem:[#allocation10 + $0x1c4] ss:$8 sps:$4 sm:$0xff]   ;;  %v21384_v34 = vld [vmem:[#allocation7 + $0xf30] ss:$60 sps:$4 sm:$0xff]  }
 0x783   :  { %v18479_v49 = vpop.f32.mrb[36].mxu0 }
 0x784   :  { %v18480_v50 = vpop.f32.mrb[37].mxu0  ;;  %13709 = vmatpush1.bf16.msra.mxu1 %v21342_v31  ;;  %v21387_v31 = vld [vmem:[#allocation10 + $0x1c0] ss:$8 sps:$4 sm:$0xff]  }
 0x785   :  { %v18481_v55 = vadd.f32 %v18480_v50, %v18479_v49  ;;  %v18482_v57 = vpop.f32.mrb[38].mxu0  ;;  %15750 = vmatpush1.bf16.msra.mxu0 %v21345_v40  ;;  %13710 = vmatprep.subr.bf16.mxu1 %v21350_v46  ;;  %v21392_v40 = vld [vmem:[#allocation7 + $0xfac] ss:$60 sps:$4 sm:$0xff]   ;;  %v21398_v50 = vld [vmem:[#allocation7 + $0x1024] ss:$60 sps:$4 sm:$0xff]  }
 0x786   :  { %v18483_v58 = vpop.f32.mrb[39].mxu0  ;;  %15751 = vmatprep.subr.bf16.mxu0 %v21353_v48  ;;  %v21395_v46 = vld [vmem:[#allocation10 + $0x1d4] ss:$8 sps:$4 sm:$0xff]   ;;  %v21393_v49 = vld [vmem:[#allocation10 + $0x1d0] ss:$8 sps:$4 sm:$0xff]  }
 0x787   :  { %v22575_v51 = vadd.f32 %v18481_v55, %v22571_v52  ;;  %v21369_v52 = vld [vmem:[#allocation10 + $0x190] ss:$8 sps:$4 sm:$0xff]   ;;  %v3363_v55 = vrot.slane %v22549_v5, %v22353_v43 }
 0x788   :  { %13711 = vmatpush1.bf16.msra.mxu1 %v21348_v53  ;;  %v21390_v48 = vld [vmem:[#allocation7 + $0xfa8] ss:$60 sps:$4 sm:$0xff]   ;;  %v21401_v53 = vld [vmem:[#allocation10 + $0x1e4] ss:$8 sps:$4 sm:$0xff]  }
 0x789   :  { %15752 = vmatpush1.bf16.msra.mxu0 %v21351_v30  ;;  %13712 = vmatprep.subr.bf16.mxu1 %v21356_v56  ;;  %v21396_v56 = vld [vmem:[#allocation7 + $0x1020] ss:$60 sps:$4 sm:$0xff]  }
 0x78a   :  { %15753 = vmatprep.subr.bf16.mxu0 %v21359_v60 }
 0x78c   :  { %13713 = vmatpush1.bf16.msra.mxu1 %v21354_v25 }
 0x78d   :  { %15754 = vmatpush1.bf16.msra.mxu0 %v21357_v6  ;;  %13714 = vmatprep.subr.bf16.mxu1 %v21362_v10  ;;  %v21407_v6 = vld [vmem:[#allocation10 + $0x1f4] ss:$8 sps:$4 sm:$0xff]   ;;  %v18609_v10 = vadd.f32 %v22525_v47, %v3363_v55 }
 0x78e   :  { %15755 = vmatprep.subr.bf16.mxu0 %v21365_v13  ;;  %v21443_v55 = vld [vmem:[#allocation10 + $0x254] ss:$8 sps:$4 sm:$0xff]  }
 0x790   :  { %13715 = vmatpush1.bf16.msra.mxu1 %v21360_v15  ;;  %v21402_v15 = vld [vmem:[#allocation7 + $0x1098] ss:$60 sps:$4 sm:$0xff]  }
 0x791   :  { %15756 = vmatpush1.bf16.msra.mxu0 %v21363_v14  ;;  %13716 = vmatprep.subr.bf16.mxu1 %v21368_v19  ;;  %v21405_v14 = vld [vmem:[#allocation10 + $0x1f0] ss:$8 sps:$4 sm:$0xff]   ;;  %v21410_v19 = vld [vmem:[#allocation7 + $0x1114] ss:$60 sps:$4 sm:$0xff]  }
 0x792   :  { %15757 = vmatprep.subr.bf16.mxu0 %v21371_v18  ;;  %v14218_v18 = vmax.f32 %v22486_v9, 0.0  ;;  %v21422_v9 = vld [vmem:[#allocation7 + $0x1204] ss:$60 sps:$4 sm:$0xff]  }
 0x794   :  { %13717 = vmatpush1.bf16.msra.mxu1 %v21366_v23  ;;  %v21413_v23 = vld [vmem:[#allocation10 + $0x204] ss:$8 sps:$4 sm:$0xff]   ;;  %v14233_v47 = vpack.c.bf16 %v14218_v18, %v14218_v18 }
 0x795   :  { %15758 = vmatpush1.bf16.msra.mxu0 %v21369_v52  ;;  %13718 = vmatprep.subr.bf16.mxu1 %v21374_v29  ;;  %v14221_v52 = vmax.f32 %v18609_v10, 0.0  ;;  %v21408_v29 = vld [vmem:[#allocation7 + $0x1110] ss:$60 sps:$4 sm:$0xff]  }
 0x796   :  { %15759 = vmatprep.subr.bf16.mxu0 %v21377_v20  ;;  %v21411_v20 = vld [vmem:[#allocation10 + $0x200] ss:$8 sps:$4 sm:$0xff]  }
 0x797   :  { %v21447_v10 = vld [vmem:[#allocation10 + $0x260] ss:$8 sps:$4 sm:$0xff]  }
 0x798   :  { %13719 = vmatpush1.bf16.msra.mxu1 %v21372_v32  ;;  %v21419_v32 = vld [vmem:[#allocation10 + $0x214] ss:$8 sps:$4 sm:$0xff]  }
 0x799   :  { %15760 = vmatpush1.bf16.msra.mxu0 %v21375_v11  ;;  %13720 = vmatprep.subr.bf16.mxu1 %v21380_v33  ;;  %v14236_v11 = vpack.c.bf16 %v14221_v52, %v14221_v52  ;;  %v21414_v33 = vld [vmem:[#allocation7 + $0x1188] ss:$60 sps:$4 sm:$0xff]  }
 0x79a   :  { %15761 = vmatprep.subr.bf16.mxu0 %v21383_v22  ;;  %v21417_v22 = vld [vmem:[#allocation10 + $0x210] ss:$8 sps:$4 sm:$0xff]  }
 0x79b   :  { %v21453_v52 = vld [vmem:[#allocation10 + $0x270] ss:$8 sps:$4 sm:$0xff]  }
 0x79c   :  { %13721 = vmatpush1.bf16.msra.mxu1 %v21378_v35  ;;  %v21425_v35 = vld [vmem:[#allocation10 + $0x224] ss:$8 sps:$4 sm:$0xff]  }
 0x79d   :  { %15762 = vmatpush1.bf16.msra.mxu0 %v21381_v16  ;;  %13731 = vmatprep.subr.bf16.mxu1 %v21386_v37  ;;  %v21420_v16 = vld [vmem:[#allocation7 + $0x1200] ss:$60 sps:$4 sm:$0xff]   ;;  %v21423_v37 = vld [vmem:[#allocation10 + $0x220] ss:$8 sps:$4 sm:$0xff]  }
 0x79e   :  { %15763 = vmatprep.subr.bf16.mxu0 %v21389_v38  ;;  %v21428_v38 = vld [vmem:[#allocation7 + $0x127c] ss:$60 sps:$4 sm:$0xff]  }
 0x79f   :  { %13723 = vmatmul.mubr.bf16.vlgmr.msra.gmra.mrb[28].mxu1 %v22377_v36  ;;  %v21399_v36 = vld [vmem:[#allocation10 + $0x1e0] ss:$8 sps:$4 sm:$0xff]  }
 0x7a0   :  { %13732 = vmatpush1.bf16.msra.mxu1 %v21384_v34  ;;  %13763 = vmatprep.mubr.bf16.mxu1 %v22361_v3  ;;  %v21404_v3 = vld [vmem:[#allocation7 + $0x109c] ss:$60 sps:$4 sm:$0xff]   ;;  %v21431_v34 = vld [vmem:[#allocation10 + $0x234] ss:$8 sps:$4 sm:$0xff]  }
 0x7a1   :  { %15764 = vmatpush1.bf16.msra.mxu0 %v21387_v31  ;;  %13733 = vmatprep.subr.bf16.mxu1 %v21392_v40  ;;  %v21426_v31 = vld [vmem:[#allocation7 + $0x1278] ss:$60 sps:$4 sm:$0xff]   ;;  %v21429_v40 = vld [vmem:[#allocation10 + $0x230] ss:$8 sps:$4 sm:$0xff]  }
 0x7a2   :  { %15765 = vmatprep.subr.bf16.mxu0 %v21395_v46  ;;  %v21434_v46 = vld [vmem:[#allocation7 + $0x12f4] ss:$60 sps:$4 sm:$0xff]  }
 0x7a3   :  { %v18501_v57 = vpop.f32.mrb[40].mxu0 }
 0x7a4   :  { %v18502_v30 = vpop.f32.mrb[41].mxu0  ;;  %13734 = vmatpush1.bf16.msra.mxu1 %v21390_v48  ;;  %v21437_v48 = vld [vmem:[#allocation10 + $0x244] ss:$8 sps:$4 sm:$0xff]  }
 0x7a5   :  { %v18503_v58 = vadd.f32 %v18502_v30, %v18501_v57  ;;  %v18504_v60 = vpop.f32.mrb[42].mxu0  ;;  %15766 = vmatpush1.bf16.msra.mxu0 %v21393_v49  ;;  %13735 = vmatprep.subr.bf16.mxu1 %v21398_v50  ;;  %v21432_v49 = vld [vmem:[#allocation7 + $0x12f0] ss:$60 sps:$4 sm:$0xff]   ;;  %v21438_v57 = vld [vmem:[#allocation7 + $0x1368] ss:$60 sps:$4 sm:$0xff]  }
 0x7a6   :  { %v18505_v25 = vpop.f32.mrb[43].mxu0  ;;  %15767 = vmatprep.subr.bf16.mxu0 %v21401_v53  ;;  %v21435_v50 = vld [vmem:[#allocation10 + $0x240] ss:$8 sps:$4 sm:$0xff]   ;;  %v21440_v53 = vld [vmem:[#allocation7 + $0x136c] ss:$60 sps:$4 sm:$0xff]  }
 0x7a7   :  { %v22583_v13 = vadd.f32 %v18503_v58, %v22575_v51  ;;  %v21416_v51 = vld [vmem:[#allocation7 + $0x118c] ss:$60 sps:$4 sm:$0xff]   ;;  %v21449_v58 = vld [vmem:[#allocation10 + $0x264] ss:$8 sps:$4 sm:$0xff]  }
 0x7a8   :  { %13736 = vmatpush1.bf16.msra.mxu1 %v21396_v56  ;;  %v21441_v30 = vld [vmem:[#allocation10 + $0x250] ss:$8 sps:$4 sm:$0xff]  }
 0x7a9   :  { %15768 = vmatpush1.bf16.msra.mxu0 %v21399_v36  ;;  %13737 = vmatprep.subr.bf16.mxu1 %v21404_v3  ;;  %v21446_v56 = vld [vmem:[#allocation7 + $0x13e4] ss:$60 sps:$4 sm:$0xff]  }
 0x7aa   :  { %15769 = vmatprep.subr.bf16.mxu0 %v21407_v6  ;;  %v21444_v3 = vld [vmem:[#allocation7 + $0x13e0] ss:$60 sps:$4 sm:$0xff]  }
 0x7ac   :  { %13738 = vmatpush1.bf16.msra.mxu1 %v21402_v15  ;;  %v21452_v15 = vld [vmem:[#allocation7 + $0x145c] ss:$60 sps:$4 sm:$0xff]  }
 0x7ad   :  { %15770 = vmatpush1.bf16.msra.mxu0 %v21405_v14  ;;  %13739 = vmatprep.subr.bf16.mxu1 %v21410_v19  ;;  %v21455_v19 = vld [vmem:[#allocation10 + $0x274] ss:$8 sps:$4 sm:$0xff]  }
 0x7ae   :  { %15780 = vmatprep.subr.bf16.mxu0 %v21413_v23  ;;  %v21450_v23 = vld [vmem:[#allocation7 + $0x1458] ss:$60 sps:$4 sm:$0xff]  }
 0x7b0   :  { %15772 = vmatmul.mubr.bf16.vlgmr.msra.gmra.mrb[56].mxu0 %v14233_v47  ;;  %13740 = vmatpush1.bf16.msra.mxu1 %v21408_v29  ;;  %v21458_v29 = vld [vmem:[#allocation7 + $0x14d4] ss:$60 sps:$4 sm:$0xff]  }
 0x7b1   :  { %15781 = vmatpush1.bf16.msra.mxu0 %v21411_v20  ;;  %15812 = vmatprep.mubr.bf16.mxu0 %v14236_v11  ;;  %v21461_v20 = vld [vmem:[#allocation10 + $0x284] ss:$8 sps:$4 sm:$0xff]   ;;  %v21456_v47 = vld [vmem:[#allocation7 + $0x14d0] ss:$60 sps:$4 sm:$0xff]  }
 0x7b2   :  { %13741 = vmatprep.subr.bf16.mxu1 %v21416_v51  ;;  %15782 = vmatprep.subr.bf16.mxu0 %v21419_v32  ;;  %v21459_v51 = vld [vmem:[#allocation10 + $0x280] ss:$8 sps:$4 sm:$0xff]   ;;  %v21464_v32 = vld [vmem:[#allocation7 + $0x154c] ss:$60 sps:$4 sm:$0xff]  }
 0x7b3   :  { %v21467_v11 = vld [vmem:[#allocation10 + $0x294] ss:$8 sps:$4 sm:$0xff]  }
 0x7b4   :  { %13742 = vmatpush1.bf16.msra.mxu1 %v21414_v33  ;;  %v21462_v33 = vld [vmem:[#allocation7 + $0x1548] ss:$60 sps:$4 sm:$0xff]  }
 0x7b5   :  { %15783 = vmatpush1.bf16.msra.mxu0 %v21417_v22  ;;  %13743 = vmatprep.subr.bf16.mxu1 %v21422_v9  ;;  %v21470_v22 = vld [vmem:[#allocation7 + $0x15c4] ss:$60 sps:$4 sm:$0xff]   ;;  %v21473_v9 = vld [vmem:[#allocation10 + $0x2a4] ss:$8 sps:$4 sm:$0xff]  }
 0x7b6   :  { %15784 = vmatprep.subr.bf16.mxu0 %v21425_v35  ;;  %v21468_v35 = vld [vmem:[#allocation7 + $0x15c0] ss:$60 sps:$4 sm:$0xff]  }
 0x7b8   :  { %13744 = vmatpush1.bf16.msra.mxu1 %v21420_v16  ;;  %v21471_v16 = vld [vmem:[#allocation10 + $0x2a0] ss:$8 sps:$4 sm:$0xff]  }
 0x7b9   :  { %15785 = vmatpush1.bf16.msra.mxu0 %v21423_v37  ;;  %13745 = vmatprep.subr.bf16.mxu1 %v21428_v38  ;;  %v21476_v37 = vld [vmem:[#allocation7 + $0x163c] ss:$60 sps:$4 sm:$0xff]   ;;  %v21479_v38 = vld [vmem:[#allocation10 + $0x2b4] ss:$8 sps:$4 sm:$0xff]  }
 0x7ba   :  { %15786 = vmatprep.subr.bf16.mxu0 %v21431_v34  ;;  %v21474_v34 = vld [vmem:[#allocation7 + $0x1638] ss:$60 sps:$4 sm:$0xff]  }
 0x7bc   :  { %13746 = vmatpush1.bf16.msra.mxu1 %v21426_v31  ;;  %v21477_v31 = vld [vmem:[#allocation10 + $0x2b0] ss:$8 sps:$4 sm:$0xff]  }
 0x7bd   :  { %15787 = vmatpush1.bf16.msra.mxu0 %v21429_v40  ;;  %13747 = vmatprep.subr.bf16.mxu1 %v21434_v46  ;;  %v21482_v40 = vld [vmem:[#allocation7 + $0x16b4] ss:$60 sps:$4 sm:$0xff]  }
 0x7be   :  { %15788 = vmatprep.subr.bf16.mxu0 %v21437_v48  ;;  %v21485_v46 = vld [vmem:[#allocation10 + $0x2c4] ss:$8 sps:$4 sm:$0xff]   ;;  %v21480_v48 = vld [vmem:[#allocation7 + $0x16b0] ss:$60 sps:$4 sm:$0xff]  }
 0x7c0   :  { %13748 = vmatpush1.bf16.msra.mxu1 %v21432_v49  ;;  %v21483_v49 = vld [vmem:[#allocation10 + $0x2c0] ss:$8 sps:$4 sm:$0xff]  }
 0x7c1   :  { %15789 = vmatpush1.bf16.msra.mxu0 %v21435_v50  ;;  %13749 = vmatprep.subr.bf16.mxu1 %v21440_v53  ;;  %v21488_v50 = vld [vmem:[#allocation7 + $0x172c] ss:$60 sps:$4 sm:$0xff]  }
 0x7c2   :  { %15790 = vmatprep.subr.bf16.mxu0 %v21443_v55  ;;  %v21491_v53 = vld [vmem:[#allocation10 + $0x2d4] ss:$8 sps:$4 sm:$0xff]  }
 0x7c3   :  { %v18523_v60 = vpop.f32.mrb[44].mxu0  ;;  %v21486_v55 = vld [vmem:[#allocation7 + $0x1728] ss:$60 sps:$4 sm:$0xff]  }
 0x7c4   :  { %v18524_v36 = vpop.f32.mrb[45].mxu0  ;;  %13750 = vmatpush1.bf16.msra.mxu1 %v21438_v57  ;;  %v21489_v57 = vld [vmem:[#allocation10 + $0x2d0] ss:$8 sps:$4 sm:$0xff]  }
 0x7c5   :  { %v18525_v25 = vadd.f32 %v18524_v36, %v18523_v60  ;;  %v18526_v6 = vpop.f32.mrb[46].mxu0  ;;  %15791 = vmatpush1.bf16.msra.mxu0 %v21441_v30  ;;  %13751 = vmatprep.subr.bf16.mxu1 %v21446_v56  ;;  %v21494_v30 = vld [vmem:[#allocation7 + $0x17a4] ss:$60 sps:$4 sm:$0xff]   ;;  %v3359_v56 = vrot.slane %v22549_v5, %v22350_v42  ;;  %v3371_v60 = vrot.slane %v22549_v5, %v331_v17  ;;  %v21498_v17 = vld [vmem:[#allocation7 + $0x1818] ss:$60 sps:$4 sm:$0xff]  }
 0x7c6   :  { %v18527_v14 = vpop.f32.mrb[47].mxu0  ;;  %15792 = vmatprep.subr.bf16.mxu0 %v21449_v58  ;;  %v21497_v58 = vld [vmem:[#allocation10 + $0x2e4] ss:$8 sps:$4 sm:$0xff]   ;;  %v21495_v6 = vld [vmem:[#allocation10 + $0x2e0] ss:$8 sps:$4 sm:$0xff]  }
 0x7c7   :  { %v22587_v18 = vadd.f32 %v18525_v25, %v22583_v13  ;;  %v21465_v13 = vld [vmem:[#allocation10 + $0x290] ss:$8 sps:$4 sm:$0xff]  }
 0x7c8   :  { %13752 = vmatpush1.bf16.msra.mxu1 %v21444_v3  ;;  %v21501_v5 = vld [vmem:[#allocation10 + $0x2f0] ss:$8 sps:$4 sm:$0xff]  }
 0x7c9   :  { %15793 = vmatpush1.bf16.msra.mxu0 %v21447_v10  ;;  %13753 = vmatprep.subr.bf16.mxu1 %v21452_v15  ;;  %v21500_v10 = vld [vmem:[#allocation7 + $0x181c] ss:$60 sps:$4 sm:$0xff]   ;;  %v18608_v15 = vadd.f32 %v22523_v1, %v3359_v56  ;;  %v21504_v1 = vld [vmem:[#allocation7 + $0x1890] ss:$60 sps:$4 sm:$0xff]  }
 0x7ca   :  { %15794 = vmatprep.subr.bf16.mxu0 %v21455_v19  ;;  %v21503_v19 = vld [vmem:[#allocation10 + $0x2f4] ss:$8 sps:$4 sm:$0xff]  }
 0x7cb   :  { %v21539_v56 = vld [vmem:[#allocation10 + $0x354] ss:$8 sps:$4 sm:$0xff]  }
 0x7cc   :  { %13754 = vmatpush1.bf16.msra.mxu1 %v21450_v23  ;;  %v18611_v23 = vadd.f32 %v22509_v45, %v3371_v60  ;;  %v21512_v45 = vld [vmem:[#allocation7 + $0x190c] ss:$60 sps:$4 sm:$0xff]  }
 0x7cd   :  { %15795 = vmatpush1.bf16.msra.mxu0 %v21453_v52  ;;  %13755 = vmatprep.subr.bf16.mxu1 %v21458_v29  ;;  %v21506_v52 = vld [vmem:[#allocation7 + $0x1894] ss:$60 sps:$4 sm:$0xff]   ;;  %v14220_v29 = vmax.f32 %v18608_v15, 0.0  ;;  %v21537_v60 = vld [vmem:[#allocation10 + $0x350] ss:$8 sps:$4 sm:$0xff]  }
 0x7ce   :  { %15796 = vmatprep.subr.bf16.mxu0 %v21461_v20  ;;  %v21509_v20 = vld [vmem:[#allocation10 + $0x304] ss:$8 sps:$4 sm:$0xff]   ;;  %v21543_v15 = vld [vmem:[#allocation10 + $0x360] ss:$8 sps:$4 sm:$0xff]  }
 0x7d0   :  { %13756 = vmatpush1.bf16.msra.mxu1 %v21456_v47  ;;  %v14223_v47 = vmax.f32 %v18611_v23, 0.0  ;;  %v21551_v23 = vld [vmem:[#allocation10 + $0x374] ss:$8 sps:$4 sm:$0xff]  }
 0x7d1   :  { %15797 = vmatpush1.bf16.msra.mxu0 %v21459_v51  ;;  %13757 = vmatprep.subr.bf16.mxu1 %v21464_v32  ;;  %v21507_v51 = vld [vmem:[#allocation10 + $0x300] ss:$8 sps:$4 sm:$0xff]   ;;  %v14235_v32 = vpack.c.bf16 %v14220_v29, %v14220_v29 }
 0x7d2   :  { %15798 = vmatprep.subr.bf16.mxu0 %v21467_v11  ;;  %v14238_v11 = vpack.c.bf16 %v14223_v47, %v14223_v47  ;;  %v21554_v29 = vld [vmem:[#allocation7 + $0x1c54] ss:$60 sps:$4 sm:$0xff]  }
 0x7d3   :  { %v21552_v47 = vld [vmem:[#allocation7 + $0x1c50] ss:$60 sps:$4 sm:$0xff]  }
 0x7d4   :  { %13758 = vmatpush1.bf16.msra.mxu1 %v21462_v33  ;;  %v21510_v33 = vld [vmem:[#allocation7 + $0x1908] ss:$60 sps:$4 sm:$0xff]  }
 0x7d5   :  { %15799 = vmatpush1.bf16.msra.mxu0 %v21465_v13  ;;  %13759 = vmatprep.subr.bf16.mxu1 %v21470_v22  ;;  %v21513_v13 = vld [vmem:[#allocation10 + $0x310] ss:$8 sps:$4 sm:$0xff]  }
 0x7d6   :  { %15800 = vmatprep.subr.bf16.mxu0 %v21473_v9  ;;  %v21518_v22 = vld [vmem:[#allocation7 + $0x1984] ss:$60 sps:$4 sm:$0xff]  }
 0x7d8   :  { %13760 = vmatpush1.bf16.msra.mxu1 %v21468_v35  ;;  %v21521_v35 = vld [vmem:[#allocation10 + $0x324] ss:$8 sps:$4 sm:$0xff]  }
 0x7d9   :  { %15801 = vmatpush1.bf16.msra.mxu0 %v21471_v16  ;;  %13761 = vmatprep.subr.bf16.mxu1 %v21476_v37 }
 0x7da   :  { %15802 = vmatprep.subr.bf16.mxu0 %v21479_v38  ;;  %v21516_v38 = vld [vmem:[#allocation7 + $0x1980] ss:$60 sps:$4 sm:$0xff]  }
 0x7dc   :  { %13762 = vmatpush1.bf16.msra.mxu1 %v21474_v34 }
 0x7dd   :  { %15803 = vmatpush1.bf16.msra.mxu0 %v21477_v31  ;;  %13772 = vmatprep.subr.bf16.mxu1 %v21482_v40  ;;  %v21519_v31 = vld [vmem:[#allocation10 + $0x320] ss:$8 sps:$4 sm:$0xff]  }
 0x7de   :  { %15804 = vmatprep.subr.bf16.mxu0 %v21485_v46  ;;  %v21524_v40 = vld [vmem:[#allocation7 + $0x19fc] ss:$60 sps:$4 sm:$0xff]   ;;  %v21527_v46 = vld [vmem:[#allocation10 + $0x334] ss:$8 sps:$4 sm:$0xff]  }
 0x7df   :  { %13764 = vmatmul.mubr.bf16.vlgmr.msra.gmra.mrb[28].mxu1 %v22359_v63  ;;  %v21492_v63 = vld [vmem:[#allocation7 + $0x17a0] ss:$60 sps:$4 sm:$0xff]  }
 0x7e0   :  { %13773 = vmatpush1.bf16.msra.mxu1 %v21480_v48  ;;  %13804 = vmatprep.mubr.bf16.mxu1 %v22380_v41  ;;  %v21522_v48 = vld [vmem:[#allocation7 + $0x19f8] ss:$60 sps:$4 sm:$0xff]  }
 0x7e1   :  { %15805 = vmatpush1.bf16.msra.mxu0 %v21483_v49  ;;  %13774 = vmatprep.subr.bf16.mxu1 %v21488_v50  ;;  %v21525_v49 = vld [vmem:[#allocation10 + $0x330] ss:$8 sps:$4 sm:$0xff]   ;;  %v21530_v50 = vld [vmem:[#allocation7 + $0x1a74] ss:$60 sps:$4 sm:$0xff]  }
 0x7e2   :  { %15806 = vmatprep.subr.bf16.mxu0 %v21491_v53  ;;  %v21533_v53 = vld [vmem:[#allocation10 + $0x344] ss:$8 sps:$4 sm:$0xff]  }
 0x7e3   :  { %v18545_v36 = vpop.f32.mrb[48].mxu0 }
 0x7e4   :  { %v18546_v3 = vpop.f32.mrb[49].mxu0  ;;  %13775 = vmatpush1.bf16.msra.mxu1 %v21486_v55  ;;  %v21528_v55 = vld [vmem:[#allocation7 + $0x1a70] ss:$60 sps:$4 sm:$0xff]  }
 0x7e5   :  { %v18547_v25 = vadd.f32 %v18546_v3, %v18545_v36  ;;  %v18548_v41 = vpop.f32.mrb[50].mxu0  ;;  %15807 = vmatpush1.bf16.msra.mxu0 %v21489_v57  ;;  %13776 = vmatprep.subr.bf16.mxu1 %v21494_v30  ;;  %v21531_v57 = vld [vmem:[#allocation10 + $0x340] ss:$8 sps:$4 sm:$0xff]   ;;  %v21536_v30 = vld [vmem:[#allocation7 + $0x1aec] ss:$60 sps:$4 sm:$0xff]  }
 0x7e6   :  { %v18549_v14 = vpop.f32.mrb[51].mxu0  ;;  %15808 = vmatprep.subr.bf16.mxu0 %v21497_v58  ;;  %v21534_v58 = vld [vmem:[#allocation7 + $0x1ae8] ss:$60 sps:$4 sm:$0xff]   ;;  %v21545_v3 = vld [vmem:[#allocation10 + $0x364] ss:$8 sps:$4 sm:$0xff]  }
 0x7e7   :  { %v22599_v61 = vadd.f32 %v18547_v25, %v22587_v18  ;;  %v21515_v18 = vld [vmem:[#allocation10 + $0x314] ss:$8 sps:$4 sm:$0xff]   ;;  %v21540_v41 = vld [vmem:[#allocation7 + $0x1b60] ss:$60 sps:$4 sm:$0xff]  }
 0x7e8   :  { %13777 = vmatpush1.bf16.msra.mxu1 %v21492_v63  ;;  %v21542_v36 = vld [vmem:[#allocation7 + $0x1b64] ss:$60 sps:$4 sm:$0xff]   ;;  %v21548_v14 = vld [vmem:[#allocation7 + $0x1bdc] ss:$60 sps:$4 sm:$0xff]  }
 0x7e9   :  { %15809 = vmatpush1.bf16.msra.mxu0 %v21495_v6  ;;  %13778 = vmatprep.subr.bf16.mxu1 %v21500_v10 }
 0x7ea   :  { %15810 = vmatprep.subr.bf16.mxu0 %v21503_v19 }
 0x7ec   :  { %13779 = vmatpush1.bf16.msra.mxu1 %v21498_v17 }
 0x7ed   :  { %15811 = vmatpush1.bf16.msra.mxu0 %v21501_v5  ;;  %13780 = vmatprep.subr.bf16.mxu1 %v21506_v52  ;;  %v21546_v5 = vld [vmem:[#allocation7 + $0x1bd8] ss:$60 sps:$4 sm:$0xff]   ;;  %v21549_v52 = vld [vmem:[#allocation10 + $0x370] ss:$8 sps:$4 sm:$0xff]  }
 0x7ee   :  { %15821 = vmatprep.subr.bf16.mxu0 %v21509_v20  ;;  %v21557_v20 = vld [vmem:[#allocation10 + $0x384] ss:$8 sps:$4 sm:$0xff]  }
 0x7f0   :  { %15813 = vmatmul.mubr.bf16.vlgmr.msra.gmra.mrb[56].mxu0 %v14235_v32  ;;  %13781 = vmatpush1.bf16.msra.mxu1 %v21504_v1  ;;  %v21555_v1 = vld [vmem:[#allocation10 + $0x380] ss:$8 sps:$4 sm:$0xff]   ;;  %v21563_v32 = vld [vmem:[#allocation10 + $0x394] ss:$8 sps:$4 sm:$0xff]  }
 0x7f1   :  { %15822 = vmatpush1.bf16.msra.mxu0 %v21507_v51  ;;  %15853 = vmatprep.mubr.bf16.mxu0 %v14238_v11  ;;  %v21560_v51 = vld [vmem:[#allocation7 + $0x1ccc] ss:$60 sps:$4 sm:$0xff]   ;;  %v21569_v11 = vld [vmem:[#allocation10 + $0x3a4] ss:$8 sps:$4 sm:$0xff]  }
 0x7f2   :  { %v22601_v9 = vpop.f32.mrb[24].mxu1  ;;  %13782 = vmatprep.subr.bf16.mxu1 %v21512_v45  ;;  %15823 = vmatprep.subr.bf16.mxu0 %v21515_v18  ;;  %v21558_v45 = vld [vmem:[#allocation7 + $0x1cc8] ss:$60 sps:$4 sm:$0xff]  }
 0x7f3   :  { %v22603_v16 = vpop.f32.mrb[25].mxu1  ;;  %v21566_v18 = vld [vmem:[#allocation7 + $0x1d44] ss:$60 sps:$4 sm:$0xff]  }
 0x7f4   :  { %v13359_v37 = vpop.f32.mrb[26].mxu1  ;;  %13783 = vmatpush1.bf16.msra.mxu1 %v21510_v33  ;;  %v21564_v33 = vld [vmem:[#allocation7 + $0x1d40] ss:$60 sps:$4 sm:$0xff]  }
 0x7f5   :  { %15824 = vmatpush1.bf16.msra.mxu0 %v21513_v13  ;;  %v13360_v34 = vpop.f32.mrb[27].mxu1  ;;  %13784 = vmatprep.subr.bf16.mxu1 %v21518_v22  ;;  %v21567_v13 = vld [vmem:[#allocation10 + $0x3a0] ss:$8 sps:$4 sm:$0xff]  }
 0x7f6   :  { %15825 = vmatprep.subr.bf16.mxu0 %v21521_v35  ;;  %v21572_v22 = vld [vmem:[#allocation7 + $0x1dbc] ss:$60 sps:$4 sm:$0xff]   ;;  %v21575_v35 = vld [vmem:[#allocation10 + $0x3b4] ss:$8 sps:$4 sm:$0xff]   ;;  %v21578_v34 = vld [vmem:[#allocation7 + $0x1e34] ss:$60 sps:$4 sm:$0xff]  }
 0x7f7   :  { %v21570_v37 = vld [vmem:[#allocation7 + $0x1db8] ss:$60 sps:$4 sm:$0xff]  }
 0x7f8   :  { %13785 = vmatpush1.bf16.msra.mxu1 %v21516_v38  ;;  %v21573_v38 = vld [vmem:[#allocation10 + $0x3b0] ss:$8 sps:$4 sm:$0xff]  }
 0x7f9   :  { %15826 = vmatpush1.bf16.msra.mxu0 %v21519_v31  ;;  %13786 = vmatprep.subr.bf16.mxu1 %v21524_v40  ;;  %v21581_v31 = vld [vmem:[#allocation10 + $0x3c4] ss:$8 sps:$4 sm:$0xff]   ;;  %v21576_v40 = vld [vmem:[#allocation7 + $0x1e30] ss:$60 sps:$4 sm:$0xff]  }
 0x7fa   :  { %15827 = vmatprep.subr.bf16.mxu0 %v21527_v46  ;;  %v21579_v46 = vld [vmem:[#allocation10 + $0x3c0] ss:$8 sps:$4 sm:$0xff]  }
 0x7fc   :  { %13787 = vmatpush1.bf16.msra.mxu1 %v21522_v48  ;;  %v21584_v48 = vld [vmem:[#allocation7 + $0x1eac] ss:$60 sps:$4 sm:$0xff]  }
 0x7fd   :  { %15828 = vmatpush1.bf16.msra.mxu0 %v21525_v49  ;;  %13788 = vmatprep.subr.bf16.mxu1 %v21530_v50  ;;  %v21587_v49 = vld [vmem:[#allocation10 + $0x3d4] ss:$8 sps:$4 sm:$0xff]  }
 0x7fe   :  { %15829 = vmatprep.subr.bf16.mxu0 %v21533_v53  ;;  %v21582_v50 = vld [vmem:[#allocation7 + $0x1ea8] ss:$60 sps:$4 sm:$0xff]  }
 0x7ff   :  { %v21585_v53 = vld [vmem:[#allocation10 + $0x3d0] ss:$8 sps:$4 sm:$0xff]  }
 0x800   :  { %13789 = vmatpush1.bf16.msra.mxu1 %v21528_v55  ;;  %v21590_v55 = vld [vmem:[#allocation7 + $0x1f24] ss:$60 sps:$4 sm:$0xff]  }
 0x801   :  { %15830 = vmatpush1.bf16.msra.mxu0 %v21531_v57  ;;  %13790 = vmatprep.subr.bf16.mxu1 %v21536_v30  ;;  %v21918_v57 = vld [vmem:[#allocation9] sm:$0xff] }
 0x802   :  { %15831 = vmatprep.subr.bf16.mxu0 %v21539_v56  ;;  %v3367_v30 = vrot.slane %v21918_v57, %v22387_v24  ;;  %v21593_v56 = vld [vmem:[#allocation10 + $0x3e4] ss:$8 sps:$4 sm:$0xff]   ;;  %v21597_v24 = vld [vmem:[#allocation10 + $0x3f0] ss:$8 sps:$4 sm:$0xff]  }
 0x803   :  { %v18567_v63 = vpop.f32.mrb[52].mxu0  ;;  %v21653_v57 = vld [vmem:[#allocation10 + $0x484] ss:$8 sps:$4 sm:$0xff]  }
 0x804   :  { %v18568_v25 = vpop.f32.mrb[53].mxu0  ;;  %13791 = vmatpush1.bf16.msra.mxu1 %v21534_v58  ;;  %v3379_v58 = vrot.slane %v22562_v26, %v22327_v2  ;;  %v21605_v26 = vld [vmem:[#allocation10 + $0x404] ss:$8 sps:$4 sm:$0xff]  }
 0x805   :  { %v18569_v6 = vadd.f32 %v18568_v25, %v18567_v63  ;;  %v18570_v10 = vpop.f32.mrb[54].mxu0  ;;  %15832 = vmatpush1.bf16.msra.mxu0 %v21537_v60  ;;  %13792 = vmatprep.subr.bf16.mxu1 %v21542_v36  ;;  %v21588_v60 = vld [vmem:[#allocation7 + $0x1f20] ss:$60 sps:$4 sm:$0xff]   ;;  %v21594_v25 = vld [vmem:[#allocation7 + $0x1f98] ss:$60 sps:$4 sm:$0xff]  }
 0x806   :  { %v18571_v19 = vpop.f32.mrb[55].mxu0  ;;  %15833 = vmatprep.subr.bf16.mxu0 %v21545_v3  ;;  %v21596_v36 = vld [vmem:[#allocation7 + $0x1f9c] ss:$60 sps:$4 sm:$0xff]   ;;  %v21599_v3 = vld [vmem:[#allocation10 + $0x3f4] ss:$8 sps:$4 sm:$0xff]   ;;  %v18613_v63 = vadd.f32 %v22603_v16, %v3379_v58 }
 0x807   :  { %v22606_v17 = vadd.f32 %v18569_v6, %v22599_v61  ;;  %v21561_v61 = vld [vmem:[#allocation10 + $0x390] ss:$8 sps:$4 sm:$0xff]  }
 0x808   :  { %13793 = vmatpush1.bf16.msra.mxu1 %v21540_v41  ;;  %v21602_v41 = vld [vmem:[#allocation7 + $0x2014] ss:$60 sps:$4 sm:$0xff]   ;;  %v14225_v10 = vmax.f32 %v18613_v63, 0.0  ;;  %v21608_v19 = vld [vmem:[#allocation7 + $0x208c] ss:$60 sps:$4 sm:$0xff]  }
 0x809   :  { %15834 = vmatpush1.bf16.msra.mxu0 %v21543_v15  ;;  %13794 = vmatprep.subr.bf16.mxu1 %v21548_v14  ;;  %v21600_v15 = vld [vmem:[#allocation7 + $0x2010] ss:$60 sps:$4 sm:$0xff]   ;;  %v21660_v63 = vld [vmem:[#allocation7 + $0x24c0] ss:$60 sps:$4 sm:$0xff]  }
 0x80a   :  { %15835 = vmatprep.subr.bf16.mxu0 %v21551_v23  ;;  %v21603_v14 = vld [vmem:[#allocation10 + $0x400] ss:$8 sps:$4 sm:$0xff]   ;;  %v21611_v23 = vld [vmem:[#allocation10 + $0x414] ss:$8 sps:$4 sm:$0xff]   ;;  %v14240_v16 = vpack.c.bf16 %v14225_v10, %v14225_v10 }
 0x80b   :  { %v21656_v58 = vld [vmem:[#allocation7 + $0x244c] ss:$60 sps:$4 sm:$0xff]   ;;  %v21674_v10 = vld [vmem:[#allocation7 + $0x25b4] ss:$60 sps:$4 sm:$0xff]  }
 0x80c   :  { %13795 = vmatpush1.bf16.msra.mxu1 %v21546_v5  ;;  %v21606_v5 = vld [vmem:[#allocation7 + $0x2088] ss:$60 sps:$4 sm:$0xff]  }
 0x80d   :  { %15836 = vmatpush1.bf16.msra.mxu0 %v21549_v52  ;;  %13796 = vmatprep.subr.bf16.mxu1 %v21554_v29  ;;  %v21609_v52 = vld [vmem:[#allocation10 + $0x410] ss:$8 sps:$4 sm:$0xff]  }
 0x80e   :  { %15837 = vmatprep.subr.bf16.mxu0 %v21557_v20  ;;  %v21614_v29 = vld [vmem:[#allocation7 + $0x2104] ss:$60 sps:$4 sm:$0xff]   ;;  %v21617_v20 = vld [vmem:[#allocation10 + $0x424] ss:$8 sps:$4 sm:$0xff]  }
 0x810   :  { %13797 = vmatpush1.bf16.msra.mxu1 %v21552_v47  ;;  %v21612_v47 = vld [vmem:[#allocation7 + $0x2100] ss:$60 sps:$4 sm:$0xff]  }
 0x811   :  { %15838 = vmatpush1.bf16.msra.mxu0 %v21555_v1  ;;  %13798 = vmatprep.subr.bf16.mxu1 %v21560_v51  ;;  %v21615_v1 = vld [vmem:[#allocation10 + $0x420] ss:$8 sps:$4 sm:$0xff]  }
 0x812   :  { %15839 = vmatprep.subr.bf16.mxu0 %v21563_v32  ;;  %v21620_v51 = vld [vmem:[#allocation7 + $0x217c] ss:$60 sps:$4 sm:$0xff]   ;;  %v21623_v32 = vld [vmem:[#allocation10 + $0x434] ss:$8 sps:$4 sm:$0xff]  }
 0x814   :  { %13799 = vmatpush1.bf16.msra.mxu1 %v21558_v45  ;;  %v21618_v45 = vld [vmem:[#allocation7 + $0x2178] ss:$60 sps:$4 sm:$0xff]  }
 0x815   :  { %15840 = vmatpush1.bf16.msra.mxu0 %v21561_v61  ;;  %13800 = vmatprep.subr.bf16.mxu1 %v21566_v18  ;;  %v21621_v61 = vld [vmem:[#allocation10 + $0x430] ss:$8 sps:$4 sm:$0xff]   ;;  %v21626_v18 = vld [vmem:[#allocation7 + $0x21f4] ss:$60 sps:$4 sm:$0xff]  }
 0x816   :  { %15841 = vmatprep.subr.bf16.mxu0 %v21569_v11  ;;  %v21629_v11 = vld [vmem:[#allocation10 + $0x444] ss:$8 sps:$4 sm:$0xff]  }
 0x818   :  { %13801 = vmatpush1.bf16.msra.mxu1 %v21564_v33  ;;  %v21624_v33 = vld [vmem:[#allocation7 + $0x21f0] ss:$60 sps:$4 sm:$0xff]  }
 0x819   :  { %15842 = vmatpush1.bf16.msra.mxu0 %v21567_v13  ;;  %13802 = vmatprep.subr.bf16.mxu1 %v21572_v22  ;;  %v21627_v13 = vld [vmem:[#allocation10 + $0x440] ss:$8 sps:$4 sm:$0xff]   ;;  %v21632_v22 = vld [vmem:[#allocation7 + $0x226c] ss:$60 sps:$4 sm:$0xff]  }
 0x81a   :  { %15843 = vmatprep.subr.bf16.mxu0 %v21575_v35  ;;  %v21635_v35 = vld [vmem:[#allocation10 + $0x454] ss:$8 sps:$4 sm:$0xff]  }
 0x81c   :  { %13803 = vmatpush1.bf16.msra.mxu1 %v21570_v37  ;;  %v21630_v37 = vld [vmem:[#allocation7 + $0x2268] ss:$60 sps:$4 sm:$0xff]  }
 0x81d   :  { %15844 = vmatpush1.bf16.msra.mxu0 %v21573_v38  ;;  %13813 = vmatprep.subr.bf16.mxu1 %v21578_v34  ;;  %v21633_v38 = vld [vmem:[#allocation10 + $0x450] ss:$8 sps:$4 sm:$0xff]  }
 0x81e   :  { %15845 = vmatprep.subr.bf16.mxu0 %v21581_v31  ;;  %v21638_v34 = vld [vmem:[#allocation7 + $0x22e4] ss:$60 sps:$4 sm:$0xff]   ;;  %v21641_v31 = vld [vmem:[#allocation10 + $0x464] ss:$8 sps:$4 sm:$0xff]  }
 0x81f   :  { %13805 = vmatmul.mubr.bf16.vlgmr.msra.gmra.mrb[28].mxu1 %v22400_v54  ;;  %v21591_v54 = vld [vmem:[#allocation10 + $0x3e0] ss:$8 sps:$4 sm:$0xff]  }
 0x820   :  { %13814 = vmatpush1.bf16.msra.mxu1 %v21576_v40  ;;  %13845 = vmatprep.mubr.bf16.mxu1 %v22402_v59  ;;  %v18610_v59 = vadd.f32 %v22507_v44, %v3367_v30  ;;  %v21636_v40 = vld [vmem:[#allocation7 + $0x22e0] ss:$60 sps:$4 sm:$0xff]   ;;  %v21648_v30 = vld [vmem:[#allocation7 + $0x23d0] ss:$60 sps:$4 sm:$0xff]  }
 0x821   :  { %15846 = vmatpush1.bf16.msra.mxu0 %v21579_v46  ;;  %13815 = vmatprep.subr.bf16.mxu1 %v21584_v48  ;;  %v21639_v46 = vld [vmem:[#allocation10 + $0x460] ss:$8 sps:$4 sm:$0xff]  }
 0x822   :  { %15847 = vmatprep.subr.bf16.mxu0 %v21587_v49  ;;  %v14222_v6 = vmax.f32 %v18610_v59, 0.0  ;;  %v21644_v48 = vld [vmem:[#allocation7 + $0x235c] ss:$60 sps:$4 sm:$0xff]   ;;  %v21647_v49 = vld [vmem:[#allocation10 + $0x474] ss:$8 sps:$4 sm:$0xff]  }
 0x823   :  { %v21662_v59 = vld [vmem:[#allocation7 + $0x24c4] ss:$60 sps:$4 sm:$0xff]  }
 0x824   :  { %13816 = vmatpush1.bf16.msra.mxu1 %v21582_v50  ;;  %v14237_v44 = vpack.c.bf16 %v14222_v6, %v14222_v6  ;;  %v21642_v50 = vld [vmem:[#allocation7 + $0x2358] ss:$60 sps:$4 sm:$0xff]  }
 0x825   :  { %15848 = vmatpush1.bf16.msra.mxu0 %v21585_v53  ;;  %13817 = vmatprep.subr.bf16.mxu1 %v21590_v55  ;;  %v21645_v53 = vld [vmem:[#allocation10 + $0x470] ss:$8 sps:$4 sm:$0xff]   ;;  %v21650_v55 = vld [vmem:[#allocation7 + $0x23d4] ss:$60 sps:$4 sm:$0xff]  }
 0x826   :  { %15849 = vmatprep.subr.bf16.mxu0 %v21593_v56  ;;  %v21651_v56 = vld [vmem:[#allocation10 + $0x480] ss:$8 sps:$4 sm:$0xff]  }
 0x827   :  { %v21666_v6 = vld [vmem:[#allocation7 + $0x2538] ss:$60 sps:$4 sm:$0xff]  }
 0x828   :  { %13818 = vmatpush1.bf16.msra.mxu1 %v21588_v60  ;;  %v21659_v60 = vld [vmem:[#allocation10 + $0x494] ss:$8 sps:$4 sm:$0xff]  }
 0x829   :  { %15850 = vmatpush1.bf16.msra.mxu0 %v21591_v54  ;;  %13819 = vmatprep.subr.bf16.mxu1 %v21596_v36  ;;  %v21654_v54 = vld [vmem:[#allocation7 + $0x2448] ss:$60 sps:$4 sm:$0xff]  }
 0x82a   :  { %15851 = vmatprep.subr.bf16.mxu0 %v21599_v3  ;;  %v21657_v36 = vld [vmem:[#allocation10 + $0x490] ss:$8 sps:$4 sm:$0xff]   ;;  %v21665_v3 = vld [vmem:[#allocation10 + $0x4a4] ss:$8 sps:$4 sm:$0xff]  }
 0x82c   :  { %13820 = vmatpush1.bf16.msra.mxu1 %v21594_v25  ;;  %v21663_v25 = vld [vmem:[#allocation10 + $0x4a0] ss:$8 sps:$4 sm:$0xff]  }
 0x82d   :  { %15852 = vmatpush1.bf16.msra.mxu0 %v21597_v24  ;;  %13821 = vmatprep.subr.bf16.mxu1 %v21602_v41  ;;  %v21668_v24 = vld [vmem:[#allocation7 + $0x253c] ss:$60 sps:$4 sm:$0xff]   ;;  %v21671_v41 = vld [vmem:[#allocation10 + $0x4b4] ss:$8 sps:$4 sm:$0xff]  }
 0x82e   :  { %15862 = vmatprep.subr.bf16.mxu0 %v21605_v26  ;;  %v21669_v26 = vld [vmem:[#allocation10 + $0x4b0] ss:$8 sps:$4 sm:$0xff]  }
 0x830   :  { %15854 = vmatmul.mubr.bf16.vlgmr.msra.gmra.mrb[56].mxu0 %v14237_v44  ;;  %13822 = vmatpush1.bf16.msra.mxu1 %v21600_v15  ;;  %v21677_v15 = vld [vmem:[#allocation10 + $0x4c4] ss:$8 sps:$4 sm:$0xff]   ;;  %v21675_v44 = vld [vmem:[#allocation10 + $0x4c0] ss:$8 sps:$4 sm:$0xff]  }
 0x831   :  { %15863 = vmatpush1.bf16.msra.mxu0 %v21603_v14  ;;  %15894 = vmatprep.mubr.bf16.mxu0 %v14240_v16  ;;  %v21672_v14 = vld [vmem:[#allocation7 + $0x25b0] ss:$60 sps:$4 sm:$0xff]   ;;  %v21678_v16 = vld [vmem:[#allocation7 + $0x2628] ss:$60 sps:$4 sm:$0xff]  }
 0x832   :  { %13823 = vmatprep.subr.bf16.mxu1 %v21608_v19  ;;  %15864 = vmatprep.subr.bf16.mxu0 %v21611_v23  ;;  %v21680_v19 = vld [vmem:[#allocation7 + $0x262c] ss:$60 sps:$4 sm:$0xff]  }
 0x833   :  { %v21683_v23 = vld [vmem:[#allocation10 + $0x4d4] ss:$8 sps:$4 sm:$0xff]  }
 0x834   :  { %13824 = vmatpush1.bf16.msra.mxu1 %v21606_v5  ;;  %v21681_v5 = vld [vmem:[#allocation10 + $0x4d0] ss:$8 sps:$4 sm:$0xff]  }
 0x835   :  { %15865 = vmatpush1.bf16.msra.mxu0 %v21609_v52  ;;  %13825 = vmatprep.subr.bf16.mxu1 %v21614_v29  ;;  %v21686_v52 = vld [vmem:[#allocation7 + $0x26a4] ss:$60 sps:$4 sm:$0xff]   ;;  %v22617_v29 = vld [vmem:[#allocation9 + $0x8] sm:$0xff] }
 0x836   :  { %15866 = vmatprep.subr.bf16.mxu0 %v21617_v20  ;;  %v3375_v20 = vrot.slane %v22617_v29, %v22322_v0 }
 0x838   :  { %13826 = vmatpush1.bf16.msra.mxu1 %v21612_v47  ;;  %v21689_v47 = vld [vmem:[#allocation10 + $0x4e4] ss:$8 sps:$4 sm:$0xff]  }
 0x839   :  { %15867 = vmatpush1.bf16.msra.mxu0 %v21615_v1  ;;  %13827 = vmatprep.subr.bf16.mxu1 %v21620_v51  ;;  %v3387_v1 = vrot.slane %v22617_v29, %v22340_v21  ;;  %v21692_v51 = vld [vmem:[#allocation7 + $0x271c] ss:$60 sps:$4 sm:$0xff]  }
 0x83a   :  { %15868 = vmatprep.subr.bf16.mxu0 %v21623_v32  ;;  %v18612_v32 = vadd.f32 %v22601_v9, %v3375_v20  ;;  %v21701_v21 = vld [vmem:[#allocation10 + $0x504] ss:$8 sps:$4 sm:$0xff]   ;;  %v21750_v20 = vld [vmem:[#allocation7 + $0x2bc8] ss:$60 sps:$4 sm:$0xff]  }
 0x83c   :  { %13828 = vmatpush1.bf16.msra.mxu1 %v21618_v45  ;;  %v21695_v45 = vld [vmem:[#allocation10 + $0x4f4] ss:$8 sps:$4 sm:$0xff]  }
 0x83d   :  { %15869 = vmatpush1.bf16.msra.mxu0 %v21621_v61  ;;  %13829 = vmatprep.subr.bf16.mxu1 %v21626_v18  ;;  %v18615_v61 = vadd.f32 %v22555_v8, %v3387_v1  ;;  %v21690_v18 = vld [vmem:[#allocation7 + $0x2718] ss:$60 sps:$4 sm:$0xff]   ;;  %v21758_v1 = vld [vmem:[#allocation7 + $0x2c44] ss:$60 sps:$4 sm:$0xff]  }
 0x83e   :  { %15870 = vmatprep.subr.bf16.mxu0 %v21629_v11  ;;  %v21693_v11 = vld [vmem:[#allocation10 + $0x4f0] ss:$8 sps:$4 sm:$0xff]  }
 0x840   :  { %13830 = vmatpush1.bf16.msra.mxu1 %v21624_v33  ;;  %v21698_v33 = vld [vmem:[#allocation7 + $0x2794] ss:$60 sps:$4 sm:$0xff]  }
 0x841   :  { %15871 = vmatpush1.bf16.msra.mxu0 %v21627_v13  ;;  %13831 = vmatprep.subr.bf16.mxu1 %v21632_v22  ;;  %v14224_v13 = vmax.f32 %v18612_v32, 0.0  ;;  %v14227_v22 = vmax.f32 %v18615_v61, 0.0  ;;  %v21764_v32 = vld [vmem:[#allocation7 + $0x2cbc] ss:$60 sps:$4 sm:$0xff]  }
 0x842   :  { %15872 = vmatprep.subr.bf16.mxu0 %v21635_v35  ;;  %v21696_v35 = vld [vmem:[#allocation7 + $0x2790] ss:$60 sps:$4 sm:$0xff]   ;;  %v21762_v61 = vld [vmem:[#allocation7 + $0x2cb8] ss:$60 sps:$4 sm:$0xff]  }
 0x843   :  { %v14239_v9 = vpack.c.bf16 %v14224_v13, %v14224_v13  ;;  %v14242_v8 = vpack.c.bf16 %v14227_v22, %v14227_v22  ;;  %v21768_v13 = vld [vmem:[#allocation7 + $0x2d30] ss:$60 sps:$4 sm:$0xff]  }
 0x844   :  { %13832 = vmatpush1.bf16.msra.mxu1 %v21630_v37  ;;  %v21699_v37 = vld [vmem:[#allocation10 + $0x500] ss:$8 sps:$4 sm:$0xff]   ;;  %v21776_v22 = vld [vmem:[#allocation7 + $0x2dac] ss:$60 sps:$4 sm:$0xff]  }
 0x845   :  { %15873 = vmatpush1.bf16.msra.mxu0 %v21633_v38  ;;  %13833 = vmatprep.subr.bf16.mxu1 %v21638_v34  ;;  %v21704_v38 = vld [vmem:[#allocation7 + $0x280c] ss:$60 sps:$4 sm:$0xff]  }
 0x846   :  { %15874 = vmatprep.subr.bf16.mxu0 %v21641_v31  ;;  %v21707_v34 = vld [vmem:[#allocation10 + $0x514] ss:$8 sps:$4 sm:$0xff]  }
 0x847   :  { %v21702_v31 = vld [vmem:[#allocation7 + $0x2808] ss:$60 sps:$4 sm:$0xff]  }
 0x848   :  { %13834 = vmatpush1.bf16.msra.mxu1 %v21636_v40  ;;  %v21705_v40 = vld [vmem:[#allocation10 + $0x510] ss:$8 sps:$4 sm:$0xff]  }
 0x849   :  { %15875 = vmatpush1.bf16.msra.mxu0 %v21639_v46  ;;  %13835 = vmatprep.subr.bf16.mxu1 %v21644_v48  ;;  %v21710_v46 = vld [vmem:[#allocation7 + $0x2884] ss:$60 sps:$4 sm:$0xff]   ;;  %v21713_v48 = vld [vmem:[#allocation10 + $0x524] ss:$8 sps:$4 sm:$0xff]  }
 0x84a   :  { %15876 = vmatprep.subr.bf16.mxu0 %v21647_v49  ;;  %v21708_v49 = vld [vmem:[#allocation7 + $0x2880] ss:$60 sps:$4 sm:$0xff]  }
 0x84c   :  { %13836 = vmatpush1.bf16.msra.mxu1 %v21642_v50  ;;  %v21711_v50 = vld [vmem:[#allocation10 + $0x520] ss:$8 sps:$4 sm:$0xff]  }
 0x84d   :  { %15877 = vmatpush1.bf16.msra.mxu0 %v21645_v53  ;;  %13837 = vmatprep.subr.bf16.mxu1 %v21650_v55  ;;  %v21716_v53 = vld [vmem:[#allocation7 + $0x28fc] ss:$60 sps:$4 sm:$0xff]   ;;  %v21719_v55 = vld [vmem:[#allocation10 + $0x534] ss:$8 sps:$4 sm:$0xff]  }
 0x84e   :  { %15878 = vmatprep.subr.bf16.mxu0 %v21653_v57  ;;  %v21714_v57 = vld [vmem:[#allocation7 + $0x28f8] ss:$60 sps:$4 sm:$0xff]  }
 0x850   :  { %13838 = vmatpush1.bf16.msra.mxu1 %v21648_v30  ;;  %v21717_v30 = vld [vmem:[#allocation10 + $0x530] ss:$8 sps:$4 sm:$0xff]  }
 0x851   :  { %15879 = vmatpush1.bf16.msra.mxu0 %v21651_v56  ;;  %13839 = vmatprep.subr.bf16.mxu1 %v21656_v58  ;;  %v21722_v56 = vld [vmem:[#allocation7 + $0x2974] ss:$60 sps:$4 sm:$0xff]  }
 0x852   :  { %15880 = vmatprep.subr.bf16.mxu0 %v21659_v60  ;;  %v21725_v58 = vld [vmem:[#allocation10 + $0x544] ss:$8 sps:$4 sm:$0xff]   ;;  %v21720_v60 = vld [vmem:[#allocation7 + $0x2970] ss:$60 sps:$4 sm:$0xff]  }
 0x854   :  { %13840 = vmatpush1.bf16.msra.mxu1 %v21654_v54  ;;  %v21723_v54 = vld [vmem:[#allocation10 + $0x540] ss:$8 sps:$4 sm:$0xff]  }
 0x855   :  { %15881 = vmatpush1.bf16.msra.mxu0 %v21657_v36  ;;  %13841 = vmatprep.subr.bf16.mxu1 %v21662_v59  ;;  %v21728_v36 = vld [vmem:[#allocation7 + $0x29ec] ss:$60 sps:$4 sm:$0xff]  }
 0x856   :  { %15882 = vmatprep.subr.bf16.mxu0 %v21665_v3  ;;  %v21731_v59 = vld [vmem:[#allocation10 + $0x554] ss:$8 sps:$4 sm:$0xff]  }
 0x857   :  { %v21726_v3 = vld [vmem:[#allocation7 + $0x29e8] ss:$60 sps:$4 sm:$0xff]  }
 0x858   :  { %13842 = vmatpush1.bf16.msra.mxu1 %v21660_v63  ;;  %v21729_v63 = vld [vmem:[#allocation10 + $0x550] ss:$8 sps:$4 sm:$0xff]  }
 0x859   :  { %15883 = vmatpush1.bf16.msra.mxu0 %v21663_v25  ;;  %13843 = vmatprep.subr.bf16.mxu1 %v21668_v24  ;;  %v21734_v25 = vld [vmem:[#allocation7 + $0x2a64] ss:$60 sps:$4 sm:$0xff]   ;;  %v21737_v24 = vld [vmem:[#allocation10 + $0x564] ss:$8 sps:$4 sm:$0xff]  }
 0x85a   :  { %15884 = vmatprep.subr.bf16.mxu0 %v21671_v41  ;;  %v21732_v41 = vld [vmem:[#allocation7 + $0x2a60] ss:$60 sps:$4 sm:$0xff]  }
 0x85c   :  { %13844 = vmatpush1.bf16.msra.mxu1 %v21666_v6  ;;  %v21735_v6 = vld [vmem:[#allocation10 + $0x560] ss:$8 sps:$4 sm:$0xff]  }
 0x85d   :  { %15885 = vmatpush1.bf16.msra.mxu0 %v21669_v26  ;;  %13854 = vmatprep.subr.bf16.mxu1 %v21674_v10  ;;  %v21740_v26 = vld [vmem:[#allocation7 + $0x2adc] ss:$60 sps:$4 sm:$0xff]   ;;  %v21743_v10 = vld [vmem:[#allocation10 + $0x574] ss:$8 sps:$4 sm:$0xff]  }
 0x85e   :  { %15886 = vmatprep.subr.bf16.mxu0 %v21677_v15  ;;  %v21738_v15 = vld [vmem:[#allocation7 + $0x2ad8] ss:$60 sps:$4 sm:$0xff]  }
 0x85f   :  { %13846 = vmatmul.mubr.bf16.vlgmr.msra.gmra.mrb[28].mxu1 %v22418_v39  ;;  %v21684_v39 = vld [vmem:[#allocation7 + $0x26a0] ss:$60 sps:$4 sm:$0xff]  }
 0x860   :  { %13855 = vmatpush1.bf16.msra.mxu1 %v21672_v14  ;;  %13886 = vmatprep.mubr.bf16.mxu1 %v22420_v12  ;;  %v21687_v12 = vld [vmem:[#allocation10 + $0x4e0] ss:$8 sps:$4 sm:$0xff]   ;;  %v21741_v14 = vld [vmem:[#allocation10 + $0x570] ss:$8 sps:$4 sm:$0xff]  }
 0x861   :  { %15887 = vmatpush1.bf16.msra.mxu0 %v21675_v44  ;;  %13856 = vmatprep.subr.bf16.mxu1 %v21680_v19  ;;  %v21746_v44 = vld [vmem:[#allocation7 + $0x2b54] ss:$60 sps:$4 sm:$0xff]  }
 0x862   :  { %15888 = vmatprep.subr.bf16.mxu0 %v21683_v23  ;;  %v21749_v19 = vld [vmem:[#allocation10 + $0x584] ss:$8 sps:$4 sm:$0xff]   ;;  %v21744_v23 = vld [vmem:[#allocation7 + $0x2b50] ss:$60 sps:$4 sm:$0xff]  }
 0x864   :  { %13857 = vmatpush1.bf16.msra.mxu1 %v21678_v16  ;;  %v21747_v16 = vld [vmem:[#allocation10 + $0x580] ss:$8 sps:$4 sm:$0xff]  }
 0x865   :  { %15889 = vmatpush1.bf16.msra.mxu0 %v21681_v5  ;;  %13858 = vmatprep.subr.bf16.mxu1 %v21686_v52  ;;  %v21752_v5 = vld [vmem:[#allocation7 + $0x2bcc] ss:$60 sps:$4 sm:$0xff]  }
 0x866   :  { %15890 = vmatprep.subr.bf16.mxu0 %v21689_v47  ;;  %v21755_v52 = vld [vmem:[#allocation10 + $0x594] ss:$8 sps:$4 sm:$0xff]   ;;  %v21753_v47 = vld [vmem:[#allocation10 + $0x590] ss:$8 sps:$4 sm:$0xff]  }
 0x868   :  { %13859 = vmatpush1.bf16.msra.mxu1 %v21684_v39  ;;  %v21761_v39 = vld [vmem:[#allocation10 + $0x5a4] ss:$8 sps:$4 sm:$0xff]  }
 0x869   :  { %15891 = vmatpush1.bf16.msra.mxu0 %v21687_v12  ;;  %13860 = vmatprep.subr.bf16.mxu1 %v21692_v51  ;;  %v21756_v12 = vld [vmem:[#allocation7 + $0x2c40] ss:$60 sps:$4 sm:$0xff]   ;;  %v21759_v51 = vld [vmem:[#allocation10 + $0x5a0] ss:$8 sps:$4 sm:$0xff]  }
 0x86a   :  { %15892 = vmatprep.subr.bf16.mxu0 %v21695_v45  ;;  %v21767_v45 = vld [vmem:[#allocation10 + $0x5b4] ss:$8 sps:$4 sm:$0xff]  }
 0x86c   :  { %13861 = vmatpush1.bf16.msra.mxu1 %v21690_v18  ;;  %v21765_v18 = vld [vmem:[#allocation10 + $0x5b0] ss:$8 sps:$4 sm:$0xff]  }
 0x86d   :  { %15893 = vmatpush1.bf16.msra.mxu0 %v21693_v11  ;;  %13862 = vmatprep.subr.bf16.mxu1 %v21698_v33  ;;  %v21770_v11 = vld [vmem:[#allocation7 + $0x2d34] ss:$60 sps:$4 sm:$0xff]  }
 0x86e   :  { %15903 = vmatprep.subr.bf16.mxu0 %v21701_v21  ;;  %v21773_v33 = vld [vmem:[#allocation10 + $0x5c4] ss:$8 sps:$4 sm:$0xff]   ;;  %v21771_v21 = vld [vmem:[#allocation10 + $0x5c0] ss:$8 sps:$4 sm:$0xff]  }
 0x870   :  { %15895 = vmatmul.mubr.bf16.vlgmr.msra.gmra.mrb[56].mxu0 %v14239_v9  ;;  %13863 = vmatpush1.bf16.msra.mxu1 %v21696_v35  ;;  %v21779_v35 = vld [vmem:[#allocation10 + $0x5d4] ss:$8 sps:$4 sm:$0xff]   ;;  %v21777_v9 = vld [vmem:[#allocation10 + $0x5d0] ss:$8 sps:$4 sm:$0xff]  }
 0x871   :  { %15904 = vmatpush1.bf16.msra.mxu0 %v21699_v37  ;;  %15935 = vmatprep.mubr.bf16.mxu0 %v14242_v8  ;;  %v21774_v37 = vld [vmem:[#allocation7 + $0x2da8] ss:$60 sps:$4 sm:$0xff]   ;;  %v21785_v8 = vld [vmem:[#allocation10 + $0x5e4] ss:$8 sps:$4 sm:$0xff]  }
 0x872   :  { %13864 = vmatprep.subr.bf16.mxu1 %v21704_v38  ;;  %15905 = vmatprep.subr.bf16.mxu0 %v21707_v34  ;;  %v21782_v38 = vld [vmem:[#allocation7 + $0x2e24] ss:$60 sps:$4 sm:$0xff]   ;;  %v3383_v34 = vrot.slane %v22617_v29, %v22364_v4  ;;  %v21830_v4 = vld [vmem:[#allocation10 + $0x604] ss:$8 sps:$4 sm:$0xff]  }
 0x874   :  { %13865 = vmatpush1.bf16.msra.mxu1 %v21702_v31  ;;  %v21780_v31 = vld [vmem:[#allocation7 + $0x2e20] ss:$60 sps:$4 sm:$0xff]  }
 0x875   :  { %15906 = vmatpush1.bf16.msra.mxu0 %v21705_v40  ;;  %13866 = vmatprep.subr.bf16.mxu1 %v21710_v46  ;;  %v21783_v40 = vld [vmem:[#allocation10 + $0x5e0] ss:$8 sps:$4 sm:$0xff]  }
 0x876   :  { %15907 = vmatprep.subr.bf16.mxu0 %v21713_v48  ;;  %v21788_v46 = vld [vmem:[#allocation7 + $0x2e9c] ss:$60 sps:$4 sm:$0xff]  }
 0x877   :  { %v21786_v48 = vld [vmem:[#allocation7 + $0x2e98] ss:$60 sps:$4 sm:$0xff]  }
 0x878   :  { %13867 = vmatpush1.bf16.msra.mxu1 %v21708_v49  ;;  %v21789_v49 = vld [vmem:[#allocation10 + $0x5f0] ss:$8 sps:$4 sm:$0xff]  }
 0x879   :  { %15908 = vmatpush1.bf16.msra.mxu0 %v21711_v50  ;;  %13868 = vmatprep.subr.bf16.mxu1 %v21716_v53  ;;  %v21794_v50 = vld [vmem:[#allocation7 + $0x2f14] ss:$60 sps:$4 sm:$0xff]  }
 0x87a   :  { %15909 = vmatprep.subr.bf16.mxu0 %v21719_v55  ;;  %v21792_v55 = vld [vmem:[#allocation7 + $0x2f10] ss:$60 sps:$4 sm:$0xff]  }
 0x87c   :  { %13869 = vmatpush1.bf16.msra.mxu1 %v21714_v57  ;;  %v21797_v57 = vld [vmem:[#allocation7 + $0x2f8c] ss:$60 sps:$4 sm:$0xff]  }
 0x87d   :  { %15910 = vmatpush1.bf16.msra.mxu0 %v21717_v30  ;;  %13870 = vmatprep.subr.bf16.mxu1 %v21722_v56  ;;  %v21828_v30 = vld [vmem:[#allocation10 + $0x600] ss:$8 sps:$4 sm:$0xff]  }
 0x87e   :  { %15911 = vmatprep.subr.bf16.mxu0 %v21725_v58  ;;  %v21795_v58 = vld [vmem:[#allocation7 + $0x2f88] ss:$60 sps:$4 sm:$0xff]  }
 0x880   :  { %13871 = vmatpush1.bf16.msra.mxu1 %v21720_v60  ;;  %v21800_v60 = vld [vmem:[#allocation7 + $0x3004] ss:$60 sps:$4 sm:$0xff]  }
 0x881   :  { %15912 = vmatpush1.bf16.msra.mxu0 %v21723_v54  ;;  %13872 = vmatprep.subr.bf16.mxu1 %v21728_v36  ;;  %v21831_v54 = vld [vmem:[#allocation10 + $0x610] ss:$8 sps:$4 sm:$0xff]   ;;  %v21836_v36 = vld [vmem:[#allocation10 + $0x624] ss:$8 sps:$4 sm:$0xff]  }
 0x882   :  { %15913 = vmatprep.subr.bf16.mxu0 %v21731_v59  ;;  %v21798_v59 = vld [vmem:[#allocation7 + $0x3000] ss:$60 sps:$4 sm:$0xff]  }
 0x884   :  { %13873 = vmatpush1.bf16.msra.mxu1 %v21726_v3  ;;  %v21803_v3 = vld [vmem:[#allocation7 + $0x307c] ss:$60 sps:$4 sm:$0xff]  }
 0x885   :  { %15914 = vmatpush1.bf16.msra.mxu0 %v21729_v63  ;;  %13874 = vmatprep.subr.bf16.mxu1 %v21734_v25  ;;  %v21834_v63 = vld [vmem:[#allocation10 + $0x620] ss:$8 sps:$4 sm:$0xff]   ;;  %v21839_v25 = vld [vmem:[#allocation10 + $0x634] ss:$8 sps:$4 sm:$0xff]  }
 0x886   :  { %15915 = vmatprep.subr.bf16.mxu0 %v21737_v24  ;;  %v21801_v24 = vld [vmem:[#allocation7 + $0x3078] ss:$60 sps:$4 sm:$0xff]  }
 0x888   :  { %13875 = vmatpush1.bf16.msra.mxu1 %v21732_v41  ;;  %v21806_v41 = vld [vmem:[#allocation7 + $0x30f4] ss:$60 sps:$4 sm:$0xff]  }
 0x889   :  { %15916 = vmatpush1.bf16.msra.mxu0 %v21735_v6  ;;  %13876 = vmatprep.subr.bf16.mxu1 %v21740_v26  ;;  %v21837_v6 = vld [vmem:[#allocation10 + $0x630] ss:$8 sps:$4 sm:$0xff]   ;;  %v21842_v26 = vld [vmem:[#allocation10 + $0x644] ss:$8 sps:$4 sm:$0xff]  }
 0x88a   :  { %15917 = vmatprep.subr.bf16.mxu0 %v21743_v10  ;;  %v21804_v10 = vld [vmem:[#allocation7 + $0x30f0] ss:$60 sps:$4 sm:$0xff]  }
 0x88c   :  { %13877 = vmatpush1.bf16.msra.mxu1 %v21738_v15  ;;  %v21809_v15 = vld [vmem:[#allocation7 + $0x316c] ss:$60 sps:$4 sm:$0xff]  }
 0x88d   :  { %15918 = vmatpush1.bf16.msra.mxu0 %v21741_v14  ;;  %13878 = vmatprep.subr.bf16.mxu1 %v21746_v44  ;;  %v21840_v14 = vld [vmem:[#allocation10 + $0x640] ss:$8 sps:$4 sm:$0xff]   ;;  %v21845_v44 = vld [vmem:[#allocation10 + $0x654] ss:$8 sps:$4 sm:$0xff]  }
 0x88e   :  { %15919 = vmatprep.subr.bf16.mxu0 %v21749_v19  ;;  %v21807_v19 = vld [vmem:[#allocation7 + $0x3168] ss:$60 sps:$4 sm:$0xff]  }
 0x890   :  { %13879 = vmatpush1.bf16.msra.mxu1 %v21744_v23  ;;  %v21812_v23 = vld [vmem:[#allocation7 + $0x31e4] ss:$60 sps:$4 sm:$0xff]  }
 0x891   :  { %15920 = vmatpush1.bf16.msra.mxu0 %v21747_v16  ;;  %13880 = vmatprep.subr.bf16.mxu1 %v21752_v5  ;;  %v21843_v16 = vld [vmem:[#allocation10 + $0x650] ss:$8 sps:$4 sm:$0xff]   ;;  %v21848_v5 = vld [vmem:[#allocation10 + $0x664] ss:$8 sps:$4 sm:$0xff]  }
 0x892   :  { %15921 = vmatprep.subr.bf16.mxu0 %v21755_v52  ;;  %v21810_v52 = vld [vmem:[#allocation7 + $0x31e0] ss:$60 sps:$4 sm:$0xff]  }
 0x894   :  { %13881 = vmatpush1.bf16.msra.mxu1 %v21750_v20  ;;  %v21815_v20 = vld [vmem:[#allocation7 + $0x325c] ss:$60 sps:$4 sm:$0xff]  }
 0x895   :  { %15922 = vmatpush1.bf16.msra.mxu0 %v21753_v47  ;;  %13882 = vmatprep.subr.bf16.mxu1 %v21758_v1  ;;  %v21846_v47 = vld [vmem:[#allocation10 + $0x660] ss:$8 sps:$4 sm:$0xff]   ;;  %v21851_v1 = vld [vmem:[#allocation10 + $0x674] ss:$8 sps:$4 sm:$0xff]  }
 0x896   :  { %15923 = vmatprep.subr.bf16.mxu0 %v21761_v39  ;;  %v21813_v39 = vld [vmem:[#allocation7 + $0x3258] ss:$60 sps:$4 sm:$0xff]  }
 0x898   :  { %13883 = vmatpush1.bf16.msra.mxu1 %v21756_v12  ;;  %v21818_v12 = vld [vmem:[#allocation7 + $0x32d4] ss:$60 sps:$4 sm:$0xff]  }
 0x899   :  { %15924 = vmatpush1.bf16.msra.mxu0 %v21759_v51  ;;  %13884 = vmatprep.subr.bf16.mxu1 %v21764_v32  ;;  %v21849_v51 = vld [vmem:[#allocation10 + $0x670] ss:$8 sps:$4 sm:$0xff]   ;;  %v21854_v32 = vld [vmem:[#allocation10 + $0x684] ss:$8 sps:$4 sm:$0xff]  }
 0x89a   :  { %15925 = vmatprep.subr.bf16.mxu0 %v21767_v45  ;;  %v21816_v45 = vld [vmem:[#allocation7 + $0x32d0] ss:$60 sps:$4 sm:$0xff]  }
 0x89c   :  { %13885 = vmatpush1.bf16.msra.mxu1 %v21762_v61  ;;  %v21821_v61 = vld [vmem:[#allocation7 + $0x334c] ss:$60 sps:$4 sm:$0xff]  }
 0x89d   :  { %15926 = vmatpush1.bf16.msra.mxu0 %v21765_v18  ;;  %13895 = vmatprep.subr.bf16.mxu1 %v21770_v11  ;;  %v21852_v18 = vld [vmem:[#allocation10 + $0x680] ss:$8 sps:$4 sm:$0xff]   ;;  %v21857_v11 = vld [vmem:[#allocation10 + $0x694] ss:$8 sps:$4 sm:$0xff]  }
 0x89e   :  { %15927 = vmatprep.subr.bf16.mxu0 %v21773_v33  ;;  %v21819_v33 = vld [vmem:[#allocation7 + $0x3348] ss:$60 sps:$4 sm:$0xff]  }
 0x89f   :  { %13887 = vmatmul.mubr.bf16.vlgmr.msra.gmra.mrb[28].mxu1 %v22434_v27  ;;  %v18614_v27 = vadd.f32 %v22553_v7, %v3383_v34  ;;  %v21833_v7 = vld [vmem:[#allocation10 + $0x614] ss:$8 sps:$4 sm:$0xff]   ;;  %v21825_v34 = vld [vmem:[#allocation7 + $0x3438] ss:$60 sps:$4 sm:$0xff]  }
 0x8a0   :  { %13896 = vmatpush1.bf16.msra.mxu1 %v21768_v13  ;;  %13927 = vmatprep.mubr.bf16.mxu1 %v22436_v28  ;;  %v21791_v28 = vld [vmem:[#allocation10 + $0x5f4] ss:$8 sps:$4 sm:$0xff]  }
 0x8a1   :  { %15928 = vmatpush1.bf16.msra.mxu0 %v21771_v21  ;;  %13897 = vmatprep.subr.bf16.mxu1 %v21776_v22  ;;  %v14226_v53 = vmax.f32 %v18614_v27, 0.0  ;;  %v21824_v13 = vld [vmem:[#allocation7 + $0x33c4] ss:$60 sps:$4 sm:$0xff]   ;;  %v21860_v22 = vld [vmem:[#allocation10 + $0x6a4] ss:$8 sps:$4 sm:$0xff]  }
 0x8a2   :  { %15929 = vmatprep.subr.bf16.mxu0 %v21779_v35  ;;  %v21855_v21 = vld [vmem:[#allocation10 + $0x690] ss:$8 sps:$4 sm:$0xff]  }
 0x8a3   :  { %v14241_v56 = vpack.c.bf16 %v14226_v53, %v14226_v53  ;;  %v21822_v35 = vld [vmem:[#allocation7 + $0x33c0] ss:$60 sps:$4 sm:$0xff]  }
 0x8a4   :  { %13898 = vmatpush1.bf16.msra.mxu1 %v21774_v37  ;;  %v21827_v37 = vld [vmem:[#allocation7 + $0x343c] ss:$60 sps:$4 sm:$0xff]   ;;  %v21867_v27 = vld [vmem:[#allocation10 + $0x6d0] ss:$8 sps:$4 sm:$0xff]  }
 0x8a5   :  { %15930 = vmatpush1.bf16.msra.mxu0 %v21777_v9  ;;  %13899 = vmatprep.subr.bf16.mxu1 %v21782_v38  ;;  %v21858_v9 = vld [vmem:[#allocation10 + $0x6a0] ss:$8 sps:$4 sm:$0xff]   ;;  %v21863_v38 = vld [vmem:[#allocation10 + $0x6b4] ss:$8 sps:$4 sm:$0xff]   ;;  %v21878_v53 = vld [vmem:[#allocation10 + $0x704] ss:$8 sps:$4 sm:$0xff]  }
 0x8a6   :  { %15931 = vmatprep.subr.bf16.mxu0 %v21785_v8  ;;  %v21861_v8 = vld [vmem:[#allocation10 + $0x6b0] ss:$8 sps:$4 sm:$0xff]  }
 0x8a8   :  { %13900 = vmatpush1.bf16.msra.mxu1 %v21780_v31  ;;  %v21866_v31 = vld [vmem:[#allocation10 + $0x6c4] ss:$8 sps:$4 sm:$0xff]  }
 0x8a9   :  { %15932 = vmatpush1.bf16.msra.mxu0 %v21783_v40  ;;  %13901 = vmatprep.subr.bf16.mxu1 %v21788_v46  ;;  %v21864_v40 = vld [vmem:[#allocation10 + $0x6c0] ss:$8 sps:$4 sm:$0xff]   ;;  %v21869_v46 = vld [vmem:[#allocation10 + $0x6d4] ss:$8 sps:$4 sm:$0xff]  }
 0x8aa   :  { %15933 = vmatprep.subr.bf16.mxu0 %v21791_v28  ;;  %v21872_v28 = vld [vmem:[#allocation10 + $0x6e4] ss:$8 sps:$4 sm:$0xff]  }
 0x8ac   :  { %13902 = vmatpush1.bf16.msra.mxu1 %v21786_v48  ;;  %v21870_v48 = vld [vmem:[#allocation10 + $0x6e0] ss:$8 sps:$4 sm:$0xff]  }
 0x8ad   :  { %15934 = vmatpush1.bf16.msra.mxu0 %v21789_v49  ;;  %13903 = vmatprep.subr.bf16.mxu1 %v21794_v50  ;;  %v21875_v49 = vld [vmem:[#allocation10 + $0x6f4] ss:$8 sps:$4 sm:$0xff]   ;;  %v21873_v50 = vld [vmem:[#allocation10 + $0x6f0] ss:$8 sps:$4 sm:$0xff]  }
 0x8ae   :  { %15944 = vmatprep.subr.bf16.mxu0 %v21830_v4  ;;  %v21900_v4 = vld [vmem:[%s22699_s7 + $0x40] sm:$0xff]  }
 0x8b0   :  { %15936 = vmatmul.mubr.bf16.vlgmr.msra.gmra.mrb[56].mxu0 %v14241_v56  ;;  %13904 = vmatpush1.bf16.msra.mxu1 %v21792_v55  ;;  %v21902_v55 = vld [vmem:[%s22699_s7 + $0x48] sm:$0xff]   ;;  %v21905_v56 = vld [vmem:[%s22699_s7 + $0x10] sm:$0xff]  }
 0x8b1   :  { %13905 = vmatprep.subr.bf16.mxu1 %v21797_v57  ;;  %15945 = vmatpush1.bf16.msra.mxu0 %v21828_v30  ;;  %v21903_v57 = vld [vmem:[%s22699_s7 + $0x8] sm:$0xff]   ;;  %v21904_v30 = vld [vmem:[%s22699_s7 + $0x50] sm:$0xff]  }
 0x8b2   :  { %15946 = vmatprep.subr.bf16.mxu0 %v21833_v7  ;;  %v21906_v7 = vld [vmem:[%s22699_s7 + $0x58] sm:$0xff]  }
 0x8b4   :  { %13906 = vmatpush1.bf16.msra.mxu1 %v21795_v58  ;;  %v21907_v58 = vld [vmem:[%s22699_s7 + $0x18] sm:$0xff]  }
 0x8b5   :  { %13907 = vmatprep.subr.bf16.mxu1 %v21800_v60  ;;  %15947 = vmatpush1.bf16.msra.mxu0 %v21831_v54  ;;  %v21908_v60 = vld [vmem:[%s22699_s7 + $0x60] sm:$0xff]  }
 0x8b6   :  { %15948 = vmatprep.subr.bf16.mxu0 %v21836_v36  ;;  %v21909_v54 = vld [vmem:[%s22699_s7 + $0x20] sm:$0xff]   ;;  %v21910_v36 = vld [vmem:[%s22699_s7 + $0x68] sm:$0xff]  }
 0x8b8   :  { %13908 = vmatpush1.bf16.msra.mxu1 %v21798_v59  ;;  %v21911_v59 = vld [vmem:[%s22699_s7 + $0x28] sm:$0xff]  }
 0x8b9   :  { %13909 = vmatprep.subr.bf16.mxu1 %v21803_v3  ;;  %15949 = vmatpush1.bf16.msra.mxu0 %v21834_v63  ;;  %v3391_v3 = vrot.slane %v22617_v29, %v22350_v42  ;;  %v3395_v63 = vrot.slane %v22617_v29, %v22353_v43  ;;  %v22120_v42 = vmov 0   ;;  %v21884_v43 = vld [vmem:[#allocation10 + $0x724] ss:$8 sps:$4 sm:$0xff]   ;;  %v21882_v29 = vld [vmem:[#allocation10 + $0x720] ss:$8 sps:$4 sm:$0xff]  }
 0x8ba   :  { %15950 = vmatprep.subr.bf16.mxu0 %v21839_v25 }
 0x8bc   :  { %13910 = vmatpush1.bf16.msra.mxu1 %v21801_v24 }
 0x8bd   :  { %13911 = vmatprep.subr.bf16.mxu1 %v21806_v41  ;;  %15951 = vmatpush1.bf16.msra.mxu0 %v21837_v6 }
 0x8be   :  { %15952 = vmatprep.subr.bf16.mxu0 %v21842_v26 }
 0x8c0   :  { %13912 = vmatpush1.bf16.msra.mxu1 %v21804_v10 }
 0x8c1   :  { %13913 = vmatprep.subr.bf16.mxu1 %v21809_v15  ;;  %15953 = vmatpush1.bf16.msra.mxu0 %v21840_v14 }
 0x8c2   :  { %15954 = vmatprep.subr.bf16.mxu0 %v21845_v44 }
 0x8c4   :  { %13914 = vmatpush1.bf16.msra.mxu1 %v21807_v19  ;;  %v21876_v19 = vld [vmem:[#allocation10 + $0x700] ss:$8 sps:$4 sm:$0xff]  }
 0x8c5   :  { %13915 = vmatprep.subr.bf16.mxu1 %v21812_v23  ;;  %15955 = vmatpush1.bf16.msra.mxu0 %v21843_v16  ;;  %v21881_v16 = vld [vmem:[#allocation10 + $0x714] ss:$8 sps:$4 sm:$0xff]  }
 0x8c6   :  { %15956 = vmatprep.subr.bf16.mxu0 %v21848_v5  ;;  %v21879_v5 = vld [vmem:[#allocation10 + $0x710] ss:$8 sps:$4 sm:$0xff]  }
 0x8c8   :  { %13916 = vmatpush1.bf16.msra.mxu1 %v21810_v52  ;;  %v21887_v52 = vld [vmem:[#allocation10 + $0x734] ss:$8 sps:$4 sm:$0xff]  }
 0x8c9   :  { %13917 = vmatprep.subr.bf16.mxu1 %v21815_v20  ;;  %15957 = vmatpush1.bf16.msra.mxu0 %v21846_v47  ;;  %v21885_v20 = vld [vmem:[#allocation10 + $0x730] ss:$8 sps:$4 sm:$0xff]   ;;  %v21890_v47 = vld [vmem:[#allocation10 + $0x744] ss:$8 sps:$4 sm:$0xff]  }
 0x8ca   :  { %15958 = vmatprep.subr.bf16.mxu0 %v21851_v1  ;;  %v21888_v1 = vld [vmem:[#allocation10 + $0x740] ss:$8 sps:$4 sm:$0xff]  }
 0x8cc   :  { %13918 = vmatpush1.bf16.msra.mxu1 %v21813_v39  ;;  %v21893_v39 = vld [vmem:[#allocation10 + $0x754] ss:$8 sps:$4 sm:$0xff]  }
 0x8cd   :  { %13919 = vmatprep.subr.bf16.mxu1 %v21818_v12  ;;  %15959 = vmatpush1.bf16.msra.mxu0 %v21849_v51  ;;  %v21891_v12 = vld [vmem:[#allocation10 + $0x750] ss:$8 sps:$4 sm:$0xff]   ;;  %v21896_v51 = vld [vmem:[#allocation10 + $0x764] ss:$8 sps:$4 sm:$0xff]  }
 0x8ce   :  { %15960 = vmatprep.subr.bf16.mxu0 %v21854_v32  ;;  %v21894_v32 = vld [vmem:[#allocation10 + $0x760] ss:$8 sps:$4 sm:$0xff]  }
 0x8d0   :  { %13920 = vmatpush1.bf16.msra.mxu1 %v21816_v45  ;;  %v21899_v45 = vld [vmem:[#allocation10 + $0x774] ss:$8 sps:$4 sm:$0xff]  }
 0x8d1   :  { %13921 = vmatprep.subr.bf16.mxu1 %v21821_v61  ;;  %15961 = vmatpush1.bf16.msra.mxu0 %v21852_v18  ;;  %v21897_v61 = vld [vmem:[#allocation10 + $0x770] ss:$8 sps:$4 sm:$0xff]   ;;  %v14230_v18 = vmax.f32 %v22606_v17, 0.0 }
 0x8d2   :  { %15962 = vmatprep.subr.bf16.mxu0 %v21857_v11  ;;  %v21915_v17 = vld [vmem:[%s22699_s7 + $0x38] sm:$0xff]  }
 0x8d3   :  { %v14245_v11 = vpack.c.bf16 %v14230_v18, %v14230_v18 }
 0x8d4   :  { %13922 = vmatpush1.bf16.msra.mxu1 %v21819_v33  ;;  %v21912_v33 = vld [vmem:[%s22699_s7 + $0x70] sm:$0xff]  }
 0x8d5   :  { %13923 = vmatprep.subr.bf16.mxu1 %v21824_v13  ;;  %15963 = vmatpush1.bf16.msra.mxu0 %v21855_v21  ;;  %v21913_v13 = vld [vmem:[%s22699_s7 + $0x30] sm:$0xff]   ;;  %v21914_v21 = vld [vmem:[%s22699_s7 + $0x78] sm:$0xff]  }
 0x8d6   :  { %15964 = vmatprep.subr.bf16.mxu0 %v21860_v22  ;;  %v22121_v22 = vmov 0.0  }
 0x8d8   :  { %13924 = vmatpush1.bf16.msra.mxu1 %v21822_v35  ;;  %v14486_v35 = vld [vmem:[#allocation12] sm:$0x3] }
 0x8d9   :  { %13925 = vmatprep.subr.bf16.mxu1 %v21827_v37  ;;  %15965 = vmatpush1.bf16.msra.mxu0 %v21858_v9  ;;  %v14491_v37 = vrot.slane %v14486_v35, %v22322_v0  ;;  %v14495_v9 = vrot.slane %v14486_v35, %v22327_v2  ;;  %v18400_v2 = vld [vmem:[#allocation13] ss:$0 sm:$0xff] }
 0x8da   :  { %15966 = vmatprep.subr.bf16.mxu0 %v21863_v38 }
 0x8dc   :  { %13926 = vmatpush1.bf16.msra.mxu1 %v21825_v34 }
 0x8dd   :  { %15967 = vmatpush1.bf16.msra.mxu0 %v21861_v8  ;;  %18573 = vmatprep.subr.bf16.mxu1 %v21900_v4 }
 0x8de   :  { %15968 = vmatprep.subr.bf16.mxu0 %v21866_v31 }
 0x8df   :  { %13928 = vmatmul.mubr.bf16.vlgmr.msra.gmra.mrb[28].mxu1 %v22445_v62  ;;  %v21901_v62 = vld [vmem:[%s22699_s7] sm:$0xff]  }
 0x8e0   :  { %18574 = vmatpush3.bf16.msra.mxu1 %v21901_v62 }
 0x8e1   :  { %15969 = vmatpush1.bf16.msra.mxu0 %v21864_v40  ;;  %18575 = vmatprep.subr.bf16.mxu1 %v21902_v55 }
 0x8e2   :  { %15970 = vmatprep.subr.bf16.mxu0 %v21869_v46 }
 0x8e4   :  { %18576 = vmatpush3.bf16.msra.mxu1 %v21903_v57 }
 0x8e5   :  { %15971 = vmatpush1.bf16.msra.mxu0 %v21867_v27  ;;  %18577 = vmatprep.subr.bf16.mxu1 %v21904_v30 }
 0x8e6   :  { %15972 = vmatprep.subr.bf16.mxu0 %v21872_v28 }
 0x8e8   :  { %18578 = vmatpush3.bf16.msra.mxu1 %v21905_v56 }
 0x8e9   :  { %15973 = vmatpush1.bf16.msra.mxu0 %v21870_v48  ;;  %18579 = vmatprep.subr.bf16.mxu1 %v21906_v7 }
 0x8ea   :  { %15974 = vmatprep.subr.bf16.mxu0 %v21875_v49 }
 0x8ec   :  { %18580 = vmatpush3.bf16.msra.mxu1 %v21907_v58 }
 0x8ed   :  { %15975 = vmatpush1.bf16.msra.mxu0 %v21873_v50  ;;  %18581 = vmatprep.subr.bf16.mxu1 %v21908_v60  ;;  %v16206_v50 = vld [vmem:[%s22701_s9] sm:$0x1f] }
 0x8ee   :  { %15985 = vmatprep.subr.bf16.mxu0 %v21878_v53 }
 0x8f0   :  { %18582 = vmatpush3.bf16.msra.mxu1 %v21909_v54 }
 0x8f1   :  { %18583 = vmatprep.subr.bf16.mxu1 %v21910_v36 }
 0x8f4   :  { %18584 = vmatpush3.bf16.msra.mxu1 %v21911_v59 }
 0x8f5   :  { %18585 = vmatprep.subr.bf16.mxu1 %v21912_v33 }
 0x8f8   :  { %18586 = vmatpush3.bf16.msra.mxu1 %v21913_v13 }
 0x8f9   :  { %18587 = vmatprep.subr.bf16.mxu1 %v21914_v21 }
 0x8fc   :  { %18588 = vmatpush3.bf16.msra.mxu1 %v21915_v17 }
 0x8fd   :  { %18597 = vmatprep.subr.mxu1 %v22121_v22 }
 0x9b2   :  { %v13929_v25 = vpop.f32.mrb[28].mxu1 }
 0x9b3   :  { %v18616_v24 = vadd.f32 %v13929_v25, %v3391_v3  ;;  %v13931_v41 = vpop.f32.mrb[29].mxu1 }
 0x9b4   :  { %v18617_v6 = vadd.f32 %v13931_v41, %v3395_v63  ;;  %v13933_v26 = vpop.f32.mrb[30].mxu1 }
 0x9b5   :  { %v14228_v10 = vmax.f32 %v18616_v24, 0.0  ;;  %v13934_v15 = vpop.f32.mrb[31].mxu1 }
 0x9b6   :  { %v14229_v14 = vmax.f32 %v18617_v6, 0.0 }
 0x9b7   :  { %v14243_v23 = vpack.c.bf16 %v14228_v10, %v14228_v10 }
 0x9b8   :  { %v14244_v44 = vpack.c.bf16 %v14229_v14, %v14229_v14 }
 0x9ba   :  { %15976 = vmatprep.mubr.bf16.mxu0 %v14244_v44 }
 0x9bb   :  { %15977 = vmatmul.mubr.bf16.vlgmr.msra.gmra.mrb[56].mxu0 %v14243_v23 }
 0x9bc   :  { %15986 = vmatpush1.bf16.msra.mxu0 %v21876_v19  ;;  %16017 = vmatprep.mubr.bf16.mxu0 %v22120_v42 }
 0x9bd   :  { %15987 = vmatprep.subr.bf16.mxu0 %v21881_v16 }
 0x9c0   :  { %15988 = vmatpush1.bf16.msra.mxu0 %v21879_v5 }
 0x9c1   :  { %15989 = vmatprep.subr.bf16.mxu0 %v21884_v43 }
 0x9c4   :  { %15990 = vmatpush1.bf16.msra.mxu0 %v21882_v29 }
 0x9c5   :  { %15991 = vmatprep.subr.bf16.mxu0 %v21887_v52 }
 0x9c8   :  { %15992 = vmatpush1.bf16.msra.mxu0 %v21885_v20 }
 0x9c9   :  { %15993 = vmatprep.subr.bf16.mxu0 %v21890_v47 }
 0x9cc   :  { %15994 = vmatpush1.bf16.msra.mxu0 %v21888_v1 }
 0x9cd   :  { %15995 = vmatprep.subr.bf16.mxu0 %v21893_v39 }
 0x9d0   :  { %15996 = vmatpush1.bf16.msra.mxu0 %v21891_v12 }
 0x9d1   :  { %15997 = vmatprep.subr.bf16.mxu0 %v21896_v51 }
 0x9d4   :  { %15998 = vmatpush1.bf16.msra.mxu0 %v21894_v32 }
 0x9d5   :  { %15999 = vmatprep.subr.bf16.mxu0 %v21899_v45 }
 0x9d8   :  { %16000 = vmatpush1.bf16.msra.mxu0 %v21897_v61 }
 0x9db   :  { %16018 = vmatmul.mubr.bf16.vlgmr.msra.gmra.mrb[56].mxu0 %v14245_v11 }
 0xaae   :  { %v16019_v38 = vpop.f32.mrb[56].mxu0 }
 0xaaf   :  { %v18618_v34 = vadd.f32 %v16019_v38, %v14491_v37  ;;  %v16021_v8 = vpop.f32.mrb[57].mxu0 }
 0xab0   :  { %v18619_v31 = vadd.f32 %v16021_v8, %v14495_v9  ;;  %v16023_v40 = vpop.f32.mrb[58].mxu0 }
 0xab1   :  { %v16026_v46 = vmax.f32 %v18618_v34, 0.0  ;;  %v16024_v27 = vpop.f32.mrb[59].mxu0 }
 0xab2   :  { %v16027_v28 = vmax.f32 %v18619_v31, 0.0 }
 0xab3   :  { %v16028_v49 = vpack.c.bf16 %v16026_v46, %v16026_v46 }
 0xab4   :  { %v16029_v48 = vpack.c.bf16 %v16027_v28, %v16027_v28 }
 0xab6   :  { %16197 = vmatprep.mubr.bf16.mxu1 %v16029_v48 }
 0xab7   :  { %16198 = vmatmul.mubr.bf16.vlgmr.msra.gmra.mrb[32].mxu1 %v16028_v49 }
 0xab8   :  { %18598 = vmatpush3.msk.msra.mxu1 %vm16211_vm2, %v16206_v50  ;;  %18599 = vmatprep.mubr.msk.f32.mxu1 %vm22122_vm3, %v22121_v22 }
 0xb8a   :  { %v18589_v0 = vpop.f32.mrb[32].mxu1 }
 0xb8b   :  { %v18590_v53 = vpop.f32.mrb[33].mxu1 }
 0xb8c   :  { %v18591_v4 = vadd.f32 %v18590_v53, %v18589_v0  ;;  %v18592_v62 = vpop.f32.mrb[34].mxu1 }
 0xb8d   :  { %v18593_v55 = vpop.f32.mrb[35].mxu1 }
 0xb8e   :  { %v16200_v57 = vadd.f32 %v18591_v4, %v18400_v2 }
 0xb90   :  { %v16205_v30 = vmax.f32 %v16200_v57, 0.0 }
 0xb92   :  { %18600 = vmatmul.mubr.msk.f32.vlgmr.msra.gmra.mrb[36].mxu1 %vm16207_vm4, %v16205_v30 }
 0xc65   :  { %v16281_v56 = vpop.f32.mrb[36].mxu1 }
 0xc66   :  { %16286 = vst.msk [vmem:[%s22702_s10] sm:$0xff] %vm16285_vm5, %v16281_v56  ;;  %v18601_v7 = vpop.f32.mrb[37].mxu1 }
 0xc67   :  { %16291 = vsyncpa [#allocation3], 1 }
 0xc68   :  { %16292 = vsyncpa [#allocation5], 1 }
 0xc69   :  { %16293 = vsyncpa [#allocation8], 1 }
 0xc6a   :  { %16294 = vsyncpa [#allocation11], 1 }
 0xc6b   :  { %16295 = vsyncpa [#allocation14], 1 }

</bundles_post_ra>
